<compile_context>
chip_gen: v7x
topology: tpu7x:2x2x1
jax: 0.10.0
libtpu: 0.0.40
codegen_flags: <defaults>
</compile_context>

<pallas_src>
import functools

import jax
import jax.numpy as jnp
from jax.experimental import pallas as pl
from jax.experimental.pallas import tpu as pltpu

INPUT_SIZE = 4
HIDDEN = 128
OUTPUT = 2
NUM_LAYERS = 4
HEAD_PAD = 128  # lane-dense dense-head width (sliced back to OUTPUT in the wrapper)


def _lstm_kernel(gx0_ref, wih_ref, whh_ref, b_ref, wd_ref, bd_ref, out_ref,
                 seq_ref, gx_ref, *, T, B):
    # gx0_ref: (T*B, 4H) f32    layer-0 gates_x = x @ W_ih0 + b0 (precomputed in wrapper)
    # wih_ref: (L-1, H, 4H) bf16  input->gates weights for layers 1..L-1 (transposed)
    # whh_ref: (L, H, 4H) bf16    hidden->gates weights (transposed)
    # b_ref:   (L-1, 1, 4H) f32   b_ih + b_hh for layers 1..L-1
    # wd_ref:  (H, HEAD_PAD) f32  dense weight, zero-padded to 128 lanes
    # bd_ref:  (1, HEAD_PAD) f32  dense bias, zero-padded
    # out_ref: (B, HEAD_PAD) f32  lane-dense output (sliced to OUTPUT outside)
    # seq_ref: (T*B, H) bf16      single in-place per-layer sequence buffer
    # gx_ref:  (T*B, 4H) f32      hoisted gate projections for the current layer
    H = whh_ref.shape[1]
    L = whh_ref.shape[0]

    h = None  # loop-carried SSA values, never round-tripped through VMEM
    c = None

    for l in range(L):                        # static unroll over layers
        last = l == L - 1
        whh_l = whh_ref[l]                    # (H, 4H) bf16, loop-invariant across all T steps

        if l == 0:
            gx = gx0_ref                      # bias already folded in by the wrapper
        else:
            # Hoisted input projection for the whole layer: ONE batched matmul
            # (T*B, H) bf16 @ (H, 4H) bf16 -> f32, off the recurrent critical path.
            gx_ref[...] = (
                jnp.dot(seq_ref[...], wih_ref[l - 1],
                        preferred_element_type=jnp.float32)
                + b_ref[l - 1])
            gx = gx_ref

        for t in range(T):                    # fully unrolled time loop (T is small & static)
            gates = gx[t * B:(t + 1) * B, :]  # (B, 4H) f32, aligned unmasked load
            if t > 0:
                # only h @ W_hh remains on the serial chain (bf16 operands, f32 MXU acc)
                gates = gates + jnp.dot(
                    h.astype(jnp.bfloat16), whh_l,
                    preferred_element_type=jnp.float32)
            i_g = jax.nn.sigmoid(gates[:, 0 * H:1 * H])
            g_g = jnp.tanh(gates[:, 2 * H:3 * H])
            o_g = jax.nn.sigmoid(gates[:, 3 * H:4 * H])
            if t > 0:
                f_g = jax.nn.sigmoid(gates[:, 1 * H:2 * H])
                c = f_g * c + i_g * g_g
            else:
                c = i_g * g_g                 # h0 = c0 = 0: skip f*c and h@W_hh at t == 0
            h = o_g * jnp.tanh(c)
            if not last:                      # top layer never stores the sequence
                seq_ref[t * B:(t + 1) * B, :] = h.astype(jnp.bfloat16)

    # dense head on lstm_out[:, -1, :] == final h of the top layer (runs once; lane-dense store)
    out_ref[...] = (jnp.dot(h, wd_ref[...],
                            preferred_element_type=jnp.float32) + bd_ref[...])


@jax.jit
def eyetrack_point_forward(x, wih, whh, b, wd, bd):
    """x: (B, T, INPUT_SIZE) f32  ->  (B, OUTPUT) f32"""
    B, T, I = x.shape
    B_pad = max(8, ((B + 7) // 8) * 8)        # sublane-align the batch

    x_p = x if B_pad == B else jnp.concatenate(
        [x, jnp.zeros((B_pad - B, T, I), x.dtype)], axis=0)

    # Layer-0 input projection + bias, hoisted out of the kernel entirely:
    # (T*B, 4) x (4, 4H) -- no zero-padding of x to 128 lanes, no transpose of a big array.
    gx0 = jnp.einsum('bti,ig->tbg', x_p, wih[0, :I, :]) + b[0]       # (T, B_pad, 4H)
    gx0 = gx0.reshape(T * B_pad, 4 * HIDDEN).astype(jnp.float32)

    wih_rest = wih[1:].astype(jnp.bfloat16)   # (L-1, H, 4H)
    whh_bf16 = whh.astype(jnp.bfloat16)       # (L,   H, 4H)
    b_rest = b[1:]                            # (L-1, 1, 4H)

    # Lane-dense dense head: zero-pad (H, O)/(1, O) to 128 output lanes.
    wd_pad = jnp.zeros((HIDDEN, HEAD_PAD), jnp.float32).at[:, :OUTPUT].set(wd)
    bd_pad = jnp.zeros((1, HEAD_PAD), jnp.float32).at[:, :OUTPUT].set(bd)

    kernel = functools.partial(_lstm_kernel, T=T, B=B_pad)
    out = pl.pallas_call(
        kernel,
        out_shape=jax.ShapeDtypeStruct((B_pad, HEAD_PAD), jnp.float32),
        in_specs=[pl.BlockSpec(memory_space=pltpu.MemorySpace.VMEM)] * 6,
        out_specs=pl.BlockSpec(memory_space=pltpu.MemorySpace.VMEM),
        scratch_shapes=[
            pltpu.VMEM((T * B_pad, HIDDEN), jnp.bfloat16),      # seq (single, in-place, bf16)
            pltpu.VMEM((T * B_pad, 4 * HIDDEN), jnp.float32),   # hoisted gate projections
        ],
    )(gx0, wih_rest, whh_bf16, b_rest, wd_pad, bd_pad)
    return out[:B, :OUTPUT]


def init_params(key):
    """Deterministic PyTorch-style uniform(-1/sqrt(H), 1/sqrt(H)) init."""
    k = 1.0 / jnp.sqrt(jnp.float32(HIDDEN))
    keys = jax.random.split(key, 4 * NUM_LAYERS + 2)
    wih_list, whh_list, b_list = [], [], []
    for l in range(NUM_LAYERS):
        in_dim = INPUT_SIZE if l == 0 else HIDDEN
        w_ih = jax.random.uniform(keys[4 * l + 0], (4 * HIDDEN, in_dim),
                                  jnp.float32, -k, k)
        # pad layer-0 input dim to HIDDEN (zeros) so all layers share one shape
        if in_dim < HIDDEN:
            w_ih = jnp.pad(w_ih, ((0, 0), (0, HIDDEN - in_dim)))
        w_hh = jax.random.uniform(keys[4 * l + 1], (4 * HIDDEN, HIDDEN),
                                  jnp.float32, -k, k)
        b_ih = jax.random.uniform(keys[4 * l + 2], (4 * HIDDEN,), jnp.float32, -k, k)
        b_hh = jax.random.uniform(keys[4 * l + 3], (4 * HIDDEN,), jnp.float32, -k, k)
        wih_list.append(w_ih.T)                       # (H, 4H)
        whh_list.append(w_hh.T)                       # (H, 4H)
        b_list.append((b_ih + b_hh)[None, :])         # (1, 4H)
    wih = jnp.stack(wih_list, axis=0)                 # (L, H, 4H)
    whh = jnp.stack(whh_list, axis=0)                 # (L, H, 4H)
    b = jnp.stack(b_list, axis=0)                     # (L, 1, 4H)

    kd = 1.0 / jnp.sqrt(jnp.float32(HIDDEN))
    wd = jax.random.uniform(keys[-2], (OUTPUT, HIDDEN), jnp.float32, -kd, kd).T  # (H, O)
    bd = jax.random.uniform(keys[-1], (1, OUTPUT), jnp.float32, -kd, kd)         # (1, O)
    return wih, whh, b, wd, bd


def reference_forward(x, wih, whh, b, wd, bd):
    """Pure-JAX f32 reference of the same math (PyTorch LSTM semantics)."""
    B, T, _ = x.shape
    h_all = jnp.zeros((B, T, HIDDEN), jnp.float32).at[:, :, :INPUT_SIZE].set(x)
    for l in range(NUM_LAYERS):
        h = jnp.zeros((B, HIDDEN), jnp.float32)
        c = jnp.zeros((B, HIDDEN), jnp.float32)
        outs = []
        for t in range(T):
            gates = h_all[:, t] @ wih[l] + h @ whh[l] + b[l]
            i_g = jax.nn.sigmoid(gates[:, 0 * HIDDEN:1 * HIDDEN])
            f_g = jax.nn.sigmoid(gates[:, 1 * HIDDEN:2 * HIDDEN])
            g_g = jnp.tanh(gates[:, 2 * HIDDEN:3 * HIDDEN])
            o_g = jax.nn.sigmoid(gates[:, 3 * HIDDEN:4 * HIDDEN])
            c = f_g * c + i_g * g_g
            h = o_g * jnp.tanh(c)
            outs.append(h)
        h_all = jnp.stack(outs, axis=1)
    return h_all[:, -1] @ wd + bd


if __name__ == "__main__":
    key = jax.random.PRNGKey(0)
    k_x, k_p = jax.random.split(key)

    B, T = 2, 8
    x = jax.random.normal(k_x, (B, T, INPUT_SIZE), jnp.float32)
    params = init_params(k_p)

    out = eyetrack_point_forward(x, *params)
    out = jax.block_until_ready(out)

    ref = reference_forward(x, *params)
    assert out.shape == (B, OUTPUT)
    assert jnp.allclose(out, ref, atol=2e-2, rtol=2e-2), (out, ref)

    print("KERNEL_OK")
</pallas_src>

<mosaic_0001>
module attributes {stable_mosaic.version = 11 : i64} {
  func.func @_lstm_kernel(%arg0: memref<64x512xf32, #tpu.memory_space<vmem>>, %arg1: memref<3x128x512xbf16, #tpu.memory_space<vmem>>, %arg2: memref<4x128x512xbf16, #tpu.memory_space<vmem>>, %arg3: memref<3x1x512xf32, #tpu.memory_space<vmem>>, %arg4: memref<128x128xf32, #tpu.memory_space<vmem>>, %arg5: memref<1x128xf32, #tpu.memory_space<vmem>>, %arg6: memref<8x128xf32, #tpu.memory_space<vmem>>, %arg7: memref<64x128xbf16, #tpu.memory_space<vmem>>, %arg8: memref<64x512xf32, #tpu.memory_space<vmem>>) attributes {dimension_semantics = [], scalar_prefetch = 0 : i64, scratch_operands = 2 : i64, tpu.core_type = #tpu.core_type<tc>} {
    %c0 = arith.constant 0 : index
    %c0_0 = arith.constant 0 : index
    %c0_1 = arith.constant 0 : index
    %0 = vector.load %arg2[%c0, %c0_0, %c0_1] : memref<4x128x512xbf16, #tpu.memory_space<vmem>>, vector<1x128x512xbf16>
    %1 = vector.shape_cast %0 : vector<1x128x512xbf16> to vector<128x512xbf16>
    %c0_2 = arith.constant 0 : index
    %c0_3 = arith.constant 0 : index
    %2 = vector.load %arg0[%c0_2, %c0_3] : memref<64x512xf32, #tpu.memory_space<vmem>>, vector<8x512xf32>
    %3 = vector.extract_strided_slice %2 {offsets = [0, 0], sizes = [8, 128], strides = [1, 1]} : vector<8x512xf32> to vector<8x128xf32>
    %4 = arith.negf %3 : vector<8x128xf32>
    %5 = math.exp %4 : vector<8x128xf32>
    %cst = arith.constant 1.000000e+00 : f32
    %6 = vector.broadcast %cst : f32 to vector<8x128xf32>
    %7 = arith.addf %6, %5 : vector<8x128xf32>
    %8 = arith.divf %6, %7 : vector<8x128xf32>
    %9 = vector.extract_strided_slice %2 {offsets = [0, 256], sizes = [8, 128], strides = [1, 1]} : vector<8x512xf32> to vector<8x128xf32>
    %10 = math.tanh %9 : vector<8x128xf32>
    %11 = vector.extract_strided_slice %2 {offsets = [0, 384], sizes = [8, 128], strides = [1, 1]} : vector<8x512xf32> to vector<8x128xf32>
    %12 = arith.negf %11 : vector<8x128xf32>
    %13 = math.exp %12 : vector<8x128xf32>
    %cst_4 = arith.constant 1.000000e+00 : f32
    %14 = vector.broadcast %cst_4 : f32 to vector<8x128xf32>
    %15 = arith.addf %14, %13 : vector<8x128xf32>
    %16 = arith.divf %14, %15 : vector<8x128xf32>
    %17 = arith.mulf %8, %10 : vector<8x128xf32>
    %18 = math.tanh %17 : vector<8x128xf32>
    %19 = arith.mulf %16, %18 : vector<8x128xf32>
    %20 = arith.truncf %19 : vector<8x128xf32> to vector<8x128xbf16>
    %c0_5 = arith.constant 0 : index
    %c0_6 = arith.constant 0 : index
    %21 = vector.load %arg7[%c0_5, %c0_6] : memref<64x128xbf16, #tpu.memory_space<vmem>>, vector<8x128xbf16>
    tpu.vector_store %arg7[%c0_5, %c0_6], %20 {strides = array<i32>} : memref<64x128xbf16, #tpu.memory_space<vmem>>, vector<8x128xbf16>,
    %c8 = arith.constant 8 : index
    %c0_7 = arith.constant 0 : index
    %22 = vector.load %arg0[%c8, %c0_7] : memref<64x512xf32, #tpu.memory_space<vmem>>, vector<8x512xf32>
    %23 = arith.truncf %19 : vector<8x128xf32> to vector<8x128xbf16>
    %cst_8 = arith.constant dense<0.000000e+00> : vector<8x512xf32>
    %24 = tpu.matmul %23, %1, %cst_8 {dimension_numbers = #tpu.dot_dimension_numbers<[1], [0], [0], [1], [0, 0, 1, 1], [], []>} : vector<8x128xbf16>, vector<128x512xbf16>, vector<8x512xf32> -> vector<8x512xf32>
    %25 = arith.addf %22, %24 : vector<8x512xf32>
    %26 = vector.extract_strided_slice %25 {offsets = [0, 0], sizes = [8, 128], strides = [1, 1]} : vector<8x512xf32> to vector<8x128xf32>
    %27 = arith.negf %26 : vector<8x128xf32>
    %28 = math.exp %27 : vector<8x128xf32>
    %cst_9 = arith.constant 1.000000e+00 : f32
    %29 = vector.broadcast %cst_9 : f32 to vector<8x128xf32>
    %30 = arith.addf %29, %28 : vector<8x128xf32>
    %31 = arith.divf %29, %30 : vector<8x128xf32>
    %32 = vector.extract_strided_slice %25 {offsets = [0, 256], sizes = [8, 128], strides = [1, 1]} : vector<8x512xf32> to vector<8x128xf32>
    %33 = math.tanh %32 : vector<8x128xf32>
    %34 = vector.extract_strided_slice %25 {offsets = [0, 384], sizes = [8, 128], strides = [1, 1]} : vector<8x512xf32> to vector<8x128xf32>
    %35 = arith.negf %34 : vector<8x128xf32>
    %36 = math.exp %35 : vector<8x128xf32>
    %cst_10 = arith.constant 1.000000e+00 : f32
    %37 = vector.broadcast %cst_10 : f32 to vector<8x128xf32>
    %38 = arith.addf %37, %36 : vector<8x128xf32>
    %39 = arith.divf %37, %38 : vector<8x128xf32>
    %40 = vector.extract_strided_slice %25 {offsets = [0, 128], sizes = [8, 128], strides = [1, 1]} : vector<8x512xf32> to vector<8x128xf32>
    %41 = arith.negf %40 : vector<8x128xf32>
    %42 = math.exp %41 : vector<8x128xf32>
    %cst_11 = arith.constant 1.000000e+00 : f32
    %43 = vector.broadcast %cst_11 : f32 to vector<8x128xf32>
    %44 = arith.addf %43, %42 : vector<8x128xf32>
    %45 = arith.divf %43, %44 : vector<8x128xf32>
    %46 = arith.mulf %45, %17 : vector<8x128xf32>
    %47 = arith.mulf %31, %33 : vector<8x128xf32>
    %48 = arith.addf %46, %47 : vector<8x128xf32>
    %49 = math.tanh %48 : vector<8x128xf32>
    %50 = arith.mulf %39, %49 : vector<8x128xf32>
    %51 = arith.truncf %50 : vector<8x128xf32> to vector<8x128xbf16>
    %c8_12 = arith.constant 8 : index
    %c0_13 = arith.constant 0 : index
    %52 = vector.load %arg7[%c8_12, %c0_13] : memref<64x128xbf16, #tpu.memory_space<vmem>>, vector<8x128xbf16>
    tpu.vector_store %arg7[%c8_12, %c0_13], %51 {strides = array<i32>} : memref<64x128xbf16, #tpu.memory_space<vmem>>, vector<8x128xbf16>,
    %c16 = arith.constant 16 : index
    %c0_14 = arith.constant 0 : index
    %53 = vector.load %arg0[%c16, %c0_14] : memref<64x512xf32, #tpu.memory_space<vmem>>, vector<8x512xf32>
    %54 = arith.truncf %50 : vector<8x128xf32> to vector<8x128xbf16>
    %cst_15 = arith.constant dense<0.000000e+00> : vector<8x512xf32>
    %55 = tpu.matmul %54, %1, %cst_15 {dimension_numbers = #tpu.dot_dimension_numbers<[1], [0], [0], [1], [0, 0, 1, 1], [], []>} : vector<8x128xbf16>, vector<128x512xbf16>, vector<8x512xf32> -> vector<8x512xf32>
    %56 = arith.addf %53, %55 : vector<8x512xf32>
    %57 = vector.extract_strided_slice %56 {offsets = [0, 0], sizes = [8, 128], strides = [1, 1]} : vector<8x512xf32> to vector<8x128xf32>
    %58 = arith.negf %57 : vector<8x128xf32>
    %59 = math.exp %58 : vector<8x128xf32>
    %cst_16 = arith.constant 1.000000e+00 : f32
    %60 = vector.broadcast %cst_16 : f32 to vector<8x128xf32>
    %61 = arith.addf %60, %59 : vector<8x128xf32>
    %62 = arith.divf %60, %61 : vector<8x128xf32>
    %63 = vector.extract_strided_slice %56 {offsets = [0, 256], sizes = [8, 128], strides = [1, 1]} : vector<8x512xf32> to vector<8x128xf32>
    %64 = math.tanh %63 : vector<8x128xf32>
    %65 = vector.extract_strided_slice %56 {offsets = [0, 384], sizes = [8, 128], strides = [1, 1]} : vector<8x512xf32> to vector<8x128xf32>
    %66 = arith.negf %65 : vector<8x128xf32>
    %67 = math.exp %66 : vector<8x128xf32>
    %cst_17 = arith.constant 1.000000e+00 : f32
    %68 = vector.broadcast %cst_17 : f32 to vector<8x128xf32>
    %69 = arith.addf %68, %67 : vector<8x128xf32>
    %70 = arith.divf %68, %69 : vector<8x128xf32>
    %71 = vector.extract_strided_slice %56 {offsets = [0, 128], sizes = [8, 128], strides = [1, 1]} : vector<8x512xf32> to vector<8x128xf32>
    %72 = arith.negf %71 : vector<8x128xf32>
    %73 = math.exp %72 : vector<8x128xf32>
    %cst_18 = arith.constant 1.000000e+00 : f32
    %74 = vector.broadcast %cst_18 : f32 to vector<8x128xf32>
    %75 = arith.addf %74, %73 : vector<8x128xf32>
    %76 = arith.divf %74, %75 : vector<8x128xf32>
    %77 = arith.mulf %76, %48 : vector<8x128xf32>
    %78 = arith.mulf %62, %64 : vector<8x128xf32>
    %79 = arith.addf %77, %78 : vector<8x128xf32>
    %80 = math.tanh %79 : vector<8x128xf32>
    %81 = arith.mulf %70, %80 : vector<8x128xf32>
    %82 = arith.truncf %81 : vector<8x128xf32> to vector<8x128xbf16>
    %c16_19 = arith.constant 16 : index
    %c0_20 = arith.constant 0 : index
    %83 = vector.load %arg7[%c16_19, %c0_20] : memref<64x128xbf16, #tpu.memory_space<vmem>>, vector<8x128xbf16>
    tpu.vector_store %arg7[%c16_19, %c0_20], %82 {strides = array<i32>} : memref<64x128xbf16, #tpu.memory_space<vmem>>, vector<8x128xbf16>,
    %c24 = arith.constant 24 : index
    %c0_21 = arith.constant 0 : index
    %84 = vector.load %arg0[%c24, %c0_21] : memref<64x512xf32, #tpu.memory_space<vmem>>, vector<8x512xf32>
    %85 = arith.truncf %81 : vector<8x128xf32> to vector<8x128xbf16>
    %cst_22 = arith.constant dense<0.000000e+00> : vector<8x512xf32>
    %86 = tpu.matmul %85, %1, %cst_22 {dimension_numbers = #tpu.dot_dimension_numbers<[1], [0], [0], [1], [0, 0, 1, 1], [], []>} : vector<8x128xbf16>, vector<128x512xbf16>, vector<8x512xf32> -> vector<8x512xf32>
    %87 = arith.addf %84, %86 : vector<8x512xf32>
    %88 = vector.extract_strided_slice %87 {offsets = [0, 0], sizes = [8, 128], strides = [1, 1]} : vector<8x512xf32> to vector<8x128xf32>
    %89 = arith.negf %88 : vector<8x128xf32>
    %90 = math.exp %89 : vector<8x128xf32>
    %cst_23 = arith.constant 1.000000e+00 : f32
    %91 = vector.broadcast %cst_23 : f32 to vector<8x128xf32>
    %92 = arith.addf %91, %90 : vector<8x128xf32>
    %93 = arith.divf %91, %92 : vector<8x128xf32>
    %94 = vector.extract_strided_slice %87 {offsets = [0, 256], sizes = [8, 128], strides = [1, 1]} : vector<8x512xf32> to vector<8x128xf32>
    %95 = math.tanh %94 : vector<8x128xf32>
    %96 = vector.extract_strided_slice %87 {offsets = [0, 384], sizes = [8, 128], strides = [1, 1]} : vector<8x512xf32> to vector<8x128xf32>
    %97 = arith.negf %96 : vector<8x128xf32>
    %98 = math.exp %97 : vector<8x128xf32>
    %cst_24 = arith.constant 1.000000e+00 : f32
    %99 = vector.broadcast %cst_24 : f32 to vector<8x128xf32>
    %100 = arith.addf %99, %98 : vector<8x128xf32>
    %101 = arith.divf %99, %100 : vector<8x128xf32>
    %102 = vector.extract_strided_slice %87 {offsets = [0, 128], sizes = [8, 128], strides = [1, 1]} : vector<8x512xf32> to vector<8x128xf32>
    %103 = arith.negf %102 : vector<8x128xf32>
    %104 = math.exp %103 : vector<8x128xf32>
    %cst_25 = arith.constant 1.000000e+00 : f32
    %105 = vector.broadcast %cst_25 : f32 to vector<8x128xf32>
    %106 = arith.addf %105, %104 : vector<8x128xf32>
    %107 = arith.divf %105, %106 : vector<8x128xf32>
    %108 = arith.mulf %107, %79 : vector<8x128xf32>
    %109 = arith.mulf %93, %95 : vector<8x128xf32>
    %110 = arith.addf %108, %109 : vector<8x128xf32>
    %111 = math.tanh %110 : vector<8x128xf32>
    %112 = arith.mulf %101, %111 : vector<8x128xf32>
    %113 = arith.truncf %112 : vector<8x128xf32> to vector<8x128xbf16>
    %c24_26 = arith.constant 24 : index
    %c0_27 = arith.constant 0 : index
    %114 = vector.load %arg7[%c24_26, %c0_27] : memref<64x128xbf16, #tpu.memory_space<vmem>>, vector<8x128xbf16>
    tpu.vector_store %arg7[%c24_26, %c0_27], %113 {strides = array<i32>} : memref<64x128xbf16, #tpu.memory_space<vmem>>, vector<8x128xbf16>,
    %c32 = arith.constant 32 : index
    %c0_28 = arith.constant 0 : index
    %115 = vector.load %arg0[%c32, %c0_28] : memref<64x512xf32, #tpu.memory_space<vmem>>, vector<8x512xf32>
    %116 = arith.truncf %112 : vector<8x128xf32> to vector<8x128xbf16>
    %cst_29 = arith.constant dense<0.000000e+00> : vector<8x512xf32>
    %117 = tpu.matmul %116, %1, %cst_29 {dimension_numbers = #tpu.dot_dimension_numbers<[1], [0], [0], [1], [0, 0, 1, 1], [], []>} : vector<8x128xbf16>, vector<128x512xbf16>, vector<8x512xf32> -> vector<8x512xf32>
    %118 = arith.addf %115, %117 : vector<8x512xf32>
    %119 = vector.extract_strided_slice %118 {offsets = [0, 0], sizes = [8, 128], strides = [1, 1]} : vector<8x512xf32> to vector<8x128xf32>
    %120 = arith.negf %119 : vector<8x128xf32>
    %121 = math.exp %120 : vector<8x128xf32>
    %cst_30 = arith.constant 1.000000e+00 : f32
    %122 = vector.broadcast %cst_30 : f32 to vector<8x128xf32>
    %123 = arith.addf %122, %121 : vector<8x128xf32>
    %124 = arith.divf %122, %123 : vector<8x128xf32>
    %125 = vector.extract_strided_slice %118 {offsets = [0, 256], sizes = [8, 128], strides = [1, 1]} : vector<8x512xf32> to vector<8x128xf32>
    %126 = math.tanh %125 : vector<8x128xf32>
    %127 = vector.extract_strided_slice %118 {offsets = [0, 384], sizes = [8, 128], strides = [1, 1]} : vector<8x512xf32> to vector<8x128xf32>
    %128 = arith.negf %127 : vector<8x128xf32>
    %129 = math.exp %128 : vector<8x128xf32>
    %cst_31 = arith.constant 1.000000e+00 : f32
    %130 = vector.broadcast %cst_31 : f32 to vector<8x128xf32>
    %131 = arith.addf %130, %129 : vector<8x128xf32>
    %132 = arith.divf %130, %131 : vector<8x128xf32>
    %133 = vector.extract_strided_slice %118 {offsets = [0, 128], sizes = [8, 128], strides = [1, 1]} : vector<8x512xf32> to vector<8x128xf32>
    %134 = arith.negf %133 : vector<8x128xf32>
    %135 = math.exp %134 : vector<8x128xf32>
    %cst_32 = arith.constant 1.000000e+00 : f32
    %136 = vector.broadcast %cst_32 : f32 to vector<8x128xf32>
    %137 = arith.addf %136, %135 : vector<8x128xf32>
    %138 = arith.divf %136, %137 : vector<8x128xf32>
    %139 = arith.mulf %138, %110 : vector<8x128xf32>
    %140 = arith.mulf %124, %126 : vector<8x128xf32>
    %141 = arith.addf %139, %140 : vector<8x128xf32>
    %142 = math.tanh %141 : vector<8x128xf32>
    %143 = arith.mulf %132, %142 : vector<8x128xf32>
    %144 = arith.truncf %143 : vector<8x128xf32> to vector<8x128xbf16>
    %c32_33 = arith.constant 32 : index
    %c0_34 = arith.constant 0 : index
    %145 = vector.load %arg7[%c32_33, %c0_34] : memref<64x128xbf16, #tpu.memory_space<vmem>>, vector<8x128xbf16>
    tpu.vector_store %arg7[%c32_33, %c0_34], %144 {strides = array<i32>} : memref<64x128xbf16, #tpu.memory_space<vmem>>, vector<8x128xbf16>,
    %c40 = arith.constant 40 : index
    %c0_35 = arith.constant 0 : index
    %146 = vector.load %arg0[%c40, %c0_35] : memref<64x512xf32, #tpu.memory_space<vmem>>, vector<8x512xf32>
    %147 = arith.truncf %143 : vector<8x128xf32> to vector<8x128xbf16>
    %cst_36 = arith.constant dense<0.000000e+00> : vector<8x512xf32>
    %148 = tpu.matmul %147, %1, %cst_36 {dimension_numbers = #tpu.dot_dimension_numbers<[1], [0], [0], [1], [0, 0, 1, 1], [], []>} : vector<8x128xbf16>, vector<128x512xbf16>, vector<8x512xf32> -> vector<8x512xf32>
    %149 = arith.addf %146, %148 : vector<8x512xf32>
    %150 = vector.extract_strided_slice %149 {offsets = [0, 0], sizes = [8, 128], strides = [1, 1]} : vector<8x512xf32> to vector<8x128xf32>
    %151 = arith.negf %150 : vector<8x128xf32>
    %152 = math.exp %151 : vector<8x128xf32>
    %cst_37 = arith.constant 1.000000e+00 : f32
    %153 = vector.broadcast %cst_37 : f32 to vector<8x128xf32>
    %154 = arith.addf %153, %152 : vector<8x128xf32>
    %155 = arith.divf %153, %154 : vector<8x128xf32>
    %156 = vector.extract_strided_slice %149 {offsets = [0, 256], sizes = [8, 128], strides = [1, 1]} : vector<8x512xf32> to vector<8x128xf32>
    %157 = math.tanh %156 : vector<8x128xf32>
    %158 = vector.extract_strided_slice %149 {offsets = [0, 384], sizes = [8, 128], strides = [1, 1]} : vector<8x512xf32> to vector<8x128xf32>
    %159 = arith.negf %158 : vector<8x128xf32>
    %160 = math.exp %159 : vector<8x128xf32>
    %cst_38 = arith.constant 1.000000e+00 : f32
    %161 = vector.broadcast %cst_38 : f32 to vector<8x128xf32>
    %162 = arith.addf %161, %160 : vector<8x128xf32>
    %163 = arith.divf %161, %162 : vector<8x128xf32>
    %164 = vector.extract_strided_slice %149 {offsets = [0, 128], sizes = [8, 128], strides = [1, 1]} : vector<8x512xf32> to vector<8x128xf32>
    %165 = arith.negf %164 : vector<8x128xf32>
    %166 = math.exp %165 : vector<8x128xf32>
    %cst_39 = arith.constant 1.000000e+00 : f32
    %167 = vector.broadcast %cst_39 : f32 to vector<8x128xf32>
    %168 = arith.addf %167, %166 : vector<8x128xf32>
    %169 = arith.divf %167, %168 : vector<8x128xf32>
    %170 = arith.mulf %169, %141 : vector<8x128xf32>
    %171 = arith.mulf %155, %157 : vector<8x128xf32>
    %172 = arith.addf %170, %171 : vector<8x128xf32>
    %173 = math.tanh %172 : vector<8x128xf32>
    %174 = arith.mulf %163, %173 : vector<8x128xf32>
    %175 = arith.truncf %174 : vector<8x128xf32> to vector<8x128xbf16>
    %c40_40 = arith.constant 40 : index
    %c0_41 = arith.constant 0 : index
    %176 = vector.load %arg7[%c40_40, %c0_41] : memref<64x128xbf16, #tpu.memory_space<vmem>>, vector<8x128xbf16>
    tpu.vector_store %arg7[%c40_40, %c0_41], %175 {strides = array<i32>} : memref<64x128xbf16, #tpu.memory_space<vmem>>, vector<8x128xbf16>,
    %c48 = arith.constant 48 : index
    %c0_42 = arith.constant 0 : index
    %177 = vector.load %arg0[%c48, %c0_42] : memref<64x512xf32, #tpu.memory_space<vmem>>, vector<8x512xf32>
    %178 = arith.truncf %174 : vector<8x128xf32> to vector<8x128xbf16>
    %cst_43 = arith.constant dense<0.000000e+00> : vector<8x512xf32>
    %179 = tpu.matmul %178, %1, %cst_43 {dimension_numbers = #tpu.dot_dimension_numbers<[1], [0], [0], [1], [0, 0, 1, 1], [], []>} : vector<8x128xbf16>, vector<128x512xbf16>, vector<8x512xf32> -> vector<8x512xf32>
    %180 = arith.addf %177, %179 : vector<8x512xf32>
    %181 = vector.extract_strided_slice %180 {offsets = [0, 0], sizes = [8, 128], strides = [1, 1]} : vector<8x512xf32> to vector<8x128xf32>
    %182 = arith.negf %181 : vector<8x128xf32>
    %183 = math.exp %182 : vector<8x128xf32>
    %cst_44 = arith.constant 1.000000e+00 : f32
    %184 = vector.broadcast %cst_44 : f32 to vector<8x128xf32>
    %185 = arith.addf %184, %183 : vector<8x128xf32>
    %186 = arith.divf %184, %185 : vector<8x128xf32>
    %187 = vector.extract_strided_slice %180 {offsets = [0, 256], sizes = [8, 128], strides = [1, 1]} : vector<8x512xf32> to vector<8x128xf32>
    %188 = math.tanh %187 : vector<8x128xf32>
    %189 = vector.extract_strided_slice %180 {offsets = [0, 384], sizes = [8, 128], strides = [1, 1]} : vector<8x512xf32> to vector<8x128xf32>
    %190 = arith.negf %189 : vector<8x128xf32>
    %191 = math.exp %190 : vector<8x128xf32>
    %cst_45 = arith.constant 1.000000e+00 : f32
    %192 = vector.broadcast %cst_45 : f32 to vector<8x128xf32>
    %193 = arith.addf %192, %191 : vector<8x128xf32>
    %194 = arith.divf %192, %193 : vector<8x128xf32>
    %195 = vector.extract_strided_slice %180 {offsets = [0, 128], sizes = [8, 128], strides = [1, 1]} : vector<8x512xf32> to vector<8x128xf32>
    %196 = arith.negf %195 : vector<8x128xf32>
    %197 = math.exp %196 : vector<8x128xf32>
    %cst_46 = arith.constant 1.000000e+00 : f32
    %198 = vector.broadcast %cst_46 : f32 to vector<8x128xf32>
    %199 = arith.addf %198, %197 : vector<8x128xf32>
    %200 = arith.divf %198, %199 : vector<8x128xf32>
    %201 = arith.mulf %200, %172 : vector<8x128xf32>
    %202 = arith.mulf %186, %188 : vector<8x128xf32>
    %203 = arith.addf %201, %202 : vector<8x128xf32>
    %204 = math.tanh %203 : vector<8x128xf32>
    %205 = arith.mulf %194, %204 : vector<8x128xf32>
    %206 = arith.truncf %205 : vector<8x128xf32> to vector<8x128xbf16>
    %c48_47 = arith.constant 48 : index
    %c0_48 = arith.constant 0 : index
    %207 = vector.load %arg7[%c48_47, %c0_48] : memref<64x128xbf16, #tpu.memory_space<vmem>>, vector<8x128xbf16>
    tpu.vector_store %arg7[%c48_47, %c0_48], %206 {strides = array<i32>} : memref<64x128xbf16, #tpu.memory_space<vmem>>, vector<8x128xbf16>,
    %c56 = arith.constant 56 : index
    %c0_49 = arith.constant 0 : index
    %208 = vector.load %arg0[%c56, %c0_49] : memref<64x512xf32, #tpu.memory_space<vmem>>, vector<8x512xf32>
    %209 = arith.truncf %205 : vector<8x128xf32> to vector<8x128xbf16>
    %cst_50 = arith.constant dense<0.000000e+00> : vector<8x512xf32>
    %210 = tpu.matmul %209, %1, %cst_50 {dimension_numbers = #tpu.dot_dimension_numbers<[1], [0], [0], [1], [0, 0, 1, 1], [], []>} : vector<8x128xbf16>, vector<128x512xbf16>, vector<8x512xf32> -> vector<8x512xf32>
    %211 = arith.addf %208, %210 : vector<8x512xf32>
    %212 = vector.extract_strided_slice %211 {offsets = [0, 0], sizes = [8, 128], strides = [1, 1]} : vector<8x512xf32> to vector<8x128xf32>
    %213 = arith.negf %212 : vector<8x128xf32>
    %214 = math.exp %213 : vector<8x128xf32>
    %cst_51 = arith.constant 1.000000e+00 : f32
    %215 = vector.broadcast %cst_51 : f32 to vector<8x128xf32>
    %216 = arith.addf %215, %214 : vector<8x128xf32>
    %217 = arith.divf %215, %216 : vector<8x128xf32>
    %218 = vector.extract_strided_slice %211 {offsets = [0, 256], sizes = [8, 128], strides = [1, 1]} : vector<8x512xf32> to vector<8x128xf32>
    %219 = math.tanh %218 : vector<8x128xf32>
    %220 = vector.extract_strided_slice %211 {offsets = [0, 384], sizes = [8, 128], strides = [1, 1]} : vector<8x512xf32> to vector<8x128xf32>
    %221 = arith.negf %220 : vector<8x128xf32>
    %222 = math.exp %221 : vector<8x128xf32>
    %cst_52 = arith.constant 1.000000e+00 : f32
    %223 = vector.broadcast %cst_52 : f32 to vector<8x128xf32>
    %224 = arith.addf %223, %222 : vector<8x128xf32>
    %225 = arith.divf %223, %224 : vector<8x128xf32>
    %226 = vector.extract_strided_slice %211 {offsets = [0, 128], sizes = [8, 128], strides = [1, 1]} : vector<8x512xf32> to vector<8x128xf32>
    %227 = arith.negf %226 : vector<8x128xf32>
    %228 = math.exp %227 : vector<8x128xf32>
    %cst_53 = arith.constant 1.000000e+00 : f32
    %229 = vector.broadcast %cst_53 : f32 to vector<8x128xf32>
    %230 = arith.addf %229, %228 : vector<8x128xf32>
    %231 = arith.divf %229, %230 : vector<8x128xf32>
    %232 = arith.mulf %231, %203 : vector<8x128xf32>
    %233 = arith.mulf %217, %219 : vector<8x128xf32>
    %234 = arith.addf %232, %233 : vector<8x128xf32>
    %235 = math.tanh %234 : vector<8x128xf32>
    %236 = arith.mulf %225, %235 : vector<8x128xf32>
    %237 = arith.truncf %236 : vector<8x128xf32> to vector<8x128xbf16>
    %c56_54 = arith.constant 56 : index
    %c0_55 = arith.constant 0 : index
    %238 = vector.load %arg7[%c56_54, %c0_55] : memref<64x128xbf16, #tpu.memory_space<vmem>>, vector<8x128xbf16>
    tpu.vector_store %arg7[%c56_54, %c0_55], %237 {strides = array<i32>} : memref<64x128xbf16, #tpu.memory_space<vmem>>, vector<8x128xbf16>,
    %c1 = arith.constant 1 : index
    %c0_56 = arith.constant 0 : index
    %c0_57 = arith.constant 0 : index
    %239 = vector.load %arg2[%c1, %c0_56, %c0_57] : memref<4x128x512xbf16, #tpu.memory_space<vmem>>, vector<1x128x512xbf16>
    %240 = vector.shape_cast %239 : vector<1x128x512xbf16> to vector<128x512xbf16>
    %c0_58 = arith.constant 0 : index
    %c0_59 = arith.constant 0 : index
    %241 = vector.load %arg7[%c0_58, %c0_59] : memref<64x128xbf16, #tpu.memory_space<vmem>>, vector<64x128xbf16>
    %c0_60 = arith.constant 0 : index
    %c0_61 = arith.constant 0 : index
    %c0_62 = arith.constant 0 : index
    %242 = vector.load %arg1[%c0_60, %c0_61, %c0_62] : memref<3x128x512xbf16, #tpu.memory_space<vmem>>, vector<1x128x512xbf16>
    %243 = vector.shape_cast %242 : vector<1x128x512xbf16> to vector<128x512xbf16>
    %cst_63 = arith.constant dense<0.000000e+00> : vector<64x512xf32>
    %244 = tpu.matmul %241, %243, %cst_63 {dimension_numbers = #tpu.dot_dimension_numbers<[1], [0], [0], [1], [0, 0, 1, 1], [], []>} : vector<64x128xbf16>, vector<128x512xbf16>, vector<64x512xf32> -> vector<64x512xf32>
    %c0_64 = arith.constant 0 : index
    %c0_65 = arith.constant 0 : index
    %c0_66 = arith.constant 0 : index
    %245 = vector.load %arg3[%c0_64, %c0_65, %c0_66] : memref<3x1x512xf32, #tpu.memory_space<vmem>>, vector<1x1x512xf32>
    %246 = vector.shape_cast %245 : vector<1x1x512xf32> to vector<1x512xf32>
    %247 = vector.broadcast %246 : vector<1x512xf32> to vector<64x512xf32>
    %248 = arith.addf %244, %247 : vector<64x512xf32>
    %c0_67 = arith.constant 0 : index
    %c0_68 = arith.constant 0 : index
    %249 = vector.load %arg8[%c0_67, %c0_68] : memref<64x512xf32, #tpu.memory_space<vmem>>, vector<64x512xf32>
    tpu.vector_store %arg8[%c0_67, %c0_68], %248 {strides = array<i32>} : memref<64x512xf32, #tpu.memory_space<vmem>>, vector<64x512xf32>,
    %c0_69 = arith.constant 0 : index
    %c0_70 = arith.constant 0 : index
    %250 = vector.load %arg8[%c0_69, %c0_70] : memref<64x512xf32, #tpu.memory_space<vmem>>, vector<8x512xf32>
    %251 = vector.extract_strided_slice %250 {offsets = [0, 0], sizes = [8, 128], strides = [1, 1]} : vector<8x512xf32> to vector<8x128xf32>
    %252 = arith.negf %251 : vector<8x128xf32>
    %253 = math.exp %252 : vector<8x128xf32>
    %cst_71 = arith.constant 1.000000e+00 : f32
    %254 = vector.broadcast %cst_71 : f32 to vector<8x128xf32>
    %255 = arith.addf %254, %253 : vector<8x128xf32>
    %256 = arith.divf %254, %255 : vector<8x128xf32>
    %257 = vector.extract_strided_slice %250 {offsets = [0, 256], sizes = [8, 128], strides = [1, 1]} : vector<8x512xf32> to vector<8x128xf32>
    %258 = math.tanh %257 : vector<8x128xf32>
    %259 = vector.extract_strided_slice %250 {offsets = [0, 384], sizes = [8, 128], strides = [1, 1]} : vector<8x512xf32> to vector<8x128xf32>
    %260 = arith.negf %259 : vector<8x128xf32>
    %261 = math.exp %260 : vector<8x128xf32>
    %cst_72 = arith.constant 1.000000e+00 : f32
    %262 = vector.broadcast %cst_72 : f32 to vector<8x128xf32>
    %263 = arith.addf %262, %261 : vector<8x128xf32>
    %264 = arith.divf %262, %263 : vector<8x128xf32>
    %265 = arith.mulf %256, %258 : vector<8x128xf32>
    %266 = math.tanh %265 : vector<8x128xf32>
    %267 = arith.mulf %264, %266 : vector<8x128xf32>
    %268 = arith.truncf %267 : vector<8x128xf32> to vector<8x128xbf16>
    %c0_73 = arith.constant 0 : index
    %c0_74 = arith.constant 0 : index
    %269 = vector.load %arg7[%c0_73, %c0_74] : memref<64x128xbf16, #tpu.memory_space<vmem>>, vector<8x128xbf16>
    tpu.vector_store %arg7[%c0_73, %c0_74], %268 {strides = array<i32>} : memref<64x128xbf16, #tpu.memory_space<vmem>>, vector<8x128xbf16>,
    %c8_75 = arith.constant 8 : index
    %c0_76 = arith.constant 0 : index
    %270 = vector.load %arg8[%c8_75, %c0_76] : memref<64x512xf32, #tpu.memory_space<vmem>>, vector<8x512xf32>
    %271 = arith.truncf %267 : vector<8x128xf32> to vector<8x128xbf16>
    %cst_77 = arith.constant dense<0.000000e+00> : vector<8x512xf32>
    %272 = tpu.matmul %271, %240, %cst_77 {dimension_numbers = #tpu.dot_dimension_numbers<[1], [0], [0], [1], [0, 0, 1, 1], [], []>} : vector<8x128xbf16>, vector<128x512xbf16>, vector<8x512xf32> -> vector<8x512xf32>
    %273 = arith.addf %270, %272 : vector<8x512xf32>
    %274 = vector.extract_strided_slice %273 {offsets = [0, 0], sizes = [8, 128], strides = [1, 1]} : vector<8x512xf32> to vector<8x128xf32>
    %275 = arith.negf %274 : vector<8x128xf32>
    %276 = math.exp %275 : vector<8x128xf32>
    %cst_78 = arith.constant 1.000000e+00 : f32
    %277 = vector.broadcast %cst_78 : f32 to vector<8x128xf32>
    %278 = arith.addf %277, %276 : vector<8x128xf32>
    %279 = arith.divf %277, %278 : vector<8x128xf32>
    %280 = vector.extract_strided_slice %273 {offsets = [0, 256], sizes = [8, 128], strides = [1, 1]} : vector<8x512xf32> to vector<8x128xf32>
    %281 = math.tanh %280 : vector<8x128xf32>
    %282 = vector.extract_strided_slice %273 {offsets = [0, 384], sizes = [8, 128], strides = [1, 1]} : vector<8x512xf32> to vector<8x128xf32>
    %283 = arith.negf %282 : vector<8x128xf32>
    %284 = math.exp %283 : vector<8x128xf32>
    %cst_79 = arith.constant 1.000000e+00 : f32
    %285 = vector.broadcast %cst_79 : f32 to vector<8x128xf32>
    %286 = arith.addf %285, %284 : vector<8x128xf32>
    %287 = arith.divf %285, %286 : vector<8x128xf32>
    %288 = vector.extract_strided_slice %273 {offsets = [0, 128], sizes = [8, 128], strides = [1, 1]} : vector<8x512xf32> to vector<8x128xf32>
    %289 = arith.negf %288 : vector<8x128xf32>
    %290 = math.exp %289 : vector<8x128xf32>
    %cst_80 = arith.constant 1.000000e+00 : f32
    %291 = vector.broadcast %cst_80 : f32 to vector<8x128xf32>
    %292 = arith.addf %291, %290 : vector<8x128xf32>
    %293 = arith.divf %291, %292 : vector<8x128xf32>
    %294 = arith.mulf %293, %265 : vector<8x128xf32>
    %295 = arith.mulf %279, %281 : vector<8x128xf32>
    %296 = arith.addf %294, %295 : vector<8x128xf32>
    %297 = math.tanh %296 : vector<8x128xf32>
    %298 = arith.mulf %287, %297 : vector<8x128xf32>
    %299 = arith.truncf %298 : vector<8x128xf32> to vector<8x128xbf16>
    %c8_81 = arith.constant 8 : index
    %c0_82 = arith.constant 0 : index
    %300 = vector.load %arg7[%c8_81, %c0_82] : memref<64x128xbf16, #tpu.memory_space<vmem>>, vector<8x128xbf16>
    tpu.vector_store %arg7[%c8_81, %c0_82], %299 {strides = array<i32>} : memref<64x128xbf16, #tpu.memory_space<vmem>>, vector<8x128xbf16>,
    %c16_83 = arith.constant 16 : index
    %c0_84 = arith.constant 0 : index
    %301 = vector.load %arg8[%c16_83, %c0_84] : memref<64x512xf32, #tpu.memory_space<vmem>>, vector<8x512xf32>
    %302 = arith.truncf %298 : vector<8x128xf32> to vector<8x128xbf16>
    %cst_85 = arith.constant dense<0.000000e+00> : vector<8x512xf32>
    %303 = tpu.matmul %302, %240, %cst_85 {dimension_numbers = #tpu.dot_dimension_numbers<[1], [0], [0], [1], [0, 0, 1, 1], [], []>} : vector<8x128xbf16>, vector<128x512xbf16>, vector<8x512xf32> -> vector<8x512xf32>
    %304 = arith.addf %301, %303 : vector<8x512xf32>
    %305 = vector.extract_strided_slice %304 {offsets = [0, 0], sizes = [8, 128], strides = [1, 1]} : vector<8x512xf32> to vector<8x128xf32>
    %306 = arith.negf %305 : vector<8x128xf32>
    %307 = math.exp %306 : vector<8x128xf32>
    %cst_86 = arith.constant 1.000000e+00 : f32
    %308 = vector.broadcast %cst_86 : f32 to vector<8x128xf32>
    %309 = arith.addf %308, %307 : vector<8x128xf32>
    %310 = arith.divf %308, %309 : vector<8x128xf32>
    %311 = vector.extract_strided_slice %304 {offsets = [0, 256], sizes = [8, 128], strides = [1, 1]} : vector<8x512xf32> to vector<8x128xf32>
    %312 = math.tanh %311 : vector<8x128xf32>
    %313 = vector.extract_strided_slice %304 {offsets = [0, 384], sizes = [8, 128], strides = [1, 1]} : vector<8x512xf32> to vector<8x128xf32>
    %314 = arith.negf %313 : vector<8x128xf32>
    %315 = math.exp %314 : vector<8x128xf32>
    %cst_87 = arith.constant 1.000000e+00 : f32
    %316 = vector.broadcast %cst_87 : f32 to vector<8x128xf32>
    %317 = arith.addf %316, %315 : vector<8x128xf32>
    %318 = arith.divf %316, %317 : vector<8x128xf32>
    %319 = vector.extract_strided_slice %304 {offsets = [0, 128], sizes = [8, 128], strides = [1, 1]} : vector<8x512xf32> to vector<8x128xf32>
    %320 = arith.negf %319 : vector<8x128xf32>
    %321 = math.exp %320 : vector<8x128xf32>
    %cst_88 = arith.constant 1.000000e+00 : f32
    %322 = vector.broadcast %cst_88 : f32 to vector<8x128xf32>
    %323 = arith.addf %322, %321 : vector<8x128xf32>
    %324 = arith.divf %322, %323 : vector<8x128xf32>
    %325 = arith.mulf %324, %296 : vector<8x128xf32>
    %326 = arith.mulf %310, %312 : vector<8x128xf32>
    %327 = arith.addf %325, %326 : vector<8x128xf32>
    %328 = math.tanh %327 : vector<8x128xf32>
    %329 = arith.mulf %318, %328 : vector<8x128xf32>
    %330 = arith.truncf %329 : vector<8x128xf32> to vector<8x128xbf16>
    %c16_89 = arith.constant 16 : index
    %c0_90 = arith.constant 0 : index
    %331 = vector.load %arg7[%c16_89, %c0_90] : memref<64x128xbf16, #tpu.memory_space<vmem>>, vector<8x128xbf16>
    tpu.vector_store %arg7[%c16_89, %c0_90], %330 {strides = array<i32>} : memref<64x128xbf16, #tpu.memory_space<vmem>>, vector<8x128xbf16>,
    %c24_91 = arith.constant 24 : index
    %c0_92 = arith.constant 0 : index
    %332 = vector.load %arg8[%c24_91, %c0_92] : memref<64x512xf32, #tpu.memory_space<vmem>>, vector<8x512xf32>
    %333 = arith.truncf %329 : vector<8x128xf32> to vector<8x128xbf16>
    %cst_93 = arith.constant dense<0.000000e+00> : vector<8x512xf32>
    %334 = tpu.matmul %333, %240, %cst_93 {dimension_numbers = #tpu.dot_dimension_numbers<[1], [0], [0], [1], [0, 0, 1, 1], [], []>} : vector<8x128xbf16>, vector<128x512xbf16>, vector<8x512xf32> -> vector<8x512xf32>
    %335 = arith.addf %332, %334 : vector<8x512xf32>
    %336 = vector.extract_strided_slice %335 {offsets = [0, 0], sizes = [8, 128], strides = [1, 1]} : vector<8x512xf32> to vector<8x128xf32>
    %337 = arith.negf %336 : vector<8x128xf32>
    %338 = math.exp %337 : vector<8x128xf32>
    %cst_94 = arith.constant 1.000000e+00 : f32
    %339 = vector.broadcast %cst_94 : f32 to vector<8x128xf32>
    %340 = arith.addf %339, %338 : vector<8x128xf32>
    %341 = arith.divf %339, %340 : vector<8x128xf32>
    %342 = vector.extract_strided_slice %335 {offsets = [0, 256], sizes = [8, 128], strides = [1, 1]} : vector<8x512xf32> to vector<8x128xf32>
    %343 = math.tanh %342 : vector<8x128xf32>
    %344 = vector.extract_strided_slice %335 {offsets = [0, 384], sizes = [8, 128], strides = [1, 1]} : vector<8x512xf32> to vector<8x128xf32>
    %345 = arith.negf %344 : vector<8x128xf32>
    %346 = math.exp %345 : vector<8x128xf32>
    %cst_95 = arith.constant 1.000000e+00 : f32
    %347 = vector.broadcast %cst_95 : f32 to vector<8x128xf32>
    %348 = arith.addf %347, %346 : vector<8x128xf32>
    %349 = arith.divf %347, %348 : vector<8x128xf32>
    %350 = vector.extract_strided_slice %335 {offsets = [0, 128], sizes = [8, 128], strides = [1, 1]} : vector<8x512xf32> to vector<8x128xf32>
    %351 = arith.negf %350 : vector<8x128xf32>
    %352 = math.exp %351 : vector<8x128xf32>
    %cst_96 = arith.constant 1.000000e+00 : f32
    %353 = vector.broadcast %cst_96 : f32 to vector<8x128xf32>
    %354 = arith.addf %353, %352 : vector<8x128xf32>
    %355 = arith.divf %353, %354 : vector<8x128xf32>
    %356 = arith.mulf %355, %327 : vector<8x128xf32>
    %357 = arith.mulf %341, %343 : vector<8x128xf32>
    %358 = arith.addf %356, %357 : vector<8x128xf32>
    %359 = math.tanh %358 : vector<8x128xf32>
    %360 = arith.mulf %349, %359 : vector<8x128xf32>
    %361 = arith.truncf %360 : vector<8x128xf32> to vector<8x128xbf16>
    %c24_97 = arith.constant 24 : index
    %c0_98 = arith.constant 0 : index
    %362 = vector.load %arg7[%c24_97, %c0_98] : memref<64x128xbf16, #tpu.memory_space<vmem>>, vector<8x128xbf16>
    tpu.vector_store %arg7[%c24_97, %c0_98], %361 {strides = array<i32>} : memref<64x128xbf16, #tpu.memory_space<vmem>>, vector<8x128xbf16>,
    %c32_99 = arith.constant 32 : index
    %c0_100 = arith.constant 0 : index
    %363 = vector.load %arg8[%c32_99, %c0_100] : memref<64x512xf32, #tpu.memory_space<vmem>>, vector<8x512xf32>
    %364 = arith.truncf %360 : vector<8x128xf32> to vector<8x128xbf16>
    %cst_101 = arith.constant dense<0.000000e+00> : vector<8x512xf32>
    %365 = tpu.matmul %364, %240, %cst_101 {dimension_numbers = #tpu.dot_dimension_numbers<[1], [0], [0], [1], [0, 0, 1, 1], [], []>} : vector<8x128xbf16>, vector<128x512xbf16>, vector<8x512xf32> -> vector<8x512xf32>
    %366 = arith.addf %363, %365 : vector<8x512xf32>
    %367 = vector.extract_strided_slice %366 {offsets = [0, 0], sizes = [8, 128], strides = [1, 1]} : vector<8x512xf32> to vector<8x128xf32>
    %368 = arith.negf %367 : vector<8x128xf32>
    %369 = math.exp %368 : vector<8x128xf32>
    %cst_102 = arith.constant 1.000000e+00 : f32
    %370 = vector.broadcast %cst_102 : f32 to vector<8x128xf32>
    %371 = arith.addf %370, %369 : vector<8x128xf32>
    %372 = arith.divf %370, %371 : vector<8x128xf32>
    %373 = vector.extract_strided_slice %366 {offsets = [0, 256], sizes = [8, 128], strides = [1, 1]} : vector<8x512xf32> to vector<8x128xf32>
    %374 = math.tanh %373 : vector<8x128xf32>
    %375 = vector.extract_strided_slice %366 {offsets = [0, 384], sizes = [8, 128], strides = [1, 1]} : vector<8x512xf32> to vector<8x128xf32>
    %376 = arith.negf %375 : vector<8x128xf32>
    %377 = math.exp %376 : vector<8x128xf32>
    %cst_103 = arith.constant 1.000000e+00 : f32
    %378 = vector.broadcast %cst_103 : f32 to vector<8x128xf32>
    %379 = arith.addf %378, %377 : vector<8x128xf32>
    %380 = arith.divf %378, %379 : vector<8x128xf32>
    %381 = vector.extract_strided_slice %366 {offsets = [0, 128], sizes = [8, 128], strides = [1, 1]} : vector<8x512xf32> to vector<8x128xf32>
    %382 = arith.negf %381 : vector<8x128xf32>
    %383 = math.exp %382 : vector<8x128xf32>
    %cst_104 = arith.constant 1.000000e+00 : f32
    %384 = vector.broadcast %cst_104 : f32 to vector<8x128xf32>
    %385 = arith.addf %384, %383 : vector<8x128xf32>
    %386 = arith.divf %384, %385 : vector<8x128xf32>
    %387 = arith.mulf %386, %358 : vector<8x128xf32>
    %388 = arith.mulf %372, %374 : vector<8x128xf32>
    %389 = arith.addf %387, %388 : vector<8x128xf32>
    %390 = math.tanh %389 : vector<8x128xf32>
    %391 = arith.mulf %380, %390 : vector<8x128xf32>
    %392 = arith.truncf %391 : vector<8x128xf32> to vector<8x128xbf16>
    %c32_105 = arith.constant 32 : index
    %c0_106 = arith.constant 0 : index
    %393 = vector.load %arg7[%c32_105, %c0_106] : memref<64x128xbf16, #tpu.memory_space<vmem>>, vector<8x128xbf16>
    tpu.vector_store %arg7[%c32_105, %c0_106], %392 {strides = array<i32>} : memref<64x128xbf16, #tpu.memory_space<vmem>>, vector<8x128xbf16>,
    %c40_107 = arith.constant 40 : index
    %c0_108 = arith.constant 0 : index
    %394 = vector.load %arg8[%c40_107, %c0_108] : memref<64x512xf32, #tpu.memory_space<vmem>>, vector<8x512xf32>
    %395 = arith.truncf %391 : vector<8x128xf32> to vector<8x128xbf16>
    %cst_109 = arith.constant dense<0.000000e+00> : vector<8x512xf32>
    %396 = tpu.matmul %395, %240, %cst_109 {dimension_numbers = #tpu.dot_dimension_numbers<[1], [0], [0], [1], [0, 0, 1, 1], [], []>} : vector<8x128xbf16>, vector<128x512xbf16>, vector<8x512xf32> -> vector<8x512xf32>
    %397 = arith.addf %394, %396 : vector<8x512xf32>
    %398 = vector.extract_strided_slice %397 {offsets = [0, 0], sizes = [8, 128], strides = [1, 1]} : vector<8x512xf32> to vector<8x128xf32>
    %399 = arith.negf %398 : vector<8x128xf32>
    %400 = math.exp %399 : vector<8x128xf32>
    %cst_110 = arith.constant 1.000000e+00 : f32
    %401 = vector.broadcast %cst_110 : f32 to vector<8x128xf32>
    %402 = arith.addf %401, %400 : vector<8x128xf32>
    %403 = arith.divf %401, %402 : vector<8x128xf32>
    %404 = vector.extract_strided_slice %397 {offsets = [0, 256], sizes = [8, 128], strides = [1, 1]} : vector<8x512xf32> to vector<8x128xf32>
    %405 = math.tanh %404 : vector<8x128xf32>
    %406 = vector.extract_strided_slice %397 {offsets = [0, 384], sizes = [8, 128], strides = [1, 1]} : vector<8x512xf32> to vector<8x128xf32>
    %407 = arith.negf %406 : vector<8x128xf32>
    %408 = math.exp %407 : vector<8x128xf32>
    %cst_111 = arith.constant 1.000000e+00 : f32
    %409 = vector.broadcast %cst_111 : f32 to vector<8x128xf32>
    %410 = arith.addf %409, %408 : vector<8x128xf32>
    %411 = arith.divf %409, %410 : vector<8x128xf32>
    %412 = vector.extract_strided_slice %397 {offsets = [0, 128], sizes = [8, 128], strides = [1, 1]} : vector<8x512xf32> to vector<8x128xf32>
    %413 = arith.negf %412 : vector<8x128xf32>
    %414 = math.exp %413 : vector<8x128xf32>
    %cst_112 = arith.constant 1.000000e+00 : f32
    %415 = vector.broadcast %cst_112 : f32 to vector<8x128xf32>
    %416 = arith.addf %415, %414 : vector<8x128xf32>
    %417 = arith.divf %415, %416 : vector<8x128xf32>
    %418 = arith.mulf %417, %389 : vector<8x128xf32>
    %419 = arith.mulf %403, %405 : vector<8x128xf32>
    %420 = arith.addf %418, %419 : vector<8x128xf32>
    %421 = math.tanh %420 : vector<8x128xf32>
    %422 = arith.mulf %411, %421 : vector<8x128xf32>
    %423 = arith.truncf %422 : vector<8x128xf32> to vector<8x128xbf16>
    %c40_113 = arith.constant 40 : index
    %c0_114 = arith.constant 0 : index
    %424 = vector.load %arg7[%c40_113, %c0_114] : memref<64x128xbf16, #tpu.memory_space<vmem>>, vector<8x128xbf16>
    tpu.vector_store %arg7[%c40_113, %c0_114], %423 {strides = array<i32>} : memref<64x128xbf16, #tpu.memory_space<vmem>>, vector<8x128xbf16>,
    %c48_115 = arith.constant 48 : index
    %c0_116 = arith.constant 0 : index
    %425 = vector.load %arg8[%c48_115, %c0_116] : memref<64x512xf32, #tpu.memory_space<vmem>>, vector<8x512xf32>
    %426 = arith.truncf %422 : vector<8x128xf32> to vector<8x128xbf16>
    %cst_117 = arith.constant dense<0.000000e+00> : vector<8x512xf32>
    %427 = tpu.matmul %426, %240, %cst_117 {dimension_numbers = #tpu.dot_dimension_numbers<[1], [0], [0], [1], [0, 0, 1, 1], [], []>} : vector<8x128xbf16>, vector<128x512xbf16>, vector<8x512xf32> -> vector<8x512xf32>
    %428 = arith.addf %425, %427 : vector<8x512xf32>
    %429 = vector.extract_strided_slice %428 {offsets = [0, 0], sizes = [8, 128], strides = [1, 1]} : vector<8x512xf32> to vector<8x128xf32>
    %430 = arith.negf %429 : vector<8x128xf32>
    %431 = math.exp %430 : vector<8x128xf32>
    %cst_118 = arith.constant 1.000000e+00 : f32
    %432 = vector.broadcast %cst_118 : f32 to vector<8x128xf32>
    %433 = arith.addf %432, %431 : vector<8x128xf32>
    %434 = arith.divf %432, %433 : vector<8x128xf32>
    %435 = vector.extract_strided_slice %428 {offsets = [0, 256], sizes = [8, 128], strides = [1, 1]} : vector<8x512xf32> to vector<8x128xf32>
    %436 = math.tanh %435 : vector<8x128xf32>
    %437 = vector.extract_strided_slice %428 {offsets = [0, 384], sizes = [8, 128], strides = [1, 1]} : vector<8x512xf32> to vector<8x128xf32>
    %438 = arith.negf %437 : vector<8x128xf32>
    %439 = math.exp %438 : vector<8x128xf32>
    %cst_119 = arith.constant 1.000000e+00 : f32
    %440 = vector.broadcast %cst_119 : f32 to vector<8x128xf32>
    %441 = arith.addf %440, %439 : vector<8x128xf32>
    %442 = arith.divf %440, %441 : vector<8x128xf32>
    %443 = vector.extract_strided_slice %428 {offsets = [0, 128], sizes = [8, 128], strides = [1, 1]} : vector<8x512xf32> to vector<8x128xf32>
    %444 = arith.negf %443 : vector<8x128xf32>
    %445 = math.exp %444 : vector<8x128xf32>
    %cst_120 = arith.constant 1.000000e+00 : f32
    %446 = vector.broadcast %cst_120 : f32 to vector<8x128xf32>
    %447 = arith.addf %446, %445 : vector<8x128xf32>
    %448 = arith.divf %446, %447 : vector<8x128xf32>
    %449 = arith.mulf %448, %420 : vector<8x128xf32>
    %450 = arith.mulf %434, %436 : vector<8x128xf32>
    %451 = arith.addf %449, %450 : vector<8x128xf32>
    %452 = math.tanh %451 : vector<8x128xf32>
    %453 = arith.mulf %442, %452 : vector<8x128xf32>
    %454 = arith.truncf %453 : vector<8x128xf32> to vector<8x128xbf16>
    %c48_121 = arith.constant 48 : index
    %c0_122 = arith.constant 0 : index
    %455 = vector.load %arg7[%c48_121, %c0_122] : memref<64x128xbf16, #tpu.memory_space<vmem>>, vector<8x128xbf16>
    tpu.vector_store %arg7[%c48_121, %c0_122], %454 {strides = array<i32>} : memref<64x128xbf16, #tpu.memory_space<vmem>>, vector<8x128xbf16>,
    %c56_123 = arith.constant 56 : index
    %c0_124 = arith.constant 0 : index
    %456 = vector.load %arg8[%c56_123, %c0_124] : memref<64x512xf32, #tpu.memory_space<vmem>>, vector<8x512xf32>
    %457 = arith.truncf %453 : vector<8x128xf32> to vector<8x128xbf16>
    %cst_125 = arith.constant dense<0.000000e+00> : vector<8x512xf32>
    %458 = tpu.matmul %457, %240, %cst_125 {dimension_numbers = #tpu.dot_dimension_numbers<[1], [0], [0], [1], [0, 0, 1, 1], [], []>} : vector<8x128xbf16>, vector<128x512xbf16>, vector<8x512xf32> -> vector<8x512xf32>
    %459 = arith.addf %456, %458 : vector<8x512xf32>
    %460 = vector.extract_strided_slice %459 {offsets = [0, 0], sizes = [8, 128], strides = [1, 1]} : vector<8x512xf32> to vector<8x128xf32>
    %461 = arith.negf %460 : vector<8x128xf32>
    %462 = math.exp %461 : vector<8x128xf32>
    %cst_126 = arith.constant 1.000000e+00 : f32
    %463 = vector.broadcast %cst_126 : f32 to vector<8x128xf32>
    %464 = arith.addf %463, %462 : vector<8x128xf32>
    %465 = arith.divf %463, %464 : vector<8x128xf32>
    %466 = vector.extract_strided_slice %459 {offsets = [0, 256], sizes = [8, 128], strides = [1, 1]} : vector<8x512xf32> to vector<8x128xf32>
    %467 = math.tanh %466 : vector<8x128xf32>
    %468 = vector.extract_strided_slice %459 {offsets = [0, 384], sizes = [8, 128], strides = [1, 1]} : vector<8x512xf32> to vector<8x128xf32>
    %469 = arith.negf %468 : vector<8x128xf32>
    %470 = math.exp %469 : vector<8x128xf32>
    %cst_127 = arith.constant 1.000000e+00 : f32
    %471 = vector.broadcast %cst_127 : f32 to vector<8x128xf32>
    %472 = arith.addf %471, %470 : vector<8x128xf32>
    %473 = arith.divf %471, %472 : vector<8x128xf32>
    %474 = vector.extract_strided_slice %459 {offsets = [0, 128], sizes = [8, 128], strides = [1, 1]} : vector<8x512xf32> to vector<8x128xf32>
    %475 = arith.negf %474 : vector<8x128xf32>
    %476 = math.exp %475 : vector<8x128xf32>
    %cst_128 = arith.constant 1.000000e+00 : f32
    %477 = vector.broadcast %cst_128 : f32 to vector<8x128xf32>
    %478 = arith.addf %477, %476 : vector<8x128xf32>
    %479 = arith.divf %477, %478 : vector<8x128xf32>
    %480 = arith.mulf %479, %451 : vector<8x128xf32>
    %481 = arith.mulf %465, %467 : vector<8x128xf32>
    %482 = arith.addf %480, %481 : vector<8x128xf32>
    %483 = math.tanh %482 : vector<8x128xf32>
    %484 = arith.mulf %473, %483 : vector<8x128xf32>
    %485 = arith.truncf %484 : vector<8x128xf32> to vector<8x128xbf16>
    %c56_129 = arith.constant 56 : index
    %c0_130 = arith.constant 0 : index
    %486 = vector.load %arg7[%c56_129, %c0_130] : memref<64x128xbf16, #tpu.memory_space<vmem>>, vector<8x128xbf16>
    tpu.vector_store %arg7[%c56_129, %c0_130], %485 {strides = array<i32>} : memref<64x128xbf16, #tpu.memory_space<vmem>>, vector<8x128xbf16>,
    %c2 = arith.constant 2 : index
    %c0_131 = arith.constant 0 : index
    %c0_132 = arith.constant 0 : index
    %487 = vector.load %arg2[%c2, %c0_131, %c0_132] : memref<4x128x512xbf16, #tpu.memory_space<vmem>>, vector<1x128x512xbf16>
    %488 = vector.shape_cast %487 : vector<1x128x512xbf16> to vector<128x512xbf16>
    %c0_133 = arith.constant 0 : index
    %c0_134 = arith.constant 0 : index
    %489 = vector.load %arg7[%c0_133, %c0_134] : memref<64x128xbf16, #tpu.memory_space<vmem>>, vector<64x128xbf16>
    %c1_135 = arith.constant 1 : index
    %c0_136 = arith.constant 0 : index
    %c0_137 = arith.constant 0 : index
    %490 = vector.load %arg1[%c1_135, %c0_136, %c0_137] : memref<3x128x512xbf16, #tpu.memory_space<vmem>>, vector<1x128x512xbf16>
    %491 = vector.shape_cast %490 : vector<1x128x512xbf16> to vector<128x512xbf16>
    %cst_138 = arith.constant dense<0.000000e+00> : vector<64x512xf32>
    %492 = tpu.matmul %489, %491, %cst_138 {dimension_numbers = #tpu.dot_dimension_numbers<[1], [0], [0], [1], [0, 0, 1, 1], [], []>} : vector<64x128xbf16>, vector<128x512xbf16>, vector<64x512xf32> -> vector<64x512xf32>
    %c1_139 = arith.constant 1 : index
    %c0_140 = arith.constant 0 : index
    %c0_141 = arith.constant 0 : index
    %493 = vector.load %arg3[%c1_139, %c0_140, %c0_141] : memref<3x1x512xf32, #tpu.memory_space<vmem>>, vector<1x1x512xf32>
    %494 = vector.shape_cast %493 : vector<1x1x512xf32> to vector<1x512xf32>
    %495 = vector.broadcast %494 : vector<1x512xf32> to vector<64x512xf32>
    %496 = arith.addf %492, %495 : vector<64x512xf32>
    %c0_142 = arith.constant 0 : index
    %c0_143 = arith.constant 0 : index
    %497 = vector.load %arg8[%c0_142, %c0_143] : memref<64x512xf32, #tpu.memory_space<vmem>>, vector<64x512xf32>
    tpu.vector_store %arg8[%c0_142, %c0_143], %496 {strides = array<i32>} : memref<64x512xf32, #tpu.memory_space<vmem>>, vector<64x512xf32>,
    %c0_144 = arith.constant 0 : index
    %c0_145 = arith.constant 0 : index
    %498 = vector.load %arg8[%c0_144, %c0_145] : memref<64x512xf32, #tpu.memory_space<vmem>>, vector<8x512xf32>
    %499 = vector.extract_strided_slice %498 {offsets = [0, 0], sizes = [8, 128], strides = [1, 1]} : vector<8x512xf32> to vector<8x128xf32>
    %500 = arith.negf %499 : vector<8x128xf32>
    %501 = math.exp %500 : vector<8x128xf32>
    %cst_146 = arith.constant 1.000000e+00 : f32
    %502 = vector.broadcast %cst_146 : f32 to vector<8x128xf32>
    %503 = arith.addf %502, %501 : vector<8x128xf32>
    %504 = arith.divf %502, %503 : vector<8x128xf32>
    %505 = vector.extract_strided_slice %498 {offsets = [0, 256], sizes = [8, 128], strides = [1, 1]} : vector<8x512xf32> to vector<8x128xf32>
    %506 = math.tanh %505 : vector<8x128xf32>
    %507 = vector.extract_strided_slice %498 {offsets = [0, 384], sizes = [8, 128], strides = [1, 1]} : vector<8x512xf32> to vector<8x128xf32>
    %508 = arith.negf %507 : vector<8x128xf32>
    %509 = math.exp %508 : vector<8x128xf32>
    %cst_147 = arith.constant 1.000000e+00 : f32
    %510 = vector.broadcast %cst_147 : f32 to vector<8x128xf32>
    %511 = arith.addf %510, %509 : vector<8x128xf32>
    %512 = arith.divf %510, %511 : vector<8x128xf32>
    %513 = arith.mulf %504, %506 : vector<8x128xf32>
    %514 = math.tanh %513 : vector<8x128xf32>
    %515 = arith.mulf %512, %514 : vector<8x128xf32>
    %516 = arith.truncf %515 : vector<8x128xf32> to vector<8x128xbf16>
    %c0_148 = arith.constant 0 : index
    %c0_149 = arith.constant 0 : index
    %517 = vector.load %arg7[%c0_148, %c0_149] : memref<64x128xbf16, #tpu.memory_space<vmem>>, vector<8x128xbf16>
    tpu.vector_store %arg7[%c0_148, %c0_149], %516 {strides = array<i32>} : memref<64x128xbf16, #tpu.memory_space<vmem>>, vector<8x128xbf16>,
    %c8_150 = arith.constant 8 : index
    %c0_151 = arith.constant 0 : index
    %518 = vector.load %arg8[%c8_150, %c0_151] : memref<64x512xf32, #tpu.memory_space<vmem>>, vector<8x512xf32>
    %519 = arith.truncf %515 : vector<8x128xf32> to vector<8x128xbf16>
    %cst_152 = arith.constant dense<0.000000e+00> : vector<8x512xf32>
    %520 = tpu.matmul %519, %488, %cst_152 {dimension_numbers = #tpu.dot_dimension_numbers<[1], [0], [0], [1], [0, 0, 1, 1], [], []>} : vector<8x128xbf16>, vector<128x512xbf16>, vector<8x512xf32> -> vector<8x512xf32>
    %521 = arith.addf %518, %520 : vector<8x512xf32>
    %522 = vector.extract_strided_slice %521 {offsets = [0, 0], sizes = [8, 128], strides = [1, 1]} : vector<8x512xf32> to vector<8x128xf32>
    %523 = arith.negf %522 : vector<8x128xf32>
    %524 = math.exp %523 : vector<8x128xf32>
    %cst_153 = arith.constant 1.000000e+00 : f32
    %525 = vector.broadcast %cst_153 : f32 to vector<8x128xf32>
    %526 = arith.addf %525, %524 : vector<8x128xf32>
    %527 = arith.divf %525, %526 : vector<8x128xf32>
    %528 = vector.extract_strided_slice %521 {offsets = [0, 256], sizes = [8, 128], strides = [1, 1]} : vector<8x512xf32> to vector<8x128xf32>
    %529 = math.tanh %528 : vector<8x128xf32>
    %530 = vector.extract_strided_slice %521 {offsets = [0, 384], sizes = [8, 128], strides = [1, 1]} : vector<8x512xf32> to vector<8x128xf32>
    %531 = arith.negf %530 : vector<8x128xf32>
    %532 = math.exp %531 : vector<8x128xf32>
    %cst_154 = arith.constant 1.000000e+00 : f32
    %533 = vector.broadcast %cst_154 : f32 to vector<8x128xf32>
    %534 = arith.addf %533, %532 : vector<8x128xf32>
    %535 = arith.divf %533, %534 : vector<8x128xf32>
    %536 = vector.extract_strided_slice %521 {offsets = [0, 128], sizes = [8, 128], strides = [1, 1]} : vector<8x512xf32> to vector<8x128xf32>
    %537 = arith.negf %536 : vector<8x128xf32>
    %538 = math.exp %537 : vector<8x128xf32>
    %cst_155 = arith.constant 1.000000e+00 : f32
    %539 = vector.broadcast %cst_155 : f32 to vector<8x128xf32>
    %540 = arith.addf %539, %538 : vector<8x128xf32>
    %541 = arith.divf %539, %540 : vector<8x128xf32>
    %542 = arith.mulf %541, %513 : vector<8x128xf32>
    %543 = arith.mulf %527, %529 : vector<8x128xf32>
    %544 = arith.addf %542, %543 : vector<8x128xf32>
    %545 = math.tanh %544 : vector<8x128xf32>
    %546 = arith.mulf %535, %545 : vector<8x128xf32>
    %547 = arith.truncf %546 : vector<8x128xf32> to vector<8x128xbf16>
    %c8_156 = arith.constant 8 : index
    %c0_157 = arith.constant 0 : index
    %548 = vector.load %arg7[%c8_156, %c0_157] : memref<64x128xbf16, #tpu.memory_space<vmem>>, vector<8x128xbf16>
    tpu.vector_store %arg7[%c8_156, %c0_157], %547 {strides = array<i32>} : memref<64x128xbf16, #tpu.memory_space<vmem>>, vector<8x128xbf16>,
    %c16_158 = arith.constant 16 : index
    %c0_159 = arith.constant 0 : index
    %549 = vector.load %arg8[%c16_158, %c0_159] : memref<64x512xf32, #tpu.memory_space<vmem>>, vector<8x512xf32>
    %550 = arith.truncf %546 : vector<8x128xf32> to vector<8x128xbf16>
    %cst_160 = arith.constant dense<0.000000e+00> : vector<8x512xf32>
    %551 = tpu.matmul %550, %488, %cst_160 {dimension_numbers = #tpu.dot_dimension_numbers<[1], [0], [0], [1], [0, 0, 1, 1], [], []>} : vector<8x128xbf16>, vector<128x512xbf16>, vector<8x512xf32> -> vector<8x512xf32>
    %552 = arith.addf %549, %551 : vector<8x512xf32>
    %553 = vector.extract_strided_slice %552 {offsets = [0, 0], sizes = [8, 128], strides = [1, 1]} : vector<8x512xf32> to vector<8x128xf32>
    %554 = arith.negf %553 : vector<8x128xf32>
    %555 = math.exp %554 : vector<8x128xf32>
    %cst_161 = arith.constant 1.000000e+00 : f32
    %556 = vector.broadcast %cst_161 : f32 to vector<8x128xf32>
    %557 = arith.addf %556, %555 : vector<8x128xf32>
    %558 = arith.divf %556, %557 : vector<8x128xf32>
    %559 = vector.extract_strided_slice %552 {offsets = [0, 256], sizes = [8, 128], strides = [1, 1]} : vector<8x512xf32> to vector<8x128xf32>
    %560 = math.tanh %559 : vector<8x128xf32>
    %561 = vector.extract_strided_slice %552 {offsets = [0, 384], sizes = [8, 128], strides = [1, 1]} : vector<8x512xf32> to vector<8x128xf32>
    %562 = arith.negf %561 : vector<8x128xf32>
    %563 = math.exp %562 : vector<8x128xf32>
    %cst_162 = arith.constant 1.000000e+00 : f32
    %564 = vector.broadcast %cst_162 : f32 to vector<8x128xf32>
    %565 = arith.addf %564, %563 : vector<8x128xf32>
    %566 = arith.divf %564, %565 : vector<8x128xf32>
    %567 = vector.extract_strided_slice %552 {offsets = [0, 128], sizes = [8, 128], strides = [1, 1]} : vector<8x512xf32> to vector<8x128xf32>
    %568 = arith.negf %567 : vector<8x128xf32>
    %569 = math.exp %568 : vector<8x128xf32>
    %cst_163 = arith.constant 1.000000e+00 : f32
    %570 = vector.broadcast %cst_163 : f32 to vector<8x128xf32>
    %571 = arith.addf %570, %569 : vector<8x128xf32>
    %572 = arith.divf %570, %571 : vector<8x128xf32>
    %573 = arith.mulf %572, %544 : vector<8x128xf32>
    %574 = arith.mulf %558, %560 : vector<8x128xf32>
    %575 = arith.addf %573, %574 : vector<8x128xf32>
    %576 = math.tanh %575 : vector<8x128xf32>
    %577 = arith.mulf %566, %576 : vector<8x128xf32>
    %578 = arith.truncf %577 : vector<8x128xf32> to vector<8x128xbf16>
    %c16_164 = arith.constant 16 : index
    %c0_165 = arith.constant 0 : index
    %579 = vector.load %arg7[%c16_164, %c0_165] : memref<64x128xbf16, #tpu.memory_space<vmem>>, vector<8x128xbf16>
    tpu.vector_store %arg7[%c16_164, %c0_165], %578 {strides = array<i32>} : memref<64x128xbf16, #tpu.memory_space<vmem>>, vector<8x128xbf16>,
    %c24_166 = arith.constant 24 : index
    %c0_167 = arith.constant 0 : index
    %580 = vector.load %arg8[%c24_166, %c0_167] : memref<64x512xf32, #tpu.memory_space<vmem>>, vector<8x512xf32>
    %581 = arith.truncf %577 : vector<8x128xf32> to vector<8x128xbf16>
    %cst_168 = arith.constant dense<0.000000e+00> : vector<8x512xf32>
    %582 = tpu.matmul %581, %488, %cst_168 {dimension_numbers = #tpu.dot_dimension_numbers<[1], [0], [0], [1], [0, 0, 1, 1], [], []>} : vector<8x128xbf16>, vector<128x512xbf16>, vector<8x512xf32> -> vector<8x512xf32>
    %583 = arith.addf %580, %582 : vector<8x512xf32>
    %584 = vector.extract_strided_slice %583 {offsets = [0, 0], sizes = [8, 128], strides = [1, 1]} : vector<8x512xf32> to vector<8x128xf32>
    %585 = arith.negf %584 : vector<8x128xf32>
    %586 = math.exp %585 : vector<8x128xf32>
    %cst_169 = arith.constant 1.000000e+00 : f32
    %587 = vector.broadcast %cst_169 : f32 to vector<8x128xf32>
    %588 = arith.addf %587, %586 : vector<8x128xf32>
    %589 = arith.divf %587, %588 : vector<8x128xf32>
    %590 = vector.extract_strided_slice %583 {offsets = [0, 256], sizes = [8, 128], strides = [1, 1]} : vector<8x512xf32> to vector<8x128xf32>
    %591 = math.tanh %590 : vector<8x128xf32>
    %592 = vector.extract_strided_slice %583 {offsets = [0, 384], sizes = [8, 128], strides = [1, 1]} : vector<8x512xf32> to vector<8x128xf32>
    %593 = arith.negf %592 : vector<8x128xf32>
    %594 = math.exp %593 : vector<8x128xf32>
    %cst_170 = arith.constant 1.000000e+00 : f32
    %595 = vector.broadcast %cst_170 : f32 to vector<8x128xf32>
    %596 = arith.addf %595, %594 : vector<8x128xf32>
    %597 = arith.divf %595, %596 : vector<8x128xf32>
    %598 = vector.extract_strided_slice %583 {offsets = [0, 128], sizes = [8, 128], strides = [1, 1]} : vector<8x512xf32> to vector<8x128xf32>
    %599 = arith.negf %598 : vector<8x128xf32>
    %600 = math.exp %599 : vector<8x128xf32>
    %cst_171 = arith.constant 1.000000e+00 : f32
    %601 = vector.broadcast %cst_171 : f32 to vector<8x128xf32>
    %602 = arith.addf %601, %600 : vector<8x128xf32>
    %603 = arith.divf %601, %602 : vector<8x128xf32>
    %604 = arith.mulf %603, %575 : vector<8x128xf32>
    %605 = arith.mulf %589, %591 : vector<8x128xf32>
    %606 = arith.addf %604, %605 : vector<8x128xf32>
    %607 = math.tanh %606 : vector<8x128xf32>
    %608 = arith.mulf %597, %607 : vector<8x128xf32>
    %609 = arith.truncf %608 : vector<8x128xf32> to vector<8x128xbf16>
    %c24_172 = arith.constant 24 : index
    %c0_173 = arith.constant 0 : index
    %610 = vector.load %arg7[%c24_172, %c0_173] : memref<64x128xbf16, #tpu.memory_space<vmem>>, vector<8x128xbf16>
    tpu.vector_store %arg7[%c24_172, %c0_173], %609 {strides = array<i32>} : memref<64x128xbf16, #tpu.memory_space<vmem>>, vector<8x128xbf16>,
    %c32_174 = arith.constant 32 : index
    %c0_175 = arith.constant 0 : index
    %611 = vector.load %arg8[%c32_174, %c0_175] : memref<64x512xf32, #tpu.memory_space<vmem>>, vector<8x512xf32>
    %612 = arith.truncf %608 : vector<8x128xf32> to vector<8x128xbf16>
    %cst_176 = arith.constant dense<0.000000e+00> : vector<8x512xf32>
    %613 = tpu.matmul %612, %488, %cst_176 {dimension_numbers = #tpu.dot_dimension_numbers<[1], [0], [0], [1], [0, 0, 1, 1], [], []>} : vector<8x128xbf16>, vector<128x512xbf16>, vector<8x512xf32> -> vector<8x512xf32>
    %614 = arith.addf %611, %613 : vector<8x512xf32>
    %615 = vector.extract_strided_slice %614 {offsets = [0, 0], sizes = [8, 128], strides = [1, 1]} : vector<8x512xf32> to vector<8x128xf32>
    %616 = arith.negf %615 : vector<8x128xf32>
    %617 = math.exp %616 : vector<8x128xf32>
    %cst_177 = arith.constant 1.000000e+00 : f32
    %618 = vector.broadcast %cst_177 : f32 to vector<8x128xf32>
    %619 = arith.addf %618, %617 : vector<8x128xf32>
    %620 = arith.divf %618, %619 : vector<8x128xf32>
    %621 = vector.extract_strided_slice %614 {offsets = [0, 256], sizes = [8, 128], strides = [1, 1]} : vector<8x512xf32> to vector<8x128xf32>
    %622 = math.tanh %621 : vector<8x128xf32>
    %623 = vector.extract_strided_slice %614 {offsets = [0, 384], sizes = [8, 128], strides = [1, 1]} : vector<8x512xf32> to vector<8x128xf32>
    %624 = arith.negf %623 : vector<8x128xf32>
    %625 = math.exp %624 : vector<8x128xf32>
    %cst_178 = arith.constant 1.000000e+00 : f32
    %626 = vector.broadcast %cst_178 : f32 to vector<8x128xf32>
    %627 = arith.addf %626, %625 : vector<8x128xf32>
    %628 = arith.divf %626, %627 : vector<8x128xf32>
    %629 = vector.extract_strided_slice %614 {offsets = [0, 128], sizes = [8, 128], strides = [1, 1]} : vector<8x512xf32> to vector<8x128xf32>
    %630 = arith.negf %629 : vector<8x128xf32>
    %631 = math.exp %630 : vector<8x128xf32>
    %cst_179 = arith.constant 1.000000e+00 : f32
    %632 = vector.broadcast %cst_179 : f32 to vector<8x128xf32>
    %633 = arith.addf %632, %631 : vector<8x128xf32>
    %634 = arith.divf %632, %633 : vector<8x128xf32>
    %635 = arith.mulf %634, %606 : vector<8x128xf32>
    %636 = arith.mulf %620, %622 : vector<8x128xf32>
    %637 = arith.addf %635, %636 : vector<8x128xf32>
    %638 = math.tanh %637 : vector<8x128xf32>
    %639 = arith.mulf %628, %638 : vector<8x128xf32>
    %640 = arith.truncf %639 : vector<8x128xf32> to vector<8x128xbf16>
    %c32_180 = arith.constant 32 : index
    %c0_181 = arith.constant 0 : index
    %641 = vector.load %arg7[%c32_180, %c0_181] : memref<64x128xbf16, #tpu.memory_space<vmem>>, vector<8x128xbf16>
    tpu.vector_store %arg7[%c32_180, %c0_181], %640 {strides = array<i32>} : memref<64x128xbf16, #tpu.memory_space<vmem>>, vector<8x128xbf16>,
    %c40_182 = arith.constant 40 : index
    %c0_183 = arith.constant 0 : index
    %642 = vector.load %arg8[%c40_182, %c0_183] : memref<64x512xf32, #tpu.memory_space<vmem>>, vector<8x512xf32>
    %643 = arith.truncf %639 : vector<8x128xf32> to vector<8x128xbf16>
    %cst_184 = arith.constant dense<0.000000e+00> : vector<8x512xf32>
    %644 = tpu.matmul %643, %488, %cst_184 {dimension_numbers = #tpu.dot_dimension_numbers<[1], [0], [0], [1], [0, 0, 1, 1], [], []>} : vector<8x128xbf16>, vector<128x512xbf16>, vector<8x512xf32> -> vector<8x512xf32>
    %645 = arith.addf %642, %644 : vector<8x512xf32>
    %646 = vector.extract_strided_slice %645 {offsets = [0, 0], sizes = [8, 128], strides = [1, 1]} : vector<8x512xf32> to vector<8x128xf32>
    %647 = arith.negf %646 : vector<8x128xf32>
    %648 = math.exp %647 : vector<8x128xf32>
    %cst_185 = arith.constant 1.000000e+00 : f32
    %649 = vector.broadcast %cst_185 : f32 to vector<8x128xf32>
    %650 = arith.addf %649, %648 : vector<8x128xf32>
    %651 = arith.divf %649, %650 : vector<8x128xf32>
    %652 = vector.extract_strided_slice %645 {offsets = [0, 256], sizes = [8, 128], strides = [1, 1]} : vector<8x512xf32> to vector<8x128xf32>
    %653 = math.tanh %652 : vector<8x128xf32>
    %654 = vector.extract_strided_slice %645 {offsets = [0, 384], sizes = [8, 128], strides = [1, 1]} : vector<8x512xf32> to vector<8x128xf32>
    %655 = arith.negf %654 : vector<8x128xf32>
    %656 = math.exp %655 : vector<8x128xf32>
    %cst_186 = arith.constant 1.000000e+00 : f32
    %657 = vector.broadcast %cst_186 : f32 to vector<8x128xf32>
    %658 = arith.addf %657, %656 : vector<8x128xf32>
    %659 = arith.divf %657, %658 : vector<8x128xf32>
    %660 = vector.extract_strided_slice %645 {offsets = [0, 128], sizes = [8, 128], strides = [1, 1]} : vector<8x512xf32> to vector<8x128xf32>
    %661 = arith.negf %660 : vector<8x128xf32>
    %662 = math.exp %661 : vector<8x128xf32>
    %cst_187 = arith.constant 1.000000e+00 : f32
    %663 = vector.broadcast %cst_187 : f32 to vector<8x128xf32>
    %664 = arith.addf %663, %662 : vector<8x128xf32>
    %665 = arith.divf %663, %664 : vector<8x128xf32>
    %666 = arith.mulf %665, %637 : vector<8x128xf32>
    %667 = arith.mulf %651, %653 : vector<8x128xf32>
    %668 = arith.addf %666, %667 : vector<8x128xf32>
    %669 = math.tanh %668 : vector<8x128xf32>
    %670 = arith.mulf %659, %669 : vector<8x128xf32>
    %671 = arith.truncf %670 : vector<8x128xf32> to vector<8x128xbf16>
    %c40_188 = arith.constant 40 : index
    %c0_189 = arith.constant 0 : index
    %672 = vector.load %arg7[%c40_188, %c0_189] : memref<64x128xbf16, #tpu.memory_space<vmem>>, vector<8x128xbf16>
    tpu.vector_store %arg7[%c40_188, %c0_189], %671 {strides = array<i32>} : memref<64x128xbf16, #tpu.memory_space<vmem>>, vector<8x128xbf16>,
    %c48_190 = arith.constant 48 : index
    %c0_191 = arith.constant 0 : index
    %673 = vector.load %arg8[%c48_190, %c0_191] : memref<64x512xf32, #tpu.memory_space<vmem>>, vector<8x512xf32>
    %674 = arith.truncf %670 : vector<8x128xf32> to vector<8x128xbf16>
    %cst_192 = arith.constant dense<0.000000e+00> : vector<8x512xf32>
    %675 = tpu.matmul %674, %488, %cst_192 {dimension_numbers = #tpu.dot_dimension_numbers<[1], [0], [0], [1], [0, 0, 1, 1], [], []>} : vector<8x128xbf16>, vector<128x512xbf16>, vector<8x512xf32> -> vector<8x512xf32>
    %676 = arith.addf %673, %675 : vector<8x512xf32>
    %677 = vector.extract_strided_slice %676 {offsets = [0, 0], sizes = [8, 128], strides = [1, 1]} : vector<8x512xf32> to vector<8x128xf32>
    %678 = arith.negf %677 : vector<8x128xf32>
    %679 = math.exp %678 : vector<8x128xf32>
    %cst_193 = arith.constant 1.000000e+00 : f32
    %680 = vector.broadcast %cst_193 : f32 to vector<8x128xf32>
    %681 = arith.addf %680, %679 : vector<8x128xf32>
    %682 = arith.divf %680, %681 : vector<8x128xf32>
    %683 = vector.extract_strided_slice %676 {offsets = [0, 256], sizes = [8, 128], strides = [1, 1]} : vector<8x512xf32> to vector<8x128xf32>
    %684 = math.tanh %683 : vector<8x128xf32>
    %685 = vector.extract_strided_slice %676 {offsets = [0, 384], sizes = [8, 128], strides = [1, 1]} : vector<8x512xf32> to vector<8x128xf32>
    %686 = arith.negf %685 : vector<8x128xf32>
    %687 = math.exp %686 : vector<8x128xf32>
    %cst_194 = arith.constant 1.000000e+00 : f32
    %688 = vector.broadcast %cst_194 : f32 to vector<8x128xf32>
    %689 = arith.addf %688, %687 : vector<8x128xf32>
    %690 = arith.divf %688, %689 : vector<8x128xf32>
    %691 = vector.extract_strided_slice %676 {offsets = [0, 128], sizes = [8, 128], strides = [1, 1]} : vector<8x512xf32> to vector<8x128xf32>
    %692 = arith.negf %691 : vector<8x128xf32>
    %693 = math.exp %692 : vector<8x128xf32>
    %cst_195 = arith.constant 1.000000e+00 : f32
    %694 = vector.broadcast %cst_195 : f32 to vector<8x128xf32>
    %695 = arith.addf %694, %693 : vector<8x128xf32>
    %696 = arith.divf %694, %695 : vector<8x128xf32>
    %697 = arith.mulf %696, %668 : vector<8x128xf32>
    %698 = arith.mulf %682, %684 : vector<8x128xf32>
    %699 = arith.addf %697, %698 : vector<8x128xf32>
    %700 = math.tanh %699 : vector<8x128xf32>
    %701 = arith.mulf %690, %700 : vector<8x128xf32>
    %702 = arith.truncf %701 : vector<8x128xf32> to vector<8x128xbf16>
    %c48_196 = arith.constant 48 : index
    %c0_197 = arith.constant 0 : index
    %703 = vector.load %arg7[%c48_196, %c0_197] : memref<64x128xbf16, #tpu.memory_space<vmem>>, vector<8x128xbf16>
    tpu.vector_store %arg7[%c48_196, %c0_197], %702 {strides = array<i32>} : memref<64x128xbf16, #tpu.memory_space<vmem>>, vector<8x128xbf16>,
    %c56_198 = arith.constant 56 : index
    %c0_199 = arith.constant 0 : index
    %704 = vector.load %arg8[%c56_198, %c0_199] : memref<64x512xf32, #tpu.memory_space<vmem>>, vector<8x512xf32>
    %705 = arith.truncf %701 : vector<8x128xf32> to vector<8x128xbf16>
    %cst_200 = arith.constant dense<0.000000e+00> : vector<8x512xf32>
    %706 = tpu.matmul %705, %488, %cst_200 {dimension_numbers = #tpu.dot_dimension_numbers<[1], [0], [0], [1], [0, 0, 1, 1], [], []>} : vector<8x128xbf16>, vector<128x512xbf16>, vector<8x512xf32> -> vector<8x512xf32>
    %707 = arith.addf %704, %706 : vector<8x512xf32>
    %708 = vector.extract_strided_slice %707 {offsets = [0, 0], sizes = [8, 128], strides = [1, 1]} : vector<8x512xf32> to vector<8x128xf32>
    %709 = arith.negf %708 : vector<8x128xf32>
    %710 = math.exp %709 : vector<8x128xf32>
    %cst_201 = arith.constant 1.000000e+00 : f32
    %711 = vector.broadcast %cst_201 : f32 to vector<8x128xf32>
    %712 = arith.addf %711, %710 : vector<8x128xf32>
    %713 = arith.divf %711, %712 : vector<8x128xf32>
    %714 = vector.extract_strided_slice %707 {offsets = [0, 256], sizes = [8, 128], strides = [1, 1]} : vector<8x512xf32> to vector<8x128xf32>
    %715 = math.tanh %714 : vector<8x128xf32>
    %716 = vector.extract_strided_slice %707 {offsets = [0, 384], sizes = [8, 128], strides = [1, 1]} : vector<8x512xf32> to vector<8x128xf32>
    %717 = arith.negf %716 : vector<8x128xf32>
    %718 = math.exp %717 : vector<8x128xf32>
    %cst_202 = arith.constant 1.000000e+00 : f32
    %719 = vector.broadcast %cst_202 : f32 to vector<8x128xf32>
    %720 = arith.addf %719, %718 : vector<8x128xf32>
    %721 = arith.divf %719, %720 : vector<8x128xf32>
    %722 = vector.extract_strided_slice %707 {offsets = [0, 128], sizes = [8, 128], strides = [1, 1]} : vector<8x512xf32> to vector<8x128xf32>
    %723 = arith.negf %722 : vector<8x128xf32>
    %724 = math.exp %723 : vector<8x128xf32>
    %cst_203 = arith.constant 1.000000e+00 : f32
    %725 = vector.broadcast %cst_203 : f32 to vector<8x128xf32>
    %726 = arith.addf %725, %724 : vector<8x128xf32>
    %727 = arith.divf %725, %726 : vector<8x128xf32>
    %728 = arith.mulf %727, %699 : vector<8x128xf32>
    %729 = arith.mulf %713, %715 : vector<8x128xf32>
    %730 = arith.addf %728, %729 : vector<8x128xf32>
    %731 = math.tanh %730 : vector<8x128xf32>
    %732 = arith.mulf %721, %731 : vector<8x128xf32>
    %733 = arith.truncf %732 : vector<8x128xf32> to vector<8x128xbf16>
    %c56_204 = arith.constant 56 : index
    %c0_205 = arith.constant 0 : index
    %734 = vector.load %arg7[%c56_204, %c0_205] : memref<64x128xbf16, #tpu.memory_space<vmem>>, vector<8x128xbf16>
    tpu.vector_store %arg7[%c56_204, %c0_205], %733 {strides = array<i32>} : memref<64x128xbf16, #tpu.memory_space<vmem>>, vector<8x128xbf16>,
    %c3 = arith.constant 3 : index
    %c0_206 = arith.constant 0 : index
    %c0_207 = arith.constant 0 : index
    %735 = vector.load %arg2[%c3, %c0_206, %c0_207] : memref<4x128x512xbf16, #tpu.memory_space<vmem>>, vector<1x128x512xbf16>
    %736 = vector.shape_cast %735 : vector<1x128x512xbf16> to vector<128x512xbf16>
    %c0_208 = arith.constant 0 : index
    %c0_209 = arith.constant 0 : index
    %737 = vector.load %arg7[%c0_208, %c0_209] : memref<64x128xbf16, #tpu.memory_space<vmem>>, vector<64x128xbf16>
    %c2_210 = arith.constant 2 : index
    %c0_211 = arith.constant 0 : index
    %c0_212 = arith.constant 0 : index
    %738 = vector.load %arg1[%c2_210, %c0_211, %c0_212] : memref<3x128x512xbf16, #tpu.memory_space<vmem>>, vector<1x128x512xbf16>
    %739 = vector.shape_cast %738 : vector<1x128x512xbf16> to vector<128x512xbf16>
    %cst_213 = arith.constant dense<0.000000e+00> : vector<64x512xf32>
    %740 = tpu.matmul %737, %739, %cst_213 {dimension_numbers = #tpu.dot_dimension_numbers<[1], [0], [0], [1], [0, 0, 1, 1], [], []>} : vector<64x128xbf16>, vector<128x512xbf16>, vector<64x512xf32> -> vector<64x512xf32>
    %c2_214 = arith.constant 2 : index
    %c0_215 = arith.constant 0 : index
    %c0_216 = arith.constant 0 : index
    %741 = vector.load %arg3[%c2_214, %c0_215, %c0_216] : memref<3x1x512xf32, #tpu.memory_space<vmem>>, vector<1x1x512xf32>
    %742 = vector.shape_cast %741 : vector<1x1x512xf32> to vector<1x512xf32>
    %743 = vector.broadcast %742 : vector<1x512xf32> to vector<64x512xf32>
    %744 = arith.addf %740, %743 : vector<64x512xf32>
    %c0_217 = arith.constant 0 : index
    %c0_218 = arith.constant 0 : index
    %745 = vector.load %arg8[%c0_217, %c0_218] : memref<64x512xf32, #tpu.memory_space<vmem>>, vector<64x512xf32>
    tpu.vector_store %arg8[%c0_217, %c0_218], %744 {strides = array<i32>} : memref<64x512xf32, #tpu.memory_space<vmem>>, vector<64x512xf32>,
    %c0_219 = arith.constant 0 : index
    %c0_220 = arith.constant 0 : index
    %746 = vector.load %arg8[%c0_219, %c0_220] : memref<64x512xf32, #tpu.memory_space<vmem>>, vector<8x512xf32>
    %747 = vector.extract_strided_slice %746 {offsets = [0, 0], sizes = [8, 128], strides = [1, 1]} : vector<8x512xf32> to vector<8x128xf32>
    %748 = arith.negf %747 : vector<8x128xf32>
    %749 = math.exp %748 : vector<8x128xf32>
    %cst_221 = arith.constant 1.000000e+00 : f32
    %750 = vector.broadcast %cst_221 : f32 to vector<8x128xf32>
    %751 = arith.addf %750, %749 : vector<8x128xf32>
    %752 = arith.divf %750, %751 : vector<8x128xf32>
    %753 = vector.extract_strided_slice %746 {offsets = [0, 256], sizes = [8, 128], strides = [1, 1]} : vector<8x512xf32> to vector<8x128xf32>
    %754 = math.tanh %753 : vector<8x128xf32>
    %755 = vector.extract_strided_slice %746 {offsets = [0, 384], sizes = [8, 128], strides = [1, 1]} : vector<8x512xf32> to vector<8x128xf32>
    %756 = arith.negf %755 : vector<8x128xf32>
    %757 = math.exp %756 : vector<8x128xf32>
    %cst_222 = arith.constant 1.000000e+00 : f32
    %758 = vector.broadcast %cst_222 : f32 to vector<8x128xf32>
    %759 = arith.addf %758, %757 : vector<8x128xf32>
    %760 = arith.divf %758, %759 : vector<8x128xf32>
    %761 = arith.mulf %752, %754 : vector<8x128xf32>
    %762 = math.tanh %761 : vector<8x128xf32>
    %763 = arith.mulf %760, %762 : vector<8x128xf32>
    %c8_223 = arith.constant 8 : index
    %c0_224 = arith.constant 0 : index
    %764 = vector.load %arg8[%c8_223, %c0_224] : memref<64x512xf32, #tpu.memory_space<vmem>>, vector<8x512xf32>
    %765 = arith.truncf %763 : vector<8x128xf32> to vector<8x128xbf16>
    %cst_225 = arith.constant dense<0.000000e+00> : vector<8x512xf32>
    %766 = tpu.matmul %765, %736, %cst_225 {dimension_numbers = #tpu.dot_dimension_numbers<[1], [0], [0], [1], [0, 0, 1, 1], [], []>} : vector<8x128xbf16>, vector<128x512xbf16>, vector<8x512xf32> -> vector<8x512xf32>
    %767 = arith.addf %764, %766 : vector<8x512xf32>
    %768 = vector.extract_strided_slice %767 {offsets = [0, 0], sizes = [8, 128], strides = [1, 1]} : vector<8x512xf32> to vector<8x128xf32>
    %769 = arith.negf %768 : vector<8x128xf32>
    %770 = math.exp %769 : vector<8x128xf32>
    %cst_226 = arith.constant 1.000000e+00 : f32
    %771 = vector.broadcast %cst_226 : f32 to vector<8x128xf32>
    %772 = arith.addf %771, %770 : vector<8x128xf32>
    %773 = arith.divf %771, %772 : vector<8x128xf32>
    %774 = vector.extract_strided_slice %767 {offsets = [0, 256], sizes = [8, 128], strides = [1, 1]} : vector<8x512xf32> to vector<8x128xf32>
    %775 = math.tanh %774 : vector<8x128xf32>
    %776 = vector.extract_strided_slice %767 {offsets = [0, 384], sizes = [8, 128], strides = [1, 1]} : vector<8x512xf32> to vector<8x128xf32>
    %777 = arith.negf %776 : vector<8x128xf32>
    %778 = math.exp %777 : vector<8x128xf32>
    %cst_227 = arith.constant 1.000000e+00 : f32
    %779 = vector.broadcast %cst_227 : f32 to vector<8x128xf32>
    %780 = arith.addf %779, %778 : vector<8x128xf32>
    %781 = arith.divf %779, %780 : vector<8x128xf32>
    %782 = vector.extract_strided_slice %767 {offsets = [0, 128], sizes = [8, 128], strides = [1, 1]} : vector<8x512xf32> to vector<8x128xf32>
    %783 = arith.negf %782 : vector<8x128xf32>
    %784 = math.exp %783 : vector<8x128xf32>
    %cst_228 = arith.constant 1.000000e+00 : f32
    %785 = vector.broadcast %cst_228 : f32 to vector<8x128xf32>
    %786 = arith.addf %785, %784 : vector<8x128xf32>
    %787 = arith.divf %785, %786 : vector<8x128xf32>
    %788 = arith.mulf %787, %761 : vector<8x128xf32>
    %789 = arith.mulf %773, %775 : vector<8x128xf32>
    %790 = arith.addf %788, %789 : vector<8x128xf32>
    %791 = math.tanh %790 : vector<8x128xf32>
    %792 = arith.mulf %781, %791 : vector<8x128xf32>
    %c16_229 = arith.constant 16 : index
    %c0_230 = arith.constant 0 : index
    %793 = vector.load %arg8[%c16_229, %c0_230] : memref<64x512xf32, #tpu.memory_space<vmem>>, vector<8x512xf32>
    %794 = arith.truncf %792 : vector<8x128xf32> to vector<8x128xbf16>
    %cst_231 = arith.constant dense<0.000000e+00> : vector<8x512xf32>
    %795 = tpu.matmul %794, %736, %cst_231 {dimension_numbers = #tpu.dot_dimension_numbers<[1], [0], [0], [1], [0, 0, 1, 1], [], []>} : vector<8x128xbf16>, vector<128x512xbf16>, vector<8x512xf32> -> vector<8x512xf32>
    %796 = arith.addf %793, %795 : vector<8x512xf32>
    %797 = vector.extract_strided_slice %796 {offsets = [0, 0], sizes = [8, 128], strides = [1, 1]} : vector<8x512xf32> to vector<8x128xf32>
    %798 = arith.negf %797 : vector<8x128xf32>
    %799 = math.exp %798 : vector<8x128xf32>
    %cst_232 = arith.constant 1.000000e+00 : f32
    %800 = vector.broadcast %cst_232 : f32 to vector<8x128xf32>
    %801 = arith.addf %800, %799 : vector<8x128xf32>
    %802 = arith.divf %800, %801 : vector<8x128xf32>
    %803 = vector.extract_strided_slice %796 {offsets = [0, 256], sizes = [8, 128], strides = [1, 1]} : vector<8x512xf32> to vector<8x128xf32>
    %804 = math.tanh %803 : vector<8x128xf32>
    %805 = vector.extract_strided_slice %796 {offsets = [0, 384], sizes = [8, 128], strides = [1, 1]} : vector<8x512xf32> to vector<8x128xf32>
    %806 = arith.negf %805 : vector<8x128xf32>
    %807 = math.exp %806 : vector<8x128xf32>
    %cst_233 = arith.constant 1.000000e+00 : f32
    %808 = vector.broadcast %cst_233 : f32 to vector<8x128xf32>
    %809 = arith.addf %808, %807 : vector<8x128xf32>
    %810 = arith.divf %808, %809 : vector<8x128xf32>
    %811 = vector.extract_strided_slice %796 {offsets = [0, 128], sizes = [8, 128], strides = [1, 1]} : vector<8x512xf32> to vector<8x128xf32>
    %812 = arith.negf %811 : vector<8x128xf32>
    %813 = math.exp %812 : vector<8x128xf32>
    %cst_234 = arith.constant 1.000000e+00 : f32
    %814 = vector.broadcast %cst_234 : f32 to vector<8x128xf32>
    %815 = arith.addf %814, %813 : vector<8x128xf32>
    %816 = arith.divf %814, %815 : vector<8x128xf32>
    %817 = arith.mulf %816, %790 : vector<8x128xf32>
    %818 = arith.mulf %802, %804 : vector<8x128xf32>
    %819 = arith.addf %817, %818 : vector<8x128xf32>
    %820 = math.tanh %819 : vector<8x128xf32>
    %821 = arith.mulf %810, %820 : vector<8x128xf32>
    %c24_235 = arith.constant 24 : index
    %c0_236 = arith.constant 0 : index
    %822 = vector.load %arg8[%c24_235, %c0_236] : memref<64x512xf32, #tpu.memory_space<vmem>>, vector<8x512xf32>
    %823 = arith.truncf %821 : vector<8x128xf32> to vector<8x128xbf16>
    %cst_237 = arith.constant dense<0.000000e+00> : vector<8x512xf32>
    %824 = tpu.matmul %823, %736, %cst_237 {dimension_numbers = #tpu.dot_dimension_numbers<[1], [0], [0], [1], [0, 0, 1, 1], [], []>} : vector<8x128xbf16>, vector<128x512xbf16>, vector<8x512xf32> -> vector<8x512xf32>
    %825 = arith.addf %822, %824 : vector<8x512xf32>
    %826 = vector.extract_strided_slice %825 {offsets = [0, 0], sizes = [8, 128], strides = [1, 1]} : vector<8x512xf32> to vector<8x128xf32>
    %827 = arith.negf %826 : vector<8x128xf32>
    %828 = math.exp %827 : vector<8x128xf32>
    %cst_238 = arith.constant 1.000000e+00 : f32
    %829 = vector.broadcast %cst_238 : f32 to vector<8x128xf32>
    %830 = arith.addf %829, %828 : vector<8x128xf32>
    %831 = arith.divf %829, %830 : vector<8x128xf32>
    %832 = vector.extract_strided_slice %825 {offsets = [0, 256], sizes = [8, 128], strides = [1, 1]} : vector<8x512xf32> to vector<8x128xf32>
    %833 = math.tanh %832 : vector<8x128xf32>
    %834 = vector.extract_strided_slice %825 {offsets = [0, 384], sizes = [8, 128], strides = [1, 1]} : vector<8x512xf32> to vector<8x128xf32>
    %835 = arith.negf %834 : vector<8x128xf32>
    %836 = math.exp %835 : vector<8x128xf32>
    %cst_239 = arith.constant 1.000000e+00 : f32
    %837 = vector.broadcast %cst_239 : f32 to vector<8x128xf32>
    %838 = arith.addf %837, %836 : vector<8x128xf32>
    %839 = arith.divf %837, %838 : vector<8x128xf32>
    %840 = vector.extract_strided_slice %825 {offsets = [0, 128], sizes = [8, 128], strides = [1, 1]} : vector<8x512xf32> to vector<8x128xf32>
    %841 = arith.negf %840 : vector<8x128xf32>
    %842 = math.exp %841 : vector<8x128xf32>
    %cst_240 = arith.constant 1.000000e+00 : f32
    %843 = vector.broadcast %cst_240 : f32 to vector<8x128xf32>
    %844 = arith.addf %843, %842 : vector<8x128xf32>
    %845 = arith.divf %843, %844 : vector<8x128xf32>
    %846 = arith.mulf %845, %819 : vector<8x128xf32>
    %847 = arith.mulf %831, %833 : vector<8x128xf32>
    %848 = arith.addf %846, %847 : vector<8x128xf32>
    %849 = math.tanh %848 : vector<8x128xf32>
    %850 = arith.mulf %839, %849 : vector<8x128xf32>
    %c32_241 = arith.constant 32 : index
    %c0_242 = arith.constant 0 : index
    %851 = vector.load %arg8[%c32_241, %c0_242] : memref<64x512xf32, #tpu.memory_space<vmem>>, vector<8x512xf32>
    %852 = arith.truncf %850 : vector<8x128xf32> to vector<8x128xbf16>
    %cst_243 = arith.constant dense<0.000000e+00> : vector<8x512xf32>
    %853 = tpu.matmul %852, %736, %cst_243 {dimension_numbers = #tpu.dot_dimension_numbers<[1], [0], [0], [1], [0, 0, 1, 1], [], []>} : vector<8x128xbf16>, vector<128x512xbf16>, vector<8x512xf32> -> vector<8x512xf32>
    %854 = arith.addf %851, %853 : vector<8x512xf32>
    %855 = vector.extract_strided_slice %854 {offsets = [0, 0], sizes = [8, 128], strides = [1, 1]} : vector<8x512xf32> to vector<8x128xf32>
    %856 = arith.negf %855 : vector<8x128xf32>
    %857 = math.exp %856 : vector<8x128xf32>
    %cst_244 = arith.constant 1.000000e+00 : f32
    %858 = vector.broadcast %cst_244 : f32 to vector<8x128xf32>
    %859 = arith.addf %858, %857 : vector<8x128xf32>
    %860 = arith.divf %858, %859 : vector<8x128xf32>
    %861 = vector.extract_strided_slice %854 {offsets = [0, 256], sizes = [8, 128], strides = [1, 1]} : vector<8x512xf32> to vector<8x128xf32>
    %862 = math.tanh %861 : vector<8x128xf32>
    %863 = vector.extract_strided_slice %854 {offsets = [0, 384], sizes = [8, 128], strides = [1, 1]} : vector<8x512xf32> to vector<8x128xf32>
    %864 = arith.negf %863 : vector<8x128xf32>
    %865 = math.exp %864 : vector<8x128xf32>
    %cst_245 = arith.constant 1.000000e+00 : f32
    %866 = vector.broadcast %cst_245 : f32 to vector<8x128xf32>
    %867 = arith.addf %866, %865 : vector<8x128xf32>
    %868 = arith.divf %866, %867 : vector<8x128xf32>
    %869 = vector.extract_strided_slice %854 {offsets = [0, 128], sizes = [8, 128], strides = [1, 1]} : vector<8x512xf32> to vector<8x128xf32>
    %870 = arith.negf %869 : vector<8x128xf32>
    %871 = math.exp %870 : vector<8x128xf32>
    %cst_246 = arith.constant 1.000000e+00 : f32
    %872 = vector.broadcast %cst_246 : f32 to vector<8x128xf32>
    %873 = arith.addf %872, %871 : vector<8x128xf32>
    %874 = arith.divf %872, %873 : vector<8x128xf32>
    %875 = arith.mulf %874, %848 : vector<8x128xf32>
    %876 = arith.mulf %860, %862 : vector<8x128xf32>
    %877 = arith.addf %875, %876 : vector<8x128xf32>
    %878 = math.tanh %877 : vector<8x128xf32>
    %879 = arith.mulf %868, %878 : vector<8x128xf32>
    %c40_247 = arith.constant 40 : index
    %c0_248 = arith.constant 0 : index
    %880 = vector.load %arg8[%c40_247, %c0_248] : memref<64x512xf32, #tpu.memory_space<vmem>>, vector<8x512xf32>
    %881 = arith.truncf %879 : vector<8x128xf32> to vector<8x128xbf16>
    %cst_249 = arith.constant dense<0.000000e+00> : vector<8x512xf32>
    %882 = tpu.matmul %881, %736, %cst_249 {dimension_numbers = #tpu.dot_dimension_numbers<[1], [0], [0], [1], [0, 0, 1, 1], [], []>} : vector<8x128xbf16>, vector<128x512xbf16>, vector<8x512xf32> -> vector<8x512xf32>
    %883 = arith.addf %880, %882 : vector<8x512xf32>
    %884 = vector.extract_strided_slice %883 {offsets = [0, 0], sizes = [8, 128], strides = [1, 1]} : vector<8x512xf32> to vector<8x128xf32>
    %885 = arith.negf %884 : vector<8x128xf32>
    %886 = math.exp %885 : vector<8x128xf32>
    %cst_250 = arith.constant 1.000000e+00 : f32
    %887 = vector.broadcast %cst_250 : f32 to vector<8x128xf32>
    %888 = arith.addf %887, %886 : vector<8x128xf32>
    %889 = arith.divf %887, %888 : vector<8x128xf32>
    %890 = vector.extract_strided_slice %883 {offsets = [0, 256], sizes = [8, 128], strides = [1, 1]} : vector<8x512xf32> to vector<8x128xf32>
    %891 = math.tanh %890 : vector<8x128xf32>
    %892 = vector.extract_strided_slice %883 {offsets = [0, 384], sizes = [8, 128], strides = [1, 1]} : vector<8x512xf32> to vector<8x128xf32>
    %893 = arith.negf %892 : vector<8x128xf32>
    %894 = math.exp %893 : vector<8x128xf32>
    %cst_251 = arith.constant 1.000000e+00 : f32
    %895 = vector.broadcast %cst_251 : f32 to vector<8x128xf32>
    %896 = arith.addf %895, %894 : vector<8x128xf32>
    %897 = arith.divf %895, %896 : vector<8x128xf32>
    %898 = vector.extract_strided_slice %883 {offsets = [0, 128], sizes = [8, 128], strides = [1, 1]} : vector<8x512xf32> to vector<8x128xf32>
    %899 = arith.negf %898 : vector<8x128xf32>
    %900 = math.exp %899 : vector<8x128xf32>
    %cst_252 = arith.constant 1.000000e+00 : f32
    %901 = vector.broadcast %cst_252 : f32 to vector<8x128xf32>
    %902 = arith.addf %901, %900 : vector<8x128xf32>
    %903 = arith.divf %901, %902 : vector<8x128xf32>
    %904 = arith.mulf %903, %877 : vector<8x128xf32>
    %905 = arith.mulf %889, %891 : vector<8x128xf32>
    %906 = arith.addf %904, %905 : vector<8x128xf32>
    %907 = math.tanh %906 : vector<8x128xf32>
    %908 = arith.mulf %897, %907 : vector<8x128xf32>
    %c48_253 = arith.constant 48 : index
    %c0_254 = arith.constant 0 : index
    %909 = vector.load %arg8[%c48_253, %c0_254] : memref<64x512xf32, #tpu.memory_space<vmem>>, vector<8x512xf32>
    %910 = arith.truncf %908 : vector<8x128xf32> to vector<8x128xbf16>
    %cst_255 = arith.constant dense<0.000000e+00> : vector<8x512xf32>
    %911 = tpu.matmul %910, %736, %cst_255 {dimension_numbers = #tpu.dot_dimension_numbers<[1], [0], [0], [1], [0, 0, 1, 1], [], []>} : vector<8x128xbf16>, vector<128x512xbf16>, vector<8x512xf32> -> vector<8x512xf32>
    %912 = arith.addf %909, %911 : vector<8x512xf32>
    %913 = vector.extract_strided_slice %912 {offsets = [0, 0], sizes = [8, 128], strides = [1, 1]} : vector<8x512xf32> to vector<8x128xf32>
    %914 = arith.negf %913 : vector<8x128xf32>
    %915 = math.exp %914 : vector<8x128xf32>
    %cst_256 = arith.constant 1.000000e+00 : f32
    %916 = vector.broadcast %cst_256 : f32 to vector<8x128xf32>
    %917 = arith.addf %916, %915 : vector<8x128xf32>
    %918 = arith.divf %916, %917 : vector<8x128xf32>
    %919 = vector.extract_strided_slice %912 {offsets = [0, 256], sizes = [8, 128], strides = [1, 1]} : vector<8x512xf32> to vector<8x128xf32>
    %920 = math.tanh %919 : vector<8x128xf32>
    %921 = vector.extract_strided_slice %912 {offsets = [0, 384], sizes = [8, 128], strides = [1, 1]} : vector<8x512xf32> to vector<8x128xf32>
    %922 = arith.negf %921 : vector<8x128xf32>
    %923 = math.exp %922 : vector<8x128xf32>
    %cst_257 = arith.constant 1.000000e+00 : f32
    %924 = vector.broadcast %cst_257 : f32 to vector<8x128xf32>
    %925 = arith.addf %924, %923 : vector<8x128xf32>
    %926 = arith.divf %924, %925 : vector<8x128xf32>
    %927 = vector.extract_strided_slice %912 {offsets = [0, 128], sizes = [8, 128], strides = [1, 1]} : vector<8x512xf32> to vector<8x128xf32>
    %928 = arith.negf %927 : vector<8x128xf32>
    %929 = math.exp %928 : vector<8x128xf32>
    %cst_258 = arith.constant 1.000000e+00 : f32
    %930 = vector.broadcast %cst_258 : f32 to vector<8x128xf32>
    %931 = arith.addf %930, %929 : vector<8x128xf32>
    %932 = arith.divf %930, %931 : vector<8x128xf32>
    %933 = arith.mulf %932, %906 : vector<8x128xf32>
    %934 = arith.mulf %918, %920 : vector<8x128xf32>
    %935 = arith.addf %933, %934 : vector<8x128xf32>
    %936 = math.tanh %935 : vector<8x128xf32>
    %937 = arith.mulf %926, %936 : vector<8x128xf32>
    %c56_259 = arith.constant 56 : index
    %c0_260 = arith.constant 0 : index
    %938 = vector.load %arg8[%c56_259, %c0_260] : memref<64x512xf32, #tpu.memory_space<vmem>>, vector<8x512xf32>
    %939 = arith.truncf %937 : vector<8x128xf32> to vector<8x128xbf16>
    %cst_261 = arith.constant dense<0.000000e+00> : vector<8x512xf32>
    %940 = tpu.matmul %939, %736, %cst_261 {dimension_numbers = #tpu.dot_dimension_numbers<[1], [0], [0], [1], [0, 0, 1, 1], [], []>} : vector<8x128xbf16>, vector<128x512xbf16>, vector<8x512xf32> -> vector<8x512xf32>
    %941 = arith.addf %938, %940 : vector<8x512xf32>
    %942 = vector.extract_strided_slice %941 {offsets = [0, 0], sizes = [8, 128], strides = [1, 1]} : vector<8x512xf32> to vector<8x128xf32>
    %943 = arith.negf %942 : vector<8x128xf32>
    %944 = math.exp %943 : vector<8x128xf32>
    %cst_262 = arith.constant 1.000000e+00 : f32
    %945 = vector.broadcast %cst_262 : f32 to vector<8x128xf32>
    %946 = arith.addf %945, %944 : vector<8x128xf32>
    %947 = arith.divf %945, %946 : vector<8x128xf32>
    %948 = vector.extract_strided_slice %941 {offsets = [0, 256], sizes = [8, 128], strides = [1, 1]} : vector<8x512xf32> to vector<8x128xf32>
    %949 = math.tanh %948 : vector<8x128xf32>
    %950 = vector.extract_strided_slice %941 {offsets = [0, 384], sizes = [8, 128], strides = [1, 1]} : vector<8x512xf32> to vector<8x128xf32>
    %951 = arith.negf %950 : vector<8x128xf32>
    %952 = math.exp %951 : vector<8x128xf32>
    %cst_263 = arith.constant 1.000000e+00 : f32
    %953 = vector.broadcast %cst_263 : f32 to vector<8x128xf32>
    %954 = arith.addf %953, %952 : vector<8x128xf32>
    %955 = arith.divf %953, %954 : vector<8x128xf32>
    %956 = vector.extract_strided_slice %941 {offsets = [0, 128], sizes = [8, 128], strides = [1, 1]} : vector<8x512xf32> to vector<8x128xf32>
    %957 = arith.negf %956 : vector<8x128xf32>
    %958 = math.exp %957 : vector<8x128xf32>
    %cst_264 = arith.constant 1.000000e+00 : f32
    %959 = vector.broadcast %cst_264 : f32 to vector<8x128xf32>
    %960 = arith.addf %959, %958 : vector<8x128xf32>
    %961 = arith.divf %959, %960 : vector<8x128xf32>
    %962 = arith.mulf %961, %935 : vector<8x128xf32>
    %963 = arith.mulf %947, %949 : vector<8x128xf32>
    %964 = arith.addf %962, %963 : vector<8x128xf32>
    %965 = math.tanh %964 : vector<8x128xf32>
    %966 = arith.mulf %955, %965 : vector<8x128xf32>
    %c0_265 = arith.constant 0 : index
    %c0_266 = arith.constant 0 : index
    %967 = vector.load %arg4[%c0_265, %c0_266] : memref<128x128xf32, #tpu.memory_space<vmem>>, vector<128x128xf32>
    %cst_267 = arith.constant dense<0.000000e+00> : vector<8x128xf32>
    %968 = tpu.matmul %966, %967, %cst_267 {dimension_numbers = #tpu.dot_dimension_numbers<[1], [0], [0], [1], [0, 0, 1, 1], [], []>} : vector<8x128xf32>, vector<128x128xf32>, vector<8x128xf32> -> vector<8x128xf32>
    %c0_268 = arith.constant 0 : index
    %c0_269 = arith.constant 0 : index
    %969 = vector.load %arg5[%c0_268, %c0_269] : memref<1x128xf32, #tpu.memory_space<vmem>>, vector<1x128xf32>
    %970 = vector.broadcast %969 : vector<1x128xf32> to vector<8x128xf32>
    %971 = arith.addf %968, %970 : vector<8x128xf32>
    %c0_270 = arith.constant 0 : index
    %c0_271 = arith.constant 0 : index
    %972 = vector.load %arg6[%c0_270, %c0_271] : memref<8x128xf32, #tpu.memory_space<vmem>>, vector<8x128xf32>
    tpu.vector_store %arg6[%c0_270, %c0_271], %971 {strides = array<i32>} : memref<8x128xf32, #tpu.memory_space<vmem>>, vector<8x128xf32>,
    return
  }
}

</mosaic_0001>

<bundles_post_ra>
// kernel: eyetrack_point_forward.1
= control target key start
LH: loop header
LB: loop body
LE: loop exit
PB: predicated region body
PF: predicated region fallthrough
CT: control target
= control target key end

     0   :  { %v9883_v1 = vmov 0   ;;  %vm6965_vm0 = vmmov 0   ;;  %s9876_s2 = inlined_call_operand.vmem [shape: bf16[4,128,512], index: 2, kind: input, shape index: {}]   ;;  %s9877_s0 = inlined_call_operand.vmem [shape: f32[64,512], index: 0, kind: input, shape index: {}]   ;;  %s9878_s1 = inlined_call_operand.vmem [shape: bf16[3,128,512], index: 1, kind: input, shape index: {}]   ;;  %s9879_s3 = inlined_call_operand.vmem [shape: f32[3,1,512], index: 3, kind: input, shape index: {}]   ;;  %s9880_s4 = inlined_call_operand.vmem [shape: f32[128,128], index: 4, kind: input, shape index: {}]   ;;  %s9881_s5 = inlined_call_operand.vmem [shape: f32[1,128], index: 5, kind: input, shape index: {}]   ;;  %s9882_s6 = inlined_call_operand.vmem [shape: f32[8,128], index: 6, kind: output, shape index: {}]  }
   0x1   :  { %v7005_v0 = vld [vmem:[%s9876_s2 + $0x4] ss:$16 sps:$4 sm:$0xff]   ;;  %273 = vmatprep.mubr.bf16.mxu0 %v9883_v1  ;;  %314 = vmatprep.mubr.bf16.mxu1 %v9883_v1  ;;  %v7012_v2 = vld [vmem:[%s9876_s2] ss:$16 sps:$4 sm:$0xff]   ;;  %v7035_v6 = vld [vmem:[%s9876_s2 + $0xc] ss:$16 sps:$4 sm:$0xff]  }
   0x2   :  { %241 = vmatprep.subr.bf16.mxu0 %v7005_v0  ;;  %v7018_v3 = vld [vmem:[%s9876_s2 + $0x24] ss:$16 sps:$4 sm:$0xff]   ;;  %v7024_v4 = vld [vmem:[%s9876_s2 + $0x20] ss:$16 sps:$4 sm:$0xff]   ;;  %v7040_v7 = vld [vmem:[%s9876_s2 + $0x8] ss:$16 sps:$4 sm:$0xff]   ;;  %282 = vmatprep.subr.bf16.mxu1 %v7035_v6 }
   0x3   :  { %242 = vmatpush1.bf16.msra.mxu0 %v7012_v2  ;;  %v7030_v5 = vld [vmem:[%s9876_s2 + $0x44] ss:$16 sps:$4 sm:$0xff]   ;;  %v7046_v8 = vld [vmem:[%s9876_s2 + $0x40] ss:$16 sps:$4 sm:$0xff]   ;;  %283 = vmatpush1.bf16.msra.mxu1 %v7040_v7  ;;  %v7059_v10 = vld [vmem:[%s9876_s2 + $0x2c] ss:$16 sps:$4 sm:$0xff]  }
   0x4   :  { %243 = vmatprep.subr.bf16.mxu0 %v7018_v3  ;;  %v7053_v9 = vld [vmem:[%s9876_s2 + $0x64] ss:$16 sps:$4 sm:$0xff]   ;;  %v7064_v11 = vld [vmem:[%s9876_s2 + $0x28] ss:$16 sps:$4 sm:$0xff]   ;;  %284 = vmatprep.subr.bf16.mxu1 %v7059_v10  ;;  %v7071_v12 = vld [vmem:[%s9876_s2 + $0x60] ss:$16 sps:$4 sm:$0xff]  }
   0x5   :  { %v7076_v13 = vld [vmem:[%s9876_s2 + $0x84] ss:$16 sps:$4 sm:$0xff]   ;;  %v7081_v14 = vld [vmem:[%s9876_s2 + $0x4c] ss:$16 sps:$4 sm:$0xff]   ;;  %v7088_v15 = vld [vmem:[%s9876_s2 + $0x48] ss:$16 sps:$4 sm:$0xff]  }
   0x6   :  { %v7094_v16 = vld [vmem:[%s9876_s2 + $0x6c] ss:$16 sps:$4 sm:$0xff]   ;;  %v7100_v17 = vld [vmem:[%s9876_s2 + $0x80] ss:$16 sps:$4 sm:$0xff]   ;;  %v7106_v18 = vld [vmem:[%s9876_s2 + $0xa4] ss:$16 sps:$4 sm:$0xff]  }
   0x7   :  { %244 = vmatpush1.bf16.msra.mxu0 %v7024_v4  ;;  %285 = vmatpush1.bf16.msra.mxu1 %v7064_v11  ;;  %v7112_v19 = vld [vmem:[%s9876_s2 + $0x68] ss:$16 sps:$4 sm:$0xff]   ;;  %v7118_v20 = vld [vmem:[%s9876_s2 + $0x8c] ss:$16 sps:$4 sm:$0xff]   ;;  %v56_v21 = vld [vmem:[%s9877_s0] sm:$0xff] }
   0x8   :  { %245 = vmatprep.subr.bf16.mxu0 %v7030_v5  ;;  %286 = vmatprep.subr.bf16.mxu1 %v7081_v14  ;;  %v5444_v22 = vmul.f32 -1.442695, %v56_v21  ;;  %v7127_v23 = vld [vmem:[%s9876_s2 + $0xa0] ss:$16 sps:$4 sm:$0xff]   ;;  %v7132_v24 = vld [vmem:[%s9876_s2 + $0xc4] ss:$16 sps:$4 sm:$0xff]  }
   0x9   :  { %v7137_v25 = vld [vmem:[%s9876_s2 + $0x88] ss:$16 sps:$4 sm:$0xff]   ;;  %v7148_v27 = vld [vmem:[%s9876_s2 + $0xac] ss:$16 sps:$4 sm:$0xff]   ;;  %v7153_v28 = vld [vmem:[%s9876_s2 + $0xc0] ss:$16 sps:$4 sm:$0xff]  }
   0xa   :  { %v58_v26 = vld [vmem:[%s9877_s0 + $0x18] sm:$0xff]  ;;  %6339 = vpow2.f32 %v5444_v22  ;;  %v7158_v29 = vld [vmem:[%s9876_s2 + $0xe4] ss:$16 sps:$4 sm:$0xff]   ;;  %v7176_v33 = vld [vmem:[%s9876_s2 + $0xe0] ss:$16 sps:$4 sm:$0xff]  }
   0xb   :  { %246 = vmatpush1.bf16.msra.mxu0 %v7046_v8  ;;  %287 = vmatpush1.bf16.msra.mxu1 %v7088_v15  ;;  %v7163_v30 = vld [vmem:[%s9876_s2 + $0xa8] ss:$16 sps:$4 sm:$0xff]   ;;  %v5445_v31 = vmul.f32 -1.442695, %v58_v26  ;;  %v7169_v32 = vld [vmem:[%s9876_s2 + $0xcc] ss:$16 sps:$4 sm:$0xff]  }
   0xc   :  { %247 = vmatprep.subr.bf16.mxu0 %v7053_v9  ;;  %288 = vmatprep.subr.bf16.mxu1 %v7094_v16  ;;  %v57_v34 = vld [vmem:[%s9877_s0 + $0x10] sm:$0xff]  ;;  %v7185_v35 = vld [vmem:[%s9876_s2 + $0xc8] ss:$16 sps:$4 sm:$0xff]   ;;  %v7191_v36 = vld [vmem:[%s9876_s2 + $0xec] ss:$16 sps:$4 sm:$0xff]  }
   0xd   :  { %6341 = vpow2.f32 %v5445_v31  ;;  %v7199_v38 = vld [vmem:[%s9876_s2 + $0xe8] ss:$16 sps:$4 sm:$0xff]   ;;  %v77_v49 = vld [vmem:[%s9877_s0 + $0x20] sm:$0xff]  ;;  %v79_v22 = vld [vmem:[%s9877_s0 + $0x30] sm:$0xff] }
   0xe   :  { %6343 = vtanh.f32 %v57_v34  ;;  %v78_v50 = vld [vmem:[%s9877_s0 + $0x28] sm:$0xff]  ;;  %v80_v63 = vld [vmem:[%s9877_s0 + $0x38] sm:$0xff] }
   0xf   :  { %248 = vmatpush1.bf16.msra.mxu0 %v7071_v12  ;;  %289 = vmatpush1.bf16.msra.mxu1 %v7112_v19 }
  0x10   :  { %249 = vmatprep.subr.bf16.mxu0 %v7076_v13  ;;  %290 = vmatprep.subr.bf16.mxu1 %v7118_v20 }
  0x13   :  { %250 = vmatpush1.bf16.msra.mxu0 %v7100_v17  ;;  %291 = vmatpush1.bf16.msra.mxu1 %v7137_v25 }
  0x14   :  { %251 = vmatprep.subr.bf16.mxu0 %v7106_v18  ;;  %292 = vmatprep.subr.bf16.mxu1 %v7148_v27  ;;  %v6340_v37 = vpop.eup %6339 }
  0x15   :  { %v62_v39 = vadd.f32 1.0, %v6340_v37 }
  0x17   :  { %252 = vmatpush1.bf16.msra.mxu0 %v7127_v23  ;;  %293 = vmatpush1.bf16.msra.mxu1 %v7163_v30  ;;  %6345 = vrcp.f32 %v62_v39  ;;  %v6342_v40 = vpop.eup %6341 }
  0x18   :  { %253 = vmatprep.subr.bf16.mxu0 %v7132_v24  ;;  %294 = vmatprep.subr.bf16.mxu1 %v7169_v32  ;;  %v69_v41 = vadd.f32 1.0, %v6342_v40  ;;  %v6344_v42 = vpop.eup %6343 }
  0x1a   :  { %6347 = vrcp.f32 %v69_v41 }
  0x1b   :  { %254 = vmatpush1.bf16.msra.mxu0 %v7153_v28  ;;  %295 = vmatpush1.bf16.msra.mxu1 %v7185_v35 }
  0x1c   :  { %255 = vmatprep.subr.bf16.mxu0 %v7158_v29  ;;  %296 = vmatprep.subr.bf16.mxu1 %v7191_v36 }
  0x1f   :  { %256 = vmatpush1.bf16.msra.mxu0 %v7176_v33  ;;  %297 = vmatpush1.bf16.msra.mxu1 %v7199_v38 }
  0x20   :  { %360 = vmatprep.subr.bf16.mxu0 %v7005_v0  ;;  %401 = vmatprep.subr.bf16.mxu1 %v7035_v6 }
  0x21   :  { %v6346_v43 = vpop.eup %6345 }
  0x22   :  { %v7207_v44 = vmul.f32 %v6346_v43, %v6344_v42 }
  0x24   :  { %6349 = vtanh.f32 %v7207_v44  ;;  %v6348_v45 = vpop.eup %6347 }
  0x2e   :  { %v6350_v46 = vpop.eup %6349 }
  0x2f   :  { %v74_v47 = vmul.f32 %v6350_v46, %v6348_v45 }
  0x31   :  { %v75_v48 = vpack.c.bf16 %v74_v47, %v74_v47 }
  0x33   :  { %76 = vst [vmem:[#allocation2] sm:$0xf] %v75_v48  ;;  %274 = vmatmul.mubr.bf16.vlgmr.msra.gmra.mrb[0].mxu0 %v75_v48  ;;  %315 = vmatmul.mubr.bf16.vlgmr.msra.gmra.mrb[0].mxu1 %v75_v48 }
  0x34   :  { %361 = vmatpush1.bf16.msra.mxu0 %v7012_v2  ;;  %402 = vmatpush1.bf16.msra.mxu1 %v7040_v7 }
  0x35   :  { %362 = vmatprep.subr.bf16.mxu0 %v7018_v3  ;;  %403 = vmatprep.subr.bf16.mxu1 %v7059_v10 }
  0x36   :  { %392 = vmatprep.mubr.bf16.mxu0 %v9883_v1  ;;  %433 = vmatprep.mubr.bf16.mxu1 %v9883_v1 }
  0x38   :  { %363 = vmatpush1.bf16.msra.mxu0 %v7024_v4  ;;  %404 = vmatpush1.bf16.msra.mxu1 %v7064_v11 }
  0x39   :  { %364 = vmatprep.subr.bf16.mxu0 %v7030_v5  ;;  %405 = vmatprep.subr.bf16.mxu1 %v7081_v14 }
  0x3c   :  { %365 = vmatpush1.bf16.msra.mxu0 %v7046_v8  ;;  %406 = vmatpush1.bf16.msra.mxu1 %v7088_v15 }
  0x3d   :  { %366 = vmatprep.subr.bf16.mxu0 %v7053_v9  ;;  %407 = vmatprep.subr.bf16.mxu1 %v7094_v16 }
  0x40   :  { %367 = vmatpush1.bf16.msra.mxu0 %v7071_v12  ;;  %408 = vmatpush1.bf16.msra.mxu1 %v7112_v19 }
  0x41   :  { %368 = vmatprep.subr.bf16.mxu0 %v7076_v13  ;;  %409 = vmatprep.subr.bf16.mxu1 %v7118_v20 }
  0x44   :  { %369 = vmatpush1.bf16.msra.mxu0 %v7100_v17  ;;  %410 = vmatpush1.bf16.msra.mxu1 %v7137_v25 }
  0x45   :  { %370 = vmatprep.subr.bf16.mxu0 %v7106_v18  ;;  %411 = vmatprep.subr.bf16.mxu1 %v7148_v27 }
  0x48   :  { %371 = vmatpush1.bf16.msra.mxu0 %v7127_v23  ;;  %412 = vmatpush1.bf16.msra.mxu1 %v7163_v30 }
  0x49   :  { %372 = vmatprep.subr.bf16.mxu0 %v7132_v24  ;;  %413 = vmatprep.subr.bf16.mxu1 %v7169_v32 }
  0x4c   :  { %373 = vmatpush1.bf16.msra.mxu0 %v7153_v28  ;;  %414 = vmatpush1.bf16.msra.mxu1 %v7185_v35 }
  0x4d   :  { %374 = vmatprep.subr.bf16.mxu0 %v7158_v29  ;;  %415 = vmatprep.subr.bf16.mxu1 %v7191_v36 }
  0x50   :  { %375 = vmatpush1.bf16.msra.mxu0 %v7176_v33  ;;  %416 = vmatpush1.bf16.msra.mxu1 %v7199_v38 }
  0x51   :  { %476 = vmatprep.subr.bf16.mxu0 %v7005_v0  ;;  %517 = vmatprep.subr.bf16.mxu1 %v7035_v6 }
 0x106   :  { %v275_v51 = vpop.f32.mrb[0].mxu0  ;;  %v316_v52 = vpop.f32.mrb[0].mxu1 }
 0x107   :  { %v323_v53 = vadd.f32 %v275_v51, %v77_v49  ;;  %v277_v54 = vpop.f32.mrb[1].mxu0  ;;  %v318_v55 = vpop.f32.mrb[1].mxu1  ;;  %v325_v31 = vadd.f32 %v316_v52, %v79_v22 }
 0x108   :  { %v324_v56 = vadd.f32 %v277_v54, %v78_v50  ;;  %v279_v57 = vpop.f32.mrb[2].mxu0  ;;  %v320_v58 = vpop.f32.mrb[2].mxu1  ;;  %v326_v21 = vadd.f32 %v318_v55, %v80_v63  ;;  %v357_v55 = vld [vmem:[%s9877_s0 + $0x48] sm:$0xff] }
 0x109   :  { %v5478_v59 = vmul.f32 -1.442695, %v323_v53  ;;  %v280_v60 = vpop.f32.mrb[3].mxu0  ;;  %v321_v61 = vpop.f32.mrb[3].mxu1 }
 0x10a   :  { %v5480_v62 = vmul.f32 -1.442695, %v324_v56  ;;  %v5479_v26 = vmul.f32 -1.442695, %v326_v21 }
 0x10b   :  { %6351 = vpow2.f32 %v5478_v59 }
 0x10c   :  { %6353 = vpow2.f32 %v5480_v62 }
 0x10d   :  { %6355 = vpow2.f32 %v5479_v26 }
 0x10e   :  { %6357 = vtanh.f32 %v325_v31 }
 0x115   :  { %v6352_v34 = vpop.eup %6351 }
 0x116   :  { %v6354_v37 = vpop.eup %6353  ;;  %v330_v39 = vadd.f32 1.0, %v6352_v34  ;;  %v359_v34 = vld [vmem:[%s9877_s0 + $0x58] sm:$0xff] }
 0x117   :  { %v343_v40 = vadd.f32 1.0, %v6354_v37  ;;  %v6356_v41 = vpop.eup %6355 }
 0x118   :  { %6359 = vrcp.f32 %v330_v39  ;;  %v6358_v42 = vpop.eup %6357  ;;  %v337_v45 = vadd.f32 1.0, %v6356_v41  ;;  %v358_v39 = vld [vmem:[%s9877_s0 + $0x50] sm:$0xff] }
 0x119   :  { %6361 = vrcp.f32 %v343_v40 }
 0x11a   :  { %6363 = vrcp.f32 %v337_v45 }
 0x122   :  { %v6360_v43 = vpop.eup %6359 }
 0x123   :  { %v6362_v46 = vpop.eup %6361  ;;  %v347_v47 = vmul.f32 %v6360_v43, %v6358_v42 }
 0x124   :  { %v346_v48 = vmul.f32 %v6362_v46, %v7207_v44  ;;  %v6364_v50 = vpop.eup %6363  ;;  %v356_v44 = vld [vmem:[%s9877_s0 + $0x40] sm:$0xff] }
 0x126   :  { %v7257_v49 = vadd.f32 %v347_v47, %v346_v48 }
 0x128   :  { %6365 = vtanh.f32 %v7257_v49 }
 0x132   :  { %v6366_v51 = vpop.eup %6365 }
 0x133   :  { %v350_v52 = vmul.f32 %v6366_v51, %v6364_v50 }
 0x135   :  { %v351_v53 = vpack.c.bf16 %v350_v52, %v350_v52 }
 0x137   :  { %v353_v54 = vrot.slane %v351_v53, 4  ;;  %393 = vmatmul.mubr.bf16.vlgmr.msra.gmra.mrb[4].mxu0 %v351_v53  ;;  %434 = vmatmul.mubr.bf16.vlgmr.msra.gmra.mrb[4].mxu1 %v351_v53 }
 0x138   :  { %477 = vmatpush1.bf16.msra.mxu0 %v7012_v2  ;;  %518 = vmatpush1.bf16.msra.mxu1 %v7040_v7 }
 0x139   :  { %355 = vst [vmem:[#allocation2] sm:$0xf0] %v353_v54  ;;  %478 = vmatprep.subr.bf16.mxu0 %v7018_v3  ;;  %519 = vmatprep.subr.bf16.mxu1 %v7059_v10 }
 0x13a   :  { %508 = vmatprep.mubr.bf16.mxu0 %v9883_v1  ;;  %549 = vmatprep.mubr.bf16.mxu1 %v9883_v1 }
 0x13c   :  { %479 = vmatpush1.bf16.msra.mxu0 %v7024_v4  ;;  %520 = vmatpush1.bf16.msra.mxu1 %v7064_v11 }
 0x13d   :  { %480 = vmatprep.subr.bf16.mxu0 %v7030_v5  ;;  %521 = vmatprep.subr.bf16.mxu1 %v7081_v14 }
 0x140   :  { %481 = vmatpush1.bf16.msra.mxu0 %v7046_v8  ;;  %522 = vmatpush1.bf16.msra.mxu1 %v7088_v15 }
 0x141   :  { %482 = vmatprep.subr.bf16.mxu0 %v7053_v9  ;;  %523 = vmatprep.subr.bf16.mxu1 %v7094_v16 }
 0x144   :  { %483 = vmatpush1.bf16.msra.mxu0 %v7071_v12  ;;  %524 = vmatpush1.bf16.msra.mxu1 %v7112_v19 }
 0x145   :  { %484 = vmatprep.subr.bf16.mxu0 %v7076_v13  ;;  %525 = vmatprep.subr.bf16.mxu1 %v7118_v20 }
 0x148   :  { %485 = vmatpush1.bf16.msra.mxu0 %v7100_v17  ;;  %526 = vmatpush1.bf16.msra.mxu1 %v7137_v25 }
 0x149   :  { %486 = vmatprep.subr.bf16.mxu0 %v7106_v18  ;;  %527 = vmatprep.subr.bf16.mxu1 %v7148_v27 }
 0x14c   :  { %487 = vmatpush1.bf16.msra.mxu0 %v7127_v23  ;;  %528 = vmatpush1.bf16.msra.mxu1 %v7163_v30 }
 0x14d   :  { %488 = vmatprep.subr.bf16.mxu0 %v7132_v24  ;;  %529 = vmatprep.subr.bf16.mxu1 %v7169_v32 }
 0x150   :  { %489 = vmatpush1.bf16.msra.mxu0 %v7153_v28  ;;  %530 = vmatpush1.bf16.msra.mxu1 %v7185_v35 }
 0x151   :  { %490 = vmatprep.subr.bf16.mxu0 %v7158_v29  ;;  %531 = vmatprep.subr.bf16.mxu1 %v7191_v36 }
 0x154   :  { %491 = vmatpush1.bf16.msra.mxu0 %v7176_v33  ;;  %532 = vmatpush1.bf16.msra.mxu1 %v7199_v38 }
 0x155   :  { %595 = vmatprep.subr.bf16.mxu0 %v7005_v0  ;;  %636 = vmatprep.subr.bf16.mxu1 %v7035_v6 }
 0x20a   :  { %v394_v56 = vpop.f32.mrb[4].mxu0  ;;  %v435_v57 = vpop.f32.mrb[4].mxu1 }
 0x20b   :  { %v442_v58 = vadd.f32 %v394_v56, %v356_v44  ;;  %v396_v59 = vpop.f32.mrb[5].mxu0  ;;  %v437_v60 = vpop.f32.mrb[5].mxu1  ;;  %v444_v41 = vadd.f32 %v435_v57, %v358_v39 }
 0x20c   :  { %v443_v61 = vadd.f32 %v396_v59, %v357_v55  ;;  %v398_v62 = vpop.f32.mrb[6].mxu0  ;;  %v439_v63 = vpop.f32.mrb[6].mxu1  ;;  %v445_v37 = vadd.f32 %v437_v60, %v359_v34  ;;  %v473_v59 = vld [vmem:[%s9877_s0 + $0x68] sm:$0xff] }
 0x20d   :  { %v5481_v21 = vmul.f32 -1.442695, %v442_v58  ;;  %v399_v22 = vpop.f32.mrb[7].mxu0  ;;  %v440_v26 = vpop.f32.mrb[7].mxu1 }
 0x20e   :  { %v5483_v31 = vmul.f32 -1.442695, %v443_v61  ;;  %v5482_v40 = vmul.f32 -1.442695, %v445_v37 }
 0x20f   :  { %6367 = vpow2.f32 %v5481_v21 }
 0x210   :  { %6369 = vpow2.f32 %v5483_v31 }
 0x211   :  { %6371 = vpow2.f32 %v5482_v40 }
 0x212   :  { %6373 = vtanh.f32 %v444_v41  ;;  %v475_v41 = vld [vmem:[%s9877_s0 + $0x78] sm:$0xff] }
 0x219   :  { %v6368_v42 = vpop.eup %6367 }
 0x21a   :  { %v6370_v43 = vpop.eup %6369  ;;  %v449_v45 = vadd.f32 1.0, %v6368_v42 }
 0x21b   :  { %v462_v46 = vadd.f32 1.0, %v6370_v43  ;;  %v6372_v47 = vpop.eup %6371  ;;  %v474_v43 = vld [vmem:[%s9877_s0 + $0x70] sm:$0xff] }
 0x21c   :  { %6375 = vrcp.f32 %v449_v45  ;;  %v6374_v48 = vpop.eup %6373  ;;  %v456_v53 = vadd.f32 1.0, %v6372_v47 }
 0x21d   :  { %6377 = vrcp.f32 %v462_v46 }
 0x21e   :  { %6379 = vrcp.f32 %v456_v53 }
 0x226   :  { %v6376_v50 = vpop.eup %6375 }
 0x227   :  { %v6378_v51 = vpop.eup %6377  ;;  %v466_v52 = vmul.f32 %v6376_v50, %v6374_v48 }
 0x228   :  { %v465_v54 = vmul.f32 %v6378_v51, %v7257_v49  ;;  %v6380_v55 = vpop.eup %6379  ;;  %v472_v49 = vld [vmem:[%s9877_s0 + $0x60] sm:$0xff] }
 0x22a   :  { %v7307_v44 = vadd.f32 %v466_v52, %v465_v54 }
 0x22c   :  { %6381 = vtanh.f32 %v7307_v44 }
 0x236   :  { %v6382_v56 = vpop.eup %6381 }
 0x237   :  { %v469_v57 = vmul.f32 %v6382_v56, %v6380_v55 }
 0x239   :  { %v470_v58 = vpack.c.bf16 %v469_v57, %v469_v57 }
 0x23b   :  { %471 = vst [vmem:[#allocation2 + $0x8] sm:$0xf] %v470_v58  ;;  %509 = vmatmul.mubr.bf16.vlgmr.msra.gmra.mrb[8].mxu0 %v470_v58  ;;  %550 = vmatmul.mubr.bf16.vlgmr.msra.gmra.mrb[8].mxu1 %v470_v58 }
 0x23c   :  { %596 = vmatpush1.bf16.msra.mxu0 %v7012_v2  ;;  %637 = vmatpush1.bf16.msra.mxu1 %v7040_v7 }
 0x23d   :  { %597 = vmatprep.subr.bf16.mxu0 %v7018_v3  ;;  %638 = vmatprep.subr.bf16.mxu1 %v7059_v10 }
 0x23e   :  { %627 = vmatprep.mubr.bf16.mxu0 %v9883_v1  ;;  %668 = vmatprep.mubr.bf16.mxu1 %v9883_v1 }
 0x240   :  { %598 = vmatpush1.bf16.msra.mxu0 %v7024_v4  ;;  %639 = vmatpush1.bf16.msra.mxu1 %v7064_v11 }
 0x241   :  { %599 = vmatprep.subr.bf16.mxu0 %v7030_v5  ;;  %640 = vmatprep.subr.bf16.mxu1 %v7081_v14 }
 0x244   :  { %600 = vmatpush1.bf16.msra.mxu0 %v7046_v8  ;;  %641 = vmatpush1.bf16.msra.mxu1 %v7088_v15 }
 0x245   :  { %601 = vmatprep.subr.bf16.mxu0 %v7053_v9  ;;  %642 = vmatprep.subr.bf16.mxu1 %v7094_v16 }
 0x248   :  { %602 = vmatpush1.bf16.msra.mxu0 %v7071_v12  ;;  %643 = vmatpush1.bf16.msra.mxu1 %v7112_v19 }
 0x249   :  { %603 = vmatprep.subr.bf16.mxu0 %v7076_v13  ;;  %644 = vmatprep.subr.bf16.mxu1 %v7118_v20 }
 0x24c   :  { %604 = vmatpush1.bf16.msra.mxu0 %v7100_v17  ;;  %645 = vmatpush1.bf16.msra.mxu1 %v7137_v25 }
 0x24d   :  { %605 = vmatprep.subr.bf16.mxu0 %v7106_v18  ;;  %646 = vmatprep.subr.bf16.mxu1 %v7148_v27 }
 0x250   :  { %606 = vmatpush1.bf16.msra.mxu0 %v7127_v23  ;;  %647 = vmatpush1.bf16.msra.mxu1 %v7163_v30 }
 0x251   :  { %607 = vmatprep.subr.bf16.mxu0 %v7132_v24  ;;  %648 = vmatprep.subr.bf16.mxu1 %v7169_v32 }
 0x254   :  { %608 = vmatpush1.bf16.msra.mxu0 %v7153_v28  ;;  %649 = vmatpush1.bf16.msra.mxu1 %v7185_v35 }
 0x255   :  { %609 = vmatprep.subr.bf16.mxu0 %v7158_v29  ;;  %650 = vmatprep.subr.bf16.mxu1 %v7191_v36 }
 0x258   :  { %610 = vmatpush1.bf16.msra.mxu0 %v7176_v33  ;;  %651 = vmatpush1.bf16.msra.mxu1 %v7199_v38 }
 0x259   :  { %711 = vmatprep.subr.bf16.mxu0 %v7005_v0  ;;  %752 = vmatprep.subr.bf16.mxu1 %v7035_v6 }
 0x30e   :  { %v510_v60 = vpop.f32.mrb[8].mxu0  ;;  %v551_v61 = vpop.f32.mrb[8].mxu1 }
 0x30f   :  { %v558_v62 = vadd.f32 %v510_v60, %v472_v49  ;;  %v512_v63 = vpop.f32.mrb[9].mxu0  ;;  %v553_v21 = vpop.f32.mrb[9].mxu1  ;;  %v560_v46 = vadd.f32 %v551_v61, %v474_v43 }
 0x310   :  { %v559_v22 = vadd.f32 %v512_v63, %v473_v59  ;;  %v514_v26 = vpop.f32.mrb[10].mxu0  ;;  %v555_v31 = vpop.f32.mrb[10].mxu1  ;;  %v561_v42 = vadd.f32 %v553_v21, %v475_v41  ;;  %v594_v21 = vld [vmem:[%s9877_s0 + $0x98] sm:$0xff] }
 0x311   :  { %v5484_v34 = vmul.f32 -1.442695, %v558_v62  ;;  %v515_v37 = vpop.f32.mrb[11].mxu0  ;;  %v556_v39 = vpop.f32.mrb[11].mxu1  ;;  %v593_v26 = vld [vmem:[%s9877_s0 + $0x90] sm:$0xff] }
 0x312   :  { %v5486_v40 = vmul.f32 -1.442695, %v559_v22  ;;  %v5485_v45 = vmul.f32 -1.442695, %v561_v42 }
 0x313   :  { %6383 = vpow2.f32 %v5484_v34 }
 0x314   :  { %6385 = vpow2.f32 %v5486_v40 }
 0x315   :  { %6387 = vpow2.f32 %v5485_v45 }
 0x316   :  { %6389 = vtanh.f32 %v560_v46 }
 0x31d   :  { %v6384_v47 = vpop.eup %6383 }
 0x31e   :  { %v6386_v48 = vpop.eup %6385  ;;  %v565_v50 = vadd.f32 1.0, %v6384_v47 }
 0x31f   :  { %v578_v51 = vadd.f32 1.0, %v6386_v48  ;;  %v6388_v52 = vpop.eup %6387 }
 0x320   :  { %6391 = vrcp.f32 %v565_v50  ;;  %v6390_v53 = vpop.eup %6389  ;;  %v572_v57 = vadd.f32 1.0, %v6388_v52 }
 0x321   :  { %6393 = vrcp.f32 %v578_v51 }
 0x322   :  { %6395 = vrcp.f32 %v572_v57  ;;  %v7419_v57 = vld [vmem:[%s9876_s2 + $0x8] ss:$16 sps:$4 sm:$0xff]  }
 0x32a   :  { %v6392_v54 = vpop.eup %6391 }
 0x32b   :  { %v6394_v55 = vpop.eup %6393  ;;  %v582_v56 = vmul.f32 %v6392_v54, %v6390_v53 }
 0x32c   :  { %v581_v58 = vmul.f32 %v6394_v55, %v7307_v44  ;;  %v6396_v59 = vpop.eup %6395 }
 0x32e   :  { %v7357_v49 = vadd.f32 %v582_v56, %v581_v58  ;;  %v7413_v56 = vld [vmem:[%s9876_s2] ss:$16 sps:$4 sm:$0xff]   ;;  %v7425_v58 = vld [vmem:[%s9876_s2 + $0x24] ss:$16 sps:$4 sm:$0xff]  }
 0x330   :  { %6397 = vtanh.f32 %v7357_v49 }
 0x33a   :  { %v6398_v60 = vpop.eup %6397 }
 0x33b   :  { %v585_v61 = vmul.f32 %v6398_v60, %v6396_v59  ;;  %v7439_v59 = vld [vmem:[%s9876_s2 + $0x20] ss:$16 sps:$4 sm:$0xff]   ;;  %v7445_v60 = vld [vmem:[%s9876_s2 + $0x28] ss:$16 sps:$4 sm:$0xff]  }
 0x33d   :  { %v586_v62 = vpack.c.bf16 %v585_v61, %v585_v61  ;;  %v7451_v61 = vld [vmem:[%s9876_s2 + $0x44] ss:$16 sps:$4 sm:$0xff]  }
 0x33f   :  { %v588_v63 = vrot.slane %v586_v62, 4  ;;  %628 = vmatmul.mubr.bf16.vlgmr.msra.gmra.mrb[12].mxu0 %v586_v62  ;;  %669 = vmatmul.mubr.bf16.vlgmr.msra.gmra.mrb[12].mxu1 %v586_v62  ;;  %v7458_v62 = vld [vmem:[%s9876_s2 + $0x40] ss:$16 sps:$4 sm:$0xff]  }
 0x340   :  { %712 = vmatpush1.bf16.msra.mxu0 %v7012_v2  ;;  %753 = vmatpush1.bf16.msra.mxu1 %v7040_v7  ;;  %v591_v2 = vld [vmem:[%s9877_s0 + $0x80] sm:$0xff] }
 0x341   :  { %590 = vst [vmem:[#allocation2 + $0x8] sm:$0xf0] %v588_v63  ;;  %713 = vmatprep.subr.bf16.mxu0 %v7018_v3  ;;  %754 = vmatprep.subr.bf16.mxu1 %v7059_v10  ;;  %v592_v3 = vld [vmem:[%s9877_s0 + $0x88] sm:$0xff]  ;;  %v7465_v63 = vld [vmem:[%s9876_s2 + $0x64] ss:$16 sps:$4 sm:$0xff]  }
 0x342   :  { %743 = vmatprep.mubr.bf16.mxu0 %v9883_v1  ;;  %784 = vmatprep.mubr.bf16.mxu1 %v9883_v1 }
 0x344   :  { %714 = vmatpush1.bf16.msra.mxu0 %v7024_v4  ;;  %755 = vmatpush1.bf16.msra.mxu1 %v7064_v11 }
 0x345   :  { %715 = vmatprep.subr.bf16.mxu0 %v7030_v5  ;;  %756 = vmatprep.subr.bf16.mxu1 %v7081_v14 }
 0x348   :  { %716 = vmatpush1.bf16.msra.mxu0 %v7046_v8  ;;  %757 = vmatpush1.bf16.msra.mxu1 %v7088_v15 }
 0x349   :  { %717 = vmatprep.subr.bf16.mxu0 %v7053_v9  ;;  %758 = vmatprep.subr.bf16.mxu1 %v7094_v16 }
 0x34c   :  { %718 = vmatpush1.bf16.msra.mxu0 %v7071_v12  ;;  %759 = vmatpush1.bf16.msra.mxu1 %v7112_v19 }
 0x34d   :  { %719 = vmatprep.subr.bf16.mxu0 %v7076_v13  ;;  %760 = vmatprep.subr.bf16.mxu1 %v7118_v20 }
 0x350   :  { %720 = vmatpush1.bf16.msra.mxu0 %v7100_v17  ;;  %761 = vmatpush1.bf16.msra.mxu1 %v7137_v25 }
 0x351   :  { %721 = vmatprep.subr.bf16.mxu0 %v7106_v18  ;;  %762 = vmatprep.subr.bf16.mxu1 %v7148_v27 }
 0x354   :  { %722 = vmatpush1.bf16.msra.mxu0 %v7127_v23  ;;  %763 = vmatpush1.bf16.msra.mxu1 %v7163_v30 }
 0x355   :  { %723 = vmatprep.subr.bf16.mxu0 %v7132_v24  ;;  %764 = vmatprep.subr.bf16.mxu1 %v7169_v32 }
 0x358   :  { %724 = vmatpush1.bf16.msra.mxu0 %v7153_v28  ;;  %765 = vmatpush1.bf16.msra.mxu1 %v7185_v35 }
 0x359   :  { %725 = vmatprep.subr.bf16.mxu0 %v7158_v29  ;;  %766 = vmatprep.subr.bf16.mxu1 %v7191_v36 }
 0x35c   :  { %726 = vmatpush1.bf16.msra.mxu0 %v7176_v33  ;;  %767 = vmatpush1.bf16.msra.mxu1 %v7199_v38 }
 0x35d   :  { %830 = vmatprep.subr.bf16.mxu0 %v7005_v0  ;;  %871 = vmatprep.subr.bf16.mxu1 %v7035_v6 }
 0x412   :  { %v629_v4 = vpop.f32.mrb[12].mxu0  ;;  %v670_v5 = vpop.f32.mrb[12].mxu1 }
 0x413   :  { %v677_v7 = vadd.f32 %v629_v4, %v591_v2  ;;  %v631_v8 = vpop.f32.mrb[13].mxu0  ;;  %v672_v9 = vpop.f32.mrb[13].mxu1  ;;  %v679_v34 = vadd.f32 %v670_v5, %v593_v26 }
 0x414   :  { %v678_v10 = vadd.f32 %v631_v8, %v592_v3  ;;  %v633_v11 = vpop.f32.mrb[14].mxu0  ;;  %v674_v12 = vpop.f32.mrb[14].mxu1  ;;  %v680_v22 = vadd.f32 %v672_v9, %v594_v21  ;;  %v709_v3 = vld [vmem:[%s9877_s0 + $0xb0] sm:$0xff] }
 0x415   :  { %v5487_v13 = vmul.f32 -1.442695, %v677_v7  ;;  %v634_v0 = vpop.f32.mrb[15].mxu0  ;;  %v675_v44 = vpop.f32.mrb[15].mxu1 }
 0x416   :  { %v5489_v6 = vmul.f32 -1.442695, %v678_v10  ;;  %v5488_v31 = vmul.f32 -1.442695, %v680_v22 }
 0x417   :  { %6399 = vpow2.f32 %v5487_v13 }
 0x418   :  { %6401 = vpow2.f32 %v5489_v6 }
 0x419   :  { %6403 = vpow2.f32 %v5488_v31 }
 0x41a   :  { %6405 = vtanh.f32 %v679_v34 }
 0x421   :  { %v6400_v37 = vpop.eup %6399 }
 0x422   :  { %v6402_v39 = vpop.eup %6401  ;;  %v684_v40 = vadd.f32 1.0, %v6400_v37 }
 0x423   :  { %v697_v41 = vadd.f32 1.0, %v6402_v39  ;;  %v6404_v42 = vpop.eup %6403 }
 0x424   :  { %6407 = vrcp.f32 %v684_v40  ;;  %v6406_v43 = vpop.eup %6405  ;;  %v691_v48 = vadd.f32 1.0, %v6404_v42  ;;  %v6848_v40 = vld [vmem:[%s9876_s2 + $0x4c] ss:$16 sps:$4 sm:$0xff]  }
 0x425   :  { %6409 = vrcp.f32 %v697_v41  ;;  %v6849_v41 = vld [vmem:[%s9876_s2 + $0x48] ss:$16 sps:$4 sm:$0xff]   ;;  %v6850_v42 = vld [vmem:[%s9876_s2 + $0x6c] ss:$16 sps:$4 sm:$0xff]  }
 0x426   :  { %6411 = vrcp.f32 %v691_v48  ;;  %v6855_v48 = vld [vmem:[%s9876_s2 + $0xa4] ss:$16 sps:$4 sm:$0xff]  }
 0x42e   :  { %v6408_v45 = vpop.eup %6407 }
 0x42f   :  { %v6410_v46 = vpop.eup %6409  ;;  %v701_v47 = vmul.f32 %v6408_v45, %v6406_v43  ;;  %v6851_v43 = vld [vmem:[%s9876_s2 + $0x68] ss:$16 sps:$4 sm:$0xff]   ;;  %v6852_v45 = vld [vmem:[%s9876_s2 + $0x8c] ss:$16 sps:$4 sm:$0xff]  }
 0x430   :  { %v700_v50 = vmul.f32 %v6410_v46, %v7357_v49  ;;  %v6412_v52 = vpop.eup %6411  ;;  %v7431_v49 = vld [vmem:[%s9876_s2 + $0x2c] ss:$16 sps:$4 sm:$0xff]   ;;  %v6853_v46 = vld [vmem:[%s9876_s2 + $0x80] ss:$16 sps:$4 sm:$0xff]  }
 0x432   :  { %v7407_v51 = vadd.f32 %v701_v47, %v700_v50  ;;  %v6854_v47 = vld [vmem:[%s9876_s2 + $0x88] ss:$16 sps:$4 sm:$0xff]   ;;  %v6856_v50 = vld [vmem:[%s9876_s2 + $0xac] ss:$16 sps:$4 sm:$0xff]  }
 0x434   :  { %6413 = vtanh.f32 %v7407_v51 }
 0x43e   :  { %v6414_v53 = vpop.eup %6413 }
 0x43f   :  { %v704_v54 = vmul.f32 %v6414_v53, %v6412_v52  ;;  %v6858_v52 = vld [vmem:[%s9876_s2 + $0xa8] ss:$16 sps:$4 sm:$0xff]   ;;  %v6859_v53 = vld [vmem:[%s9876_s2 + $0xc4] ss:$16 sps:$4 sm:$0xff]  }
 0x441   :  { %v705_v55 = vpack.c.bf16 %v704_v54, %v704_v54  ;;  %v6860_v54 = vld [vmem:[%s9876_s2 + $0xcc] ss:$16 sps:$4 sm:$0xff]  }
 0x443   :  { %706 = vst [vmem:[#allocation2 + $0x10] sm:$0xf] %v705_v55  ;;  %744 = vmatmul.mubr.bf16.vlgmr.msra.gmra.mrb[16].mxu0 %v705_v55  ;;  %785 = vmatmul.mubr.bf16.vlgmr.msra.gmra.mrb[16].mxu1 %v705_v55  ;;  %v6861_v55 = vld [vmem:[%s9876_s2 + $0xc0] ss:$16 sps:$4 sm:$0xff]  }
 0x444   :  { %831 = vmatpush1.bf16.msra.mxu0 %v7413_v56  ;;  %872 = vmatpush1.bf16.msra.mxu1 %v7419_v57 }
 0x445   :  { %832 = vmatprep.subr.bf16.mxu0 %v7425_v58  ;;  %873 = vmatprep.subr.bf16.mxu1 %v7431_v49 }
 0x446   :  { %862 = vmatprep.mubr.bf16.mxu0 %v9883_v1  ;;  %903 = vmatprep.mubr.bf16.mxu1 %v9883_v1 }
 0x448   :  { %833 = vmatpush1.bf16.msra.mxu0 %v7439_v59  ;;  %874 = vmatpush1.bf16.msra.mxu1 %v7445_v60 }
 0x449   :  { %834 = vmatprep.subr.bf16.mxu0 %v7451_v61  ;;  %875 = vmatprep.subr.bf16.mxu1 %v7081_v14  ;;  %v7472_v14 = vld [vmem:[%s9876_s2 + $0x60] ss:$16 sps:$4 sm:$0xff]  }
 0x44c   :  { %835 = vmatpush1.bf16.msra.mxu0 %v7458_v62  ;;  %876 = vmatpush1.bf16.msra.mxu1 %v7088_v15  ;;  %v7479_v15 = vld [vmem:[%s9876_s2 + $0x84] ss:$16 sps:$4 sm:$0xff]  }
 0x44d   :  { %836 = vmatprep.subr.bf16.mxu0 %v7465_v63  ;;  %877 = vmatprep.subr.bf16.mxu1 %v7094_v16  ;;  %v6846_v16 = vld [vmem:[%s9876_s2 + $0x4] ss:$16 sps:$4 sm:$0xff]  }
 0x450   :  { %837 = vmatpush1.bf16.msra.mxu0 %v7472_v14  ;;  %878 = vmatpush1.bf16.msra.mxu1 %v7112_v19  ;;  %v708_v19 = vld [vmem:[%s9877_s0 + $0xa8] sm:$0xff] }
 0x451   :  { %838 = vmatprep.subr.bf16.mxu0 %v7479_v15  ;;  %879 = vmatprep.subr.bf16.mxu1 %v7118_v20 }
 0x454   :  { %839 = vmatpush1.bf16.msra.mxu0 %v7100_v17  ;;  %880 = vmatpush1.bf16.msra.mxu1 %v7137_v25  ;;  %v6847_v17 = vld [vmem:[%s9876_s2 + $0xc] ss:$16 sps:$4 sm:$0xff]  }
 0x455   :  { %840 = vmatprep.subr.bf16.mxu0 %v7106_v18  ;;  %881 = vmatprep.subr.bf16.mxu1 %v7148_v27  ;;  %v707_v18 = vld [vmem:[%s9877_s0 + $0xa0] sm:$0xff] }
 0x458   :  { %841 = vmatpush1.bf16.msra.mxu0 %v7127_v23  ;;  %882 = vmatpush1.bf16.msra.mxu1 %v7163_v30 }
 0x459   :  { %842 = vmatprep.subr.bf16.mxu0 %v7132_v24  ;;  %883 = vmatprep.subr.bf16.mxu1 %v7169_v32 }
 0x45c   :  { %843 = vmatpush1.bf16.msra.mxu0 %v7153_v28  ;;  %884 = vmatpush1.bf16.msra.mxu1 %v7185_v35 }
 0x45d   :  { %844 = vmatprep.subr.bf16.mxu0 %v7158_v29  ;;  %885 = vmatprep.subr.bf16.mxu1 %v7191_v36 }
 0x460   :  { %845 = vmatpush1.bf16.msra.mxu0 %v7176_v33  ;;  %886 = vmatpush1.bf16.msra.mxu1 %v7199_v38  ;;  %v710_v38 = vld [vmem:[%s9877_s0 + $0xb8] sm:$0xff] }
 0x461   :  { %946 = vmatprep.subr.bf16.mxu0 %v6846_v16  ;;  %987 = vmatprep.subr.bf16.mxu1 %v6847_v17 }
 0x516   :  { %v745_v20 = vpop.f32.mrb[16].mxu0  ;;  %v786_v23 = vpop.f32.mrb[16].mxu1 }
 0x517   :  { %v793_v24 = vadd.f32 %v745_v20, %v707_v18  ;;  %v747_v25 = vpop.f32.mrb[17].mxu0  ;;  %v788_v27 = vpop.f32.mrb[17].mxu1  ;;  %v795_v5 = vadd.f32 %v786_v23, %v709_v3 }
 0x518   :  { %v794_v28 = vadd.f32 %v747_v25, %v708_v19  ;;  %v749_v29 = vpop.f32.mrb[18].mxu0  ;;  %v790_v30 = vpop.f32.mrb[18].mxu1  ;;  %v796_v2 = vadd.f32 %v788_v27, %v710_v38 }
 0x519   :  { %v5490_v32 = vmul.f32 -1.442695, %v793_v24  ;;  %v750_v33 = vpop.f32.mrb[19].mxu0  ;;  %v791_v35 = vpop.f32.mrb[19].mxu1  ;;  %v829_v29 = vld [vmem:[%s9877_s0 + $0xd8] sm:$0xff] }
 0x51a   :  { %v5492_v36 = vmul.f32 -1.442695, %v794_v28  ;;  %v5491_v4 = vmul.f32 -1.442695, %v796_v2 }
 0x51b   :  { %6415 = vpow2.f32 %v5490_v32  ;;  %v828_v32 = vld [vmem:[%s9877_s0 + $0xd0] sm:$0xff] }
 0x51c   :  { %6417 = vpow2.f32 %v5492_v36 }
 0x51d   :  { %6419 = vpow2.f32 %v5491_v4 }
 0x51e   :  { %6421 = vtanh.f32 %v795_v5 }
 0x525   :  { %v6416_v7 = vpop.eup %6415 }
 0x526   :  { %v6418_v8 = vpop.eup %6417  ;;  %v800_v9 = vadd.f32 1.0, %v6416_v7 }
 0x527   :  { %v813_v10 = vadd.f32 1.0, %v6418_v8  ;;  %v6420_v11 = vpop.eup %6419 }
 0x528   :  { %6423 = vrcp.f32 %v800_v9  ;;  %v6422_v12 = vpop.eup %6421  ;;  %v807_v6 = vadd.f32 1.0, %v6420_v11 }
 0x529   :  { %6425 = vrcp.f32 %v813_v10 }
 0x52a   :  { %6427 = vrcp.f32 %v807_v6  ;;  %v6051_v6 = vld [vmem:[%s9878_s1] ss:$16 sps:$4 sm:$0xff]  }
 0x532   :  { %v6424_v13 = vpop.eup %6423 }
 0x533   :  { %v6426_v0 = vpop.eup %6425  ;;  %v817_v44 = vmul.f32 %v6424_v13, %v6422_v12 }
 0x534   :  { %v816_v21 = vmul.f32 %v6426_v0, %v7407_v51  ;;  %v6428_v26 = vpop.eup %6427  ;;  %v6857_v51 = vld [vmem:[%s9876_s2 + $0xa0] ss:$16 sps:$4 sm:$0xff]  }
 0x536   :  { %v7516_v22 = vadd.f32 %v817_v44, %v816_v21  ;;  %v6054_v21 = vld [vmem:[%s9878_s1 + $0x8] ss:$16 sps:$4 sm:$0xff]  }
 0x538   :  { %6429 = vtanh.f32 %v7516_v22 }
 0x542   :  { %v6430_v31 = vpop.eup %6429 }
 0x543   :  { %v820_v34 = vmul.f32 %v6430_v31, %v6428_v26  ;;  %v6062_v31 = vld [vmem:[%s9878_s1 + $0x2c] ss:$16 sps:$4 sm:$0xff]  }
 0x545   :  { %v821_v37 = vpack.c.bf16 %v820_v34, %v820_v34  ;;  %v6057_v34 = vld [vmem:[%s9878_s1 + $0x20] ss:$16 sps:$4 sm:$0xff]  }
 0x547   :  { %v823_v39 = vrot.slane %v821_v37, 4  ;;  %863 = vmatmul.mubr.bf16.vlgmr.msra.gmra.mrb[20].mxu0 %v821_v37  ;;  %904 = vmatmul.mubr.bf16.vlgmr.msra.gmra.mrb[20].mxu1 %v821_v37  ;;  %v6060_v37 = vld [vmem:[%s9878_s1 + $0x28] ss:$16 sps:$4 sm:$0xff]  }
 0x548   :  { %947 = vmatpush1.bf16.msra.mxu0 %v7413_v56  ;;  %988 = vmatpush1.bf16.msra.mxu1 %v7419_v57  ;;  %v6862_v56 = vld [vmem:[%s9876_s2 + $0xc8] ss:$16 sps:$4 sm:$0xff]   ;;  %v6863_v57 = vld [vmem:[%s9876_s2 + $0xe4] ss:$16 sps:$4 sm:$0xff]  }
 0x549   :  { %825 = vst [vmem:[#allocation2 + $0x10] sm:$0xf0] %v823_v39  ;;  %948 = vmatprep.subr.bf16.mxu0 %v7425_v58  ;;  %989 = vmatprep.subr.bf16.mxu1 %v7431_v49  ;;  %v6864_v58 = vld [vmem:[%s9876_s2 + $0xec] ss:$16 sps:$4 sm:$0xff]   ;;  %v6865_v49 = vld [vmem:[%s9876_s2 + $0xe0] ss:$16 sps:$4 sm:$0xff]  }
 0x54a   :  { %978 = vmatprep.mubr.bf16.mxu0 %v9883_v1  ;;  %1019 = vmatprep.mubr.bf16.mxu1 %v9883_v1  ;;  %v6065_v39 = vld [vmem:[%s9878_s1 + $0x44] ss:$16 sps:$4 sm:$0xff]  }
 0x54c   :  { %949 = vmatpush1.bf16.msra.mxu0 %v7439_v59  ;;  %990 = vmatpush1.bf16.msra.mxu1 %v7445_v60  ;;  %v6866_v59 = vld [vmem:[%s9876_s2 + $0xe8] ss:$16 sps:$4 sm:$0xff]   ;;  %v6053_v60 = vld [vmem:[%s9878_s1 + $0x4] ss:$16 sps:$4 sm:$0xff]  }
 0x54d   :  { %950 = vmatprep.subr.bf16.mxu0 %v7451_v61  ;;  %991 = vmatprep.subr.bf16.mxu1 %v6848_v40  ;;  %v6056_v61 = vld [vmem:[%s9878_s1 + $0xc] ss:$16 sps:$4 sm:$0xff]  }
 0x54e   :  { %v6068_v40 = vld [vmem:[%s9878_s1 + $0x4c] ss:$16 sps:$4 sm:$0xff]  }
 0x550   :  { %951 = vmatpush1.bf16.msra.mxu0 %v7458_v62  ;;  %992 = vmatpush1.bf16.msra.mxu1 %v6849_v41  ;;  %v826_v62 = vld [vmem:[%s9877_s0 + $0xc0] sm:$0xff] }
 0x551   :  { %952 = vmatprep.subr.bf16.mxu0 %v7465_v63  ;;  %993 = vmatprep.subr.bf16.mxu1 %v6850_v42  ;;  %v827_v63 = vld [vmem:[%s9877_s0 + $0xc8] sm:$0xff]  ;;  %v6063_v41 = vld [vmem:[%s9878_s1 + $0x40] ss:$16 sps:$4 sm:$0xff]  }
 0x552   :  { %v6066_v42 = vld [vmem:[%s9878_s1 + $0x48] ss:$16 sps:$4 sm:$0xff]  }
 0x554   :  { %953 = vmatpush1.bf16.msra.mxu0 %v7472_v14  ;;  %994 = vmatpush1.bf16.msra.mxu1 %v6851_v43  ;;  %v6071_v43 = vld [vmem:[%s9878_s1 + $0x64] ss:$16 sps:$4 sm:$0xff]  }
 0x555   :  { %954 = vmatprep.subr.bf16.mxu0 %v7479_v15  ;;  %995 = vmatprep.subr.bf16.mxu1 %v6852_v45  ;;  %v6074_v45 = vld [vmem:[%s9878_s1 + $0x6c] ss:$16 sps:$4 sm:$0xff]  }
 0x558   :  { %955 = vmatpush1.bf16.msra.mxu0 %v6853_v46  ;;  %996 = vmatpush1.bf16.msra.mxu1 %v6854_v47  ;;  %v6069_v46 = vld [vmem:[%s9878_s1 + $0x60] ss:$16 sps:$4 sm:$0xff]   ;;  %v6072_v47 = vld [vmem:[%s9878_s1 + $0x68] ss:$16 sps:$4 sm:$0xff]  }
 0x559   :  { %956 = vmatprep.subr.bf16.mxu0 %v6855_v48  ;;  %997 = vmatprep.subr.bf16.mxu1 %v6856_v50  ;;  %v6077_v48 = vld [vmem:[%s9878_s1 + $0x84] ss:$16 sps:$4 sm:$0xff]   ;;  %v6080_v50 = vld [vmem:[%s9878_s1 + $0x8c] ss:$16 sps:$4 sm:$0xff]  }
 0x55c   :  { %957 = vmatpush1.bf16.msra.mxu0 %v6857_v51  ;;  %998 = vmatpush1.bf16.msra.mxu1 %v6858_v52  ;;  %v6075_v51 = vld [vmem:[%s9878_s1 + $0x80] ss:$16 sps:$4 sm:$0xff]   ;;  %v6078_v52 = vld [vmem:[%s9878_s1 + $0x88] ss:$16 sps:$4 sm:$0xff]  }
 0x55d   :  { %958 = vmatprep.subr.bf16.mxu0 %v6859_v53  ;;  %999 = vmatprep.subr.bf16.mxu1 %v6860_v54  ;;  %v6083_v53 = vld [vmem:[%s9878_s1 + $0xa4] ss:$16 sps:$4 sm:$0xff]   ;;  %v6086_v54 = vld [vmem:[%s9878_s1 + $0xac] ss:$16 sps:$4 sm:$0xff]  }
 0x560   :  { %959 = vmatpush1.bf16.msra.mxu0 %v6861_v55  ;;  %1000 = vmatpush1.bf16.msra.mxu1 %v6862_v56  ;;  %v6081_v55 = vld [vmem:[%s9878_s1 + $0xa0] ss:$16 sps:$4 sm:$0xff]   ;;  %v6084_v56 = vld [vmem:[%s9878_s1 + $0xa8] ss:$16 sps:$4 sm:$0xff]  }
 0x561   :  { %960 = vmatprep.subr.bf16.mxu0 %v6863_v57  ;;  %1001 = vmatprep.subr.bf16.mxu1 %v6864_v58  ;;  %v6089_v57 = vld [vmem:[%s9878_s1 + $0xc4] ss:$16 sps:$4 sm:$0xff]   ;;  %v6092_v58 = vld [vmem:[%s9878_s1 + $0xcc] ss:$16 sps:$4 sm:$0xff]  }
 0x564   :  { %961 = vmatpush1.bf16.msra.mxu0 %v6865_v49  ;;  %1002 = vmatpush1.bf16.msra.mxu1 %v6866_v59  ;;  %v6087_v49 = vld [vmem:[%s9878_s1 + $0xc0] ss:$16 sps:$4 sm:$0xff]   ;;  %v6090_v59 = vld [vmem:[%s9878_s1 + $0xc8] ss:$16 sps:$4 sm:$0xff]  }
 0x565   :  { %1312 = vmatprep.subr.bf16.mxu0 %v6053_v60  ;;  %1385 = vmatprep.subr.bf16.mxu1 %v6056_v61  ;;  %v6095_v60 = vld [vmem:[%s9878_s1 + $0xe4] ss:$16 sps:$4 sm:$0xff]   ;;  %v6098_v61 = vld [vmem:[%s9878_s1 + $0xec] ss:$16 sps:$4 sm:$0xff]  }
 0x61a   :  { %v864_v14 = vpop.f32.mrb[20].mxu0  ;;  %v905_v15 = vpop.f32.mrb[20].mxu1 }
 0x61b   :  { %v912_v16 = vadd.f32 %v864_v14, %v826_v62  ;;  %v866_v17 = vpop.f32.mrb[21].mxu0  ;;  %v907_v18 = vpop.f32.mrb[21].mxu1  ;;  %v914_v35 = vadd.f32 %v905_v15, %v828_v32  ;;  %v6093_v62 = vld [vmem:[%s9878_s1 + $0xe0] ss:$16 sps:$4 sm:$0xff]   ;;  %v1095_v15 = vld [vmem:[#allocation2 + $0x8] sm:$0xff] }
 0x61c   :  { %v913_v19 = vadd.f32 %v866_v17, %v827_v63  ;;  %v868_v20 = vpop.f32.mrb[22].mxu0  ;;  %v909_v23 = vpop.f32.mrb[22].mxu1  ;;  %v915_v30 = vadd.f32 %v907_v18, %v829_v29  ;;  %v6096_v63 = vld [vmem:[%s9878_s1 + $0xe8] ss:$16 sps:$4 sm:$0xff]   ;;  %v1094_v14 = vld [vmem:[#allocation2] sm:$0xff] }
 0x61d   :  { %v5493_v24 = vmul.f32 -1.442695, %v912_v16  ;;  %v869_v25 = vpop.f32.mrb[23].mxu0  ;;  %v910_v27 = vpop.f32.mrb[23].mxu1  ;;  %v1096_v16 = vld [vmem:[#allocation2 + $0x10] sm:$0xff] }
 0x61e   :  { %v5495_v28 = vmul.f32 -1.442695, %v913_v19  ;;  %v5494_v33 = vmul.f32 -1.442695, %v915_v30  ;;  %v7712_v17 = vld [vmem:[%s9876_s2 + $0x104] ss:$16 sps:$4 sm:$0xff]  }
 0x61f   :  { %6431 = vpow2.f32 %v5493_v24  ;;  %v7717_v18 = vld [vmem:[%s9876_s2 + $0x10c] ss:$16 sps:$4 sm:$0xff]   ;;  %v7722_v19 = vld [vmem:[%s9876_s2 + $0x100] ss:$16 sps:$4 sm:$0xff]   ;;  %v7727_v20 = vld [vmem:[%s9876_s2 + $0x108] ss:$16 sps:$4 sm:$0xff]  }
 0x620   :  { %6433 = vpow2.f32 %v5495_v28  ;;  %v7736_v23 = vld [vmem:[%s9876_s2 + $0x124] ss:$16 sps:$4 sm:$0xff]   ;;  %v7741_v24 = vld [vmem:[%s9876_s2 + $0x12c] ss:$16 sps:$4 sm:$0xff]   ;;  %v7746_v25 = vld [vmem:[%s9876_s2 + $0x120] ss:$16 sps:$4 sm:$0xff]  }
 0x621   :  { %6435 = vpow2.f32 %v5494_v33  ;;  %v7751_v27 = vld [vmem:[%s9876_s2 + $0x128] ss:$16 sps:$4 sm:$0xff]   ;;  %v7760_v28 = vld [vmem:[%s9876_s2 + $0x144] ss:$16 sps:$4 sm:$0xff]   ;;  %v7765_v29 = vld [vmem:[%s9876_s2 + $0x14c] ss:$16 sps:$4 sm:$0xff]  }
 0x622   :  { %6437 = vtanh.f32 %v914_v35  ;;  %v7770_v30 = vld [vmem:[%s9876_s2 + $0x140] ss:$16 sps:$4 sm:$0xff]   ;;  %v7775_v32 = vld [vmem:[%s9876_s2 + $0x148] ss:$16 sps:$4 sm:$0xff]   ;;  %v7784_v33 = vld [vmem:[%s9876_s2 + $0x164] ss:$16 sps:$4 sm:$0xff]  }
 0x623   :  { %v7789_v35 = vld [vmem:[%s9876_s2 + $0x16c] ss:$16 sps:$4 sm:$0xff]  }
 0x629   :  { %v6432_v36 = vpop.eup %6431 }
 0x62a   :  { %v6434_v38 = vpop.eup %6433  ;;  %v919_v2 = vadd.f32 1.0, %v6432_v36  ;;  %v7794_v36 = vld [vmem:[%s9876_s2 + $0x160] ss:$16 sps:$4 sm:$0xff]  }
 0x62b   :  { %v932_v3 = vadd.f32 1.0, %v6434_v38  ;;  %v6436_v4 = vpop.eup %6435  ;;  %v7799_v38 = vld [vmem:[%s9876_s2 + $0x168] ss:$16 sps:$4 sm:$0xff]  }
 0x62c   :  { %6439 = vrcp.f32 %v919_v2  ;;  %v6438_v5 = vpop.eup %6437  ;;  %v926_v10 = vadd.f32 1.0, %v6436_v4  ;;  %v7808_v2 = vld [vmem:[%s9876_s2 + $0x184] ss:$16 sps:$4 sm:$0xff]   ;;  %v7818_v4 = vld [vmem:[%s9876_s2 + $0x180] ss:$16 sps:$4 sm:$0xff]  }
 0x62d   :  { %6441 = vrcp.f32 %v932_v3  ;;  %v7813_v3 = vld [vmem:[%s9876_s2 + $0x18c] ss:$16 sps:$4 sm:$0xff]  }
 0x62e   :  { %6443 = vrcp.f32 %v926_v10  ;;  %v7847_v10 = vld [vmem:[%s9876_s2 + $0x1a8] ss:$16 sps:$4 sm:$0xff]  }
 0x636   :  { %v6440_v7 = vpop.eup %6439 }
 0x637   :  { %v6442_v8 = vpop.eup %6441  ;;  %v936_v9 = vmul.f32 %v6440_v7, %v6438_v5  ;;  %v7823_v5 = vld [vmem:[%s9876_s2 + $0x188] ss:$16 sps:$4 sm:$0xff]   ;;  %v7832_v7 = vld [vmem:[%s9876_s2 + $0x1a4] ss:$16 sps:$4 sm:$0xff]  }
 0x638   :  { %v935_v11 = vmul.f32 %v6442_v8, %v7516_v22  ;;  %v6444_v13 = vpop.eup %6443  ;;  %v6059_v22 = vld [vmem:[%s9878_s1 + $0x24] ss:$16 sps:$4 sm:$0xff]   ;;  %v7837_v8 = vld [vmem:[%s9876_s2 + $0x1a0] ss:$16 sps:$4 sm:$0xff]  }
 0x63a   :  { %v7608_v12 = vadd.f32 %v936_v9, %v935_v11  ;;  %v7842_v9 = vld [vmem:[%s9876_s2 + $0x1ac] ss:$16 sps:$4 sm:$0xff]   ;;  %v7852_v11 = vld [vmem:[%s9876_s2 + $0x1c4] ss:$16 sps:$4 sm:$0xff]  }
 0x63c   :  { %6445 = vtanh.f32 %v7608_v12 }
 0x646   :  { %v6446_v0 = vpop.eup %6445 }
 0x647   :  { %v939_v44 = vmul.f32 %v6446_v0, %v6444_v13  ;;  %v7859_v13 = vld [vmem:[%s9876_s2 + $0x1cc] ss:$16 sps:$4 sm:$0xff]   ;;  %v7866_v0 = vld [vmem:[%s9876_s2 + $0x1c0] ss:$16 sps:$4 sm:$0xff]  }
 0x649   :  { %v940_v26 = vpack.c.bf16 %v939_v44, %v939_v44  ;;  %v7871_v44 = vld [vmem:[%s9876_s2 + $0x1c8] ss:$16 sps:$4 sm:$0xff]  }
 0x64b   :  { %941 = vst [vmem:[#allocation2 + $0x18] sm:$0xf] %v940_v26  ;;  %979 = vmatmul.mubr.bf16.vlgmr.msra.gmra.mrb[24].mxu0 %v940_v26  ;;  %1020 = vmatmul.mubr.bf16.vlgmr.msra.gmra.mrb[24].mxu1 %v940_v26  ;;  %v7890_v26 = vld [vmem:[%s9876_s2 + $0x1e0] ss:$16 sps:$4 sm:$0xff]  }
 0x64c   :  { %1313 = vmatpush1.bf16.msra.mxu0 %v6051_v6  ;;  %1386 = vmatpush1.bf16.msra.mxu1 %v6054_v21  ;;  %v7878_v6 = vld [vmem:[%s9876_s2 + $0x1e4] ss:$16 sps:$4 sm:$0xff]   ;;  %v7883_v21 = vld [vmem:[%s9876_s2 + $0x1ec] ss:$16 sps:$4 sm:$0xff]  }
 0x64d   :  { %1314 = vmatprep.subr.bf16.mxu0 %v6059_v22  ;;  %1387 = vmatprep.subr.bf16.mxu1 %v6062_v31  ;;  %v7895_v22 = vld [vmem:[%s9876_s2 + $0x1e8] ss:$16 sps:$4 sm:$0xff]   ;;  %v942_v31 = vld [vmem:[%s9877_s0 + $0xe0] sm:$0xff] }
 0x64e   :  { %1344 = vmatprep.mubr.bf16.mxu0 %v9883_v1  ;;  %1417 = vmatprep.mubr.bf16.mxu1 %v9883_v1 }
 0x650   :  { %1315 = vmatpush1.bf16.msra.mxu0 %v6057_v34  ;;  %1388 = vmatpush1.bf16.msra.mxu1 %v6060_v37  ;;  %v943_v34 = vld [vmem:[%s9877_s0 + $0xe8] sm:$0xff] }
 0x651   :  { %1316 = vmatprep.subr.bf16.mxu0 %v6065_v39  ;;  %1389 = vmatprep.subr.bf16.mxu1 %v6068_v40 }
 0x654   :  { %1317 = vmatpush1.bf16.msra.mxu0 %v6063_v41  ;;  %1390 = vmatpush1.bf16.msra.mxu1 %v6066_v42 }
 0x655   :  { %1318 = vmatprep.subr.bf16.mxu0 %v6071_v43  ;;  %1391 = vmatprep.subr.bf16.mxu1 %v6074_v45 }
 0x658   :  { %1319 = vmatpush1.bf16.msra.mxu0 %v6069_v46  ;;  %1392 = vmatpush1.bf16.msra.mxu1 %v6072_v47 }
 0x659   :  { %1320 = vmatprep.subr.bf16.mxu0 %v6077_v48  ;;  %1393 = vmatprep.subr.bf16.mxu1 %v6080_v50 }
 0x65c   :  { %1321 = vmatpush1.bf16.msra.mxu0 %v6075_v51  ;;  %1394 = vmatpush1.bf16.msra.mxu1 %v6078_v52  ;;  %v945_v52 = vld [vmem:[%s9877_s0 + $0xf8] sm:$0xff] }
 0x65d   :  { %1322 = vmatprep.subr.bf16.mxu0 %v6083_v53  ;;  %1395 = vmatprep.subr.bf16.mxu1 %v6086_v54  ;;  %v944_v54 = vld [vmem:[%s9877_s0 + $0xf0] sm:$0xff] }
 0x660   :  { %1323 = vmatpush1.bf16.msra.mxu0 %v6081_v55  ;;  %1396 = vmatpush1.bf16.msra.mxu1 %v6084_v56 }
 0x661   :  { %1324 = vmatprep.subr.bf16.mxu0 %v6089_v57  ;;  %1397 = vmatprep.subr.bf16.mxu1 %v6092_v58 }
 0x664   :  { %1325 = vmatpush1.bf16.msra.mxu0 %v6087_v49  ;;  %1398 = vmatpush1.bf16.msra.mxu1 %v6090_v59 }
 0x665   :  { %1326 = vmatprep.subr.bf16.mxu0 %v6095_v60  ;;  %1399 = vmatprep.subr.bf16.mxu1 %v6098_v61  ;;  %v1132_v60 = vlaneseq }
 0x667   :  { %v7915_v61 = vshrl.u32 %v1132_v60, 7 }
 0x668   :  { %1327 = vmatpush1.bf16.msra.mxu0 %v6093_v62  ;;  %1400 = vmatpush1.bf16.msra.mxu1 %v6096_v63 }
 0x669   :  { %1675 = vmatprep.subr.bf16.mxu0 %v7712_v17  ;;  %1716 = vmatprep.subr.bf16.mxu1 %v7717_v18  ;;  %v7918_v62 = vsub.s32 0, %v7915_v61 }
 0x66b   :  { %1345 = vmatmul.mubr.bf16.vlgmr.msra.gmra.mrb[28].mxu0 %v1094_v14  ;;  %1418 = vmatmul.mubr.bf16.vlgmr.msra.gmra.mrb[28].mxu1 %v1094_v14  ;;  %9893 = vst [vmem:[#allocation4_spill] sm:$0xff] %v7918_v62  ;;  %v7923_v14 = vld [vmem:[%s9879_s3] sm:$0xf] }
 0x66c   :  { %1354 = vmatprep.mubr.bf16.mxu0 %v9883_v1  ;;  %1427 = vmatprep.mubr.bf16.mxu1 %v9883_v1 }
 0x66d   :  { %1676 = vmatpush1.bf16.msra.mxu0 %v7722_v19  ;;  %1717 = vmatpush1.bf16.msra.mxu1 %v7727_v20 }
 0x66e   :  { %1677 = vmatprep.subr.bf16.mxu0 %v7736_v23  ;;  %1718 = vmatprep.subr.bf16.mxu1 %v7741_v24 }
 0x671   :  { %1678 = vmatpush1.bf16.msra.mxu0 %v7746_v25  ;;  %1719 = vmatpush1.bf16.msra.mxu1 %v7751_v27 }
 0x672   :  { %1679 = vmatprep.subr.bf16.mxu0 %v7760_v28  ;;  %1720 = vmatprep.subr.bf16.mxu1 %v7765_v29 }
 0x673   :  { %1355 = vmatmul.mubr.bf16.gmra.mrb[32].mxu0 %v1095_v15  ;;  %1428 = vmatmul.mubr.bf16.gmra.mrb[32].mxu1 %v1095_v15 }
 0x674   :  { %1364 = vmatprep.mubr.bf16.mxu0 %v9883_v1  ;;  %1437 = vmatprep.mubr.bf16.mxu1 %v9883_v1 }
 0x675   :  { %1680 = vmatpush1.bf16.msra.mxu0 %v7770_v30  ;;  %1721 = vmatpush1.bf16.msra.mxu1 %v7775_v32 }
 0x676   :  { %1681 = vmatprep.subr.bf16.mxu0 %v7784_v33  ;;  %1722 = vmatprep.subr.bf16.mxu1 %v7789_v35 }
 0x679   :  { %1682 = vmatpush1.bf16.msra.mxu0 %v7794_v36  ;;  %1723 = vmatpush1.bf16.msra.mxu1 %v7799_v38 }
 0x67a   :  { %1683 = vmatprep.subr.bf16.mxu0 %v7808_v2  ;;  %1724 = vmatprep.subr.bf16.mxu1 %v7813_v3 }
 0x67b   :  { %1365 = vmatmul.mubr.bf16.gmra.mrb[36].mxu0 %v1096_v16  ;;  %1438 = vmatmul.mubr.bf16.gmra.mrb[36].mxu1 %v1096_v16 }
 0x67c   :  { %1374 = vmatprep.mubr.bf16.mxu0 %v9883_v1  ;;  %1447 = vmatprep.mubr.bf16.mxu1 %v9883_v1 }
 0x67d   :  { %1684 = vmatpush1.bf16.msra.mxu0 %v7818_v4  ;;  %1725 = vmatpush1.bf16.msra.mxu1 %v7823_v5 }
 0x67e   :  { %1685 = vmatprep.subr.bf16.mxu0 %v7832_v7  ;;  %1726 = vmatprep.subr.bf16.mxu1 %v7842_v9 }
 0x681   :  { %1686 = vmatpush1.bf16.msra.mxu0 %v7837_v8  ;;  %1727 = vmatpush1.bf16.msra.mxu1 %v7847_v10 }
 0x682   :  { %1687 = vmatprep.subr.bf16.mxu0 %v7852_v11  ;;  %1728 = vmatprep.subr.bf16.mxu1 %v7859_v13 }
 0x685   :  { %1688 = vmatpush1.bf16.msra.mxu0 %v7866_v0  ;;  %1729 = vmatpush1.bf16.msra.mxu1 %v7871_v44 }
 0x686   :  { %1689 = vmatprep.subr.bf16.mxu0 %v7878_v6  ;;  %1730 = vmatprep.subr.bf16.mxu1 %v7883_v21 }
 0x689   :  { %1690 = vmatpush1.bf16.msra.mxu0 %v7890_v26  ;;  %1731 = vmatpush1.bf16.msra.mxu1 %v7895_v22 }
 0x68a   :  { %1794 = vmatprep.subr.bf16.mxu0 %v7712_v17  ;;  %1835 = vmatprep.subr.bf16.mxu1 %v7717_v18 }
 0x71e   :  { %v980_v37 = vpop.f32.mrb[24].mxu0  ;;  %v1021_v39 = vpop.f32.mrb[24].mxu1 }
 0x71f   :  { %v1028_v40 = vadd.f32 %v980_v37, %v942_v31  ;;  %v982_v41 = vpop.f32.mrb[25].mxu0  ;;  %v1023_v42 = vpop.f32.mrb[25].mxu1  ;;  %v1030_v56 = vadd.f32 %v1021_v39, %v944_v54  ;;  %v7927_v39 = vrot.slane %v7923_v14, %v7918_v62 }
 0x720   :  { %v1029_v43 = vadd.f32 %v982_v41, %v943_v34  ;;  %v984_v45 = vpop.f32.mrb[26].mxu0  ;;  %v1025_v46 = vpop.f32.mrb[26].mxu1  ;;  %v1031_v53 = vadd.f32 %v1023_v42, %v945_v52 }
 0x721   :  { %v5496_v47 = vmul.f32 -1.442695, %v1028_v40  ;;  %v985_v48 = vpop.f32.mrb[27].mxu0  ;;  %v1026_v50 = vpop.f32.mrb[27].mxu1  ;;  %v7930_v40 = vsub.s32 3, %v7915_v61 }
 0x722   :  { %v5498_v51 = vmul.f32 -1.442695, %v1029_v43  ;;  %v5497_v55 = vmul.f32 -1.442695, %v1031_v53 }
 0x723   :  { %6447 = vpow2.f32 %v5496_v47  ;;  %9894 = vst [vmem:[#allocation5_spill] sm:$0xff] %v7930_v40  ;;  %v7936_v48 = vrot.slane %v7923_v14, %v7930_v40 }
 0x724   :  { %6449 = vpow2.f32 %v5498_v51 }
 0x725   :  { %6451 = vpow2.f32 %v5497_v55  ;;  %v7947_v55 = vsub.s32 2, %v7915_v61 }
 0x726   :  { %6453 = vtanh.f32 %v1030_v56 }
 0x727   :  { %9895 = vst [vmem:[#allocation6_spill] sm:$0xff] %v7947_v55 }
 0x72d   :  { %v6448_v57 = vpop.eup %6447 }
 0x72e   :  { %v6450_v58 = vpop.eup %6449  ;;  %v1035_v49 = vadd.f32 1.0, %v6448_v57 }
 0x72f   :  { %v1048_v59 = vadd.f32 1.0, %v6450_v58  ;;  %v6452_v63 = vpop.eup %6451 }
 0x730   :  { %6455 = vrcp.f32 %v1035_v49  ;;  %v6454_v15 = vpop.eup %6453  ;;  %v1042_v37 = vadd.f32 1.0, %v6452_v63  ;;  %v7956_v49 = vrot.slane %v7923_v14, %v7947_v55 }
 0x731   :  { %6457 = vrcp.f32 %v1048_v59 }
 0x732   :  { %6459 = vrcp.f32 %v1042_v37 }
 0x73a   :  { %v6456_v16 = vpop.eup %6455 }
 0x73b   :  { %v6458_v31 = vpop.eup %6457  ;;  %v1052_v34 = vmul.f32 %v6456_v16, %v6454_v15 }
 0x73c   :  { %v1051_v41 = vmul.f32 %v6458_v31, %v7608_v12  ;;  %v6460_v31 = vpop.eup %6459 }
 0x73e   :  { %v1053_v42 = vadd.f32 %v1052_v34, %v1051_v41  ;;  %v1346_v43 = vpop.f32.mrb[28].mxu0  ;;  %v1419_v45 = vpop.f32.mrb[28].mxu1 }
 0x73f   :  { %v1347_v46 = vadd.f32 %v1346_v43, %v7927_v39  ;;  %v1348_v47 = vpop.f32.mrb[29].mxu0  ;;  %v1421_v50 = vpop.f32.mrb[29].mxu1  ;;  %v1420_v43 = vadd.f32 %v1419_v45, %v7956_v49 }
 0x740   :  { %6461 = vtanh.f32 %v1053_v42  ;;  %v7938_v51 = vpop.f32.mrb[30].mxu0  ;;  %v7940_v52 = vpop.f32.mrb[30].mxu1  ;;  %v1422_v56 = vadd.f32 %v1421_v50, %v7936_v48 }
 0x741   :  { %v5563_v53 = vmul.f32 -1.442695, %v1347_v46  ;;  %v7942_v54 = vpop.f32.mrb[31].mxu0  ;;  %v7944_v12 = vpop.f32.mrb[31].mxu1 }
 0x742   :  { %v5564_v59 = vmul.f32 -1.442695, %v1422_v56 }
 0x743   :  { %6463 = vpow2.f32 %v5563_v53 }
 0x744   :  { %6465 = vpow2.f32 %v5564_v59 }
 0x745   :  { %6467 = vtanh.f32 %v1420_v43 }
 0x746   :  { %v7950_v57 = vpop.f32.mrb[32].mxu0  ;;  %v7952_v58 = vpop.f32.mrb[32].mxu1 }
 0x747   :  { %v7958_v60 = vpop.f32.mrb[33].mxu0  ;;  %v7960_v63 = vpop.f32.mrb[33].mxu1 }
 0x748   :  { %v7962_v15 = vpop.f32.mrb[34].mxu0  ;;  %v7964_v16 = vpop.f32.mrb[34].mxu1 }
 0x749   :  { %9896 = vst [vmem:[#allocation7_spill] sm:$0xff] %v7962_v15  ;;  %9897 = vst [vmem:[#allocation8_spill] sm:$0xff] %v7964_v16  ;;  %v7966_v34 = vpop.f32.mrb[35].mxu0  ;;  %v7968_v37 = vpop.f32.mrb[35].mxu1 }
 0x74a   :  { %9898 = vst [vmem:[#allocation9_spill] sm:$0xff] %v7966_v34  ;;  %9899 = vst [vmem:[#allocation10_spill] sm:$0xff] %v7968_v37  ;;  %v6462_v41 = vpop.eup %6461 }
 0x74b   :  { %v1055_v42 = vmul.f32 %v6462_v41, %v6460_v31 }
 0x74d   :  { %v6464_v46 = vpop.eup %6463  ;;  %v1056_v47 = vpack.c.bf16 %v1055_v42, %v1055_v42 }
 0x74e   :  { %v1496_v50 = vadd.f32 1.0, %v6464_v46  ;;  %v7971_v53 = vpop.f32.mrb[36].mxu0  ;;  %v7973_v56 = vpop.f32.mrb[36].mxu1 }
 0x74f   :  { %9900 = vst [vmem:[#allocation11_spill] sm:$0xff] %v7971_v53  ;;  %9901 = vst [vmem:[#allocation12_spill] sm:$0xff] %v7973_v56  ;;  %v1058_v1 = vrot.slane %v1056_v47, 4  ;;  %v7975_v55 = vpop.f32.mrb[37].mxu0  ;;  %v7977_v40 = vpop.f32.mrb[37].mxu1  ;;  %v9908_v47 = vmov 0  }
 0x750   :  { %9902 = vst [vmem:[#allocation13_spill] sm:$0xff] %v7975_v55  ;;  %9903 = vst [vmem:[#allocation14_spill] sm:$0xff] %v7977_v40  ;;  %6469 = vrcp.f32 %v1496_v50  ;;  %v7979_v62 = vpop.f32.mrb[38].mxu0  ;;  %v7981_v31 = vpop.f32.mrb[38].mxu1 }
 0x751   :  { %9904 = vst [vmem:[#allocation15_spill] sm:$0xff] %v7979_v62  ;;  %9905 = vst [vmem:[#allocation16_spill] sm:$0xff] %v7981_v31  ;;  %v7983_v45 = vpop.f32.mrb[39].mxu0  ;;  %v7985_v59 = vpop.f32.mrb[39].mxu1 }
 0x752   :  { %1060 = vst [vmem:[#allocation2 + $0x18] sm:$0xf0] %v1058_v1  ;;  %9906 = vst [vmem:[#allocation17_spill] sm:$0xff] %v7983_v45  ;;  %v6466_v41 = vpop.eup %6465 }
 0x753   :  { %9907 = vst [vmem:[#allocation18_spill] sm:$0xff] %v7985_v59  ;;  %v1503_v42 = vadd.f32 1.0, %v6466_v41  ;;  %v6468_v56 = vpop.eup %6467 }
 0x755   :  { %6471 = vrcp.f32 %v1503_v42 }
 0x759   :  { %v1097_v46 = vld [vmem:[#allocation2 + $0x18] sm:$0xff] }
 0x75a   :  { %1375 = vmatmul.mubr.bf16.gmra.mrb[40].mxu0 %v1097_v46  ;;  %1448 = vmatmul.mubr.bf16.gmra.mrb[40].mxu1 %v1097_v46  ;;  %v6470_v43 = vpop.eup %6469 }
 0x75b   :  { %1707 = vmatprep.mubr.bf16.mxu0 %v9908_v47  ;;  %1748 = vmatprep.mubr.bf16.mxu1 %v9908_v47  ;;  %v7989_v50 = vmul.f32 %v6470_v43, %v6468_v56 }
 0x75d   :  { %6473 = vtanh.f32 %v7989_v50 }
 0x75f   :  { %v6472_v1 = vpop.eup %6471 }
 0x767   :  { %v6474_v45 = vpop.eup %6473 }
 0x768   :  { %v1508_v31 = vmul.f32 %v6474_v45, %v6472_v1  ;;  %v8043_v1 = vsub.s32 1, %v7915_v61 }
 0x76a   :  { %v1509_v59 = vpack.c.bf16 %v1508_v31, %v1508_v31  ;;  %9917 = vst [vmem:[#allocation27_spill] sm:$0xff] %v8043_v1 }
 0x76c   :  { %1510 = vst [vmem:[#allocation2] sm:$0xf] %v1509_v59  ;;  %1708 = vmatmul.mubr.bf16.vlgmr.msra.gmra.mrb[44].mxu0 %v1509_v59  ;;  %1749 = vmatmul.mubr.bf16.vlgmr.msra.gmra.mrb[44].mxu1 %v1509_v59 }
 0x76d   :  { %1795 = vmatpush1.bf16.msra.mxu0 %v7722_v19  ;;  %1836 = vmatpush1.bf16.msra.mxu1 %v7727_v20 }
 0x76e   :  { %1796 = vmatprep.subr.bf16.mxu0 %v7736_v23  ;;  %1837 = vmatprep.subr.bf16.mxu1 %v7741_v24 }
 0x76f   :  { %1826 = vmatprep.mubr.bf16.mxu0 %v9908_v47  ;;  %1867 = vmatprep.mubr.bf16.mxu1 %v9908_v47 }
 0x771   :  { %1797 = vmatpush1.bf16.msra.mxu0 %v7746_v25  ;;  %1838 = vmatpush1.bf16.msra.mxu1 %v7751_v27 }
 0x772   :  { %1798 = vmatprep.subr.bf16.mxu0 %v7760_v28  ;;  %1839 = vmatprep.subr.bf16.mxu1 %v7765_v29 }
 0x775   :  { %1799 = vmatpush1.bf16.msra.mxu0 %v7770_v30  ;;  %1840 = vmatpush1.bf16.msra.mxu1 %v7775_v32 }
 0x776   :  { %1800 = vmatprep.subr.bf16.mxu0 %v7784_v33  ;;  %1841 = vmatprep.subr.bf16.mxu1 %v7789_v35 }
 0x779   :  { %1801 = vmatpush1.bf16.msra.mxu0 %v7794_v36  ;;  %1842 = vmatpush1.bf16.msra.mxu1 %v7799_v38 }
 0x77a   :  { %1802 = vmatprep.subr.bf16.mxu0 %v7808_v2  ;;  %1843 = vmatprep.subr.bf16.mxu1 %v7813_v3 }
 0x77d   :  { %1803 = vmatpush1.bf16.msra.mxu0 %v7818_v4  ;;  %1844 = vmatpush1.bf16.msra.mxu1 %v7823_v5 }
 0x77e   :  { %1804 = vmatprep.subr.bf16.mxu0 %v7832_v7  ;;  %1845 = vmatprep.subr.bf16.mxu1 %v7842_v9 }
 0x781   :  { %1805 = vmatpush1.bf16.msra.mxu0 %v7837_v8  ;;  %1846 = vmatpush1.bf16.msra.mxu1 %v7847_v10 }
 0x782   :  { %1806 = vmatprep.subr.bf16.mxu0 %v7852_v11  ;;  %1847 = vmatprep.subr.bf16.mxu1 %v7859_v13 }
 0x785   :  { %1807 = vmatpush1.bf16.msra.mxu0 %v7866_v0  ;;  %1848 = vmatpush1.bf16.msra.mxu1 %v7871_v44 }
 0x786   :  { %1808 = vmatprep.subr.bf16.mxu0 %v7878_v6  ;;  %1849 = vmatprep.subr.bf16.mxu1 %v7883_v21 }
 0x789   :  { %1809 = vmatpush1.bf16.msra.mxu0 %v7890_v26  ;;  %1850 = vmatpush1.bf16.msra.mxu1 %v7895_v22 }
 0x78a   :  { %1910 = vmatprep.subr.bf16.mxu0 %v7712_v17  ;;  %1951 = vmatprep.subr.bf16.mxu1 %v7717_v18 }
 0x82d   :  { %v8026_v56 = vpop.f32.mrb[40].mxu0  ;;  %v8028_v31 = vpop.f32.mrb[40].mxu1 }
 0x82e   :  { %9909 = vst [vmem:[#allocation19_spill] sm:$0xff] %v8026_v56  ;;  %9910 = vst [vmem:[#allocation20_spill] sm:$0xff] %v8028_v31  ;;  %v8030_v45 = vpop.f32.mrb[41].mxu0  ;;  %v8032_v59 = vpop.f32.mrb[41].mxu1  ;;  %v8047_v56 = vrot.slane %v7923_v14, %v8043_v1 }
 0x82f   :  { %9911 = vst [vmem:[#allocation21_spill] sm:$0xff] %v8030_v45  ;;  %9912 = vst [vmem:[#allocation22_spill] sm:$0xff] %v8032_v59  ;;  %v8034_v41 = vpop.f32.mrb[42].mxu0  ;;  %v8036_v42 = vpop.f32.mrb[42].mxu1  ;;  %v1351_v45 = vadd.f32 %v7938_v51, %v7927_v39  ;;  %v1424_v59 = vadd.f32 %v7940_v52, %v7956_v49 }
 0x830   :  { %9913 = vst [vmem:[#allocation23_spill] sm:$0xff] %v8034_v41  ;;  %9914 = vst [vmem:[#allocation24_spill] sm:$0xff] %v8036_v42  ;;  %v8038_v46 = vpop.f32.mrb[43].mxu0  ;;  %v8040_v43 = vpop.f32.mrb[43].mxu1  ;;  %v1353_v42 = vadd.f32 %v7942_v54, %v8047_v56 }
 0x831   :  { %9915 = vst [vmem:[#allocation25_spill] sm:$0xff] %v8038_v46  ;;  %9916 = vst [vmem:[#allocation26_spill] sm:$0xff] %v8040_v43  ;;  %v1426_v46 = vadd.f32 %v7944_v12, %v7936_v48 }
 0x83f   :  { %v1709_v43 = vpop.f32.mrb[44].mxu0  ;;  %v1750_v41 = vpop.f32.mrb[44].mxu1 }
 0x840   :  { %v1757_v61 = vadd.f32 %v1709_v43, %v1351_v45  ;;  %v1759_v31 = vadd.f32 %v1750_v41, %v1424_v59  ;;  %v1711_v62 = vpop.f32.mrb[45].mxu0  ;;  %v1752_v40 = vpop.f32.mrb[45].mxu1  ;;  %v1430_v43 = vadd.f32 %v7952_v58, %v7956_v49 }
 0x841   :  { %v1758_v14 = vadd.f32 %v1711_v62, %v1353_v42  ;;  %v1760_v1 = vadd.f32 %v1752_v40, %v1426_v46  ;;  %v1713_v55 = vpop.f32.mrb[46].mxu0  ;;  %v1754_v53 = vpop.f32.mrb[46].mxu1 }
 0x842   :  { %v5597_v51 = vmul.f32 -1.442695, %v1757_v61  ;;  %v1714_v37 = vpop.f32.mrb[47].mxu0  ;;  %v1755_v34 = vpop.f32.mrb[47].mxu1  ;;  %v1432_v61 = vadd.f32 %v7960_v63, %v7936_v48 }
 0x843   :  { %v5599_v52 = vmul.f32 -1.442695, %v1758_v14  ;;  %v5598_v54 = vmul.f32 -1.442695, %v1760_v1  ;;  %v1359_v1 = vadd.f32 %v7958_v60, %v8047_v56 }
 0x844   :  { %6475 = vpow2.f32 %v5597_v51 }
 0x845   :  { %6477 = vpow2.f32 %v5599_v52 }
 0x846   :  { %6479 = vpow2.f32 %v5598_v54 }
 0x847   :  { %6481 = vtanh.f32 %v1759_v31 }
 0x84e   :  { %v6476_v16 = vpop.eup %6475 }
 0x84f   :  { %v6478_v15 = vpop.eup %6477  ;;  %v1764_v12 = vadd.f32 1.0, %v6476_v16 }
 0x850   :  { %v1777_v45 = vadd.f32 1.0, %v6478_v15  ;;  %v6480_v59 = vpop.eup %6479 }
 0x851   :  { %6483 = vrcp.f32 %v1764_v12  ;;  %v6482_v62 = vpop.eup %6481  ;;  %v1771_v41 = vadd.f32 1.0, %v6480_v59 }
 0x852   :  { %6485 = vrcp.f32 %v1777_v45 }
 0x853   :  { %6487 = vrcp.f32 %v1771_v41 }
 0x85b   :  { %v6484_v40 = vpop.eup %6483 }
 0x85c   :  { %v6486_v55 = vpop.eup %6485  ;;  %v1781_v53 = vmul.f32 %v6484_v40, %v6482_v62 }
 0x85d   :  { %v1780_v34 = vmul.f32 %v6486_v55, %v7989_v50  ;;  %v6488_v42 = vpop.eup %6487  ;;  %v1357_v50 = vadd.f32 %v7950_v57, %v7927_v39 }
 0x85f   :  { %v8058_v37 = vadd.f32 %v1781_v53, %v1780_v34 }
 0x861   :  { %6489 = vtanh.f32 %v8058_v37 }
 0x86b   :  { %v6490_v16 = vpop.eup %6489 }
 0x86c   :  { %v1784_v46 = vmul.f32 %v6490_v16, %v6488_v42 }
 0x86e   :  { %v1785_v31 = vpack.c.bf16 %v1784_v46, %v1784_v46 }
 0x870   :  { %v1787_v15 = vrot.slane %v1785_v31, 4  ;;  %1827 = vmatmul.mubr.bf16.vlgmr.msra.gmra.mrb[48].mxu0 %v1785_v31  ;;  %1868 = vmatmul.mubr.bf16.vlgmr.msra.gmra.mrb[48].mxu1 %v1785_v31 }
 0x871   :  { %1911 = vmatpush1.bf16.msra.mxu0 %v7722_v19  ;;  %1952 = vmatpush1.bf16.msra.mxu1 %v7727_v20 }
 0x872   :  { %1789 = vst [vmem:[#allocation2] sm:$0xf0] %v1787_v15  ;;  %1912 = vmatprep.subr.bf16.mxu0 %v7736_v23  ;;  %1953 = vmatprep.subr.bf16.mxu1 %v7741_v24 }
 0x873   :  { %1942 = vmatprep.mubr.bf16.mxu0 %v9908_v47  ;;  %1983 = vmatprep.mubr.bf16.mxu1 %v9908_v47 }
 0x875   :  { %1913 = vmatpush1.bf16.msra.mxu0 %v7746_v25  ;;  %1954 = vmatpush1.bf16.msra.mxu1 %v7751_v27 }
 0x876   :  { %1914 = vmatprep.subr.bf16.mxu0 %v7760_v28  ;;  %1955 = vmatprep.subr.bf16.mxu1 %v7765_v29 }
 0x879   :  { %1915 = vmatpush1.bf16.msra.mxu0 %v7770_v30  ;;  %1956 = vmatpush1.bf16.msra.mxu1 %v7775_v32 }
 0x87a   :  { %1916 = vmatprep.subr.bf16.mxu0 %v7784_v33  ;;  %1957 = vmatprep.subr.bf16.mxu1 %v7789_v35 }
 0x87d   :  { %1917 = vmatpush1.bf16.msra.mxu0 %v7794_v36  ;;  %1958 = vmatpush1.bf16.msra.mxu1 %v7799_v38 }
 0x87e   :  { %1918 = vmatprep.subr.bf16.mxu0 %v7808_v2  ;;  %1959 = vmatprep.subr.bf16.mxu1 %v7813_v3 }
 0x881   :  { %1919 = vmatpush1.bf16.msra.mxu0 %v7818_v4  ;;  %1960 = vmatpush1.bf16.msra.mxu1 %v7823_v5 }
 0x882   :  { %1920 = vmatprep.subr.bf16.mxu0 %v7832_v7  ;;  %1961 = vmatprep.subr.bf16.mxu1 %v7842_v9 }
 0x885   :  { %1921 = vmatpush1.bf16.msra.mxu0 %v7837_v8  ;;  %1962 = vmatpush1.bf16.msra.mxu1 %v7847_v10 }
 0x886   :  { %1922 = vmatprep.subr.bf16.mxu0 %v7852_v11  ;;  %1963 = vmatprep.subr.bf16.mxu1 %v7859_v13 }
 0x889   :  { %1923 = vmatpush1.bf16.msra.mxu0 %v7866_v0  ;;  %1964 = vmatpush1.bf16.msra.mxu1 %v7871_v44 }
 0x88a   :  { %1924 = vmatprep.subr.bf16.mxu0 %v7878_v6  ;;  %1965 = vmatprep.subr.bf16.mxu1 %v7883_v21 }
 0x88d   :  { %1925 = vmatpush1.bf16.msra.mxu0 %v7890_v26  ;;  %1966 = vmatpush1.bf16.msra.mxu1 %v7895_v22 }
 0x88e   :  { %2029 = vmatprep.subr.bf16.mxu0 %v7712_v17  ;;  %2070 = vmatprep.subr.bf16.mxu1 %v7717_v18 }
 0x943   :  { %v1828_v14 = vpop.f32.mrb[48].mxu0  ;;  %v1869_v51 = vpop.f32.mrb[48].mxu1 }
 0x944   :  { %v1876_v52 = vadd.f32 %v1828_v14, %v1357_v50  ;;  %v1878_v54 = vadd.f32 %v1869_v51, %v1430_v43  ;;  %v1830_v12 = vpop.f32.mrb[49].mxu0  ;;  %v1871_v45 = vpop.f32.mrb[49].mxu1 }
 0x945   :  { %v1877_v59 = vadd.f32 %v1830_v12, %v1359_v1  ;;  %v1879_v62 = vadd.f32 %v1871_v45, %v1432_v61  ;;  %v1832_v40 = vpop.f32.mrb[50].mxu0  ;;  %v1873_v55 = vpop.f32.mrb[50].mxu1 }
 0x946   :  { %v5600_v57 = vmul.f32 -1.442695, %v1876_v52  ;;  %v1833_v53 = vpop.f32.mrb[51].mxu0  ;;  %v1874_v41 = vpop.f32.mrb[51].mxu1  ;;  %v9920_v40 = vld [vmem:[#allocation9_spill] sm:$0xff] }
 0x947   :  { %v5602_v58 = vmul.f32 -1.442695, %v1877_v59  ;;  %v5601_v60 = vmul.f32 -1.442695, %v1879_v62  ;;  %v9919_v59 = vld [vmem:[#allocation8_spill] sm:$0xff]  ;;  %v1363_v55 = vadd.f32 %v9920_v40, %v8047_v56 }
 0x948   :  { %6491 = vpow2.f32 %v5600_v57  ;;  %v1434_v62 = vadd.f32 %v9919_v59, %v7956_v49  ;;  %v9921_v57 = vld [vmem:[#allocation10_spill] sm:$0xff] }
 0x949   :  { %6493 = vpow2.f32 %v5602_v58  ;;  %v1436_v53 = vadd.f32 %v9921_v57, %v7936_v48 }
 0x94a   :  { %6495 = vpow2.f32 %v5601_v60 }
 0x94b   :  { %6497 = vtanh.f32 %v1878_v54 }
 0x952   :  { %v6492_v34 = vpop.eup %6491 }
 0x953   :  { %v6494_v42 = vpop.eup %6493  ;;  %v1883_v63 = vadd.f32 1.0, %v6492_v34 }
 0x954   :  { %v1896_v16 = vadd.f32 1.0, %v6494_v42  ;;  %v6496_v46 = vpop.eup %6495 }
 0x955   :  { %6499 = vrcp.f32 %v1883_v63  ;;  %v6498_v31 = vpop.eup %6497  ;;  %v1890_v1 = vadd.f32 1.0, %v6496_v46 }
 0x956   :  { %6501 = vrcp.f32 %v1896_v16 }
 0x957   :  { %6503 = vrcp.f32 %v1890_v1 }
 0x95f   :  { %v6500_v15 = vpop.eup %6499 }
 0x960   :  { %v6502_v50 = vpop.eup %6501  ;;  %v1900_v43 = vmul.f32 %v6500_v15, %v6498_v31 }
 0x961   :  { %v1899_v61 = vmul.f32 %v6502_v50, %v8058_v37  ;;  %v6504_v51 = vpop.eup %6503  ;;  %v9918_v37 = vld [vmem:[#allocation7_spill] sm:$0xff] }
 0x962   :  { %v1361_v45 = vadd.f32 %v9918_v37, %v7927_v39 }
 0x963   :  { %v8104_v14 = vadd.f32 %v1900_v43, %v1899_v61 }
 0x965   :  { %6505 = vtanh.f32 %v8104_v14 }
 0x96f   :  { %v6506_v52 = vpop.eup %6505 }
 0x970   :  { %v1903_v12 = vmul.f32 %v6506_v52, %v6504_v51 }
 0x972   :  { %v1904_v54 = vpack.c.bf16 %v1903_v12, %v1903_v12 }
 0x974   :  { %1905 = vst [vmem:[#allocation2 + $0x8] sm:$0xf] %v1904_v54  ;;  %1943 = vmatmul.mubr.bf16.vlgmr.msra.gmra.mrb[52].mxu0 %v1904_v54  ;;  %1984 = vmatmul.mubr.bf16.vlgmr.msra.gmra.mrb[52].mxu1 %v1904_v54 }
 0x975   :  { %2030 = vmatpush1.bf16.msra.mxu0 %v7722_v19  ;;  %2071 = vmatpush1.bf16.msra.mxu1 %v7727_v20 }
 0x976   :  { %2031 = vmatprep.subr.bf16.mxu0 %v7736_v23  ;;  %2072 = vmatprep.subr.bf16.mxu1 %v7741_v24 }
 0x977   :  { %2061 = vmatprep.mubr.bf16.mxu0 %v9908_v47  ;;  %2102 = vmatprep.mubr.bf16.mxu1 %v9908_v47 }
 0x979   :  { %2032 = vmatpush1.bf16.msra.mxu0 %v7746_v25  ;;  %2073 = vmatpush1.bf16.msra.mxu1 %v7751_v27 }
 0x97a   :  { %2033 = vmatprep.subr.bf16.mxu0 %v7760_v28  ;;  %2074 = vmatprep.subr.bf16.mxu1 %v7765_v29 }
 0x97d   :  { %2034 = vmatpush1.bf16.msra.mxu0 %v7770_v30  ;;  %2075 = vmatpush1.bf16.msra.mxu1 %v7775_v32 }
 0x97e   :  { %2035 = vmatprep.subr.bf16.mxu0 %v7784_v33  ;;  %2076 = vmatprep.subr.bf16.mxu1 %v7789_v35 }
 0x981   :  { %2036 = vmatpush1.bf16.msra.mxu0 %v7794_v36  ;;  %2077 = vmatpush1.bf16.msra.mxu1 %v7799_v38 }
 0x982   :  { %2037 = vmatprep.subr.bf16.mxu0 %v7808_v2  ;;  %2078 = vmatprep.subr.bf16.mxu1 %v7813_v3 }
 0x985   :  { %2038 = vmatpush1.bf16.msra.mxu0 %v7818_v4  ;;  %2079 = vmatpush1.bf16.msra.mxu1 %v7823_v5 }
 0x986   :  { %2039 = vmatprep.subr.bf16.mxu0 %v7832_v7  ;;  %2080 = vmatprep.subr.bf16.mxu1 %v7842_v9 }
 0x989   :  { %2040 = vmatpush1.bf16.msra.mxu0 %v7837_v8  ;;  %2081 = vmatpush1.bf16.msra.mxu1 %v7847_v10 }
 0x98a   :  { %2041 = vmatprep.subr.bf16.mxu0 %v7852_v11  ;;  %2082 = vmatprep.subr.bf16.mxu1 %v7859_v13 }
 0x98d   :  { %2042 = vmatpush1.bf16.msra.mxu0 %v7866_v0  ;;  %2083 = vmatpush1.bf16.msra.mxu1 %v7871_v44 }
 0x98e   :  { %2043 = vmatprep.subr.bf16.mxu0 %v7878_v6  ;;  %2084 = vmatprep.subr.bf16.mxu1 %v7883_v21 }
 0x991   :  { %2044 = vmatpush1.bf16.msra.mxu0 %v7890_v26  ;;  %2085 = vmatpush1.bf16.msra.mxu1 %v7895_v22 }
 0x992   :  { %2145 = vmatprep.subr.bf16.mxu0 %v7712_v17  ;;  %2186 = vmatprep.subr.bf16.mxu1 %v7717_v18 }
 0xa47   :  { %v1944_v41 = vpop.f32.mrb[52].mxu0  ;;  %v1985_v58 = vpop.f32.mrb[52].mxu1 }
 0xa48   :  { %v1992_v60 = vadd.f32 %v1944_v41, %v1361_v45  ;;  %v1994_v34 = vadd.f32 %v1985_v58, %v1434_v62  ;;  %v1946_v42 = vpop.f32.mrb[53].mxu0  ;;  %v1987_v63 = vpop.f32.mrb[53].mxu1 }
 0xa49   :  { %v1993_v16 = vadd.f32 %v1946_v42, %v1363_v55  ;;  %v1995_v46 = vadd.f32 %v1987_v63, %v1436_v53  ;;  %v1948_v31 = vpop.f32.mrb[54].mxu0  ;;  %v1989_v15 = vpop.f32.mrb[54].mxu1 }
 0xa4a   :  { %v5603_v50 = vmul.f32 -1.442695, %v1992_v60  ;;  %v1949_v43 = vpop.f32.mrb[55].mxu0  ;;  %v1990_v1 = vpop.f32.mrb[55].mxu1  ;;  %v9924_v15 = vld [vmem:[#allocation13_spill] sm:$0xff] }
 0xa4b   :  { %v5605_v61 = vmul.f32 -1.442695, %v1993_v16  ;;  %v5604_v51 = vmul.f32 -1.442695, %v1995_v46  ;;  %v9923_v46 = vld [vmem:[#allocation12_spill] sm:$0xff]  ;;  %v9925_v43 = vld [vmem:[#allocation14_spill] sm:$0xff] }
 0xa4c   :  { %6507 = vpow2.f32 %v5603_v50  ;;  %v1440_v31 = vadd.f32 %v9923_v46, %v7956_v49  ;;  %v1369_v50 = vadd.f32 %v9924_v15, %v8047_v56  ;;  %v1442_v1 = vadd.f32 %v9925_v43, %v7936_v48 }
 0xa4d   :  { %6509 = vpow2.f32 %v5605_v61 }
 0xa4e   :  { %6511 = vpow2.f32 %v5604_v51 }
 0xa4f   :  { %6513 = vtanh.f32 %v1994_v34 }
 0xa56   :  { %v6508_v52 = vpop.eup %6507 }
 0xa57   :  { %v6510_v12 = vpop.eup %6509  ;;  %v1999_v54 = vadd.f32 1.0, %v6508_v52 }
 0xa58   :  { %v2012_v37 = vadd.f32 1.0, %v6510_v12  ;;  %v6512_v45 = vpop.eup %6511 }
 0xa59   :  { %6515 = vrcp.f32 %v1999_v54  ;;  %v6514_v59 = vpop.eup %6513  ;;  %v2006_v57 = vadd.f32 1.0, %v6512_v45 }
 0xa5a   :  { %6517 = vrcp.f32 %v2012_v37 }
 0xa5b   :  { %6519 = vrcp.f32 %v2006_v57 }
 0xa63   :  { %v6516_v62 = vpop.eup %6515 }
 0xa64   :  { %v6518_v40 = vpop.eup %6517  ;;  %v2016_v55 = vmul.f32 %v6516_v62, %v6514_v59 }
 0xa65   :  { %v2015_v53 = vmul.f32 %v6518_v40, %v8104_v14  ;;  %v6520_v58 = vpop.eup %6519  ;;  %v9922_v14 = vld [vmem:[#allocation11_spill] sm:$0xff] }
 0xa66   :  { %v1367_v16 = vadd.f32 %v9922_v14, %v7927_v39 }
 0xa67   :  { %v8150_v41 = vadd.f32 %v2016_v55, %v2015_v53 }
 0xa69   :  { %6521 = vtanh.f32 %v8150_v41 }
 0xa73   :  { %v6522_v60 = vpop.eup %6521 }
 0xa74   :  { %v2019_v42 = vmul.f32 %v6522_v60, %v6520_v58 }
 0xa76   :  { %v2020_v34 = vpack.c.bf16 %v2019_v42, %v2019_v42 }
 0xa78   :  { %v2022_v63 = vrot.slane %v2020_v34, 4  ;;  %2062 = vmatmul.mubr.bf16.vlgmr.msra.gmra.mrb[56].mxu0 %v2020_v34  ;;  %2103 = vmatmul.mubr.bf16.vlgmr.msra.gmra.mrb[56].mxu1 %v2020_v34 }
 0xa79   :  { %2146 = vmatpush1.bf16.msra.mxu0 %v7722_v19  ;;  %2187 = vmatpush1.bf16.msra.mxu1 %v7727_v20 }
 0xa7a   :  { %2024 = vst [vmem:[#allocation2 + $0x8] sm:$0xf0] %v2022_v63  ;;  %2147 = vmatprep.subr.bf16.mxu0 %v7736_v23  ;;  %2188 = vmatprep.subr.bf16.mxu1 %v7741_v24 }
 0xa7b   :  { %2177 = vmatprep.mubr.bf16.mxu0 %v9908_v47  ;;  %2218 = vmatprep.mubr.bf16.mxu1 %v9908_v47 }
 0xa7d   :  { %2148 = vmatpush1.bf16.msra.mxu0 %v7746_v25  ;;  %2189 = vmatpush1.bf16.msra.mxu1 %v7751_v27 }
 0xa7e   :  { %2149 = vmatprep.subr.bf16.mxu0 %v7760_v28  ;;  %2190 = vmatprep.subr.bf16.mxu1 %v7765_v29 }
 0xa81   :  { %2150 = vmatpush1.bf16.msra.mxu0 %v7770_v30  ;;  %2191 = vmatpush1.bf16.msra.mxu1 %v7775_v32 }
 0xa82   :  { %2151 = vmatprep.subr.bf16.mxu0 %v7784_v33  ;;  %2192 = vmatprep.subr.bf16.mxu1 %v7789_v35 }
 0xa85   :  { %2152 = vmatpush1.bf16.msra.mxu0 %v7794_v36  ;;  %2193 = vmatpush1.bf16.msra.mxu1 %v7799_v38 }
 0xa86   :  { %2153 = vmatprep.subr.bf16.mxu0 %v7808_v2  ;;  %2194 = vmatprep.subr.bf16.mxu1 %v7813_v3 }
 0xa89   :  { %2154 = vmatpush1.bf16.msra.mxu0 %v7818_v4  ;;  %2195 = vmatpush1.bf16.msra.mxu1 %v7823_v5 }
 0xa8a   :  { %2155 = vmatprep.subr.bf16.mxu0 %v7832_v7  ;;  %2196 = vmatprep.subr.bf16.mxu1 %v7842_v9 }
 0xa8d   :  { %2156 = vmatpush1.bf16.msra.mxu0 %v7837_v8  ;;  %2197 = vmatpush1.bf16.msra.mxu1 %v7847_v10 }
 0xa8e   :  { %2157 = vmatprep.subr.bf16.mxu0 %v7852_v11  ;;  %2198 = vmatprep.subr.bf16.mxu1 %v7859_v13 }
 0xa91   :  { %2158 = vmatpush1.bf16.msra.mxu0 %v7866_v0  ;;  %2199 = vmatpush1.bf16.msra.mxu1 %v7871_v44 }
 0xa92   :  { %2159 = vmatprep.subr.bf16.mxu0 %v7878_v6  ;;  %2200 = vmatprep.subr.bf16.mxu1 %v7883_v21 }
 0xa95   :  { %2160 = vmatpush1.bf16.msra.mxu0 %v7890_v26  ;;  %2201 = vmatpush1.bf16.msra.mxu1 %v7895_v22 }
 0xa96   :  { %2264 = vmatprep.subr.bf16.mxu0 %v7712_v17  ;;  %2305 = vmatprep.subr.bf16.mxu1 %v7717_v18 }
 0xb4b   :  { %v2063_v61 = vpop.f32.mrb[56].mxu0  ;;  %v2104_v51 = vpop.f32.mrb[56].mxu1 }
 0xb4c   :  { %v2111_v52 = vadd.f32 %v2063_v61, %v1367_v16  ;;  %v2113_v12 = vadd.f32 %v2104_v51, %v1440_v31  ;;  %v2065_v54 = vpop.f32.mrb[57].mxu0  ;;  %v2106_v17 = vpop.f32.mrb[57].mxu1 }
 0xb4d   :  { %v2112_v37 = vadd.f32 %v2065_v54, %v1369_v50  ;;  %v2114_v18 = vadd.f32 %v2106_v17, %v1442_v1  ;;  %v2067_v45 = vpop.f32.mrb[58].mxu0  ;;  %v2108_v59 = vpop.f32.mrb[58].mxu1 }
 0xb4e   :  { %v5606_v62 = vmul.f32 -1.442695, %v2111_v52  ;;  %v2068_v40 = vpop.f32.mrb[59].mxu0  ;;  %v2109_v55 = vpop.f32.mrb[59].mxu1 }
 0xb4f   :  { %v5608_v57 = vmul.f32 -1.442695, %v2112_v37  ;;  %v5607_v53 = vmul.f32 -1.442695, %v2114_v18 }
 0xb50   :  { %6523 = vpow2.f32 %v5606_v62 }
 0xb51   :  { %6525 = vpow2.f32 %v5608_v57 }
 0xb52   :  { %6527 = vpow2.f32 %v5607_v53  ;;  %v6869_v53 = vld [vmem:[%s9876_s2 + $0x100] ss:$16 sps:$4 sm:$0xff]  }
 0xb53   :  { %6529 = vtanh.f32 %v2113_v12 }
 0xb5a   :  { %v6524_v58 = vpop.eup %6523 }
 0xb5b   :  { %v6526_v60 = vpop.eup %6525  ;;  %v2118_v42 = vadd.f32 1.0, %v6524_v58  ;;  %v6870_v58 = vld [vmem:[%s9876_s2 + $0x108] ss:$16 sps:$4 sm:$0xff]  }
 0xb5c   :  { %v2131_v34 = vadd.f32 1.0, %v6526_v60  ;;  %v6528_v63 = vpop.eup %6527  ;;  %v6871_v60 = vld [vmem:[%s9876_s2 + $0x124] ss:$16 sps:$4 sm:$0xff]  }
 0xb5d   :  { %6531 = vrcp.f32 %v2118_v42  ;;  %v6530_v14 = vpop.eup %6529  ;;  %v2125_v15 = vadd.f32 1.0, %v6528_v63  ;;  %v6872_v42 = vld [vmem:[%s9876_s2 + $0x12c] ss:$16 sps:$4 sm:$0xff]   ;;  %v6874_v63 = vld [vmem:[%s9876_s2 + $0x128] ss:$16 sps:$4 sm:$0xff]  }
 0xb5e   :  { %6533 = vrcp.f32 %v2131_v34  ;;  %v6873_v34 = vld [vmem:[%s9876_s2 + $0x120] ss:$16 sps:$4 sm:$0xff]  }
 0xb5f   :  { %6535 = vrcp.f32 %v2125_v15  ;;  %v6879_v15 = vld [vmem:[%s9876_s2 + $0x164] ss:$16 sps:$4 sm:$0xff]  }
 0xb67   :  { %v6532_v16 = vpop.eup %6531 }
 0xb68   :  { %v6534_v46 = vpop.eup %6533  ;;  %v2135_v31 = vmul.f32 %v6532_v16, %v6530_v14  ;;  %v6875_v14 = vld [vmem:[%s9876_s2 + $0x144] ss:$16 sps:$4 sm:$0xff]   ;;  %v6876_v16 = vld [vmem:[%s9876_s2 + $0x14c] ss:$16 sps:$4 sm:$0xff]  }
 0xb69   :  { %v2134_v50 = vmul.f32 %v6534_v46, %v8150_v41  ;;  %v6536_v1 = vpop.eup %6535  ;;  %v6877_v46 = vld [vmem:[%s9876_s2 + $0x140] ss:$16 sps:$4 sm:$0xff]  }
 0xb6b   :  { %v8196_v43 = vadd.f32 %v2135_v31, %v2134_v50  ;;  %v6878_v31 = vld [vmem:[%s9876_s2 + $0x148] ss:$16 sps:$4 sm:$0xff]   ;;  %v6880_v50 = vld [vmem:[%s9876_s2 + $0x16c] ss:$16 sps:$4 sm:$0xff]  }
 0xb6d   :  { %6537 = vtanh.f32 %v8196_v43 }
 0xb77   :  { %v6538_v61 = vpop.eup %6537 }
 0xb78   :  { %v2138_v51 = vmul.f32 %v6538_v61, %v6536_v1  ;;  %v6882_v1 = vld [vmem:[%s9876_s2 + $0x168] ss:$16 sps:$4 sm:$0xff]   ;;  %v6883_v61 = vld [vmem:[%s9876_s2 + $0x184] ss:$16 sps:$4 sm:$0xff]  }
 0xb7a   :  { %v2139_v52 = vpack.c.bf16 %v2138_v51, %v2138_v51  ;;  %v6884_v51 = vld [vmem:[%s9876_s2 + $0x18c] ss:$16 sps:$4 sm:$0xff]  }
 0xb7c   :  { %2140 = vst [vmem:[#allocation2 + $0x10] sm:$0xf] %v2139_v52  ;;  %2178 = vmatmul.mubr.bf16.vlgmr.msra.gmra.mrb[60].mxu0 %v2139_v52  ;;  %2219 = vmatmul.mubr.bf16.vlgmr.msra.gmra.mrb[60].mxu1 %v2139_v52  ;;  %v6885_v52 = vld [vmem:[%s9876_s2 + $0x180] ss:$16 sps:$4 sm:$0xff]  }
 0xb7d   :  { %2265 = vmatpush1.bf16.msra.mxu0 %v7722_v19  ;;  %2306 = vmatpush1.bf16.msra.mxu1 %v7727_v20  ;;  %v6867_v19 = vld [vmem:[%s9876_s2 + $0x104] ss:$16 sps:$4 sm:$0xff]   ;;  %v6868_v20 = vld [vmem:[%s9876_s2 + $0x10c] ss:$16 sps:$4 sm:$0xff]  }
 0xb7e   :  { %2266 = vmatprep.subr.bf16.mxu0 %v7736_v23  ;;  %2307 = vmatprep.subr.bf16.mxu1 %v7741_v24  ;;  %v9926_v23 = vld [vmem:[#allocation15_spill] sm:$0xff] }
 0xb7f   :  { %2296 = vmatprep.mubr.bf16.mxu0 %v9908_v47  ;;  %2337 = vmatprep.mubr.bf16.mxu1 %v9908_v47  ;;  %v1371_v24 = vadd.f32 %v9926_v23, %v7927_v39  ;;  %v6888_v23 = vld [vmem:[%s9876_s2 + $0x1ac] ss:$16 sps:$4 sm:$0xff]  }
 0xb81   :  { %2267 = vmatpush1.bf16.msra.mxu0 %v7746_v25  ;;  %2308 = vmatpush1.bf16.msra.mxu1 %v7751_v27  ;;  %v9927_v25 = vld [vmem:[#allocation16_spill] sm:$0xff] }
 0xb82   :  { %2268 = vmatprep.subr.bf16.mxu0 %v7760_v28  ;;  %2309 = vmatprep.subr.bf16.mxu1 %v7765_v29  ;;  %v1444_v27 = vadd.f32 %v9927_v25, %v7956_v49  ;;  %v9928_v28 = vld [vmem:[#allocation17_spill] sm:$0xff] }
 0xb83   :  { %v1373_v29 = vadd.f32 %v9928_v28, %v8047_v56  ;;  %v6890_v25 = vld [vmem:[%s9876_s2 + $0x1a8] ss:$16 sps:$4 sm:$0xff]   ;;  %v6892_v28 = vld [vmem:[%s9876_s2 + $0x1cc] ss:$16 sps:$4 sm:$0xff]  }
 0xb85   :  { %2269 = vmatpush1.bf16.msra.mxu0 %v7770_v30  ;;  %2310 = vmatpush1.bf16.msra.mxu1 %v7775_v32  ;;  %v9929_v30 = vld [vmem:[#allocation18_spill] sm:$0xff] }
 0xb86   :  { %2270 = vmatprep.subr.bf16.mxu0 %v7784_v33  ;;  %2311 = vmatprep.subr.bf16.mxu1 %v7789_v35  ;;  %v1446_v32 = vadd.f32 %v9929_v30, %v7936_v48  ;;  %v6894_v30 = vld [vmem:[%s9876_s2 + $0x1c8] ss:$16 sps:$4 sm:$0xff]  }
 0xb89   :  { %2271 = vmatpush1.bf16.msra.mxu0 %v7794_v36  ;;  %2312 = vmatpush1.bf16.msra.mxu1 %v7799_v38 }
 0xb8a   :  { %2272 = vmatprep.subr.bf16.mxu0 %v7808_v2  ;;  %2313 = vmatprep.subr.bf16.mxu1 %v7813_v3 }
 0xb8d   :  { %2273 = vmatpush1.bf16.msra.mxu0 %v7818_v4  ;;  %2314 = vmatpush1.bf16.msra.mxu1 %v7823_v5 }
 0xb8e   :  { %2274 = vmatprep.subr.bf16.mxu0 %v7832_v7  ;;  %2315 = vmatprep.subr.bf16.mxu1 %v7842_v9 }
 0xb91   :  { %2275 = vmatpush1.bf16.msra.mxu0 %v7837_v8  ;;  %2316 = vmatpush1.bf16.msra.mxu1 %v7847_v10 }
 0xb92   :  { %2276 = vmatprep.subr.bf16.mxu0 %v7852_v11  ;;  %2317 = vmatprep.subr.bf16.mxu1 %v7859_v13 }
 0xb95   :  { %2277 = vmatpush1.bf16.msra.mxu0 %v7866_v0  ;;  %2318 = vmatpush1.bf16.msra.mxu1 %v7871_v44 }
 0xb96   :  { %2278 = vmatprep.subr.bf16.mxu0 %v7878_v6  ;;  %2319 = vmatprep.subr.bf16.mxu1 %v7883_v21 }
 0xb99   :  { %2279 = vmatpush1.bf16.msra.mxu0 %v7890_v26  ;;  %2320 = vmatpush1.bf16.msra.mxu1 %v7895_v22 }
 0xb9a   :  { %2380 = vmatprep.subr.bf16.mxu0 %v6867_v19  ;;  %2421 = vmatprep.subr.bf16.mxu1 %v6868_v20  ;;  %v6886_v19 = vld [vmem:[%s9876_s2 + $0x188] ss:$16 sps:$4 sm:$0xff]   ;;  %v6887_v20 = vld [vmem:[%s9876_s2 + $0x1a4] ss:$16 sps:$4 sm:$0xff]  }
 0xc4f   :  { %v2179_v33 = vpop.f32.mrb[60].mxu0  ;;  %v2220_v35 = vpop.f32.mrb[60].mxu1 }
 0xc50   :  { %v2227_v36 = vadd.f32 %v2179_v33, %v1371_v24  ;;  %v2229_v38 = vadd.f32 %v2220_v35, %v1444_v27  ;;  %v2181_v2 = vpop.f32.mrb[61].mxu0  ;;  %v2222_v3 = vpop.f32.mrb[61].mxu1  ;;  %v6889_v24 = vld [vmem:[%s9876_s2 + $0x1a0] ss:$16 sps:$4 sm:$0xff]   ;;  %v6891_v27 = vld [vmem:[%s9876_s2 + $0x1c4] ss:$16 sps:$4 sm:$0xff]  }
 0xc51   :  { %v2228_v4 = vadd.f32 %v2181_v2, %v1373_v29  ;;  %v2230_v5 = vadd.f32 %v2222_v3, %v1446_v32  ;;  %v2183_v7 = vpop.f32.mrb[62].mxu0  ;;  %v2224_v8 = vpop.f32.mrb[62].mxu1  ;;  %v6893_v29 = vld [vmem:[%s9876_s2 + $0x1c0] ss:$16 sps:$4 sm:$0xff]   ;;  %v6895_v32 = vld [vmem:[%s9876_s2 + $0x1e4] ss:$16 sps:$4 sm:$0xff]  }
 0xc52   :  { %v5609_v9 = vmul.f32 -1.442695, %v2227_v36  ;;  %v2184_v10 = vpop.f32.mrb[63].mxu0  ;;  %v2225_v11 = vpop.f32.mrb[63].mxu1  ;;  %v6896_v33 = vld [vmem:[%s9876_s2 + $0x1ec] ss:$16 sps:$4 sm:$0xff]  }
 0xc53   :  { %v5611_v13 = vmul.f32 -1.442695, %v2228_v4  ;;  %v5610_v0 = vmul.f32 -1.442695, %v2230_v5  ;;  %v6897_v35 = vld [vmem:[%s9876_s2 + $0x1e0] ss:$16 sps:$4 sm:$0xff]  }
 0xc54   :  { %6539 = vpow2.f32 %v5609_v9  ;;  %v6898_v36 = vld [vmem:[%s9876_s2 + $0x1e8] ss:$16 sps:$4 sm:$0xff]   ;;  %v6152_v2 = vld [vmem:[%s9878_s1 + $0x10c] ss:$16 sps:$4 sm:$0xff]   ;;  %v9931_v5 = vld [vmem:[#allocation20_spill] sm:$0xff] }
 0xc55   :  { %6541 = vpow2.f32 %v5611_v13  ;;  %v9930_v3 = vld [vmem:[#allocation19_spill] sm:$0xff]  ;;  %v1450_v7 = vadd.f32 %v9931_v5, %v7956_v49  ;;  %v9932_v8 = vld [vmem:[#allocation21_spill] sm:$0xff]  ;;  %v9933_v10 = vld [vmem:[#allocation22_spill] sm:$0xff] }
 0xc56   :  { %6543 = vpow2.f32 %v5610_v0  ;;  %v1377_v4 = vadd.f32 %v9930_v3, %v7927_v39  ;;  %v1379_v9 = vadd.f32 %v9932_v8, %v8047_v56  ;;  %v1452_v11 = vadd.f32 %v9933_v10, %v7936_v48  ;;  %v6177_v3 = vld [vmem:[%s9878_s1 + $0x1a0] ss:$16 sps:$4 sm:$0xff]   ;;  %v6185_v5 = vld [vmem:[%s9878_s1 + $0x1c4] ss:$16 sps:$4 sm:$0xff]  }
 0xc57   :  { %6545 = vtanh.f32 %v2229_v38  ;;  %v6149_v38 = vld [vmem:[%s9878_s1 + $0x104] ss:$16 sps:$4 sm:$0xff]   ;;  %v6183_v8 = vld [vmem:[%s9878_s1 + $0x1c0] ss:$16 sps:$4 sm:$0xff]  }
 0xc58   :  { %v6191_v10 = vld [vmem:[%s9878_s1 + $0x1e4] ss:$16 sps:$4 sm:$0xff]  }
 0xc5e   :  { %v6540_v44 = vpop.eup %6539 }
 0xc5f   :  { %v6542_v6 = vpop.eup %6541  ;;  %v2234_v21 = vadd.f32 1.0, %v6540_v44 }
 0xc60   :  { %v2247_v26 = vadd.f32 1.0, %v6542_v6  ;;  %v6544_v22 = vpop.eup %6543 }
 0xc61   :  { %6547 = vrcp.f32 %v2234_v21  ;;  %v6546_v41 = vpop.eup %6545  ;;  %v2241_v37 = vadd.f32 1.0, %v6544_v22 }
 0xc62   :  { %6549 = vrcp.f32 %v2247_v26 }
 0xc63   :  { %6551 = vrcp.f32 %v2241_v37 }
 0xc6b   :  { %v6548_v12 = vpop.eup %6547 }
 0xc6c   :  { %v6550_v54 = vpop.eup %6549  ;;  %v2251_v17 = vmul.f32 %v6548_v12, %v6546_v41 }
 0xc6d   :  { %v2250_v18 = vmul.f32 %v6550_v54, %v8196_v43  ;;  %v6552_v59 = vpop.eup %6551  ;;  %v6881_v43 = vld [vmem:[%s9876_s2 + $0x160] ss:$16 sps:$4 sm:$0xff]  }
 0xc6f   :  { %v8246_v45 = vadd.f32 %v2251_v17, %v2250_v18 }
 0xc71   :  { %6553 = vtanh.f32 %v8246_v45 }
 0xc7b   :  { %v6554_v62 = vpop.eup %6553 }
 0xc7c   :  { %v2254_v40 = vmul.f32 %v6554_v62, %v6552_v59 }
 0xc7e   :  { %v2255_v55 = vpack.c.bf16 %v2254_v40, %v2254_v40 }
 0xc80   :  { %v2257_v57 = vrot.slane %v2255_v55, 4  ;;  %2297 = vmatmul.mubr.bf16.vlgmr.msra.gmra.mrb[64].mxu0 %v2255_v55  ;;  %2338 = vmatmul.mubr.bf16.vlgmr.msra.gmra.mrb[64].mxu1 %v2255_v55 }
 0xc81   :  { %2381 = vmatpush1.bf16.msra.mxu0 %v6869_v53  ;;  %2422 = vmatpush1.bf16.msra.mxu1 %v6870_v58 }
 0xc82   :  { %2259 = vst [vmem:[#allocation2 + $0x10] sm:$0xf0] %v2257_v57  ;;  %2382 = vmatprep.subr.bf16.mxu0 %v6871_v60  ;;  %2423 = vmatprep.subr.bf16.mxu1 %v6872_v42 }
 0xc83   :  { %2412 = vmatprep.mubr.bf16.mxu0 %v9908_v47  ;;  %2453 = vmatprep.mubr.bf16.mxu1 %v9908_v47 }
 0xc85   :  { %2383 = vmatpush1.bf16.msra.mxu0 %v6873_v34  ;;  %2424 = vmatpush1.bf16.msra.mxu1 %v6874_v63 }
 0xc86   :  { %2384 = vmatprep.subr.bf16.mxu0 %v6875_v14  ;;  %2425 = vmatprep.subr.bf16.mxu1 %v6876_v16 }
 0xc89   :  { %2385 = vmatpush1.bf16.msra.mxu0 %v6877_v46  ;;  %2426 = vmatpush1.bf16.msra.mxu1 %v6878_v31 }
 0xc8a   :  { %2386 = vmatprep.subr.bf16.mxu0 %v6879_v15  ;;  %2427 = vmatprep.subr.bf16.mxu1 %v6880_v50 }
 0xc8d   :  { %2387 = vmatpush1.bf16.msra.mxu0 %v6881_v43  ;;  %2428 = vmatpush1.bf16.msra.mxu1 %v6882_v1  ;;  %v6147_v43 = vld [vmem:[%s9878_s1 + $0x100] ss:$16 sps:$4 sm:$0xff]   ;;  %v6150_v1 = vld [vmem:[%s9878_s1 + $0x108] ss:$16 sps:$4 sm:$0xff]  }
 0xc8e   :  { %2388 = vmatprep.subr.bf16.mxu0 %v6883_v61  ;;  %2429 = vmatprep.subr.bf16.mxu1 %v6884_v51  ;;  %v6158_v51 = vld [vmem:[%s9878_s1 + $0x12c] ss:$16 sps:$4 sm:$0xff]  }
 0xc91   :  { %2389 = vmatpush1.bf16.msra.mxu0 %v6885_v52  ;;  %2430 = vmatpush1.bf16.msra.mxu1 %v6886_v19  ;;  %v6153_v52 = vld [vmem:[%s9878_s1 + $0x120] ss:$16 sps:$4 sm:$0xff]   ;;  %v6156_v19 = vld [vmem:[%s9878_s1 + $0x128] ss:$16 sps:$4 sm:$0xff]  }
 0xc92   :  { %2390 = vmatprep.subr.bf16.mxu0 %v6887_v20  ;;  %2431 = vmatprep.subr.bf16.mxu1 %v6888_v23  ;;  %v6161_v20 = vld [vmem:[%s9878_s1 + $0x144] ss:$16 sps:$4 sm:$0xff]   ;;  %v6164_v23 = vld [vmem:[%s9878_s1 + $0x14c] ss:$16 sps:$4 sm:$0xff]  }
 0xc95   :  { %2391 = vmatpush1.bf16.msra.mxu0 %v6889_v24  ;;  %2432 = vmatpush1.bf16.msra.mxu1 %v6890_v25  ;;  %v6159_v24 = vld [vmem:[%s9878_s1 + $0x140] ss:$16 sps:$4 sm:$0xff]   ;;  %v6162_v25 = vld [vmem:[%s9878_s1 + $0x148] ss:$16 sps:$4 sm:$0xff]  }
 0xc96   :  { %2392 = vmatprep.subr.bf16.mxu0 %v6891_v27  ;;  %2433 = vmatprep.subr.bf16.mxu1 %v6892_v28  ;;  %v6167_v27 = vld [vmem:[%s9878_s1 + $0x164] ss:$16 sps:$4 sm:$0xff]   ;;  %v6170_v28 = vld [vmem:[%s9878_s1 + $0x16c] ss:$16 sps:$4 sm:$0xff]  }
 0xc99   :  { %2393 = vmatpush1.bf16.msra.mxu0 %v6893_v29  ;;  %2434 = vmatpush1.bf16.msra.mxu1 %v6894_v30  ;;  %v6165_v29 = vld [vmem:[%s9878_s1 + $0x160] ss:$16 sps:$4 sm:$0xff]   ;;  %v6168_v30 = vld [vmem:[%s9878_s1 + $0x168] ss:$16 sps:$4 sm:$0xff]  }
 0xc9a   :  { %2394 = vmatprep.subr.bf16.mxu0 %v6895_v32  ;;  %2435 = vmatprep.subr.bf16.mxu1 %v6896_v33  ;;  %v6173_v32 = vld [vmem:[%s9878_s1 + $0x184] ss:$16 sps:$4 sm:$0xff]   ;;  %v6176_v33 = vld [vmem:[%s9878_s1 + $0x18c] ss:$16 sps:$4 sm:$0xff]  }
 0xc9d   :  { %2395 = vmatpush1.bf16.msra.mxu0 %v6897_v35  ;;  %2436 = vmatpush1.bf16.msra.mxu1 %v6898_v36  ;;  %v6171_v35 = vld [vmem:[%s9878_s1 + $0x180] ss:$16 sps:$4 sm:$0xff]   ;;  %v6174_v36 = vld [vmem:[%s9878_s1 + $0x188] ss:$16 sps:$4 sm:$0xff]  }
 0xc9e   :  { %2748 = vmatprep.subr.bf16.mxu0 %v6149_v38  ;;  %2821 = vmatprep.subr.bf16.mxu1 %v6152_v2  ;;  %v6179_v38 = vld [vmem:[%s9878_s1 + $0x1a4] ss:$16 sps:$4 sm:$0xff]   ;;  %v6182_v2 = vld [vmem:[%s9878_s1 + $0x1ac] ss:$16 sps:$4 sm:$0xff]  }
 0xd53   :  { %v2298_v13 = vpop.f32.mrb[64].mxu0  ;;  %v2339_v0 = vpop.f32.mrb[64].mxu1 }
 0xd54   :  { %v2346_v44 = vadd.f32 %v2298_v13, %v1377_v4  ;;  %v2348_v6 = vadd.f32 %v2339_v0, %v1450_v7  ;;  %v2300_v21 = vpop.f32.mrb[65].mxu0  ;;  %v2341_v26 = vpop.f32.mrb[65].mxu1  ;;  %v6180_v4 = vld [vmem:[%s9878_s1 + $0x1a8] ss:$16 sps:$4 sm:$0xff]   ;;  %v6188_v7 = vld [vmem:[%s9878_s1 + $0x1cc] ss:$16 sps:$4 sm:$0xff]  }
 0xd55   :  { %v2347_v22 = vadd.f32 %v2300_v21, %v1379_v9  ;;  %v2349_v41 = vadd.f32 %v2341_v26, %v1452_v11  ;;  %v2302_v12 = vpop.f32.mrb[66].mxu0  ;;  %v2343_v54 = vpop.f32.mrb[66].mxu1  ;;  %v6186_v9 = vld [vmem:[%s9878_s1 + $0x1c8] ss:$16 sps:$4 sm:$0xff]   ;;  %v6194_v11 = vld [vmem:[%s9878_s1 + $0x1ec] ss:$16 sps:$4 sm:$0xff]  }
 0xd56   :  { %v5612_v17 = vmul.f32 -1.442695, %v2346_v44  ;;  %v2303_v37 = vpop.f32.mrb[67].mxu0  ;;  %v2344_v18 = vpop.f32.mrb[67].mxu1  ;;  %v6189_v13 = vld [vmem:[%s9878_s1 + $0x1e0] ss:$16 sps:$4 sm:$0xff]  }
 0xd57   :  { %v5614_v59 = vmul.f32 -1.442695, %v2347_v22  ;;  %v5613_v62 = vmul.f32 -1.442695, %v2349_v41  ;;  %v6192_v0 = vld [vmem:[%s9878_s1 + $0x1e8] ss:$16 sps:$4 sm:$0xff]  }
 0xd58   :  { %6555 = vpow2.f32 %v5612_v17  ;;  %v2528_v44 = vld [vmem:[#allocation2] sm:$0xff]  ;;  %v2530_v21 = vld [vmem:[#allocation2 + $0x10] sm:$0xff]  ;;  %v8465_v22 = vld [vmem:[%s9876_s2 + $0x20c] ss:$16 sps:$4 sm:$0xff]  }
 0xd59   :  { %6557 = vpow2.f32 %v5614_v59  ;;  %v8460_v26 = vld [vmem:[%s9876_s2 + $0x204] ss:$16 sps:$4 sm:$0xff]   ;;  %v8470_v41 = vld [vmem:[%s9876_s2 + $0x200] ss:$16 sps:$4 sm:$0xff]   ;;  %v8475_v12 = vld [vmem:[%s9876_s2 + $0x208] ss:$16 sps:$4 sm:$0xff]  }
 0xd5a   :  { %6559 = vpow2.f32 %v5613_v62  ;;  %v8484_v54 = vld [vmem:[%s9876_s2 + $0x224] ss:$16 sps:$4 sm:$0xff]   ;;  %v8489_v17 = vld [vmem:[%s9876_s2 + $0x22c] ss:$16 sps:$4 sm:$0xff]   ;;  %v8494_v37 = vld [vmem:[%s9876_s2 + $0x220] ss:$16 sps:$4 sm:$0xff]  }
 0xd5b   :  { %6561 = vtanh.f32 %v2348_v6  ;;  %v2529_v6 = vld [vmem:[#allocation2 + $0x8] sm:$0xff]  ;;  %v8508_v59 = vld [vmem:[%s9876_s2 + $0x244] ss:$16 sps:$4 sm:$0xff]  }
 0xd5c   :  { %v8499_v18 = vld [vmem:[%s9876_s2 + $0x228] ss:$16 sps:$4 sm:$0xff]   ;;  %v8513_v62 = vld [vmem:[%s9876_s2 + $0x24c] ss:$16 sps:$4 sm:$0xff]  }
 0xd62   :  { %v6556_v40 = vpop.eup %6555 }
 0xd63   :  { %v6558_v55 = vpop.eup %6557  ;;  %v2353_v57 = vadd.f32 1.0, %v6556_v40  ;;  %v8518_v40 = vld [vmem:[%s9876_s2 + $0x240] ss:$16 sps:$4 sm:$0xff]  }
 0xd64   :  { %v2366_v53 = vadd.f32 1.0, %v6558_v55  ;;  %v6560_v58 = vpop.eup %6559  ;;  %v8523_v55 = vld [vmem:[%s9876_s2 + $0x248] ss:$16 sps:$4 sm:$0xff]  }
 0xd65   :  { %6563 = vrcp.f32 %v2353_v57  ;;  %v6562_v60 = vpop.eup %6561  ;;  %v2360_v14 = vadd.f32 1.0, %v6560_v58  ;;  %v8532_v57 = vld [vmem:[%s9876_s2 + $0x264] ss:$16 sps:$4 sm:$0xff]   ;;  %v8542_v58 = vld [vmem:[%s9876_s2 + $0x260] ss:$16 sps:$4 sm:$0xff]  }
 0xd66   :  { %6565 = vrcp.f32 %v2366_v53  ;;  %v8537_v53 = vld [vmem:[%s9876_s2 + $0x26c] ss:$16 sps:$4 sm:$0xff]  }
 0xd67   :  { %6567 = vrcp.f32 %v2360_v14  ;;  %v8571_v14 = vld [vmem:[%s9876_s2 + $0x288] ss:$16 sps:$4 sm:$0xff]  }
 0xd6f   :  { %v6564_v42 = vpop.eup %6563 }
 0xd70   :  { %v6566_v34 = vpop.eup %6565  ;;  %v2370_v63 = vmul.f32 %v6564_v42, %v6562_v60  ;;  %v8547_v60 = vld [vmem:[%s9876_s2 + $0x268] ss:$16 sps:$4 sm:$0xff]   ;;  %v8556_v42 = vld [vmem:[%s9876_s2 + $0x284] ss:$16 sps:$4 sm:$0xff]  }
 0xd71   :  { %v2369_v16 = vmul.f32 %v6566_v34, %v8246_v45  ;;  %v6568_v31 = vpop.eup %6567  ;;  %v6155_v45 = vld [vmem:[%s9878_s1 + $0x124] ss:$16 sps:$4 sm:$0xff]   ;;  %v8561_v34 = vld [vmem:[%s9876_s2 + $0x28c] ss:$16 sps:$4 sm:$0xff]  }
 0xd73   :  { %v8356_v46 = vadd.f32 %v2370_v63, %v2369_v16  ;;  %v8566_v63 = vld [vmem:[%s9876_s2 + $0x280] ss:$16 sps:$4 sm:$0xff]   ;;  %v8580_v16 = vld [vmem:[%s9876_s2 + $0x2a4] ss:$16 sps:$4 sm:$0xff]  }
 0xd75   :  { %6569 = vtanh.f32 %v8356_v46 }
 0xd7f   :  { %v6570_v15 = vpop.eup %6569 }
 0xd80   :  { %v2373_v50 = vmul.f32 %v6570_v15, %v6568_v31  ;;  %v8585_v31 = vld [vmem:[%s9876_s2 + $0x2a0] ss:$16 sps:$4 sm:$0xff]   ;;  %v8590_v15 = vld [vmem:[%s9876_s2 + $0x2ac] ss:$16 sps:$4 sm:$0xff]  }
 0xd82   :  { %v2374_v61 = vpack.c.bf16 %v2373_v50, %v2373_v50  ;;  %v8595_v50 = vld [vmem:[%s9876_s2 + $0x2a8] ss:$16 sps:$4 sm:$0xff]  }
 0xd84   :  { %2375 = vst [vmem:[#allocation2 + $0x18] sm:$0xf] %v2374_v61  ;;  %2413 = vmatmul.mubr.bf16.vlgmr.msra.gmra.mrb[68].mxu0 %v2374_v61  ;;  %2454 = vmatmul.mubr.bf16.vlgmr.msra.gmra.mrb[68].mxu1 %v2374_v61  ;;  %v8614_v61 = vld [vmem:[%s9876_s2 + $0x2c0] ss:$16 sps:$4 sm:$0xff]  }
 0xd85   :  { %2749 = vmatpush1.bf16.msra.mxu0 %v6147_v43  ;;  %2822 = vmatpush1.bf16.msra.mxu1 %v6150_v1  ;;  %v8600_v43 = vld [vmem:[%s9876_s2 + $0x2c4] ss:$16 sps:$4 sm:$0xff]   ;;  %v8607_v1 = vld [vmem:[%s9876_s2 + $0x2cc] ss:$16 sps:$4 sm:$0xff]  }
 0xd86   :  { %2750 = vmatprep.subr.bf16.mxu0 %v6155_v45  ;;  %2823 = vmatprep.subr.bf16.mxu1 %v6158_v51  ;;  %v8619_v45 = vld [vmem:[%s9876_s2 + $0x2c8] ss:$16 sps:$4 sm:$0xff]   ;;  %v8626_v51 = vld [vmem:[%s9876_s2 + $0x2e4] ss:$16 sps:$4 sm:$0xff]  }
 0xd87   :  { %2780 = vmatprep.mubr.bf16.mxu0 %v9908_v47  ;;  %2853 = vmatprep.mubr.bf16.mxu1 %v9908_v47 }
 0xd89   :  { %2751 = vmatpush1.bf16.msra.mxu0 %v6153_v52  ;;  %2824 = vmatpush1.bf16.msra.mxu1 %v6156_v19  ;;  %v8631_v52 = vld [vmem:[%s9876_s2 + $0x2ec] ss:$16 sps:$4 sm:$0xff]   ;;  %v8638_v19 = vld [vmem:[%s9876_s2 + $0x2e0] ss:$16 sps:$4 sm:$0xff]  }
 0xd8a   :  { %2752 = vmatprep.subr.bf16.mxu0 %v6161_v20  ;;  %2825 = vmatprep.subr.bf16.mxu1 %v6164_v23  ;;  %v8643_v20 = vld [vmem:[%s9876_s2 + $0x2e8] ss:$16 sps:$4 sm:$0xff]  }
 0xd8b   :  { %v9934_v23 = vld [vmem:[#allocation23_spill] sm:$0xff] }
 0xd8d   :  { %2753 = vmatpush1.bf16.msra.mxu0 %v6159_v24  ;;  %2826 = vmatpush1.bf16.msra.mxu1 %v6162_v25  ;;  %v1381_v24 = vadd.f32 %v9934_v23, %v7927_v39  ;;  %v9935_v25 = vld [vmem:[#allocation24_spill] sm:$0xff] }
 0xd8e   :  { %2754 = vmatprep.subr.bf16.mxu0 %v6167_v27  ;;  %2827 = vmatprep.subr.bf16.mxu1 %v6170_v28  ;;  %v1454_v27 = vadd.f32 %v9935_v25, %v7956_v49  ;;  %v9936_v28 = vld [vmem:[#allocation25_spill] sm:$0xff] }
 0xd91   :  { %2755 = vmatpush1.bf16.msra.mxu0 %v6165_v29  ;;  %2828 = vmatpush1.bf16.msra.mxu1 %v6168_v30  ;;  %v1383_v29 = vadd.f32 %v9936_v28, %v8047_v56  ;;  %v9937_v30 = vld [vmem:[#allocation26_spill] sm:$0xff]  ;;  %v9938_v28 = vld [vmem:[#allocation4_spill] sm:$0xff] }
 0xd92   :  { %2756 = vmatprep.subr.bf16.mxu0 %v6173_v32  ;;  %2829 = vmatprep.subr.bf16.mxu1 %v6176_v33  ;;  %v1456_v32 = vadd.f32 %v9937_v30, %v7936_v48 }
 0xd95   :  { %2757 = vmatpush1.bf16.msra.mxu0 %v6171_v35  ;;  %2830 = vmatpush1.bf16.msra.mxu1 %v6174_v36 }
 0xd96   :  { %2758 = vmatprep.subr.bf16.mxu0 %v6179_v38  ;;  %2831 = vmatprep.subr.bf16.mxu1 %v6182_v2 }
 0xd99   :  { %2759 = vmatpush1.bf16.msra.mxu0 %v6177_v3  ;;  %2832 = vmatpush1.bf16.msra.mxu1 %v6180_v4 }
 0xd9a   :  { %2760 = vmatprep.subr.bf16.mxu0 %v6185_v5  ;;  %2833 = vmatprep.subr.bf16.mxu1 %v6188_v7 }
 0xd9d   :  { %2761 = vmatpush1.bf16.msra.mxu0 %v6183_v8  ;;  %2834 = vmatpush1.bf16.msra.mxu1 %v6186_v9 }
 0xd9e   :  { %2762 = vmatprep.subr.bf16.mxu0 %v6191_v10  ;;  %2835 = vmatprep.subr.bf16.mxu1 %v6194_v11 }
 0xda1   :  { %2763 = vmatpush1.bf16.msra.mxu0 %v6189_v13  ;;  %2836 = vmatpush1.bf16.msra.mxu1 %v6192_v0 }
 0xda2   :  { %3111 = vmatprep.subr.bf16.mxu0 %v8460_v26  ;;  %3152 = vmatprep.subr.bf16.mxu1 %v8465_v22 }
 0xda4   :  { %2781 = vmatmul.mubr.bf16.vlgmr.msra.gmra.mrb[72].mxu0 %v2528_v44  ;;  %2854 = vmatmul.mubr.bf16.vlgmr.msra.gmra.mrb[72].mxu1 %v2528_v44 }
 0xda5   :  { %2790 = vmatprep.mubr.bf16.mxu0 %v9908_v47  ;;  %2863 = vmatprep.mubr.bf16.mxu1 %v9908_v47 }
 0xda6   :  { %3112 = vmatpush1.bf16.msra.mxu0 %v8470_v41  ;;  %3153 = vmatpush1.bf16.msra.mxu1 %v8475_v12 }
 0xda7   :  { %3113 = vmatprep.subr.bf16.mxu0 %v8484_v54  ;;  %3154 = vmatprep.subr.bf16.mxu1 %v8489_v17 }
 0xdaa   :  { %3114 = vmatpush1.bf16.msra.mxu0 %v8494_v37  ;;  %3155 = vmatpush1.bf16.msra.mxu1 %v8499_v18 }
 0xdab   :  { %3115 = vmatprep.subr.bf16.mxu0 %v8508_v59  ;;  %3156 = vmatprep.subr.bf16.mxu1 %v8513_v62 }
 0xdac   :  { %2791 = vmatmul.mubr.bf16.gmra.mrb[76].mxu0 %v2529_v6  ;;  %2864 = vmatmul.mubr.bf16.gmra.mrb[76].mxu1 %v2529_v6  ;;  %v8662_v6 = vld [vmem:[%s9879_s3 + $0x4] sm:$0xf] }
 0xdad   :  { %2800 = vmatprep.mubr.bf16.mxu0 %v9908_v47  ;;  %2873 = vmatprep.mubr.bf16.mxu1 %v9908_v47 }
 0xdae   :  { %3116 = vmatpush1.bf16.msra.mxu0 %v8518_v40  ;;  %3157 = vmatpush1.bf16.msra.mxu1 %v8523_v55 }
 0xdaf   :  { %3117 = vmatprep.subr.bf16.mxu0 %v8532_v57  ;;  %3158 = vmatprep.subr.bf16.mxu1 %v8537_v53 }
 0xdb2   :  { %3118 = vmatpush1.bf16.msra.mxu0 %v8542_v58  ;;  %3159 = vmatpush1.bf16.msra.mxu1 %v8547_v60 }
 0xdb3   :  { %3119 = vmatprep.subr.bf16.mxu0 %v8556_v42  ;;  %3160 = vmatprep.subr.bf16.mxu1 %v8561_v34 }
 0xdb4   :  { %2801 = vmatmul.mubr.bf16.gmra.mrb[80].mxu0 %v2530_v21  ;;  %2874 = vmatmul.mubr.bf16.gmra.mrb[80].mxu1 %v2530_v21 }
 0xdb5   :  { %2810 = vmatprep.mubr.bf16.mxu0 %v9908_v47  ;;  %2883 = vmatprep.mubr.bf16.mxu1 %v9908_v47 }
 0xdb6   :  { %3120 = vmatpush1.bf16.msra.mxu0 %v8566_v63  ;;  %3161 = vmatpush1.bf16.msra.mxu1 %v8571_v14 }
 0xdb7   :  { %3121 = vmatprep.subr.bf16.mxu0 %v8580_v16  ;;  %3162 = vmatprep.subr.bf16.mxu1 %v8590_v15 }
 0xdba   :  { %3122 = vmatpush1.bf16.msra.mxu0 %v8585_v31  ;;  %3163 = vmatpush1.bf16.msra.mxu1 %v8595_v50 }
 0xdbb   :  { %3123 = vmatprep.subr.bf16.mxu0 %v8600_v43  ;;  %3164 = vmatprep.subr.bf16.mxu1 %v8607_v1 }
 0xdbe   :  { %3124 = vmatpush1.bf16.msra.mxu0 %v8614_v61  ;;  %3165 = vmatpush1.bf16.msra.mxu1 %v8619_v45 }
 0xdbf   :  { %3125 = vmatprep.subr.bf16.mxu0 %v8626_v51  ;;  %3166 = vmatprep.subr.bf16.mxu1 %v8631_v52 }
 0xdc2   :  { %3126 = vmatpush1.bf16.msra.mxu0 %v8638_v19  ;;  %3167 = vmatpush1.bf16.msra.mxu1 %v8643_v20 }
 0xdc3   :  { %3230 = vmatprep.subr.bf16.mxu0 %v8460_v26  ;;  %3271 = vmatprep.subr.bf16.mxu1 %v8465_v22 }
 0xe57   :  { %v2414_v33 = vpop.f32.mrb[68].mxu0  ;;  %v2455_v35 = vpop.f32.mrb[68].mxu1 }
 0xe58   :  { %v2462_v36 = vadd.f32 %v2414_v33, %v1381_v24  ;;  %v2464_v38 = vadd.f32 %v2455_v35, %v1454_v27  ;;  %v2416_v2 = vpop.f32.mrb[69].mxu0  ;;  %v2457_v3 = vpop.f32.mrb[69].mxu1 }
 0xe59   :  { %v2463_v4 = vadd.f32 %v2416_v2, %v1383_v29  ;;  %v2465_v5 = vadd.f32 %v2457_v3, %v1456_v32  ;;  %v2418_v7 = vpop.f32.mrb[70].mxu0  ;;  %v2459_v8 = vpop.f32.mrb[70].mxu1  ;;  %v8666_v29 = vrot.slane %v8662_v6, %v9938_v28  ;;  %v9939_v2 = vld [vmem:[#allocation5_spill] sm:$0xff] }
 0xe5a   :  { %v5615_v39 = vmul.f32 -1.442695, %v2462_v36  ;;  %v2419_v9 = vpop.f32.mrb[71].mxu0  ;;  %v2460_v10 = vpop.f32.mrb[71].mxu1  ;;  %v8672_v3 = vrot.slane %v8662_v6, %v9939_v2 }
 0xe5b   :  { %v5617_v49 = vmul.f32 -1.442695, %v2463_v4  ;;  %v5616_v56 = vmul.f32 -1.442695, %v2465_v5 }
 0xe5c   :  { %6571 = vpow2.f32 %v5615_v39 }
 0xe5d   :  { %6573 = vpow2.f32 %v5617_v49 }
 0xe5e   :  { %6575 = vpow2.f32 %v5616_v56  ;;  %v9940_v56 = vld [vmem:[#allocation6_spill] sm:$0xff] }
 0xe5f   :  { %6577 = vtanh.f32 %v2464_v38 }
 0xe66   :  { %v6572_v11 = vpop.eup %6571 }
 0xe67   :  { %v6574_v13 = vpop.eup %6573  ;;  %v2469_v48 = vadd.f32 1.0, %v6572_v11  ;;  %v8689_v11 = vrot.slane %v8662_v6, %v9940_v56 }
 0xe68   :  { %v2482_v0 = vadd.f32 1.0, %v6574_v13  ;;  %v6576_v44 = vpop.eup %6575 }
 0xe69   :  { %6579 = vrcp.f32 %v2469_v48  ;;  %v6578_v21 = vpop.eup %6577  ;;  %v2476_v27 = vadd.f32 1.0, %v6576_v44 }
 0xe6a   :  { %6581 = vrcp.f32 %v2482_v0 }
 0xe6b   :  { %6583 = vrcp.f32 %v2476_v27 }
 0xe73   :  { %v6580_v23 = vpop.eup %6579 }
 0xe74   :  { %v6582_v24 = vpop.eup %6581  ;;  %v2486_v25 = vmul.f32 %v6580_v23, %v6578_v21 }
 0xe75   :  { %v2485_v30 = vmul.f32 %v6582_v24, %v8356_v46  ;;  %v6584_v23 = vpop.eup %6583 }
 0xe77   :  { %v2487_v32 = vadd.f32 %v2486_v25, %v2485_v30  ;;  %v2782_v33 = vpop.f32.mrb[72].mxu0  ;;  %v2855_v35 = vpop.f32.mrb[72].mxu1 }
 0xe78   :  { %v2783_v36 = vadd.f32 %v2782_v33, %v8666_v29  ;;  %v2784_v38 = vpop.f32.mrb[73].mxu0  ;;  %v2857_v4 = vpop.f32.mrb[73].mxu1 }
 0xe79   :  { %6585 = vtanh.f32 %v2487_v32  ;;  %v8674_v5 = vpop.f32.mrb[74].mxu0  ;;  %v8676_v7 = vpop.f32.mrb[74].mxu1  ;;  %v2858_v9 = vadd.f32 %v2857_v4, %v8672_v3  ;;  %v2856_v32 = vadd.f32 %v2855_v35, %v8689_v11 }
 0xe7a   :  { %v5715_v8 = vmul.f32 -1.442695, %v2783_v36  ;;  %v8678_v39 = vpop.f32.mrb[75].mxu0  ;;  %v8680_v46 = vpop.f32.mrb[75].mxu1 }
 0xe7b   :  { %v5716_v13 = vmul.f32 -1.442695, %v2858_v9 }
 0xe7c   :  { %6587 = vpow2.f32 %v5715_v8 }
 0xe7d   :  { %6589 = vpow2.f32 %v5716_v13 }
 0xe7e   :  { %6591 = vtanh.f32 %v2856_v32 }
 0xe7f   :  { %v8683_v10 = vpop.f32.mrb[76].mxu0  ;;  %v8685_v49 = vpop.f32.mrb[76].mxu1 }
 0xe80   :  { %v8691_v48 = vpop.f32.mrb[77].mxu0  ;;  %v8693_v0 = vpop.f32.mrb[77].mxu1 }
 0xe81   :  { %v8695_v44 = vpop.f32.mrb[78].mxu0  ;;  %v8697_v21 = vpop.f32.mrb[78].mxu1 }
 0xe82   :  { %9941 = vst [vmem:[#allocation7_spill] sm:$0xff] %v8695_v44  ;;  %9942 = vst [vmem:[#allocation8_spill] sm:$0xff] %v8697_v21  ;;  %v8699_v24 = vpop.f32.mrb[79].mxu0  ;;  %v8701_v25 = vpop.f32.mrb[79].mxu1 }
 0xe83   :  { %9943 = vst [vmem:[#allocation9_spill] sm:$0xff] %v8699_v24  ;;  %9944 = vst [vmem:[#allocation10_spill] sm:$0xff] %v8701_v25  ;;  %v6586_v27 = vpop.eup %6585 }
 0xe84   :  { %v2489_v30 = vmul.f32 %v6586_v27, %v6584_v23 }
 0xe86   :  { %v6588_v33 = vpop.eup %6587  ;;  %v2490_v36 = vpack.c.bf16 %v2489_v30, %v2489_v30 }
 0xe87   :  { %v2932_v38 = vadd.f32 1.0, %v6588_v33  ;;  %v8704_v4 = vpop.f32.mrb[80].mxu0  ;;  %v8706_v8 = vpop.f32.mrb[80].mxu1 }
 0xe88   :  { %9945 = vst [vmem:[#allocation11_spill] sm:$0xff] %v8704_v4  ;;  %9946 = vst [vmem:[#allocation12_spill] sm:$0xff] %v8706_v8  ;;  %v2492_v9 = vrot.slane %v2490_v36, 4  ;;  %v8708_v56 = vpop.f32.mrb[81].mxu0  ;;  %v8710_v2 = vpop.f32.mrb[81].mxu1 }
 0xe89   :  { %9947 = vst [vmem:[#allocation13_spill] sm:$0xff] %v8708_v56  ;;  %9948 = vst [vmem:[#allocation14_spill] sm:$0xff] %v8710_v2  ;;  %6593 = vrcp.f32 %v2932_v38  ;;  %v8712_v28 = vpop.f32.mrb[82].mxu0  ;;  %v8714_v23 = vpop.f32.mrb[82].mxu1 }
 0xe8a   :  { %9949 = vst [vmem:[#allocation15_spill] sm:$0xff] %v8712_v28  ;;  %9950 = vst [vmem:[#allocation16_spill] sm:$0xff] %v8714_v23  ;;  %v8716_v35 = vpop.f32.mrb[83].mxu0  ;;  %v8718_v13 = vpop.f32.mrb[83].mxu1 }
 0xe8b   :  { %2494 = vst [vmem:[#allocation2 + $0x18] sm:$0xf0] %v2492_v9  ;;  %9951 = vst [vmem:[#allocation17_spill] sm:$0xff] %v8716_v35  ;;  %v6590_v27 = vpop.eup %6589 }
 0xe8c   :  { %9952 = vst [vmem:[#allocation18_spill] sm:$0xff] %v8718_v13  ;;  %v2939_v30 = vadd.f32 1.0, %v6590_v27  ;;  %v6592_v8 = vpop.eup %6591 }
 0xe8e   :  { %6595 = vrcp.f32 %v2939_v30 }
 0xe92   :  { %v2531_v33 = vld [vmem:[#allocation2 + $0x18] sm:$0xff] }
 0xe93   :  { %2811 = vmatmul.mubr.bf16.gmra.mrb[84].mxu0 %v2531_v33  ;;  %2884 = vmatmul.mubr.bf16.gmra.mrb[84].mxu1 %v2531_v33  ;;  %v6594_v32 = vpop.eup %6593 }
 0xe94   :  { %3143 = vmatprep.mubr.bf16.mxu0 %v9908_v47  ;;  %3184 = vmatprep.mubr.bf16.mxu1 %v9908_v47  ;;  %v8722_v36 = vmul.f32 %v6594_v32, %v6592_v8 }
 0xe96   :  { %6597 = vtanh.f32 %v8722_v36 }
 0xe98   :  { %v6596_v38 = vpop.eup %6595 }
 0xea0   :  { %v6598_v9 = vpop.eup %6597 }
 0xea1   :  { %v2944_v35 = vmul.f32 %v6598_v9, %v6596_v38  ;;  %v9961_v9 = vld [vmem:[#allocation27_spill] sm:$0xff] }
 0xea2   :  { %v8777_v23 = vrot.slane %v8662_v6, %v9961_v9 }
 0xea3   :  { %v2945_v13 = vpack.c.bf16 %v2944_v35, %v2944_v35 }
 0xea5   :  { %2946 = vst [vmem:[#allocation2] sm:$0xf] %v2945_v13  ;;  %3144 = vmatmul.mubr.bf16.vlgmr.msra.gmra.mrb[88].mxu0 %v2945_v13  ;;  %3185 = vmatmul.mubr.bf16.vlgmr.msra.gmra.mrb[88].mxu1 %v2945_v13 }
 0xea6   :  { %3231 = vmatpush1.bf16.msra.mxu0 %v8470_v41  ;;  %3272 = vmatpush1.bf16.msra.mxu1 %v8475_v12 }
 0xea7   :  { %3232 = vmatprep.subr.bf16.mxu0 %v8484_v54  ;;  %3273 = vmatprep.subr.bf16.mxu1 %v8489_v17 }
 0xea8   :  { %3262 = vmatprep.mubr.bf16.mxu0 %v9908_v47  ;;  %3303 = vmatprep.mubr.bf16.mxu1 %v9908_v47 }
 0xeaa   :  { %3233 = vmatpush1.bf16.msra.mxu0 %v8494_v37  ;;  %3274 = vmatpush1.bf16.msra.mxu1 %v8499_v18 }
 0xeab   :  { %3234 = vmatprep.subr.bf16.mxu0 %v8508_v59  ;;  %3275 = vmatprep.subr.bf16.mxu1 %v8513_v62 }
 0xeae   :  { %3235 = vmatpush1.bf16.msra.mxu0 %v8518_v40  ;;  %3276 = vmatpush1.bf16.msra.mxu1 %v8523_v55 }
 0xeaf   :  { %3236 = vmatprep.subr.bf16.mxu0 %v8532_v57  ;;  %3277 = vmatprep.subr.bf16.mxu1 %v8537_v53 }
 0xeb2   :  { %3237 = vmatpush1.bf16.msra.mxu0 %v8542_v58  ;;  %3278 = vmatpush1.bf16.msra.mxu1 %v8547_v60 }
 0xeb3   :  { %3238 = vmatprep.subr.bf16.mxu0 %v8556_v42  ;;  %3279 = vmatprep.subr.bf16.mxu1 %v8561_v34 }
 0xeb6   :  { %3239 = vmatpush1.bf16.msra.mxu0 %v8566_v63  ;;  %3280 = vmatpush1.bf16.msra.mxu1 %v8571_v14 }
 0xeb7   :  { %3240 = vmatprep.subr.bf16.mxu0 %v8580_v16  ;;  %3281 = vmatprep.subr.bf16.mxu1 %v8590_v15 }
 0xeba   :  { %3241 = vmatpush1.bf16.msra.mxu0 %v8585_v31  ;;  %3282 = vmatpush1.bf16.msra.mxu1 %v8595_v50 }
 0xebb   :  { %3242 = vmatprep.subr.bf16.mxu0 %v8600_v43  ;;  %3283 = vmatprep.subr.bf16.mxu1 %v8607_v1 }
 0xebe   :  { %3243 = vmatpush1.bf16.msra.mxu0 %v8614_v61  ;;  %3284 = vmatpush1.bf16.msra.mxu1 %v8619_v45 }
 0xebf   :  { %3244 = vmatprep.subr.bf16.mxu0 %v8626_v51  ;;  %3285 = vmatprep.subr.bf16.mxu1 %v8631_v52 }
 0xec2   :  { %3245 = vmatpush1.bf16.msra.mxu0 %v8638_v19  ;;  %3286 = vmatpush1.bf16.msra.mxu1 %v8643_v20 }
 0xec3   :  { %3346 = vmatprep.subr.bf16.mxu0 %v8460_v26  ;;  %3387 = vmatprep.subr.bf16.mxu1 %v8465_v22 }
 0xf66   :  { %v8759_v8 = vpop.f32.mrb[84].mxu0  ;;  %v8761_v35 = vpop.f32.mrb[84].mxu1 }
 0xf67   :  { %9953 = vst [vmem:[#allocation19_spill] sm:$0xff] %v8759_v8  ;;  %9954 = vst [vmem:[#allocation20_spill] sm:$0xff] %v8761_v35  ;;  %v8763_v13 = vpop.f32.mrb[85].mxu0  ;;  %v8765_v27 = vpop.f32.mrb[85].mxu1  ;;  %v2787_v8 = vadd.f32 %v8674_v5, %v8666_v29 }
 0xf68   :  { %9955 = vst [vmem:[#allocation21_spill] sm:$0xff] %v8763_v13  ;;  %9956 = vst [vmem:[#allocation22_spill] sm:$0xff] %v8765_v27  ;;  %v8767_v30 = vpop.f32.mrb[86].mxu0  ;;  %v8769_v33 = vpop.f32.mrb[86].mxu1  ;;  %v2860_v13 = vadd.f32 %v8676_v7, %v8689_v11  ;;  %v2789_v27 = vadd.f32 %v8678_v39, %v8777_v23 }
 0xf69   :  { %9957 = vst [vmem:[#allocation23_spill] sm:$0xff] %v8767_v30  ;;  %9958 = vst [vmem:[#allocation24_spill] sm:$0xff] %v8769_v33  ;;  %v8771_v32 = vpop.f32.mrb[87].mxu0  ;;  %v8773_v38 = vpop.f32.mrb[87].mxu1  ;;  %v2862_v33 = vadd.f32 %v8680_v46, %v8672_v3 }
 0xf6a   :  { %9959 = vst [vmem:[#allocation25_spill] sm:$0xff] %v8771_v32  ;;  %9960 = vst [vmem:[#allocation26_spill] sm:$0xff] %v8773_v38 }
 0xf78   :  { %v3145_v30 = vpop.f32.mrb[88].mxu0  ;;  %v3186_v32 = vpop.f32.mrb[88].mxu1 }
 0xf79   :  { %v3193_v35 = vadd.f32 %v3145_v30, %v2787_v8  ;;  %v3195_v38 = vadd.f32 %v3186_v32, %v2860_v13  ;;  %v3147_v28 = vpop.f32.mrb[89].mxu0  ;;  %v3188_v2 = vpop.f32.mrb[89].mxu1  ;;  %v2866_v32 = vadd.f32 %v8685_v49, %v8689_v11 }
 0xf7a   :  { %v3194_v6 = vadd.f32 %v3147_v28, %v2789_v27  ;;  %v3196_v9 = vadd.f32 %v3188_v2, %v2862_v33  ;;  %v3149_v56 = vpop.f32.mrb[90].mxu0  ;;  %v3190_v4 = vpop.f32.mrb[90].mxu1 }
 0xf7b   :  { %v5749_v5 = vmul.f32 -1.442695, %v3193_v35  ;;  %v3150_v25 = vpop.f32.mrb[91].mxu0  ;;  %v3191_v24 = vpop.f32.mrb[91].mxu1 }
 0xf7c   :  { %v5751_v7 = vmul.f32 -1.442695, %v3194_v6  ;;  %v5750_v39 = vmul.f32 -1.442695, %v3196_v9  ;;  %v2868_v9 = vadd.f32 %v8693_v0, %v8672_v3 }
 0xf7d   :  { %6599 = vpow2.f32 %v5749_v5 }
 0xf7e   :  { %6601 = vpow2.f32 %v5751_v7 }
 0xf7f   :  { %6603 = vpow2.f32 %v5750_v39 }
 0xf80   :  { %6605 = vtanh.f32 %v3195_v38  ;;  %v2795_v38 = vadd.f32 %v8691_v48, %v8777_v23 }
 0xf87   :  { %v6600_v21 = vpop.eup %6599 }
 0xf88   :  { %v6602_v44 = vpop.eup %6601  ;;  %v3200_v46 = vadd.f32 1.0, %v6600_v21 }
 0xf89   :  { %v3213_v8 = vadd.f32 1.0, %v6602_v44  ;;  %v6604_v13 = vpop.eup %6603 }
 0xf8a   :  { %6607 = vrcp.f32 %v3200_v46  ;;  %v6606_v28 = vpop.eup %6605  ;;  %v3207_v35 = vadd.f32 1.0, %v6604_v13 }
 0xf8b   :  { %6609 = vrcp.f32 %v3213_v8 }
 0xf8c   :  { %6611 = vrcp.f32 %v3207_v35 }
 0xf94   :  { %v6608_v2 = vpop.eup %6607 }
 0xf95   :  { %v6610_v56 = vpop.eup %6609  ;;  %v3217_v4 = vmul.f32 %v6608_v2, %v6606_v28 }
 0xf96   :  { %v3216_v24 = vmul.f32 %v6610_v56, %v8722_v36  ;;  %v6612_v27 = vpop.eup %6611  ;;  %v2793_v36 = vadd.f32 %v8683_v10, %v8666_v29 }
 0xf98   :  { %v8788_v25 = vadd.f32 %v3217_v4, %v3216_v24 }
 0xf9a   :  { %6613 = vtanh.f32 %v8788_v25 }
 0xfa4   :  { %v6614_v21 = vpop.eup %6613 }
 0xfa5   :  { %v3220_v30 = vmul.f32 %v6614_v21, %v6612_v27 }
 0xfa7   :  { %v3221_v33 = vpack.c.bf16 %v3220_v30, %v3220_v30 }
 0xfa9   :  { %v3223_v44 = vrot.slane %v3221_v33, 4  ;;  %3263 = vmatmul.mubr.bf16.vlgmr.msra.gmra.mrb[92].mxu0 %v3221_v33  ;;  %3304 = vmatmul.mubr.bf16.vlgmr.msra.gmra.mrb[92].mxu1 %v3221_v33 }
 0xfaa   :  { %3347 = vmatpush1.bf16.msra.mxu0 %v8470_v41  ;;  %3388 = vmatpush1.bf16.msra.mxu1 %v8475_v12 }
 0xfab   :  { %3225 = vst [vmem:[#allocation2] sm:$0xf0] %v3223_v44  ;;  %3348 = vmatprep.subr.bf16.mxu0 %v8484_v54  ;;  %3389 = vmatprep.subr.bf16.mxu1 %v8489_v17 }
 0xfac   :  { %3378 = vmatprep.mubr.bf16.mxu0 %v9908_v47  ;;  %3419 = vmatprep.mubr.bf16.mxu1 %v9908_v47 }
 0xfae   :  { %3349 = vmatpush1.bf16.msra.mxu0 %v8494_v37  ;;  %3390 = vmatpush1.bf16.msra.mxu1 %v8499_v18 }
 0xfaf   :  { %3350 = vmatprep.subr.bf16.mxu0 %v8508_v59  ;;  %3391 = vmatprep.subr.bf16.mxu1 %v8513_v62 }
 0xfb2   :  { %3351 = vmatpush1.bf16.msra.mxu0 %v8518_v40  ;;  %3392 = vmatpush1.bf16.msra.mxu1 %v8523_v55 }
 0xfb3   :  { %3352 = vmatprep.subr.bf16.mxu0 %v8532_v57  ;;  %3393 = vmatprep.subr.bf16.mxu1 %v8537_v53 }
 0xfb6   :  { %3353 = vmatpush1.bf16.msra.mxu0 %v8542_v58  ;;  %3394 = vmatpush1.bf16.msra.mxu1 %v8547_v60 }
 0xfb7   :  { %3354 = vmatprep.subr.bf16.mxu0 %v8556_v42  ;;  %3395 = vmatprep.subr.bf16.mxu1 %v8561_v34 }
 0xfba   :  { %3355 = vmatpush1.bf16.msra.mxu0 %v8566_v63  ;;  %3396 = vmatpush1.bf16.msra.mxu1 %v8571_v14 }
 0xfbb   :  { %3356 = vmatprep.subr.bf16.mxu0 %v8580_v16  ;;  %3397 = vmatprep.subr.bf16.mxu1 %v8590_v15 }
 0xfbe   :  { %3357 = vmatpush1.bf16.msra.mxu0 %v8585_v31  ;;  %3398 = vmatpush1.bf16.msra.mxu1 %v8595_v50 }
 0xfbf   :  { %3358 = vmatprep.subr.bf16.mxu0 %v8600_v43  ;;  %3399 = vmatprep.subr.bf16.mxu1 %v8607_v1 }
 0xfc2   :  { %3359 = vmatpush1.bf16.msra.mxu0 %v8614_v61  ;;  %3400 = vmatpush1.bf16.msra.mxu1 %v8619_v45 }
 0xfc3   :  { %3360 = vmatprep.subr.bf16.mxu0 %v8626_v51  ;;  %3401 = vmatprep.subr.bf16.mxu1 %v8631_v52 }
 0xfc6   :  { %3361 = vmatpush1.bf16.msra.mxu0 %v8638_v19  ;;  %3402 = vmatpush1.bf16.msra.mxu1 %v8643_v20 }
 0xfc7   :  { %3465 = vmatprep.subr.bf16.mxu0 %v8460_v26  ;;  %3506 = vmatprep.subr.bf16.mxu1 %v8465_v22 }
0x107c   :  { %v3264_v6 = vpop.f32.mrb[92].mxu0  ;;  %v3305_v5 = vpop.f32.mrb[92].mxu1 }
0x107d   :  { %v3312_v7 = vadd.f32 %v3264_v6, %v2793_v36  ;;  %v3314_v39 = vadd.f32 %v3305_v5, %v2866_v32  ;;  %v3266_v46 = vpop.f32.mrb[93].mxu0  ;;  %v3307_v8 = vpop.f32.mrb[93].mxu1 }
0x107e   :  { %v3313_v13 = vadd.f32 %v3266_v46, %v2795_v38  ;;  %v3315_v28 = vadd.f32 %v3307_v8, %v2868_v9  ;;  %v3268_v2 = vpop.f32.mrb[94].mxu0  ;;  %v3309_v56 = vpop.f32.mrb[94].mxu1 }
0x107f   :  { %v5752_v10 = vmul.f32 -1.442695, %v3312_v7  ;;  %v3269_v4 = vpop.f32.mrb[95].mxu0  ;;  %v3310_v35 = vpop.f32.mrb[95].mxu1  ;;  %v9964_v2 = vld [vmem:[#allocation9_spill] sm:$0xff] }
0x1080   :  { %v5754_v49 = vmul.f32 -1.442695, %v3313_v13  ;;  %v5753_v48 = vmul.f32 -1.442695, %v3315_v28  ;;  %v9963_v13 = vld [vmem:[#allocation8_spill] sm:$0xff]  ;;  %v2799_v56 = vadd.f32 %v9964_v2, %v8777_v23 }
0x1081   :  { %6615 = vpow2.f32 %v5752_v10  ;;  %v2870_v28 = vadd.f32 %v9963_v13, %v8689_v11  ;;  %v9965_v10 = vld [vmem:[#allocation10_spill] sm:$0xff] }
0x1082   :  { %6617 = vpow2.f32 %v5754_v49  ;;  %v2872_v4 = vadd.f32 %v9965_v10, %v8672_v3 }
0x1083   :  { %6619 = vpow2.f32 %v5753_v48 }
0x1084   :  { %6621 = vtanh.f32 %v3314_v39 }
0x108b   :  { %v6616_v24 = vpop.eup %6615 }
0x108c   :  { %v6618_v27 = vpop.eup %6617  ;;  %v3319_v0 = vadd.f32 1.0, %v6616_v24 }
0x108d   :  { %v3332_v21 = vadd.f32 1.0, %v6618_v27  ;;  %v6620_v30 = vpop.eup %6619 }
0x108e   :  { %6623 = vrcp.f32 %v3319_v0  ;;  %v6622_v33 = vpop.eup %6621  ;;  %v3326_v38 = vadd.f32 1.0, %v6620_v30 }
0x108f   :  { %6625 = vrcp.f32 %v3332_v21 }
0x1090   :  { %6627 = vrcp.f32 %v3326_v38 }
0x1098   :  { %v6624_v44 = vpop.eup %6623 }
0x1099   :  { %v6626_v36 = vpop.eup %6625  ;;  %v3336_v32 = vmul.f32 %v6624_v44, %v6622_v33 }
0x109a   :  { %v3335_v9 = vmul.f32 %v6626_v36, %v8788_v25  ;;  %v6628_v5 = vpop.eup %6627  ;;  %v9962_v25 = vld [vmem:[#allocation7_spill] sm:$0xff] }
0x109b   :  { %v2797_v8 = vadd.f32 %v9962_v25, %v8666_v29 }
0x109c   :  { %v8834_v6 = vadd.f32 %v3336_v32, %v3335_v9 }
0x109e   :  { %6629 = vtanh.f32 %v8834_v6 }
0x10a8   :  { %v6630_v7 = vpop.eup %6629 }
0x10a9   :  { %v3339_v46 = vmul.f32 %v6630_v7, %v6628_v5 }
0x10ab   :  { %v3340_v39 = vpack.c.bf16 %v3339_v46, %v3339_v46 }
0x10ad   :  { %3341 = vst [vmem:[#allocation2 + $0x8] sm:$0xf] %v3340_v39  ;;  %3379 = vmatmul.mubr.bf16.vlgmr.msra.gmra.mrb[96].mxu0 %v3340_v39  ;;  %3420 = vmatmul.mubr.bf16.vlgmr.msra.gmra.mrb[96].mxu1 %v3340_v39 }
0x10ae   :  { %3466 = vmatpush1.bf16.msra.mxu0 %v8470_v41  ;;  %3507 = vmatpush1.bf16.msra.mxu1 %v8475_v12 }
0x10af   :  { %3467 = vmatprep.subr.bf16.mxu0 %v8484_v54  ;;  %3508 = vmatprep.subr.bf16.mxu1 %v8489_v17 }
0x10b0   :  { %3497 = vmatprep.mubr.bf16.mxu0 %v9908_v47  ;;  %3538 = vmatprep.mubr.bf16.mxu1 %v9908_v47 }
0x10b2   :  { %3468 = vmatpush1.bf16.msra.mxu0 %v8494_v37  ;;  %3509 = vmatpush1.bf16.msra.mxu1 %v8499_v18 }
0x10b3   :  { %3469 = vmatprep.subr.bf16.mxu0 %v8508_v59  ;;  %3510 = vmatprep.subr.bf16.mxu1 %v8513_v62 }
0x10b6   :  { %3470 = vmatpush1.bf16.msra.mxu0 %v8518_v40  ;;  %3511 = vmatpush1.bf16.msra.mxu1 %v8523_v55 }
0x10b7   :  { %3471 = vmatprep.subr.bf16.mxu0 %v8532_v57  ;;  %3512 = vmatprep.subr.bf16.mxu1 %v8537_v53 }
0x10ba   :  { %3472 = vmatpush1.bf16.msra.mxu0 %v8542_v58  ;;  %3513 = vmatpush1.bf16.msra.mxu1 %v8547_v60 }
0x10bb   :  { %3473 = vmatprep.subr.bf16.mxu0 %v8556_v42  ;;  %3514 = vmatprep.subr.bf16.mxu1 %v8561_v34 }
0x10be   :  { %3474 = vmatpush1.bf16.msra.mxu0 %v8566_v63  ;;  %3515 = vmatpush1.bf16.msra.mxu1 %v8571_v14 }
0x10bf   :  { %3475 = vmatprep.subr.bf16.mxu0 %v8580_v16  ;;  %3516 = vmatprep.subr.bf16.mxu1 %v8590_v15 }
0x10c2   :  { %3476 = vmatpush1.bf16.msra.mxu0 %v8585_v31  ;;  %3517 = vmatpush1.bf16.msra.mxu1 %v8595_v50 }
0x10c3   :  { %3477 = vmatprep.subr.bf16.mxu0 %v8600_v43  ;;  %3518 = vmatprep.subr.bf16.mxu1 %v8607_v1 }
0x10c6   :  { %3478 = vmatpush1.bf16.msra.mxu0 %v8614_v61  ;;  %3519 = vmatpush1.bf16.msra.mxu1 %v8619_v45 }
0x10c7   :  { %3479 = vmatprep.subr.bf16.mxu0 %v8626_v51  ;;  %3520 = vmatprep.subr.bf16.mxu1 %v8631_v52 }
0x10ca   :  { %3480 = vmatpush1.bf16.msra.mxu0 %v8638_v19  ;;  %3521 = vmatpush1.bf16.msra.mxu1 %v8643_v20 }
0x10cb   :  { %3581 = vmatprep.subr.bf16.mxu0 %v8460_v26  ;;  %3622 = vmatprep.subr.bf16.mxu1 %v8465_v22 }
0x1180   :  { %v3380_v35 = vpop.f32.mrb[96].mxu0  ;;  %v3421_v49 = vpop.f32.mrb[96].mxu1 }
0x1181   :  { %v3428_v48 = vadd.f32 %v3380_v35, %v2797_v8  ;;  %v3430_v24 = vadd.f32 %v3421_v49, %v2870_v28  ;;  %v3382_v27 = vpop.f32.mrb[97].mxu0  ;;  %v3423_v0 = vpop.f32.mrb[97].mxu1 }
0x1182   :  { %v3429_v21 = vadd.f32 %v3382_v27, %v2799_v56  ;;  %v3431_v30 = vadd.f32 %v3423_v0, %v2872_v4  ;;  %v3384_v33 = vpop.f32.mrb[98].mxu0  ;;  %v3425_v44 = vpop.f32.mrb[98].mxu1 }
0x1183   :  { %v5755_v36 = vmul.f32 -1.442695, %v3428_v48  ;;  %v3385_v32 = vpop.f32.mrb[99].mxu0  ;;  %v3426_v38 = vpop.f32.mrb[99].mxu1  ;;  %v9968_v44 = vld [vmem:[#allocation13_spill] sm:$0xff] }
0x1184   :  { %v5757_v9 = vmul.f32 -1.442695, %v3429_v21  ;;  %v5756_v5 = vmul.f32 -1.442695, %v3431_v30  ;;  %v9967_v30 = vld [vmem:[#allocation12_spill] sm:$0xff]  ;;  %v9969_v32 = vld [vmem:[#allocation14_spill] sm:$0xff] }
0x1185   :  { %6631 = vpow2.f32 %v5755_v36  ;;  %v2876_v33 = vadd.f32 %v9967_v30, %v8689_v11  ;;  %v2805_v36 = vadd.f32 %v9968_v44, %v8777_v23  ;;  %v2878_v38 = vadd.f32 %v9969_v32, %v8672_v3 }
0x1186   :  { %6633 = vpow2.f32 %v5757_v9 }
0x1187   :  { %6635 = vpow2.f32 %v5756_v5 }
0x1188   :  { %6637 = vtanh.f32 %v3430_v24 }
0x118f   :  { %v6632_v7 = vpop.eup %6631 }
0x1190   :  { %v6634_v46 = vpop.eup %6633  ;;  %v3435_v39 = vadd.f32 1.0, %v6632_v7 }
0x1191   :  { %v3448_v25 = vadd.f32 1.0, %v6634_v46  ;;  %v6636_v8 = vpop.eup %6635 }
0x1192   :  { %6639 = vrcp.f32 %v3435_v39  ;;  %v6638_v13 = vpop.eup %6637  ;;  %v3442_v10 = vadd.f32 1.0, %v6636_v8 }
0x1193   :  { %6641 = vrcp.f32 %v3448_v25 }
0x1194   :  { %6643 = vrcp.f32 %v3442_v10 }
0x119c   :  { %v6640_v28 = vpop.eup %6639 }
0x119d   :  { %v6642_v2 = vpop.eup %6641  ;;  %v3452_v56 = vmul.f32 %v6640_v28, %v6638_v13 }
0x119e   :  { %v3451_v4 = vmul.f32 %v6642_v2, %v8834_v6  ;;  %v6644_v49 = vpop.eup %6643  ;;  %v9966_v6 = vld [vmem:[#allocation11_spill] sm:$0xff] }
0x119f   :  { %v2803_v21 = vadd.f32 %v9966_v6, %v8666_v29 }
0x11a0   :  { %v8880_v35 = vadd.f32 %v3452_v56, %v3451_v4 }
0x11a2   :  { %6645 = vtanh.f32 %v8880_v35 }
0x11ac   :  { %v6646_v48 = vpop.eup %6645 }
0x11ad   :  { %v3455_v27 = vmul.f32 %v6646_v48, %v6644_v49 }
0x11af   :  { %v3456_v24 = vpack.c.bf16 %v3455_v27, %v3455_v27 }
0x11b1   :  { %v3458_v0 = vrot.slane %v3456_v24, 4  ;;  %3498 = vmatmul.mubr.bf16.vlgmr.msra.gmra.mrb[100].mxu0 %v3456_v24  ;;  %3539 = vmatmul.mubr.bf16.vlgmr.msra.gmra.mrb[100].mxu1 %v3456_v24 }
0x11b2   :  { %3582 = vmatpush1.bf16.msra.mxu0 %v8470_v41  ;;  %3623 = vmatpush1.bf16.msra.mxu1 %v8475_v12 }
0x11b3   :  { %3460 = vst [vmem:[#allocation2 + $0x8] sm:$0xf0] %v3458_v0  ;;  %3583 = vmatprep.subr.bf16.mxu0 %v8484_v54  ;;  %3624 = vmatprep.subr.bf16.mxu1 %v8489_v17 }
0x11b4   :  { %3613 = vmatprep.mubr.bf16.mxu0 %v9908_v47  ;;  %3654 = vmatprep.mubr.bf16.mxu1 %v9908_v47 }
0x11b6   :  { %3584 = vmatpush1.bf16.msra.mxu0 %v8494_v37  ;;  %3625 = vmatpush1.bf16.msra.mxu1 %v8499_v18 }
0x11b7   :  { %3585 = vmatprep.subr.bf16.mxu0 %v8508_v59  ;;  %3626 = vmatprep.subr.bf16.mxu1 %v8513_v62 }
0x11ba   :  { %3586 = vmatpush1.bf16.msra.mxu0 %v8518_v40  ;;  %3627 = vmatpush1.bf16.msra.mxu1 %v8523_v55 }
0x11bb   :  { %3587 = vmatprep.subr.bf16.mxu0 %v8532_v57  ;;  %3628 = vmatprep.subr.bf16.mxu1 %v8537_v53 }
0x11be   :  { %3588 = vmatpush1.bf16.msra.mxu0 %v8542_v58  ;;  %3629 = vmatpush1.bf16.msra.mxu1 %v8547_v60 }
0x11bf   :  { %3589 = vmatprep.subr.bf16.mxu0 %v8556_v42  ;;  %3630 = vmatprep.subr.bf16.mxu1 %v8561_v34 }
0x11c2   :  { %3590 = vmatpush1.bf16.msra.mxu0 %v8566_v63  ;;  %3631 = vmatpush1.bf16.msra.mxu1 %v8571_v14 }
0x11c3   :  { %3591 = vmatprep.subr.bf16.mxu0 %v8580_v16  ;;  %3632 = vmatprep.subr.bf16.mxu1 %v8590_v15 }
0x11c6   :  { %3592 = vmatpush1.bf16.msra.mxu0 %v8585_v31  ;;  %3633 = vmatpush1.bf16.msra.mxu1 %v8595_v50 }
0x11c7   :  { %3593 = vmatprep.subr.bf16.mxu0 %v8600_v43  ;;  %3634 = vmatprep.subr.bf16.mxu1 %v8607_v1 }
0x11ca   :  { %3594 = vmatpush1.bf16.msra.mxu0 %v8614_v61  ;;  %3635 = vmatpush1.bf16.msra.mxu1 %v8619_v45 }
0x11cb   :  { %3595 = vmatprep.subr.bf16.mxu0 %v8626_v51  ;;  %3636 = vmatprep.subr.bf16.mxu1 %v8631_v52 }
0x11ce   :  { %3596 = vmatpush1.bf16.msra.mxu0 %v8638_v19  ;;  %3637 = vmatpush1.bf16.msra.mxu1 %v8643_v20 }
0x11cf   :  { %3700 = vmatprep.subr.bf16.mxu0 %v8460_v26  ;;  %3741 = vmatprep.subr.bf16.mxu1 %v8465_v22 }
0x1284   :  { %v3499_v9 = vpop.f32.mrb[100].mxu0  ;;  %v3540_v5 = vpop.f32.mrb[100].mxu1 }
0x1285   :  { %v3547_v7 = vadd.f32 %v3499_v9, %v2803_v21  ;;  %v3549_v46 = vadd.f32 %v3540_v5, %v2876_v33  ;;  %v3501_v39 = vpop.f32.mrb[101].mxu0  ;;  %v3542_v26 = vpop.f32.mrb[101].mxu1 }
0x1286   :  { %v3548_v25 = vadd.f32 %v3501_v39, %v2805_v36  ;;  %v3550_v22 = vadd.f32 %v3542_v26, %v2878_v38  ;;  %v3503_v8 = vpop.f32.mrb[102].mxu0  ;;  %v3544_v13 = vpop.f32.mrb[102].mxu1 }
0x1287   :  { %v5758_v28 = vmul.f32 -1.442695, %v3547_v7  ;;  %v3504_v2 = vpop.f32.mrb[103].mxu0  ;;  %v3545_v56 = vpop.f32.mrb[103].mxu1 }
0x1288   :  { %v5760_v10 = vmul.f32 -1.442695, %v3548_v25  ;;  %v5759_v4 = vmul.f32 -1.442695, %v3550_v22 }
0x1289   :  { %6647 = vpow2.f32 %v5758_v28 }
0x128a   :  { %6649 = vpow2.f32 %v5760_v10 }
0x128b   :  { %6651 = vpow2.f32 %v5759_v4  ;;  %v6901_v4 = vld [vmem:[%s9876_s2 + $0x200] ss:$16 sps:$4 sm:$0xff]  }
0x128c   :  { %6653 = vtanh.f32 %v3549_v46 }
0x1293   :  { %v6648_v49 = vpop.eup %6647 }
0x1294   :  { %v6650_v48 = vpop.eup %6649  ;;  %v3554_v27 = vadd.f32 1.0, %v6648_v49  ;;  %v6902_v49 = vld [vmem:[%s9876_s2 + $0x208] ss:$16 sps:$4 sm:$0xff]  }
0x1295   :  { %v3567_v24 = vadd.f32 1.0, %v6650_v48  ;;  %v6652_v0 = vpop.eup %6651  ;;  %v6903_v48 = vld [vmem:[%s9876_s2 + $0x224] ss:$16 sps:$4 sm:$0xff]  }
0x1296   :  { %6655 = vrcp.f32 %v3554_v27  ;;  %v6654_v6 = vpop.eup %6653  ;;  %v3561_v44 = vadd.f32 1.0, %v6652_v0  ;;  %v6904_v27 = vld [vmem:[%s9876_s2 + $0x22c] ss:$16 sps:$4 sm:$0xff]   ;;  %v6906_v0 = vld [vmem:[%s9876_s2 + $0x228] ss:$16 sps:$4 sm:$0xff]  }
0x1297   :  { %6657 = vrcp.f32 %v3567_v24  ;;  %v6905_v24 = vld [vmem:[%s9876_s2 + $0x220] ss:$16 sps:$4 sm:$0xff]  }
0x1298   :  { %6659 = vrcp.f32 %v3561_v44  ;;  %v6911_v44 = vld [vmem:[%s9876_s2 + $0x264] ss:$16 sps:$4 sm:$0xff]  }
0x12a0   :  { %v6656_v21 = vpop.eup %6655 }
0x12a1   :  { %v6658_v30 = vpop.eup %6657  ;;  %v3571_v33 = vmul.f32 %v6656_v21, %v6654_v6  ;;  %v6907_v6 = vld [vmem:[%s9876_s2 + $0x244] ss:$16 sps:$4 sm:$0xff]   ;;  %v6908_v21 = vld [vmem:[%s9876_s2 + $0x24c] ss:$16 sps:$4 sm:$0xff]  }
0x12a2   :  { %v3570_v36 = vmul.f32 %v6658_v30, %v8880_v35  ;;  %v6660_v38 = vpop.eup %6659  ;;  %v6909_v30 = vld [vmem:[%s9876_s2 + $0x240] ss:$16 sps:$4 sm:$0xff]  }
0x12a4   :  { %v8926_v32 = vadd.f32 %v3571_v33, %v3570_v36  ;;  %v6910_v33 = vld [vmem:[%s9876_s2 + $0x248] ss:$16 sps:$4 sm:$0xff]   ;;  %v6912_v36 = vld [vmem:[%s9876_s2 + $0x26c] ss:$16 sps:$4 sm:$0xff]  }
0x12a6   :  { %6661 = vtanh.f32 %v8926_v32 }
0x12b0   :  { %v6662_v9 = vpop.eup %6661 }
0x12b1   :  { %v3574_v5 = vmul.f32 %v6662_v9, %v6660_v38  ;;  %v6914_v38 = vld [vmem:[%s9876_s2 + $0x268] ss:$16 sps:$4 sm:$0xff]   ;;  %v6915_v9 = vld [vmem:[%s9876_s2 + $0x284] ss:$16 sps:$4 sm:$0xff]  }
0x12b3   :  { %v3575_v7 = vpack.c.bf16 %v3574_v5, %v3574_v5  ;;  %v6916_v5 = vld [vmem:[%s9876_s2 + $0x28c] ss:$16 sps:$4 sm:$0xff]  }
0x12b5   :  { %3576 = vst [vmem:[#allocation2 + $0x10] sm:$0xf] %v3575_v7  ;;  %3614 = vmatmul.mubr.bf16.vlgmr.msra.gmra.mrb[104].mxu0 %v3575_v7  ;;  %3655 = vmatmul.mubr.bf16.vlgmr.msra.gmra.mrb[104].mxu1 %v3575_v7  ;;  %v6917_v7 = vld [vmem:[%s9876_s2 + $0x280] ss:$16 sps:$4 sm:$0xff]  }
0x12b6   :  { %3701 = vmatpush1.bf16.msra.mxu0 %v8470_v41  ;;  %3742 = vmatpush1.bf16.msra.mxu1 %v8475_v12  ;;  %v6899_v41 = vld [vmem:[%s9876_s2 + $0x204] ss:$16 sps:$4 sm:$0xff]   ;;  %v6900_v12 = vld [vmem:[%s9876_s2 + $0x20c] ss:$16 sps:$4 sm:$0xff]  }
0x12b7   :  { %3702 = vmatprep.subr.bf16.mxu0 %v8484_v54  ;;  %3743 = vmatprep.subr.bf16.mxu1 %v8489_v17  ;;  %v9970_v54 = vld [vmem:[#allocation15_spill] sm:$0xff] }
0x12b8   :  { %3732 = vmatprep.mubr.bf16.mxu0 %v9908_v47  ;;  %3773 = vmatprep.mubr.bf16.mxu1 %v9908_v47  ;;  %v2807_v17 = vadd.f32 %v9970_v54, %v8666_v29  ;;  %v6920_v54 = vld [vmem:[%s9876_s2 + $0x2ac] ss:$16 sps:$4 sm:$0xff]  }
0x12ba   :  { %3703 = vmatpush1.bf16.msra.mxu0 %v8494_v37  ;;  %3744 = vmatpush1.bf16.msra.mxu1 %v8499_v18  ;;  %v9971_v37 = vld [vmem:[#allocation16_spill] sm:$0xff] }
0x12bb   :  { %3704 = vmatprep.subr.bf16.mxu0 %v8508_v59  ;;  %3745 = vmatprep.subr.bf16.mxu1 %v8513_v62  ;;  %v2880_v18 = vadd.f32 %v9971_v37, %v8689_v11  ;;  %v9972_v59 = vld [vmem:[#allocation17_spill] sm:$0xff] }
0x12bc   :  { %v2809_v62 = vadd.f32 %v9972_v59, %v8777_v23  ;;  %v6922_v37 = vld [vmem:[%s9876_s2 + $0x2a8] ss:$16 sps:$4 sm:$0xff]   ;;  %v6924_v59 = vld [vmem:[%s9876_s2 + $0x2cc] ss:$16 sps:$4 sm:$0xff]  }
0x12be   :  { %3705 = vmatpush1.bf16.msra.mxu0 %v8518_v40  ;;  %3746 = vmatpush1.bf16.msra.mxu1 %v8523_v55  ;;  %v9973_v40 = vld [vmem:[#allocation18_spill] sm:$0xff] }
0x12bf   :  { %3706 = vmatprep.subr.bf16.mxu0 %v8532_v57  ;;  %3747 = vmatprep.subr.bf16.mxu1 %v8537_v53  ;;  %v2882_v55 = vadd.f32 %v9973_v40, %v8672_v3  ;;  %v6926_v40 = vld [vmem:[%s9876_s2 + $0x2c8] ss:$16 sps:$4 sm:$0xff]  }
0x12c2   :  { %3707 = vmatpush1.bf16.msra.mxu0 %v8542_v58  ;;  %3748 = vmatpush1.bf16.msra.mxu1 %v8547_v60 }
0x12c3   :  { %3708 = vmatprep.subr.bf16.mxu0 %v8556_v42  ;;  %3749 = vmatprep.subr.bf16.mxu1 %v8561_v34 }
0x12c6   :  { %3709 = vmatpush1.bf16.msra.mxu0 %v8566_v63  ;;  %3750 = vmatpush1.bf16.msra.mxu1 %v8571_v14 }
0x12c7   :  { %3710 = vmatprep.subr.bf16.mxu0 %v8580_v16  ;;  %3751 = vmatprep.subr.bf16.mxu1 %v8590_v15 }
0x12ca   :  { %3711 = vmatpush1.bf16.msra.mxu0 %v8585_v31  ;;  %3752 = vmatpush1.bf16.msra.mxu1 %v8595_v50 }
0x12cb   :  { %3712 = vmatprep.subr.bf16.mxu0 %v8600_v43  ;;  %3753 = vmatprep.subr.bf16.mxu1 %v8607_v1 }
0x12ce   :  { %3713 = vmatpush1.bf16.msra.mxu0 %v8614_v61  ;;  %3754 = vmatpush1.bf16.msra.mxu1 %v8619_v45 }
0x12cf   :  { %3714 = vmatprep.subr.bf16.mxu0 %v8626_v51  ;;  %3755 = vmatprep.subr.bf16.mxu1 %v8631_v52 }
0x12d2   :  { %3715 = vmatpush1.bf16.msra.mxu0 %v8638_v19  ;;  %3756 = vmatpush1.bf16.msra.mxu1 %v8643_v20 }
0x12d3   :  { %3816 = vmatprep.subr.bf16.mxu0 %v6899_v41  ;;  %3857 = vmatprep.subr.bf16.mxu1 %v6900_v12  ;;  %v6918_v41 = vld [vmem:[%s9876_s2 + $0x288] ss:$16 sps:$4 sm:$0xff]   ;;  %v6919_v12 = vld [vmem:[%s9876_s2 + $0x2a4] ss:$16 sps:$4 sm:$0xff]  }
0x1388   :  { %v3615_v57 = vpop.f32.mrb[104].mxu0  ;;  %v3656_v53 = vpop.f32.mrb[104].mxu1 }
0x1389   :  { %v3663_v58 = vadd.f32 %v3615_v57, %v2807_v17  ;;  %v3665_v60 = vadd.f32 %v3656_v53, %v2880_v18  ;;  %v3617_v42 = vpop.f32.mrb[105].mxu0  ;;  %v3658_v34 = vpop.f32.mrb[105].mxu1  ;;  %v6921_v17 = vld [vmem:[%s9876_s2 + $0x2a0] ss:$16 sps:$4 sm:$0xff]   ;;  %v6923_v18 = vld [vmem:[%s9876_s2 + $0x2c4] ss:$16 sps:$4 sm:$0xff]  }
0x138a   :  { %v3664_v63 = vadd.f32 %v3617_v42, %v2809_v62  ;;  %v3666_v14 = vadd.f32 %v3658_v34, %v2882_v55  ;;  %v3619_v16 = vpop.f32.mrb[106].mxu0  ;;  %v3660_v31 = vpop.f32.mrb[106].mxu1  ;;  %v6925_v62 = vld [vmem:[%s9876_s2 + $0x2c0] ss:$16 sps:$4 sm:$0xff]   ;;  %v6927_v55 = vld [vmem:[%s9876_s2 + $0x2e4] ss:$16 sps:$4 sm:$0xff]  }
0x138b   :  { %v5761_v15 = vmul.f32 -1.442695, %v3663_v58  ;;  %v3620_v50 = vpop.f32.mrb[107].mxu0  ;;  %v3661_v43 = vpop.f32.mrb[107].mxu1  ;;  %v6928_v57 = vld [vmem:[%s9876_s2 + $0x2ec] ss:$16 sps:$4 sm:$0xff]  }
0x138c   :  { %v5763_v1 = vmul.f32 -1.442695, %v3664_v63  ;;  %v5762_v61 = vmul.f32 -1.442695, %v3666_v14  ;;  %v6929_v53 = vld [vmem:[%s9876_s2 + $0x2e0] ss:$16 sps:$4 sm:$0xff]  }
0x138d   :  { %6663 = vpow2.f32 %v5761_v15  ;;  %v6930_v58 = vld [vmem:[%s9876_s2 + $0x2e8] ss:$16 sps:$4 sm:$0xff]   ;;  %v6248_v42 = vld [vmem:[%s9878_s1 + $0x20c] ss:$16 sps:$4 sm:$0xff]   ;;  %v9975_v14 = vld [vmem:[#allocation20_spill] sm:$0xff] }
0x138e   :  { %6665 = vpow2.f32 %v5763_v1  ;;  %v9974_v34 = vld [vmem:[#allocation19_spill] sm:$0xff]  ;;  %v2886_v16 = vadd.f32 %v9975_v14, %v8689_v11  ;;  %v9976_v31 = vld [vmem:[#allocation21_spill] sm:$0xff]  ;;  %v9977_v50 = vld [vmem:[#allocation22_spill] sm:$0xff] }
0x138f   :  { %6667 = vpow2.f32 %v5762_v61  ;;  %v2813_v63 = vadd.f32 %v9974_v34, %v8666_v29  ;;  %v2815_v15 = vadd.f32 %v9976_v31, %v8777_v23  ;;  %v2888_v43 = vadd.f32 %v9977_v50, %v8672_v3  ;;  %v6273_v34 = vld [vmem:[%s9878_s1 + $0x2a0] ss:$16 sps:$4 sm:$0xff]   ;;  %v6281_v14 = vld [vmem:[%s9878_s1 + $0x2c4] ss:$16 sps:$4 sm:$0xff]  }
0x1390   :  { %6669 = vtanh.f32 %v3665_v60  ;;  %v6245_v60 = vld [vmem:[%s9878_s1 + $0x204] ss:$16 sps:$4 sm:$0xff]   ;;  %v6279_v31 = vld [vmem:[%s9878_s1 + $0x2c0] ss:$16 sps:$4 sm:$0xff]  }
0x1391   :  { %v6287_v50 = vld [vmem:[%s9878_s1 + $0x2e4] ss:$16 sps:$4 sm:$0xff]  }
0x1397   :  { %v6664_v45 = vpop.eup %6663 }
0x1398   :  { %v6666_v51 = vpop.eup %6665  ;;  %v3670_v52 = vadd.f32 1.0, %v6664_v45 }
0x1399   :  { %v3683_v19 = vadd.f32 1.0, %v6666_v51  ;;  %v6668_v20 = vpop.eup %6667 }
0x139a   :  { %6671 = vrcp.f32 %v3670_v52  ;;  %v6670_v35 = vpop.eup %6669  ;;  %v3677_v25 = vadd.f32 1.0, %v6668_v20 }
0x139b   :  { %6673 = vrcp.f32 %v3683_v19 }
0x139c   :  { %6675 = vrcp.f32 %v3677_v25 }
0x13a4   :  { %v6672_v46 = vpop.eup %6671 }
0x13a5   :  { %v6674_v39 = vpop.eup %6673  ;;  %v3687_v26 = vmul.f32 %v6672_v46, %v6670_v35 }
0x13a6   :  { %v3686_v22 = vmul.f32 %v6674_v39, %v8926_v32  ;;  %v6676_v13 = vpop.eup %6675  ;;  %v6913_v32 = vld [vmem:[%s9876_s2 + $0x260] ss:$16 sps:$4 sm:$0xff]  }
0x13a8   :  { %v8976_v8 = vadd.f32 %v3687_v26, %v3686_v22 }
0x13aa   :  { %6677 = vtanh.f32 %v8976_v8 }
0x13b4   :  { %v6678_v28 = vpop.eup %6677 }
0x13b5   :  { %v3690_v2 = vmul.f32 %v6678_v28, %v6676_v13 }
0x13b7   :  { %v3691_v56 = vpack.c.bf16 %v3690_v2, %v3690_v2 }
0x13b9   :  { %v3693_v10 = vrot.slane %v3691_v56, 4  ;;  %3733 = vmatmul.mubr.bf16.vlgmr.msra.gmra.mrb[108].mxu0 %v3691_v56  ;;  %3774 = vmatmul.mubr.bf16.vlgmr.msra.gmra.mrb[108].mxu1 %v3691_v56 }
0x13ba   :  { %3817 = vmatpush1.bf16.msra.mxu0 %v6901_v4  ;;  %3858 = vmatpush1.bf16.msra.mxu1 %v6902_v49 }
0x13bb   :  { %3695 = vst [vmem:[#allocation2 + $0x10] sm:$0xf0] %v3693_v10  ;;  %3818 = vmatprep.subr.bf16.mxu0 %v6903_v48  ;;  %3859 = vmatprep.subr.bf16.mxu1 %v6904_v27 }
0x13bc   :  { %3848 = vmatprep.mubr.bf16.mxu0 %v9908_v47  ;;  %3889 = vmatprep.mubr.bf16.mxu1 %v9908_v47 }
0x13be   :  { %3819 = vmatpush1.bf16.msra.mxu0 %v6905_v24  ;;  %3860 = vmatpush1.bf16.msra.mxu1 %v6906_v0 }
0x13bf   :  { %3820 = vmatprep.subr.bf16.mxu0 %v6907_v6  ;;  %3861 = vmatprep.subr.bf16.mxu1 %v6908_v21 }
0x13c2   :  { %3821 = vmatpush1.bf16.msra.mxu0 %v6909_v30  ;;  %3862 = vmatpush1.bf16.msra.mxu1 %v6910_v33 }
0x13c3   :  { %3822 = vmatprep.subr.bf16.mxu0 %v6911_v44  ;;  %3863 = vmatprep.subr.bf16.mxu1 %v6912_v36 }
0x13c6   :  { %3823 = vmatpush1.bf16.msra.mxu0 %v6913_v32  ;;  %3864 = vmatpush1.bf16.msra.mxu1 %v6914_v38  ;;  %v6243_v32 = vld [vmem:[%s9878_s1 + $0x200] ss:$16 sps:$4 sm:$0xff]   ;;  %v6246_v38 = vld [vmem:[%s9878_s1 + $0x208] ss:$16 sps:$4 sm:$0xff]  }
0x13c7   :  { %3824 = vmatprep.subr.bf16.mxu0 %v6915_v9  ;;  %3865 = vmatprep.subr.bf16.mxu1 %v6916_v5  ;;  %v6254_v5 = vld [vmem:[%s9878_s1 + $0x22c] ss:$16 sps:$4 sm:$0xff]  }
0x13ca   :  { %3825 = vmatpush1.bf16.msra.mxu0 %v6917_v7  ;;  %3866 = vmatpush1.bf16.msra.mxu1 %v6918_v41  ;;  %v6249_v7 = vld [vmem:[%s9878_s1 + $0x220] ss:$16 sps:$4 sm:$0xff]   ;;  %v6252_v41 = vld [vmem:[%s9878_s1 + $0x228] ss:$16 sps:$4 sm:$0xff]  }
0x13cb   :  { %3826 = vmatprep.subr.bf16.mxu0 %v6919_v12  ;;  %3867 = vmatprep.subr.bf16.mxu1 %v6920_v54  ;;  %v6257_v12 = vld [vmem:[%s9878_s1 + $0x244] ss:$16 sps:$4 sm:$0xff]   ;;  %v6260_v54 = vld [vmem:[%s9878_s1 + $0x24c] ss:$16 sps:$4 sm:$0xff]  }
0x13ce   :  { %3827 = vmatpush1.bf16.msra.mxu0 %v6921_v17  ;;  %3868 = vmatpush1.bf16.msra.mxu1 %v6922_v37  ;;  %v6255_v17 = vld [vmem:[%s9878_s1 + $0x240] ss:$16 sps:$4 sm:$0xff]   ;;  %v6258_v37 = vld [vmem:[%s9878_s1 + $0x248] ss:$16 sps:$4 sm:$0xff]  }
0x13cf   :  { %3828 = vmatprep.subr.bf16.mxu0 %v6923_v18  ;;  %3869 = vmatprep.subr.bf16.mxu1 %v6924_v59  ;;  %v6263_v18 = vld [vmem:[%s9878_s1 + $0x264] ss:$16 sps:$4 sm:$0xff]   ;;  %v6266_v59 = vld [vmem:[%s9878_s1 + $0x26c] ss:$16 sps:$4 sm:$0xff]  }
0x13d2   :  { %3829 = vmatpush1.bf16.msra.mxu0 %v6925_v62  ;;  %3870 = vmatpush1.bf16.msra.mxu1 %v6926_v40  ;;  %v6261_v62 = vld [vmem:[%s9878_s1 + $0x260] ss:$16 sps:$4 sm:$0xff]   ;;  %v6264_v40 = vld [vmem:[%s9878_s1 + $0x268] ss:$16 sps:$4 sm:$0xff]  }
0x13d3   :  { %3830 = vmatprep.subr.bf16.mxu0 %v6927_v55  ;;  %3871 = vmatprep.subr.bf16.mxu1 %v6928_v57  ;;  %v6269_v55 = vld [vmem:[%s9878_s1 + $0x284] ss:$16 sps:$4 sm:$0xff]   ;;  %v6272_v57 = vld [vmem:[%s9878_s1 + $0x28c] ss:$16 sps:$4 sm:$0xff]  }
0x13d6   :  { %3831 = vmatpush1.bf16.msra.mxu0 %v6929_v53  ;;  %3872 = vmatpush1.bf16.msra.mxu1 %v6930_v58  ;;  %v6267_v53 = vld [vmem:[%s9878_s1 + $0x280] ss:$16 sps:$4 sm:$0xff]   ;;  %v6270_v58 = vld [vmem:[%s9878_s1 + $0x288] ss:$16 sps:$4 sm:$0xff]  }
0x13d7   :  { %4184 = vmatprep.subr.bf16.mxu0 %v6245_v60  ;;  %4257 = vmatprep.subr.bf16.mxu1 %v6248_v42  ;;  %v6275_v60 = vld [vmem:[%s9878_s1 + $0x2a4] ss:$16 sps:$4 sm:$0xff]   ;;  %v6278_v42 = vld [vmem:[%s9878_s1 + $0x2ac] ss:$16 sps:$4 sm:$0xff]  }
0x148c   :  { %v3734_v1 = vpop.f32.mrb[108].mxu0  ;;  %v3775_v61 = vpop.f32.mrb[108].mxu1 }
0x148d   :  { %v3782_v45 = vadd.f32 %v3734_v1, %v2813_v63  ;;  %v3784_v51 = vadd.f32 %v3775_v61, %v2886_v16  ;;  %v3736_v52 = vpop.f32.mrb[109].mxu0  ;;  %v3777_v19 = vpop.f32.mrb[109].mxu1  ;;  %v6276_v63 = vld [vmem:[%s9878_s1 + $0x2a8] ss:$16 sps:$4 sm:$0xff]   ;;  %v6284_v16 = vld [vmem:[%s9878_s1 + $0x2cc] ss:$16 sps:$4 sm:$0xff]  }
0x148e   :  { %v3783_v20 = vadd.f32 %v3736_v52, %v2815_v15  ;;  %v3785_v35 = vadd.f32 %v3777_v19, %v2888_v43  ;;  %v3738_v46 = vpop.f32.mrb[110].mxu0  ;;  %v3779_v39 = vpop.f32.mrb[110].mxu1  ;;  %v6282_v15 = vld [vmem:[%s9878_s1 + $0x2c8] ss:$16 sps:$4 sm:$0xff]   ;;  %v6290_v43 = vld [vmem:[%s9878_s1 + $0x2ec] ss:$16 sps:$4 sm:$0xff]  }
0x148f   :  { %v5764_v26 = vmul.f32 -1.442695, %v3782_v45  ;;  %v3739_v25 = vpop.f32.mrb[111].mxu0  ;;  %v3780_v22 = vpop.f32.mrb[111].mxu1  ;;  %v6285_v1 = vld [vmem:[%s9878_s1 + $0x2e0] ss:$16 sps:$4 sm:$0xff]  }
0x1490   :  { %v5766_v13 = vmul.f32 -1.442695, %v3783_v20  ;;  %v5765_v28 = vmul.f32 -1.442695, %v3785_v35  ;;  %v6288_v61 = vld [vmem:[%s9878_s1 + $0x2e8] ss:$16 sps:$4 sm:$0xff]  }
0x1491   :  { %6679 = vpow2.f32 %v5764_v26  ;;  %v3964_v45 = vld [vmem:[#allocation2] sm:$0xff]  ;;  %v3966_v52 = vld [vmem:[#allocation2 + $0x10] sm:$0xff]  ;;  %v9195_v20 = vld [vmem:[%s9876_s2 + $0x30c] ss:$16 sps:$4 sm:$0xff]  }
0x1492   :  { %6681 = vpow2.f32 %v5766_v13  ;;  %v9190_v19 = vld [vmem:[%s9876_s2 + $0x304] ss:$16 sps:$4 sm:$0xff]   ;;  %v9200_v35 = vld [vmem:[%s9876_s2 + $0x300] ss:$16 sps:$4 sm:$0xff]   ;;  %v9205_v46 = vld [vmem:[%s9876_s2 + $0x308] ss:$16 sps:$4 sm:$0xff]  }
0x1493   :  { %6683 = vpow2.f32 %v5765_v28  ;;  %v9214_v39 = vld [vmem:[%s9876_s2 + $0x324] ss:$16 sps:$4 sm:$0xff]   ;;  %v9219_v26 = vld [vmem:[%s9876_s2 + $0x32c] ss:$16 sps:$4 sm:$0xff]   ;;  %v9224_v25 = vld [vmem:[%s9876_s2 + $0x320] ss:$16 sps:$4 sm:$0xff]  }
0x1494   :  { %6685 = vtanh.f32 %v3784_v51  ;;  %v3965_v51 = vld [vmem:[#allocation2 + $0x8] sm:$0xff]  ;;  %v9238_v13 = vld [vmem:[%s9876_s2 + $0x344] ss:$16 sps:$4 sm:$0xff]  }
0x1495   :  { %v9229_v22 = vld [vmem:[%s9876_s2 + $0x328] ss:$16 sps:$4 sm:$0xff]   ;;  %v9243_v28 = vld [vmem:[%s9876_s2 + $0x34c] ss:$16 sps:$4 sm:$0xff]  }
0x149b   :  { %v6680_v2 = vpop.eup %6679 }
0x149c   :  { %v6682_v56 = vpop.eup %6681  ;;  %v3789_v10 = vadd.f32 1.0, %v6680_v2  ;;  %v9248_v2 = vld [vmem:[%s9876_s2 + $0x340] ss:$16 sps:$4 sm:$0xff]  }
0x149d   :  { %v3802_v4 = vadd.f32 1.0, %v6682_v56  ;;  %v6684_v49 = vpop.eup %6683  ;;  %v9253_v56 = vld [vmem:[%s9876_s2 + $0x348] ss:$16 sps:$4 sm:$0xff]  }
0x149e   :  { %6687 = vrcp.f32 %v3789_v10  ;;  %v6686_v48 = vpop.eup %6685  ;;  %v3796_v6 = vadd.f32 1.0, %v6684_v49  ;;  %v9262_v10 = vld [vmem:[%s9876_s2 + $0x364] ss:$16 sps:$4 sm:$0xff]   ;;  %v9272_v49 = vld [vmem:[%s9876_s2 + $0x360] ss:$16 sps:$4 sm:$0xff]  }
0x149f   :  { %6689 = vrcp.f32 %v3802_v4  ;;  %v9267_v4 = vld [vmem:[%s9876_s2 + $0x36c] ss:$16 sps:$4 sm:$0xff]  }
0x14a0   :  { %6691 = vrcp.f32 %v3796_v6  ;;  %v9301_v6 = vld [vmem:[%s9876_s2 + $0x388] ss:$16 sps:$4 sm:$0xff]  }
0x14a8   :  { %v6688_v27 = vpop.eup %6687 }
0x14a9   :  { %v6690_v24 = vpop.eup %6689  ;;  %v3806_v0 = vmul.f32 %v6688_v27, %v6686_v48  ;;  %v9277_v48 = vld [vmem:[%s9876_s2 + $0x368] ss:$16 sps:$4 sm:$0xff]   ;;  %v9286_v27 = vld [vmem:[%s9876_s2 + $0x384] ss:$16 sps:$4 sm:$0xff]  }
0x14aa   :  { %v3805_v21 = vmul.f32 %v6690_v24, %v8976_v8  ;;  %v6692_v33 = vpop.eup %6691  ;;  %v6251_v8 = vld [vmem:[%s9878_s1 + $0x224] ss:$16 sps:$4 sm:$0xff]   ;;  %v9291_v24 = vld [vmem:[%s9876_s2 + $0x38c] ss:$16 sps:$4 sm:$0xff]  }
0x14ac   :  { %v9086_v30 = vadd.f32 %v3806_v0, %v3805_v21  ;;  %v9296_v0 = vld [vmem:[%s9876_s2 + $0x380] ss:$16 sps:$4 sm:$0xff]   ;;  %v9310_v21 = vld [vmem:[%s9876_s2 + $0x3a4] ss:$16 sps:$4 sm:$0xff]  }
0x14ae   :  { %6693 = vtanh.f32 %v9086_v30 }
0x14b8   :  { %v6694_v44 = vpop.eup %6693 }
0x14b9   :  { %v3809_v36 = vmul.f32 %v6694_v44, %v6692_v33  ;;  %v9315_v33 = vld [vmem:[%s9876_s2 + $0x3a0] ss:$16 sps:$4 sm:$0xff]   ;;  %v9320_v44 = vld [vmem:[%s9876_s2 + $0x3ac] ss:$16 sps:$4 sm:$0xff]  }
0x14bb   :  { %v3810_v9 = vpack.c.bf16 %v3809_v36, %v3809_v36  ;;  %v9325_v36 = vld [vmem:[%s9876_s2 + $0x3a8] ss:$16 sps:$4 sm:$0xff]  }
0x14bd   :  { %3811 = vst [vmem:[#allocation2 + $0x18] sm:$0xf] %v3810_v9  ;;  %3849 = vmatmul.mubr.bf16.vlgmr.msra.gmra.mrb[112].mxu0 %v3810_v9  ;;  %3890 = vmatmul.mubr.bf16.vlgmr.msra.gmra.mrb[112].mxu1 %v3810_v9  ;;  %v9344_v9 = vld [vmem:[%s9876_s2 + $0x3c0] ss:$16 sps:$4 sm:$0xff]  }
0x14be   :  { %4185 = vmatpush1.bf16.msra.mxu0 %v6243_v32  ;;  %4258 = vmatpush1.bf16.msra.mxu1 %v6246_v38  ;;  %v9330_v32 = vld [vmem:[%s9876_s2 + $0x3c4] ss:$16 sps:$4 sm:$0xff]   ;;  %v9337_v38 = vld [vmem:[%s9876_s2 + $0x3cc] ss:$16 sps:$4 sm:$0xff]  }
0x14bf   :  { %4186 = vmatprep.subr.bf16.mxu0 %v6251_v8  ;;  %4259 = vmatprep.subr.bf16.mxu1 %v6254_v5  ;;  %v9349_v8 = vld [vmem:[%s9876_s2 + $0x3c8] ss:$16 sps:$4 sm:$0xff]   ;;  %v9356_v5 = vld [vmem:[%s9876_s2 + $0x3e4] ss:$16 sps:$4 sm:$0xff]  }
0x14c0   :  { %4216 = vmatprep.mubr.bf16.mxu0 %v9908_v47  ;;  %4289 = vmatprep.mubr.bf16.mxu1 %v9908_v47 }
0x14c2   :  { %4187 = vmatpush1.bf16.msra.mxu0 %v6249_v7  ;;  %4260 = vmatpush1.bf16.msra.mxu1 %v6252_v41  ;;  %v9361_v7 = vld [vmem:[%s9876_s2 + $0x3ec] ss:$16 sps:$4 sm:$0xff]   ;;  %v9368_v41 = vld [vmem:[%s9876_s2 + $0x3e0] ss:$16 sps:$4 sm:$0xff]  }
0x14c3   :  { %4188 = vmatprep.subr.bf16.mxu0 %v6257_v12  ;;  %4261 = vmatprep.subr.bf16.mxu1 %v6260_v54  ;;  %v9373_v12 = vld [vmem:[%s9876_s2 + $0x3e8] ss:$16 sps:$4 sm:$0xff]  }
0x14c4   :  { %v9978_v54 = vld [vmem:[#allocation23_spill] sm:$0xff] }
0x14c6   :  { %4189 = vmatpush1.bf16.msra.mxu0 %v6255_v17  ;;  %4262 = vmatpush1.bf16.msra.mxu1 %v6258_v37  ;;  %v2817_v17 = vadd.f32 %v9978_v54, %v8666_v29  ;;  %v9979_v37 = vld [vmem:[#allocation24_spill] sm:$0xff] }
0x14c7   :  { %4190 = vmatprep.subr.bf16.mxu0 %v6263_v18  ;;  %4263 = vmatprep.subr.bf16.mxu1 %v6266_v59  ;;  %v2890_v18 = vadd.f32 %v9979_v37, %v8689_v11  ;;  %v9980_v59 = vld [vmem:[#allocation25_spill] sm:$0xff] }
0x14ca   :  { %4191 = vmatpush1.bf16.msra.mxu0 %v6261_v62  ;;  %4264 = vmatpush1.bf16.msra.mxu1 %v6264_v40  ;;  %v2819_v62 = vadd.f32 %v9980_v59, %v8777_v23  ;;  %v9981_v40 = vld [vmem:[#allocation26_spill] sm:$0xff]  ;;  %v9982_v59 = vld [vmem:[#allocation4_spill] sm:$0xff] }
0x14cb   :  { %4192 = vmatprep.subr.bf16.mxu0 %v6269_v55  ;;  %4265 = vmatprep.subr.bf16.mxu1 %v6272_v57  ;;  %v2892_v55 = vadd.f32 %v9981_v40, %v8672_v3 }
0x14ce   :  { %4193 = vmatpush1.bf16.msra.mxu0 %v6267_v53  ;;  %4266 = vmatpush1.bf16.msra.mxu1 %v6270_v58 }
0x14cf   :  { %4194 = vmatprep.subr.bf16.mxu0 %v6275_v60  ;;  %4267 = vmatprep.subr.bf16.mxu1 %v6278_v42 }
0x14d2   :  { %4195 = vmatpush1.bf16.msra.mxu0 %v6273_v34  ;;  %4268 = vmatpush1.bf16.msra.mxu1 %v6276_v63 }
0x14d3   :  { %4196 = vmatprep.subr.bf16.mxu0 %v6281_v14  ;;  %4269 = vmatprep.subr.bf16.mxu1 %v6284_v16 }
0x14d6   :  { %4197 = vmatpush1.bf16.msra.mxu0 %v6279_v31  ;;  %4270 = vmatpush1.bf16.msra.mxu1 %v6282_v15 }
0x14d7   :  { %4198 = vmatprep.subr.bf16.mxu0 %v6287_v50  ;;  %4271 = vmatprep.subr.bf16.mxu1 %v6290_v43 }
0x14da   :  { %4199 = vmatpush1.bf16.msra.mxu0 %v6285_v1  ;;  %4272 = vmatpush1.bf16.msra.mxu1 %v6288_v61 }
0x14db   :  { %4546 = vmatprep.subr.bf16.mxu0 %v9190_v19  ;;  %4587 = vmatprep.subr.bf16.mxu1 %v9195_v20 }
0x14dd   :  { %4217 = vmatmul.mubr.bf16.vlgmr.msra.gmra.mrb[116].mxu0 %v3964_v45  ;;  %4290 = vmatmul.mubr.bf16.vlgmr.msra.gmra.mrb[116].mxu1 %v3964_v45 }
0x14de   :  { %4226 = vmatprep.mubr.bf16.mxu0 %v9908_v47  ;;  %4299 = vmatprep.mubr.bf16.mxu1 %v9908_v47 }
0x14df   :  { %4547 = vmatpush1.bf16.msra.mxu0 %v9200_v35  ;;  %4588 = vmatpush1.bf16.msra.mxu1 %v9205_v46 }
0x14e0   :  { %4548 = vmatprep.subr.bf16.mxu0 %v9214_v39  ;;  %4589 = vmatprep.subr.bf16.mxu1 %v9219_v26 }
0x14e3   :  { %4549 = vmatpush1.bf16.msra.mxu0 %v9224_v25  ;;  %4590 = vmatpush1.bf16.msra.mxu1 %v9229_v22 }
0x14e4   :  { %4550 = vmatprep.subr.bf16.mxu0 %v9238_v13  ;;  %4591 = vmatprep.subr.bf16.mxu1 %v9243_v28 }
0x14e5   :  { %4227 = vmatmul.mubr.bf16.gmra.mrb[120].mxu0 %v3965_v51  ;;  %4300 = vmatmul.mubr.bf16.gmra.mrb[120].mxu1 %v3965_v51  ;;  %v9392_v51 = vld [vmem:[%s9879_s3 + $0x8] sm:$0xf] }
0x14e6   :  { %4236 = vmatprep.mubr.bf16.mxu0 %v9908_v47  ;;  %4309 = vmatprep.mubr.bf16.mxu1 %v9908_v47 }
0x14e7   :  { %4551 = vmatpush1.bf16.msra.mxu0 %v9248_v2  ;;  %4592 = vmatpush1.bf16.msra.mxu1 %v9253_v56 }
0x14e8   :  { %4552 = vmatprep.subr.bf16.mxu0 %v9262_v10  ;;  %4593 = vmatprep.subr.bf16.mxu1 %v9267_v4 }
0x14eb   :  { %4553 = vmatpush1.bf16.msra.mxu0 %v9272_v49  ;;  %4594 = vmatpush1.bf16.msra.mxu1 %v9277_v48 }
0x14ec   :  { %4554 = vmatprep.subr.bf16.mxu0 %v9286_v27  ;;  %4595 = vmatprep.subr.bf16.mxu1 %v9291_v24 }
0x14ed   :  { %4237 = vmatmul.mubr.bf16.gmra.mrb[124].mxu0 %v3966_v52  ;;  %4310 = vmatmul.mubr.bf16.gmra.mrb[124].mxu1 %v3966_v52 }
0x14ee   :  { %4246 = vmatprep.mubr.bf16.mxu0 %v9908_v47  ;;  %4319 = vmatprep.mubr.bf16.mxu1 %v9908_v47 }
0x14ef   :  { %4555 = vmatpush1.bf16.msra.mxu0 %v9296_v0  ;;  %4596 = vmatpush1.bf16.msra.mxu1 %v9301_v6 }
0x14f0   :  { %4556 = vmatprep.subr.bf16.mxu0 %v9310_v21  ;;  %4597 = vmatprep.subr.bf16.mxu1 %v9320_v44 }
0x14f3   :  { %4557 = vmatpush1.bf16.msra.mxu0 %v9315_v33  ;;  %4598 = vmatpush1.bf16.msra.mxu1 %v9325_v36 }
0x14f4   :  { %4558 = vmatprep.subr.bf16.mxu0 %v9330_v32  ;;  %4599 = vmatprep.subr.bf16.mxu1 %v9337_v38 }
0x14f7   :  { %4559 = vmatpush1.bf16.msra.mxu0 %v9344_v9  ;;  %4600 = vmatpush1.bf16.msra.mxu1 %v9349_v8 }
0x14f8   :  { %4560 = vmatprep.subr.bf16.mxu0 %v9356_v5  ;;  %4601 = vmatprep.subr.bf16.mxu1 %v9361_v7 }
0x14fb   :  { %4561 = vmatpush1.bf16.msra.mxu0 %v9368_v41  ;;  %4602 = vmatpush1.bf16.msra.mxu1 %v9373_v12 }
0x14fc   :  { %4661 = vmatprep.subr.bf16.mxu0 %v9190_v19  ;;  %4702 = vmatprep.subr.bf16.mxu1 %v9195_v20 }
0x1590   :  { %v3850_v57 = vpop.f32.mrb[112].mxu0  ;;  %v3891_v53 = vpop.f32.mrb[112].mxu1 }
0x1591   :  { %v3898_v58 = vadd.f32 %v3850_v57, %v2817_v17  ;;  %v3900_v60 = vadd.f32 %v3891_v53, %v2890_v18  ;;  %v3852_v42 = vpop.f32.mrb[113].mxu0  ;;  %v3893_v34 = vpop.f32.mrb[113].mxu1 }
0x1592   :  { %v3899_v63 = vadd.f32 %v3852_v42, %v2819_v62  ;;  %v3901_v14 = vadd.f32 %v3893_v34, %v2892_v55  ;;  %v3854_v16 = vpop.f32.mrb[114].mxu0  ;;  %v3895_v31 = vpop.f32.mrb[114].mxu1  ;;  %v9396_v62 = vrot.slane %v9392_v51, %v9982_v59  ;;  %v9983_v42 = vld [vmem:[#allocation5_spill] sm:$0xff] }
0x1593   :  { %v5767_v29 = vmul.f32 -1.442695, %v3898_v58  ;;  %v3855_v15 = vpop.f32.mrb[115].mxu0  ;;  %v3896_v50 = vpop.f32.mrb[115].mxu1  ;;  %v9402_v34 = vrot.slane %v9392_v51, %v9983_v42 }
0x1594   :  { %v5769_v11 = vmul.f32 -1.442695, %v3899_v63  ;;  %v5768_v23 = vmul.f32 -1.442695, %v3901_v14 }
0x1595   :  { %6695 = vpow2.f32 %v5767_v29 }
0x1596   :  { %6697 = vpow2.f32 %v5769_v11 }
0x1597   :  { %6699 = vpow2.f32 %v5768_v23  ;;  %v9984_v23 = vld [vmem:[#allocation6_spill] sm:$0xff] }
0x1598   :  { %6701 = vtanh.f32 %v3900_v60 }
0x159f   :  { %v6696_v43 = vpop.eup %6695 }
0x15a0   :  { %v6698_v1 = vpop.eup %6697  ;;  %v3905_v3 = vadd.f32 1.0, %v6696_v43  ;;  %v9419_v43 = vrot.slane %v9392_v51, %v9984_v23 }
0x15a1   :  { %v3918_v61 = vadd.f32 1.0, %v6698_v1  ;;  %v6700_v45 = vpop.eup %6699 }
0x15a2   :  { %6703 = vrcp.f32 %v3905_v3  ;;  %v6702_v52 = vpop.eup %6701  ;;  %v3912_v18 = vadd.f32 1.0, %v6700_v45 }
0x15a3   :  { %6705 = vrcp.f32 %v3918_v61 }
0x15a4   :  { %6707 = vrcp.f32 %v3912_v18 }
0x15ac   :  { %v6704_v54 = vpop.eup %6703 }
0x15ad   :  { %v6706_v17 = vpop.eup %6705  ;;  %v3922_v37 = vmul.f32 %v6704_v54, %v6702_v52 }
0x15ae   :  { %v3921_v40 = vmul.f32 %v6706_v17, %v9086_v30  ;;  %v6708_v54 = vpop.eup %6707 }
0x15b0   :  { %v3923_v55 = vadd.f32 %v3922_v37, %v3921_v40  ;;  %v4218_v57 = vpop.f32.mrb[116].mxu0  ;;  %v4291_v53 = vpop.f32.mrb[116].mxu1 }
0x15b1   :  { %v4219_v58 = vadd.f32 %v4218_v57, %v9396_v62  ;;  %v4220_v60 = vpop.f32.mrb[117].mxu0  ;;  %v4293_v63 = vpop.f32.mrb[117].mxu1  ;;  %v4292_v40 = vadd.f32 %v4291_v53, %v9419_v43 }
0x15b2   :  { %6709 = vtanh.f32 %v3923_v55  ;;  %v9404_v14 = vpop.f32.mrb[118].mxu0  ;;  %v9406_v16 = vpop.f32.mrb[118].mxu1  ;;  %v4294_v15 = vadd.f32 %v4293_v63, %v9402_v34 }
0x15b3   :  { %v5867_v31 = vmul.f32 -1.442695, %v4219_v58  ;;  %v9408_v29 = vpop.f32.mrb[119].mxu0  ;;  %v9410_v30 = vpop.f32.mrb[119].mxu1 }
0x15b4   :  { %v5868_v1 = vmul.f32 -1.442695, %v4294_v15 }
0x15b5   :  { %6711 = vpow2.f32 %v5867_v31 }
0x15b6   :  { %6713 = vpow2.f32 %v5868_v1 }
0x15b7   :  { %6715 = vtanh.f32 %v4292_v40 }
0x15b8   :  { %v9413_v50 = vpop.f32.mrb[120].mxu0  ;;  %v9415_v11 = vpop.f32.mrb[120].mxu1 }
0x15b9   :  { %v9421_v3 = vpop.f32.mrb[121].mxu0  ;;  %v9423_v61 = vpop.f32.mrb[121].mxu1 }
0x15ba   :  { %v9425_v45 = vpop.f32.mrb[122].mxu0  ;;  %v9427_v52 = vpop.f32.mrb[122].mxu1 }
0x15bb   :  { %9985 = vst [vmem:[#allocation7_spill] sm:$0xff] %v9425_v45  ;;  %9986 = vst [vmem:[#allocation8_spill] sm:$0xff] %v9427_v52  ;;  %v9429_v17 = vpop.f32.mrb[123].mxu0  ;;  %v9431_v37 = vpop.f32.mrb[123].mxu1 }
0x15bc   :  { %9987 = vst [vmem:[#allocation9_spill] sm:$0xff] %v9429_v17  ;;  %9988 = vst [vmem:[#allocation10_spill] sm:$0xff] %v9431_v37  ;;  %v6710_v18 = vpop.eup %6709 }
0x15bd   :  { %v3925_v59 = vmul.f32 %v6710_v18, %v6708_v54 }
0x15bf   :  { %v6712_v55 = vpop.eup %6711  ;;  %v3926_v57 = vpack.c.bf16 %v3925_v59, %v3925_v59 }
0x15c0   :  { %v4368_v58 = vadd.f32 1.0, %v6712_v55  ;;  %v9434_v60 = vpop.f32.mrb[124].mxu0  ;;  %v9436_v42 = vpop.f32.mrb[124].mxu1 }
0x15c1   :  { %9989 = vst [vmem:[#allocation11_spill] sm:$0xff] %v9434_v60  ;;  %9990 = vst [vmem:[#allocation12_spill] sm:$0xff] %v9436_v42  ;;  %v3928_v63 = vrot.slane %v3926_v57, 4  ;;  %v9438_v31 = vpop.f32.mrb[125].mxu0  ;;  %v9440_v15 = vpop.f32.mrb[125].mxu1 }
0x15c2   :  { %9991 = vst [vmem:[#allocation13_spill] sm:$0xff] %v9438_v31  ;;  %9992 = vst [vmem:[#allocation14_spill] sm:$0xff] %v9440_v15  ;;  %6717 = vrcp.f32 %v4368_v58  ;;  %v9442_v23 = vpop.f32.mrb[126].mxu0  ;;  %v9444_v54 = vpop.f32.mrb[126].mxu1 }
0x15c3   :  { %9993 = vst [vmem:[#allocation15_spill] sm:$0xff] %v9442_v23  ;;  %9994 = vst [vmem:[#allocation16_spill] sm:$0xff] %v9444_v54  ;;  %v9446_v53 = vpop.f32.mrb[127].mxu0  ;;  %v9448_v1 = vpop.f32.mrb[127].mxu1 }
0x15c4   :  { %3930 = vst [vmem:[#allocation2 + $0x18] sm:$0xf0] %v3928_v63  ;;  %9995 = vst [vmem:[#allocation17_spill] sm:$0xff] %v9446_v53  ;;  %v6714_v18 = vpop.eup %6713 }
0x15c5   :  { %9996 = vst [vmem:[#allocation18_spill] sm:$0xff] %v9448_v1  ;;  %v4375_v59 = vadd.f32 1.0, %v6714_v18  ;;  %v6716_v42 = vpop.eup %6715 }
0x15c7   :  { %6719 = vrcp.f32 %v4375_v59 }
0x15cb   :  { %v3967_v55 = vld [vmem:[#allocation2 + $0x18] sm:$0xff] }
0x15cc   :  { %4247 = vmatmul.mubr.bf16.gmra.mrb[128].mxu0 %v3967_v55  ;;  %4320 = vmatmul.mubr.bf16.gmra.mrb[128].mxu1 %v3967_v55  ;;  %v6718_v40 = vpop.eup %6717 }
0x15cd   :  { %4578 = vmatprep.mubr.bf16.mxu0 %v9908_v47  ;;  %4619 = vmatprep.mubr.bf16.mxu1 %v9908_v47  ;;  %v9452_v57 = vmul.f32 %v6718_v40, %v6716_v42 }
0x15cf   :  { %6721 = vtanh.f32 %v9452_v57 }
0x15d1   :  { %v6720_v58 = vpop.eup %6719 }
0x15d9   :  { %v6722_v63 = vpop.eup %6721 }
0x15da   :  { %v4380_v53 = vmul.f32 %v6722_v63, %v6720_v58  ;;  %v10005_v63 = vld [vmem:[#allocation27_spill] sm:$0xff] }
0x15db   :  { %v9507_v54 = vrot.slane %v9392_v51, %v10005_v63 }
0x15dc   :  { %v4385_v1 = vpack.c.bf16 %v4380_v53, %v4380_v53 }
0x15de   :  { %4579 = vmatmul.mubr.bf16.vlgmr.msra.gmra.mrb[132].mxu0 %v4385_v1  ;;  %4620 = vmatmul.mubr.bf16.vlgmr.msra.gmra.mrb[132].mxu1 %v4385_v1 }
0x15df   :  { %4662 = vmatpush1.bf16.msra.mxu0 %v9200_v35  ;;  %4703 = vmatpush1.bf16.msra.mxu1 %v9205_v46 }
0x15e0   :  { %4663 = vmatprep.subr.bf16.mxu0 %v9214_v39  ;;  %4704 = vmatprep.subr.bf16.mxu1 %v9219_v26 }
0x15e1   :  { %4693 = vmatprep.mubr.bf16.mxu0 %v9908_v47  ;;  %4734 = vmatprep.mubr.bf16.mxu1 %v9908_v47 }
0x15e3   :  { %4664 = vmatpush1.bf16.msra.mxu0 %v9224_v25  ;;  %4705 = vmatpush1.bf16.msra.mxu1 %v9229_v22 }
0x15e4   :  { %4665 = vmatprep.subr.bf16.mxu0 %v9238_v13  ;;  %4706 = vmatprep.subr.bf16.mxu1 %v9243_v28 }
0x15e7   :  { %4666 = vmatpush1.bf16.msra.mxu0 %v9248_v2  ;;  %4707 = vmatpush1.bf16.msra.mxu1 %v9253_v56 }
0x15e8   :  { %4667 = vmatprep.subr.bf16.mxu0 %v9262_v10  ;;  %4708 = vmatprep.subr.bf16.mxu1 %v9267_v4 }
0x15eb   :  { %4668 = vmatpush1.bf16.msra.mxu0 %v9272_v49  ;;  %4709 = vmatpush1.bf16.msra.mxu1 %v9277_v48 }
0x15ec   :  { %4669 = vmatprep.subr.bf16.mxu0 %v9286_v27  ;;  %4710 = vmatprep.subr.bf16.mxu1 %v9291_v24 }
0x15ef   :  { %4670 = vmatpush1.bf16.msra.mxu0 %v9296_v0  ;;  %4711 = vmatpush1.bf16.msra.mxu1 %v9301_v6 }
0x15f0   :  { %4671 = vmatprep.subr.bf16.mxu0 %v9310_v21  ;;  %4712 = vmatprep.subr.bf16.mxu1 %v9320_v44 }
0x15f3   :  { %4672 = vmatpush1.bf16.msra.mxu0 %v9315_v33  ;;  %4713 = vmatpush1.bf16.msra.mxu1 %v9325_v36 }
0x15f4   :  { %4673 = vmatprep.subr.bf16.mxu0 %v9330_v32  ;;  %4714 = vmatprep.subr.bf16.mxu1 %v9337_v38 }
0x15f7   :  { %4674 = vmatpush1.bf16.msra.mxu0 %v9344_v9  ;;  %4715 = vmatpush1.bf16.msra.mxu1 %v9349_v8 }
0x15f8   :  { %4675 = vmatprep.subr.bf16.mxu0 %v9356_v5  ;;  %4716 = vmatprep.subr.bf16.mxu1 %v9361_v7 }
0x15fb   :  { %4676 = vmatpush1.bf16.msra.mxu0 %v9368_v41  ;;  %4717 = vmatpush1.bf16.msra.mxu1 %v9373_v12 }
0x15fc   :  { %4776 = vmatprep.subr.bf16.mxu0 %v9190_v19  ;;  %4817 = vmatprep.subr.bf16.mxu1 %v9195_v20 }
0x169f   :  { %v9489_v42 = vpop.f32.mrb[128].mxu0  ;;  %v9491_v53 = vpop.f32.mrb[128].mxu1 }
0x16a0   :  { %9997 = vst [vmem:[#allocation19_spill] sm:$0xff] %v9489_v42  ;;  %9998 = vst [vmem:[#allocation20_spill] sm:$0xff] %v9491_v53  ;;  %v9493_v1 = vpop.f32.mrb[129].mxu0  ;;  %v9495_v18 = vpop.f32.mrb[129].mxu1  ;;  %v4223_v42 = vadd.f32 %v9404_v14, %v9396_v62 }
0x16a1   :  { %9999 = vst [vmem:[#allocation21_spill] sm:$0xff] %v9493_v1  ;;  %10000 = vst [vmem:[#allocation22_spill] sm:$0xff] %v9495_v18  ;;  %v9497_v59 = vpop.f32.mrb[130].mxu0  ;;  %v9499_v55 = vpop.f32.mrb[130].mxu1  ;;  %v4296_v1 = vadd.f32 %v9406_v16, %v9419_v43  ;;  %v4225_v18 = vadd.f32 %v9408_v29, %v9507_v54 }
0x16a2   :  { %10001 = vst [vmem:[#allocation23_spill] sm:$0xff] %v9497_v59  ;;  %10002 = vst [vmem:[#allocation24_spill] sm:$0xff] %v9499_v55  ;;  %v9501_v40 = vpop.f32.mrb[131].mxu0  ;;  %v9503_v58 = vpop.f32.mrb[131].mxu1  ;;  %v4298_v55 = vadd.f32 %v9410_v30, %v9402_v34 }
0x16a3   :  { %10003 = vst [vmem:[#allocation25_spill] sm:$0xff] %v9501_v40  ;;  %10004 = vst [vmem:[#allocation26_spill] sm:$0xff] %v9503_v58 }
0x16b1   :  { %v4580_v59 = vpop.f32.mrb[132].mxu0  ;;  %v4621_v40 = vpop.f32.mrb[132].mxu1 }
0x16b2   :  { %v4628_v53 = vadd.f32 %v4580_v59, %v4223_v42  ;;  %v4630_v58 = vadd.f32 %v4621_v40, %v4296_v1  ;;  %v4582_v23 = vpop.f32.mrb[133].mxu0  ;;  %v4623_v15 = vpop.f32.mrb[133].mxu1  ;;  %v4231_v40 = vadd.f32 %v9421_v3, %v9507_v54 }
0x16b3   :  { %v4629_v51 = vadd.f32 %v4582_v23, %v4225_v18  ;;  %v4631_v63 = vadd.f32 %v4623_v15, %v4298_v55  ;;  %v4584_v31 = vpop.f32.mrb[134].mxu0  ;;  %v4625_v60 = vpop.f32.mrb[134].mxu1 }
0x16b4   :  { %v5901_v14 = vmul.f32 -1.442695, %v4628_v53  ;;  %v4585_v37 = vpop.f32.mrb[135].mxu0  ;;  %v4626_v17 = vpop.f32.mrb[135].mxu1 }
0x16b5   :  { %v5903_v16 = vmul.f32 -1.442695, %v4629_v51  ;;  %v5902_v29 = vmul.f32 -1.442695, %v4631_v63 }
0x16b6   :  { %6723 = vpow2.f32 %v5901_v14 }
0x16b7   :  { %6725 = vpow2.f32 %v5903_v16 }
0x16b8   :  { %6727 = vpow2.f32 %v5902_v29 }
0x16b9   :  { %6729 = vtanh.f32 %v4630_v58  ;;  %v4304_v58 = vadd.f32 %v9423_v61, %v9402_v34 }
0x16c0   :  { %v6724_v52 = vpop.eup %6723 }
0x16c1   :  { %v6726_v45 = vpop.eup %6725  ;;  %v4635_v30 = vadd.f32 1.0, %v6724_v52 }
0x16c2   :  { %v4648_v42 = vadd.f32 1.0, %v6726_v45  ;;  %v6728_v1 = vpop.eup %6727  ;;  %v4229_v45 = vadd.f32 %v9413_v50, %v9396_v62 }
0x16c3   :  { %6731 = vrcp.f32 %v4635_v30  ;;  %v6730_v23 = vpop.eup %6729  ;;  %v4642_v53 = vadd.f32 1.0, %v6728_v1 }
0x16c4   :  { %6733 = vrcp.f32 %v4648_v42 }
0x16c5   :  { %6735 = vrcp.f32 %v4642_v53 }
0x16cd   :  { %v6732_v15 = vpop.eup %6731 }
0x16ce   :  { %v6734_v31 = vpop.eup %6733  ;;  %v4652_v60 = vmul.f32 %v6732_v15, %v6730_v23 }
0x16cf   :  { %v4651_v17 = vmul.f32 %v6734_v31, %v9452_v57  ;;  %v6736_v18 = vpop.eup %6735  ;;  %v4302_v57 = vadd.f32 %v9415_v11, %v9419_v43 }
0x16d1   :  { %v9518_v37 = vadd.f32 %v4652_v60, %v4651_v17 }
0x16d3   :  { %6737 = vtanh.f32 %v9518_v37 }
0x16dd   :  { %v6738_v52 = vpop.eup %6737 }
0x16de   :  { %v4655_v59 = vmul.f32 %v6738_v52, %v6736_v18 }
0x16e0   :  { %v4660_v55 = vpack.c.bf16 %v4655_v59, %v4655_v59 }
0x16e2   :  { %4694 = vmatmul.mubr.bf16.vlgmr.msra.gmra.mrb[136].mxu0 %v4660_v55  ;;  %4735 = vmatmul.mubr.bf16.vlgmr.msra.gmra.mrb[136].mxu1 %v4660_v55 }
0x16e3   :  { %4777 = vmatpush1.bf16.msra.mxu0 %v9200_v35  ;;  %4818 = vmatpush1.bf16.msra.mxu1 %v9205_v46 }
0x16e4   :  { %4778 = vmatprep.subr.bf16.mxu0 %v9214_v39  ;;  %4819 = vmatprep.subr.bf16.mxu1 %v9219_v26 }
0x16e5   :  { %4808 = vmatprep.mubr.bf16.mxu0 %v9908_v47  ;;  %4849 = vmatprep.mubr.bf16.mxu1 %v9908_v47 }
0x16e7   :  { %4779 = vmatpush1.bf16.msra.mxu0 %v9224_v25  ;;  %4820 = vmatpush1.bf16.msra.mxu1 %v9229_v22 }
0x16e8   :  { %4780 = vmatprep.subr.bf16.mxu0 %v9238_v13  ;;  %4821 = vmatprep.subr.bf16.mxu1 %v9243_v28 }
0x16eb   :  { %4781 = vmatpush1.bf16.msra.mxu0 %v9248_v2  ;;  %4822 = vmatpush1.bf16.msra.mxu1 %v9253_v56 }
0x16ec   :  { %4782 = vmatprep.subr.bf16.mxu0 %v9262_v10  ;;  %4823 = vmatprep.subr.bf16.mxu1 %v9267_v4 }
0x16ef   :  { %4783 = vmatpush1.bf16.msra.mxu0 %v9272_v49  ;;  %4824 = vmatpush1.bf16.msra.mxu1 %v9277_v48 }
0x16f0   :  { %4784 = vmatprep.subr.bf16.mxu0 %v9286_v27  ;;  %4825 = vmatprep.subr.bf16.mxu1 %v9291_v24 }
0x16f3   :  { %4785 = vmatpush1.bf16.msra.mxu0 %v9296_v0  ;;  %4826 = vmatpush1.bf16.msra.mxu1 %v9301_v6 }
0x16f4   :  { %4786 = vmatprep.subr.bf16.mxu0 %v9310_v21  ;;  %4827 = vmatprep.subr.bf16.mxu1 %v9320_v44 }
0x16f7   :  { %4787 = vmatpush1.bf16.msra.mxu0 %v9315_v33  ;;  %4828 = vmatpush1.bf16.msra.mxu1 %v9325_v36 }
0x16f8   :  { %4788 = vmatprep.subr.bf16.mxu0 %v9330_v32  ;;  %4829 = vmatprep.subr.bf16.mxu1 %v9337_v38 }
0x16fb   :  { %4789 = vmatpush1.bf16.msra.mxu0 %v9344_v9  ;;  %4830 = vmatpush1.bf16.msra.mxu1 %v9349_v8 }
0x16fc   :  { %4790 = vmatprep.subr.bf16.mxu0 %v9356_v5  ;;  %4831 = vmatprep.subr.bf16.mxu1 %v9361_v7 }
0x16ff   :  { %4791 = vmatpush1.bf16.msra.mxu0 %v9368_v41  ;;  %4832 = vmatpush1.bf16.msra.mxu1 %v9373_v12 }
0x1700   :  { %4891 = vmatprep.subr.bf16.mxu0 %v9190_v19  ;;  %4932 = vmatprep.subr.bf16.mxu1 %v9195_v20 }
0x17b5   :  { %v4695_v51 = vpop.f32.mrb[136].mxu0  ;;  %v4736_v63 = vpop.f32.mrb[136].mxu1 }
0x17b6   :  { %v4743_v14 = vadd.f32 %v4695_v51, %v4229_v45  ;;  %v4745_v16 = vadd.f32 %v4736_v63, %v4302_v57  ;;  %v4697_v29 = vpop.f32.mrb[137].mxu0  ;;  %v4738_v30 = vpop.f32.mrb[137].mxu1 }
0x17b7   :  { %v4744_v42 = vadd.f32 %v4697_v29, %v4231_v40  ;;  %v4746_v1 = vadd.f32 %v4738_v30, %v4304_v58  ;;  %v4699_v23 = vpop.f32.mrb[138].mxu0  ;;  %v4740_v15 = vpop.f32.mrb[138].mxu1 }
0x17b8   :  { %v5904_v50 = vmul.f32 -1.442695, %v4743_v14  ;;  %v4700_v31 = vpop.f32.mrb[139].mxu0  ;;  %v4741_v60 = vpop.f32.mrb[139].mxu1  ;;  %v10008_v23 = vld [vmem:[#allocation9_spill] sm:$0xff] }
0x17b9   :  { %v5906_v11 = vmul.f32 -1.442695, %v4744_v42  ;;  %v5905_v3 = vmul.f32 -1.442695, %v4746_v1  ;;  %v10007_v42 = vld [vmem:[#allocation8_spill] sm:$0xff]  ;;  %v4235_v15 = vadd.f32 %v10008_v23, %v9507_v54 }
0x17ba   :  { %6739 = vpow2.f32 %v5904_v50  ;;  %v4306_v1 = vadd.f32 %v10007_v42, %v9419_v43  ;;  %v10009_v50 = vld [vmem:[#allocation10_spill] sm:$0xff] }
0x17bb   :  { %6741 = vpow2.f32 %v5906_v11  ;;  %v4308_v31 = vadd.f32 %v10009_v50, %v9402_v34 }
0x17bc   :  { %6743 = vpow2.f32 %v5905_v3 }
0x17bd   :  { %6745 = vtanh.f32 %v4745_v16 }
0x17c4   :  { %v6740_v53 = vpop.eup %6739 }
0x17c5   :  { %v6742_v17 = vpop.eup %6741  ;;  %v4750_v61 = vadd.f32 1.0, %v6740_v53 }
0x17c6   :  { %v4763_v18 = vadd.f32 1.0, %v6742_v17  ;;  %v6744_v52 = vpop.eup %6743 }
0x17c7   :  { %6747 = vrcp.f32 %v4750_v61  ;;  %v6746_v59 = vpop.eup %6745  ;;  %v4757_v40 = vadd.f32 1.0, %v6744_v52 }
0x17c8   :  { %6749 = vrcp.f32 %v4763_v18 }
0x17c9   :  { %6751 = vrcp.f32 %v4757_v40 }
0x17d1   :  { %v6748_v55 = vpop.eup %6747 }
0x17d2   :  { %v6750_v45 = vpop.eup %6749  ;;  %v4767_v57 = vmul.f32 %v6748_v55, %v6746_v59 }
0x17d3   :  { %v4766_v58 = vmul.f32 %v6750_v45, %v9518_v37  ;;  %v6752_v63 = vpop.eup %6751  ;;  %v10006_v37 = vld [vmem:[#allocation7_spill] sm:$0xff] }
0x17d4   :  { %v4233_v30 = vadd.f32 %v10006_v37, %v9396_v62 }
0x17d5   :  { %v9564_v51 = vadd.f32 %v4767_v57, %v4766_v58 }
0x17d7   :  { %6753 = vtanh.f32 %v9564_v51 }
0x17e1   :  { %v6754_v14 = vpop.eup %6753 }
0x17e2   :  { %v4770_v29 = vmul.f32 %v6754_v14, %v6752_v63 }
0x17e4   :  { %v4775_v16 = vpack.c.bf16 %v4770_v29, %v4770_v29 }
0x17e6   :  { %4809 = vmatmul.mubr.bf16.vlgmr.msra.gmra.mrb[140].mxu0 %v4775_v16  ;;  %4850 = vmatmul.mubr.bf16.vlgmr.msra.gmra.mrb[140].mxu1 %v4775_v16 }
0x17e7   :  { %4892 = vmatpush1.bf16.msra.mxu0 %v9200_v35  ;;  %4933 = vmatpush1.bf16.msra.mxu1 %v9205_v46 }
0x17e8   :  { %4893 = vmatprep.subr.bf16.mxu0 %v9214_v39  ;;  %4934 = vmatprep.subr.bf16.mxu1 %v9219_v26 }
0x17e9   :  { %4923 = vmatprep.mubr.bf16.mxu0 %v9908_v47  ;;  %4964 = vmatprep.mubr.bf16.mxu1 %v9908_v47 }
0x17eb   :  { %4894 = vmatpush1.bf16.msra.mxu0 %v9224_v25  ;;  %4935 = vmatpush1.bf16.msra.mxu1 %v9229_v22 }
0x17ec   :  { %4895 = vmatprep.subr.bf16.mxu0 %v9238_v13  ;;  %4936 = vmatprep.subr.bf16.mxu1 %v9243_v28 }
0x17ef   :  { %4896 = vmatpush1.bf16.msra.mxu0 %v9248_v2  ;;  %4937 = vmatpush1.bf16.msra.mxu1 %v9253_v56 }
0x17f0   :  { %4897 = vmatprep.subr.bf16.mxu0 %v9262_v10  ;;  %4938 = vmatprep.subr.bf16.mxu1 %v9267_v4 }
0x17f3   :  { %4898 = vmatpush1.bf16.msra.mxu0 %v9272_v49  ;;  %4939 = vmatpush1.bf16.msra.mxu1 %v9277_v48 }
0x17f4   :  { %4899 = vmatprep.subr.bf16.mxu0 %v9286_v27  ;;  %4940 = vmatprep.subr.bf16.mxu1 %v9291_v24 }
0x17f7   :  { %4900 = vmatpush1.bf16.msra.mxu0 %v9296_v0  ;;  %4941 = vmatpush1.bf16.msra.mxu1 %v9301_v6 }
0x17f8   :  { %4901 = vmatprep.subr.bf16.mxu0 %v9310_v21  ;;  %4942 = vmatprep.subr.bf16.mxu1 %v9320_v44 }
0x17fb   :  { %4902 = vmatpush1.bf16.msra.mxu0 %v9315_v33  ;;  %4943 = vmatpush1.bf16.msra.mxu1 %v9325_v36 }
0x17fc   :  { %4903 = vmatprep.subr.bf16.mxu0 %v9330_v32  ;;  %4944 = vmatprep.subr.bf16.mxu1 %v9337_v38 }
0x17ff   :  { %4904 = vmatpush1.bf16.msra.mxu0 %v9344_v9  ;;  %4945 = vmatpush1.bf16.msra.mxu1 %v9349_v8 }
0x1800   :  { %4905 = vmatprep.subr.bf16.mxu0 %v9356_v5  ;;  %4946 = vmatprep.subr.bf16.mxu1 %v9361_v7 }
0x1803   :  { %4906 = vmatpush1.bf16.msra.mxu0 %v9368_v41  ;;  %4947 = vmatpush1.bf16.msra.mxu1 %v9373_v12 }
0x1804   :  { %5006 = vmatprep.subr.bf16.mxu0 %v9190_v19  ;;  %5047 = vmatprep.subr.bf16.mxu1 %v9195_v20 }
0x18b9   :  { %v4810_v60 = vpop.f32.mrb[140].mxu0  ;;  %v4851_v11 = vpop.f32.mrb[140].mxu1 }
0x18ba   :  { %v4858_v3 = vadd.f32 %v4810_v60, %v4233_v30  ;;  %v4860_v53 = vadd.f32 %v4851_v11, %v4306_v1  ;;  %v4812_v17 = vpop.f32.mrb[141].mxu0  ;;  %v4853_v61 = vpop.f32.mrb[141].mxu1 }
0x18bb   :  { %v4859_v18 = vadd.f32 %v4812_v17, %v4235_v15  ;;  %v4861_v52 = vadd.f32 %v4853_v61, %v4308_v31  ;;  %v4814_v59 = vpop.f32.mrb[142].mxu0  ;;  %v4855_v55 = vpop.f32.mrb[142].mxu1 }
0x18bc   :  { %v5907_v45 = vmul.f32 -1.442695, %v4858_v3  ;;  %v4815_v57 = vpop.f32.mrb[143].mxu0  ;;  %v4856_v40 = vpop.f32.mrb[143].mxu1  ;;  %v10012_v59 = vld [vmem:[#allocation13_spill] sm:$0xff] }
0x18bd   :  { %v5909_v58 = vmul.f32 -1.442695, %v4859_v18  ;;  %v5908_v63 = vmul.f32 -1.442695, %v4861_v52  ;;  %v10011_v18 = vld [vmem:[#allocation12_spill] sm:$0xff]  ;;  %v4241_v55 = vadd.f32 %v10012_v59, %v9507_v54 }
0x18be   :  { %6755 = vpow2.f32 %v5907_v45  ;;  %v4312_v52 = vadd.f32 %v10011_v18, %v9419_v43  ;;  %v10013_v45 = vld [vmem:[#allocation14_spill] sm:$0xff] }
0x18bf   :  { %6757 = vpow2.f32 %v5909_v58  ;;  %v4314_v57 = vadd.f32 %v10013_v45, %v9402_v34 }
0x18c0   :  { %6759 = vpow2.f32 %v5908_v63 }
0x18c1   :  { %6761 = vtanh.f32 %v4860_v53 }
0x18c8   :  { %v6756_v14 = vpop.eup %6755 }
0x18c9   :  { %v6758_v29 = vpop.eup %6757  ;;  %v4865_v16 = vadd.f32 1.0, %v6756_v14 }
0x18ca   :  { %v4878_v37 = vadd.f32 1.0, %v6758_v29  ;;  %v6760_v30 = vpop.eup %6759 }
0x18cb   :  { %6763 = vrcp.f32 %v4865_v16  ;;  %v6762_v42 = vpop.eup %6761  ;;  %v4872_v50 = vadd.f32 1.0, %v6760_v30 }
0x18cc   :  { %6765 = vrcp.f32 %v4878_v37 }
0x18cd   :  { %6767 = vrcp.f32 %v4872_v50 }
0x18d5   :  { %v6764_v1 = vpop.eup %6763 }
0x18d6   :  { %v6766_v23 = vpop.eup %6765  ;;  %v4882_v15 = vmul.f32 %v6764_v1, %v6762_v42 }
0x18d7   :  { %v4881_v31 = vmul.f32 %v6766_v23, %v9564_v51  ;;  %v6768_v11 = vpop.eup %6767  ;;  %v10010_v51 = vld [vmem:[#allocation11_spill] sm:$0xff] }
0x18d8   :  { %v4239_v61 = vadd.f32 %v10010_v51, %v9396_v62 }
0x18d9   :  { %v9610_v60 = vadd.f32 %v4882_v15, %v4881_v31 }
0x18db   :  { %6769 = vtanh.f32 %v9610_v60 }
0x18e5   :  { %v6770_v3 = vpop.eup %6769 }
0x18e6   :  { %v4885_v17 = vmul.f32 %v6770_v3, %v6768_v11 }
0x18e8   :  { %v4890_v53 = vpack.c.bf16 %v4885_v17, %v4885_v17 }
0x18ea   :  { %4924 = vmatmul.mubr.bf16.vlgmr.msra.gmra.mrb[144].mxu0 %v4890_v53  ;;  %4965 = vmatmul.mubr.bf16.vlgmr.msra.gmra.mrb[144].mxu1 %v4890_v53 }
0x18eb   :  { %5007 = vmatpush1.bf16.msra.mxu0 %v9200_v35  ;;  %5048 = vmatpush1.bf16.msra.mxu1 %v9205_v46 }
0x18ec   :  { %5008 = vmatprep.subr.bf16.mxu0 %v9214_v39  ;;  %5049 = vmatprep.subr.bf16.mxu1 %v9219_v26 }
0x18ed   :  { %5038 = vmatprep.mubr.bf16.mxu0 %v9908_v47  ;;  %5079 = vmatprep.mubr.bf16.mxu1 %v9908_v47 }
0x18ef   :  { %5009 = vmatpush1.bf16.msra.mxu0 %v9224_v25  ;;  %5050 = vmatpush1.bf16.msra.mxu1 %v9229_v22 }
0x18f0   :  { %5010 = vmatprep.subr.bf16.mxu0 %v9238_v13  ;;  %5051 = vmatprep.subr.bf16.mxu1 %v9243_v28 }
0x18f3   :  { %5011 = vmatpush1.bf16.msra.mxu0 %v9248_v2  ;;  %5052 = vmatpush1.bf16.msra.mxu1 %v9253_v56 }
0x18f4   :  { %5012 = vmatprep.subr.bf16.mxu0 %v9262_v10  ;;  %5053 = vmatprep.subr.bf16.mxu1 %v9267_v4 }
0x18f7   :  { %5013 = vmatpush1.bf16.msra.mxu0 %v9272_v49  ;;  %5054 = vmatpush1.bf16.msra.mxu1 %v9277_v48 }
0x18f8   :  { %5014 = vmatprep.subr.bf16.mxu0 %v9286_v27  ;;  %5055 = vmatprep.subr.bf16.mxu1 %v9291_v24 }
0x18fb   :  { %5015 = vmatpush1.bf16.msra.mxu0 %v9296_v0  ;;  %5056 = vmatpush1.bf16.msra.mxu1 %v9301_v6 }
0x18fc   :  { %5016 = vmatprep.subr.bf16.mxu0 %v9310_v21  ;;  %5057 = vmatprep.subr.bf16.mxu1 %v9320_v44 }
0x18ff   :  { %5017 = vmatpush1.bf16.msra.mxu0 %v9315_v33  ;;  %5058 = vmatpush1.bf16.msra.mxu1 %v9325_v36 }
0x1900   :  { %5018 = vmatprep.subr.bf16.mxu0 %v9330_v32  ;;  %5059 = vmatprep.subr.bf16.mxu1 %v9337_v38 }
0x1903   :  { %5019 = vmatpush1.bf16.msra.mxu0 %v9344_v9  ;;  %5060 = vmatpush1.bf16.msra.mxu1 %v9349_v8 }
0x1904   :  { %5020 = vmatprep.subr.bf16.mxu0 %v9356_v5  ;;  %5061 = vmatprep.subr.bf16.mxu1 %v9361_v7 }
0x1907   :  { %5021 = vmatpush1.bf16.msra.mxu0 %v9368_v41  ;;  %5062 = vmatpush1.bf16.msra.mxu1 %v9373_v12 }
0x1908   :  { %5121 = vmatprep.subr.bf16.mxu0 %v9190_v19  ;;  %5162 = vmatprep.subr.bf16.mxu1 %v9195_v20 }
0x19bd   :  { %v4925_v40 = vpop.f32.mrb[144].mxu0  ;;  %v4966_v58 = vpop.f32.mrb[144].mxu1 }
0x19be   :  { %v4973_v63 = vadd.f32 %v4925_v40, %v4239_v61  ;;  %v4975_v14 = vadd.f32 %v4966_v58, %v4312_v52  ;;  %v4927_v29 = vpop.f32.mrb[145].mxu0  ;;  %v4968_v19 = vpop.f32.mrb[145].mxu1 }
0x19bf   :  { %v4974_v16 = vadd.f32 %v4927_v29, %v4241_v55  ;;  %v4976_v20 = vadd.f32 %v4968_v19, %v4314_v57  ;;  %v4929_v37 = vpop.f32.mrb[146].mxu0  ;;  %v4970_v30 = vpop.f32.mrb[146].mxu1 }
0x19c0   :  { %v5910_v42 = vmul.f32 -1.442695, %v4973_v63  ;;  %v4930_v1 = vpop.f32.mrb[147].mxu0  ;;  %v4971_v23 = vpop.f32.mrb[147].mxu1 }
0x19c1   :  { %v5912_v15 = vmul.f32 -1.442695, %v4974_v16  ;;  %v5911_v50 = vmul.f32 -1.442695, %v4976_v20 }
0x19c2   :  { %6771 = vpow2.f32 %v5910_v42 }
0x19c3   :  { %6773 = vpow2.f32 %v5912_v15  ;;  %v6933_v15 = vld [vmem:[%s9876_s2 + $0x300] ss:$16 sps:$4 sm:$0xff]  }
0x19c4   :  { %6775 = vpow2.f32 %v5911_v50  ;;  %v6934_v50 = vld [vmem:[%s9876_s2 + $0x308] ss:$16 sps:$4 sm:$0xff]  }
0x19c5   :  { %6777 = vtanh.f32 %v4975_v14 }
0x19cc   :  { %v6772_v31 = vpop.eup %6771 }
0x19cd   :  { %v6774_v11 = vpop.eup %6773  ;;  %v4980_v3 = vadd.f32 1.0, %v6772_v31  ;;  %v6935_v31 = vld [vmem:[%s9876_s2 + $0x324] ss:$16 sps:$4 sm:$0xff]  }
0x19ce   :  { %v4993_v17 = vadd.f32 1.0, %v6774_v11  ;;  %v6776_v53 = vpop.eup %6775  ;;  %v6936_v11 = vld [vmem:[%s9876_s2 + $0x32c] ss:$16 sps:$4 sm:$0xff]  }
0x19cf   :  { %6779 = vrcp.f32 %v4980_v3  ;;  %v6778_v51 = vpop.eup %6777  ;;  %v4987_v59 = vadd.f32 1.0, %v6776_v53  ;;  %v6937_v3 = vld [vmem:[%s9876_s2 + $0x320] ss:$16 sps:$4 sm:$0xff]   ;;  %v6939_v53 = vld [vmem:[%s9876_s2 + $0x344] ss:$16 sps:$4 sm:$0xff]  }
0x19d0   :  { %6781 = vrcp.f32 %v4993_v17  ;;  %v6938_v17 = vld [vmem:[%s9876_s2 + $0x328] ss:$16 sps:$4 sm:$0xff]  }
0x19d1   :  { %6783 = vrcp.f32 %v4987_v59  ;;  %v6945_v59 = vld [vmem:[%s9876_s2 + $0x360] ss:$16 sps:$4 sm:$0xff]  }
0x19d9   :  { %v6780_v61 = vpop.eup %6779 }
0x19da   :  { %v6782_v18 = vpop.eup %6781  ;;  %v4997_v52 = vmul.f32 %v6780_v61, %v6778_v51  ;;  %v6940_v51 = vld [vmem:[%s9876_s2 + $0x34c] ss:$16 sps:$4 sm:$0xff]   ;;  %v6942_v61 = vld [vmem:[%s9876_s2 + $0x348] ss:$16 sps:$4 sm:$0xff]  }
0x19db   :  { %v4996_v55 = vmul.f32 %v6782_v18, %v9610_v60  ;;  %v6784_v57 = vpop.eup %6783  ;;  %v6943_v18 = vld [vmem:[%s9876_s2 + $0x364] ss:$16 sps:$4 sm:$0xff]  }
0x19dd   :  { %v9656_v45 = vadd.f32 %v4997_v52, %v4996_v55  ;;  %v6944_v52 = vld [vmem:[%s9876_s2 + $0x36c] ss:$16 sps:$4 sm:$0xff]   ;;  %v6946_v55 = vld [vmem:[%s9876_s2 + $0x368] ss:$16 sps:$4 sm:$0xff]  }
0x19df   :  { %6785 = vtanh.f32 %v9656_v45 }
0x19e9   :  { %v6786_v40 = vpop.eup %6785 }
0x19ea   :  { %v5000_v58 = vmul.f32 %v6786_v40, %v6784_v57  ;;  %v6948_v57 = vld [vmem:[%s9876_s2 + $0x38c] ss:$16 sps:$4 sm:$0xff]   ;;  %v6949_v40 = vld [vmem:[%s9876_s2 + $0x380] ss:$16 sps:$4 sm:$0xff]  }
0x19ec   :  { %v5005_v63 = vpack.c.bf16 %v5000_v58, %v5000_v58  ;;  %v6950_v58 = vld [vmem:[%s9876_s2 + $0x388] ss:$16 sps:$4 sm:$0xff]  }
0x19ee   :  { %5039 = vmatmul.mubr.bf16.vlgmr.msra.gmra.mrb[148].mxu0 %v5005_v63  ;;  %5080 = vmatmul.mubr.bf16.vlgmr.msra.gmra.mrb[148].mxu1 %v5005_v63  ;;  %v6951_v63 = vld [vmem:[%s9876_s2 + $0x3a4] ss:$16 sps:$4 sm:$0xff]  }
0x19ef   :  { %5122 = vmatpush1.bf16.msra.mxu0 %v9200_v35  ;;  %5163 = vmatpush1.bf16.msra.mxu1 %v9205_v46  ;;  %v6931_v35 = vld [vmem:[%s9876_s2 + $0x304] ss:$16 sps:$4 sm:$0xff]   ;;  %v6932_v46 = vld [vmem:[%s9876_s2 + $0x30c] ss:$16 sps:$4 sm:$0xff]  }
0x19f0   :  { %5123 = vmatprep.subr.bf16.mxu0 %v9214_v39  ;;  %5164 = vmatprep.subr.bf16.mxu1 %v9219_v26  ;;  %v10014_v39 = vld [vmem:[#allocation15_spill] sm:$0xff] }
0x19f1   :  { %5153 = vmatprep.mubr.bf16.mxu0 %v9908_v47  ;;  %5194 = vmatprep.mubr.bf16.mxu1 %v9908_v47  ;;  %v4243_v26 = vadd.f32 %v10014_v39, %v9396_v62  ;;  %v6954_v39 = vld [vmem:[%s9876_s2 + $0x3a8] ss:$16 sps:$4 sm:$0xff]  }
0x19f3   :  { %5124 = vmatpush1.bf16.msra.mxu0 %v9224_v25  ;;  %5165 = vmatpush1.bf16.msra.mxu1 %v9229_v22  ;;  %v10015_v25 = vld [vmem:[#allocation16_spill] sm:$0xff] }
0x19f4   :  { %5125 = vmatprep.subr.bf16.mxu0 %v9238_v13  ;;  %5166 = vmatprep.subr.bf16.mxu1 %v9243_v28  ;;  %v4316_v22 = vadd.f32 %v10015_v25, %v9419_v43  ;;  %v10016_v13 = vld [vmem:[#allocation17_spill] sm:$0xff] }
0x19f5   :  { %v4245_v28 = vadd.f32 %v10016_v13, %v9507_v54  ;;  %v6956_v25 = vld [vmem:[%s9876_s2 + $0x3cc] ss:$16 sps:$4 sm:$0xff]   ;;  %v6958_v13 = vld [vmem:[%s9876_s2 + $0x3c8] ss:$16 sps:$4 sm:$0xff]  }
0x19f7   :  { %5126 = vmatpush1.bf16.msra.mxu0 %v9248_v2  ;;  %5167 = vmatpush1.bf16.msra.mxu1 %v9253_v56  ;;  %v10017_v2 = vld [vmem:[#allocation18_spill] sm:$0xff] }
0x19f8   :  { %5127 = vmatprep.subr.bf16.mxu0 %v9262_v10  ;;  %5168 = vmatprep.subr.bf16.mxu1 %v9267_v4  ;;  %v4318_v56 = vadd.f32 %v10017_v2, %v9402_v34  ;;  %v6960_v2 = vld [vmem:[%s9876_s2 + $0x3ec] ss:$16 sps:$4 sm:$0xff]  }
0x19fb   :  { %5128 = vmatpush1.bf16.msra.mxu0 %v9272_v49  ;;  %5169 = vmatpush1.bf16.msra.mxu1 %v9277_v48 }
0x19fc   :  { %5129 = vmatprep.subr.bf16.mxu0 %v9286_v27  ;;  %5170 = vmatprep.subr.bf16.mxu1 %v9291_v24 }
0x19ff   :  { %5130 = vmatpush1.bf16.msra.mxu0 %v9296_v0  ;;  %5171 = vmatpush1.bf16.msra.mxu1 %v9301_v6 }
0x1a00   :  { %5131 = vmatprep.subr.bf16.mxu0 %v9310_v21  ;;  %5172 = vmatprep.subr.bf16.mxu1 %v9320_v44 }
0x1a03   :  { %5132 = vmatpush1.bf16.msra.mxu0 %v9315_v33  ;;  %5173 = vmatpush1.bf16.msra.mxu1 %v9325_v36 }
0x1a04   :  { %5133 = vmatprep.subr.bf16.mxu0 %v9330_v32  ;;  %5174 = vmatprep.subr.bf16.mxu1 %v9337_v38 }
0x1a07   :  { %5134 = vmatpush1.bf16.msra.mxu0 %v9344_v9  ;;  %5175 = vmatpush1.bf16.msra.mxu1 %v9349_v8 }
0x1a08   :  { %5135 = vmatprep.subr.bf16.mxu0 %v9356_v5  ;;  %5176 = vmatprep.subr.bf16.mxu1 %v9361_v7 }
0x1a0b   :  { %5136 = vmatpush1.bf16.msra.mxu0 %v9368_v41  ;;  %5177 = vmatpush1.bf16.msra.mxu1 %v9373_v12 }
0x1a0c   :  { %5236 = vmatprep.subr.bf16.mxu0 %v6931_v35  ;;  %5277 = vmatprep.subr.bf16.mxu1 %v6932_v46  ;;  %v6952_v35 = vld [vmem:[%s9876_s2 + $0x3ac] ss:$16 sps:$4 sm:$0xff]   ;;  %v6953_v46 = vld [vmem:[%s9876_s2 + $0x3a0] ss:$16 sps:$4 sm:$0xff]  }
0x1ac1   :  { %v5040_v10 = vpop.f32.mrb[148].mxu0  ;;  %v5081_v4 = vpop.f32.mrb[148].mxu1 }
0x1ac2   :  { %v5088_v49 = vadd.f32 %v5040_v10, %v4243_v26  ;;  %v5090_v48 = vadd.f32 %v5081_v4, %v4316_v22  ;;  %v5042_v27 = vpop.f32.mrb[149].mxu0  ;;  %v5083_v24 = vpop.f32.mrb[149].mxu1  ;;  %v6955_v26 = vld [vmem:[%s9876_s2 + $0x3c4] ss:$16 sps:$4 sm:$0xff]   ;;  %v6957_v22 = vld [vmem:[%s9876_s2 + $0x3c0] ss:$16 sps:$4 sm:$0xff]  }
0x1ac3   :  { %v5089_v0 = vadd.f32 %v5042_v27, %v4245_v28  ;;  %v5091_v6 = vadd.f32 %v5083_v24, %v4318_v56  ;;  %v5044_v21 = vpop.f32.mrb[150].mxu0  ;;  %v5085_v33 = vpop.f32.mrb[150].mxu1  ;;  %v6959_v28 = vld [vmem:[%s9876_s2 + $0x3e4] ss:$16 sps:$4 sm:$0xff]   ;;  %v6961_v56 = vld [vmem:[%s9876_s2 + $0x3e0] ss:$16 sps:$4 sm:$0xff]  }
0x1ac4   :  { %v5913_v44 = vmul.f32 -1.442695, %v5088_v49  ;;  %v5045_v36 = vpop.f32.mrb[151].mxu0  ;;  %v5086_v32 = vpop.f32.mrb[151].mxu1  ;;  %v6962_v10 = vld [vmem:[%s9876_s2 + $0x3e8] ss:$16 sps:$4 sm:$0xff]  }
0x1ac5   :  { %v5915_v38 = vmul.f32 -1.442695, %v5089_v0  ;;  %v5914_v9 = vmul.f32 -1.442695, %v5091_v6  ;;  %v10018_v4 = vld [vmem:[#allocation19_spill] sm:$0xff]  ;;  %v10020_v24 = vld [vmem:[#allocation21_spill] sm:$0xff] }
0x1ac6   :  { %6787 = vpow2.f32 %v5913_v44  ;;  %v4249_v49 = vadd.f32 %v10018_v4, %v9396_v62  ;;  %v4251_v0 = vadd.f32 %v10020_v24, %v9507_v54  ;;  %v10021_v6 = vld [vmem:[#allocation22_spill] sm:$0xff]  ;;  %v6966_v4 = vmov 0.0  }
0x1ac7   :  { %6789 = vpow2.f32 %v5915_v38  ;;  %v4324_v21 = vadd.f32 %v10021_v6, %v9402_v34 }
0x1ac8   :  { %6791 = vpow2.f32 %v5914_v9 }
0x1ac9   :  { %6793 = vtanh.f32 %v5090_v48  ;;  %v10019_v48 = vld [vmem:[#allocation20_spill] sm:$0xff] }
0x1aca   :  { %v4322_v27 = vadd.f32 %v10019_v48, %v9419_v43  ;;  %v5360_v48 = vld [vmem:[%s9880_s4 + $0x70] sm:$0xff] }
0x1ad0   :  { %v6788_v8 = vpop.eup %6787 }
0x1ad1   :  { %v6790_v5 = vpop.eup %6789  ;;  %v5095_v7 = vadd.f32 1.0, %v6788_v8 }
0x1ad2   :  { %v5108_v41 = vadd.f32 1.0, %v6790_v5  ;;  %v6792_v12 = vpop.eup %6791 }
0x1ad3   :  { %6795 = vrcp.f32 %v5095_v7  ;;  %v6794_v60 = vpop.eup %6793  ;;  %v5102_v16 = vadd.f32 1.0, %v6792_v12 }
0x1ad4   :  { %6797 = vrcp.f32 %v5108_v41 }
0x1ad5   :  { %6799 = vrcp.f32 %v5102_v16 }
0x1add   :  { %v6796_v14 = vpop.eup %6795 }
0x1ade   :  { %v6798_v29 = vpop.eup %6797  ;;  %v5112_v19 = vmul.f32 %v6796_v14, %v6794_v60 }
0x1adf   :  { %v5111_v20 = vmul.f32 %v6798_v29, %v9656_v45  ;;  %v6800_v30 = vpop.eup %6799  ;;  %v6947_v45 = vld [vmem:[%s9876_s2 + $0x384] ss:$16 sps:$4 sm:$0xff]  }
0x1ae1   :  { %v9706_v37 = vadd.f32 %v5112_v19, %v5111_v20 }
0x1ae3   :  { %6801 = vtanh.f32 %v9706_v37 }
0x1aed   :  { %v6802_v42 = vpop.eup %6801 }
0x1aee   :  { %v5115_v1 = vmul.f32 %v6802_v42, %v6800_v30 }
0x1af0   :  { %v5120_v23 = vpack.c.bf16 %v5115_v1, %v5115_v1 }
0x1af2   :  { %5154 = vmatmul.mubr.bf16.vlgmr.msra.gmra.mrb[152].mxu0 %v5120_v23  ;;  %5195 = vmatmul.mubr.bf16.vlgmr.msra.gmra.mrb[152].mxu1 %v5120_v23 }
0x1af3   :  { %5237 = vmatpush1.bf16.msra.mxu0 %v6933_v15  ;;  %5278 = vmatpush1.bf16.msra.mxu1 %v6934_v50 }
0x1af4   :  { %5238 = vmatprep.subr.bf16.mxu0 %v6935_v31  ;;  %5279 = vmatprep.subr.bf16.mxu1 %v6936_v11 }
0x1af5   :  { %5268 = vmatprep.mubr.bf16.mxu0 %v9908_v47  ;;  %5309 = vmatprep.mubr.bf16.mxu1 %v9908_v47  ;;  %v6941_v47 = vld [vmem:[%s9876_s2 + $0x340] ss:$16 sps:$4 sm:$0xff]  }
0x1af7   :  { %5239 = vmatpush1.bf16.msra.mxu0 %v6937_v3  ;;  %5280 = vmatpush1.bf16.msra.mxu1 %v6938_v17 }
0x1af8   :  { %5240 = vmatprep.subr.bf16.mxu0 %v6939_v53  ;;  %5281 = vmatprep.subr.bf16.mxu1 %v6940_v51 }
0x1afb   :  { %5241 = vmatpush1.bf16.msra.mxu0 %v6941_v47  ;;  %5282 = vmatpush1.bf16.msra.mxu1 %v6942_v61 }
0x1afc   :  { %5242 = vmatprep.subr.bf16.mxu0 %v6943_v18  ;;  %5283 = vmatprep.subr.bf16.mxu1 %v6944_v52  ;;  %v5346_v18 = vld [vmem:[%s9880_s4] sm:$0xff]  ;;  %v5347_v52 = vld [vmem:[%s9880_s4 + $0x8] sm:$0xff] }
0x1aff   :  { %5243 = vmatpush1.bf16.msra.mxu0 %v6945_v59  ;;  %5284 = vmatpush1.bf16.msra.mxu1 %v6946_v55  ;;  %v6964_v59 = vmov 0.0|0.0   ;;  %v5348_v55 = vld [vmem:[%s9880_s4 + $0x10] sm:$0xff] }
0x1b00   :  { %5244 = vmatprep.subr.bf16.mxu0 %v6947_v45  ;;  %5285 = vmatprep.subr.bf16.mxu1 %v6948_v57  ;;  %v5349_v45 = vld [vmem:[%s9880_s4 + $0x18] sm:$0xff] }
0x1b01   :  { %v5979_v57 = vpack.c.bf16 %v5349_v45, %v5348_v55 }
0x1b03   :  { %5245 = vmatpush1.bf16.msra.mxu0 %v6949_v40  ;;  %5286 = vmatpush1.bf16.msra.mxu1 %v6950_v58  ;;  %v5350_v40 = vld [vmem:[%s9880_s4 + $0x20] sm:$0xff]  ;;  %v5351_v58 = vld [vmem:[%s9880_s4 + $0x28] sm:$0xff] }
0x1b04   :  { %5246 = vmatprep.subr.bf16.mxu0 %v6951_v63  ;;  %5287 = vmatprep.subr.bf16.mxu1 %v6952_v35  ;;  %v5982_v63 = vpack.c.bf16 %v5351_v58, %v5350_v40  ;;  %v5352_v35 = vld [vmem:[%s9880_s4 + $0x30] sm:$0xff] }
0x1b07   :  { %5247 = vmatpush1.bf16.msra.mxu0 %v6953_v46  ;;  %5288 = vmatpush1.bf16.msra.mxu1 %v6954_v39  ;;  %v5353_v46 = vld [vmem:[%s9880_s4 + $0x38] sm:$0xff] }
0x1b08   :  { %5248 = vmatprep.subr.bf16.mxu0 %v6955_v26  ;;  %5289 = vmatprep.subr.bf16.mxu1 %v6956_v25  ;;  %v5985_v39 = vpack.c.bf16 %v5353_v46, %v5352_v35  ;;  %v5354_v26 = vld [vmem:[%s9880_s4 + $0x40] sm:$0xff]  ;;  %v5355_v25 = vld [vmem:[%s9880_s4 + $0x48] sm:$0xff] }
0x1b0b   :  { %5249 = vmatpush1.bf16.msra.mxu0 %v6957_v22  ;;  %5290 = vmatpush1.bf16.msra.mxu1 %v6958_v13  ;;  %v5988_v22 = vpack.c.bf16 %v5355_v25, %v5354_v26  ;;  %v5356_v13 = vld [vmem:[%s9880_s4 + $0x50] sm:$0xff] }
0x1b0c   :  { %5250 = vmatprep.subr.bf16.mxu0 %v6959_v28  ;;  %5291 = vmatprep.subr.bf16.mxu1 %v6960_v2  ;;  %v5357_v28 = vld [vmem:[%s9880_s4 + $0x58] sm:$0xff]  ;;  %v5358_v2 = vld [vmem:[%s9880_s4 + $0x60] sm:$0xff] }
0x1b0f   :  { %5251 = vmatpush1.bf16.msra.mxu0 %v6961_v56  ;;  %5292 = vmatpush1.bf16.msra.mxu1 %v6962_v10  ;;  %v5991_v56 = vpack.c.bf16 %v5357_v28, %v5356_v13  ;;  %v5359_v10 = vld [vmem:[%s9880_s4 + $0x68] sm:$0xff] }
0x1b10   :  { %5975 = vmatprep.subr.bf16.mxu0 %v6964_v59 }
0x1bc5   :  { %v5155_v33 = vpop.f32.mrb[152].mxu0  ;;  %v5196_v44 = vpop.f32.mrb[152].mxu1 }
0x1bc6   :  { %v5203_v36 = vadd.f32 %v5155_v33, %v4249_v49  ;;  %v5205_v32 = vadd.f32 %v5196_v44, %v4322_v27  ;;  %v5157_v38 = vpop.f32.mrb[153].mxu0  ;;  %v5198_v9 = vpop.f32.mrb[153].mxu1  ;;  %v5994_v49 = vpack.c.bf16 %v5359_v10, %v5358_v2  ;;  %v5361_v27 = vld [vmem:[%s9880_s4 + $0x78] sm:$0xff]  ;;  %v10024_v44 = vld [vmem:[#allocation25_spill] sm:$0xff] }
0x1bc7   :  { %v5204_v8 = vadd.f32 %v5157_v38, %v4251_v0  ;;  %v5206_v5 = vadd.f32 %v5198_v9, %v4324_v21  ;;  %v5159_v7 = vpop.f32.mrb[154].mxu0  ;;  %v5200_v41 = vpop.f32.mrb[154].mxu1  ;;  %v5997_v24 = vpack.c.bf16 %v5361_v27, %v5360_v48  ;;  %v10022_v0 = vld [vmem:[#allocation23_spill] sm:$0xff]  ;;  %v10023_v21 = vld [vmem:[#allocation24_spill] sm:$0xff] }
0x1bc8   :  { %v5916_v12 = vmul.f32 -1.442695, %v5203_v36  ;;  %v5160_v60 = vpop.f32.mrb[155].mxu0  ;;  %v5201_v14 = vpop.f32.mrb[155].mxu1  ;;  %v4253_v6 = vadd.f32 %v10022_v0, %v9396_v62  ;;  %v4326_v33 = vadd.f32 %v10023_v21, %v9419_v43  ;;  %v4255_v36 = vadd.f32 %v10024_v44, %v9507_v54 }
0x1bc9   :  { %v5918_v29 = vmul.f32 -1.442695, %v5204_v8  ;;  %v5917_v19 = vmul.f32 -1.442695, %v5206_v5 }
0x1bca   :  { %6803 = vpow2.f32 %v5916_v12 }
0x1bcb   :  { %6805 = vpow2.f32 %v5918_v29 }
0x1bcc   :  { %6807 = vpow2.f32 %v5917_v19 }
0x1bcd   :  { %6809 = vtanh.f32 %v5205_v32  ;;  %v10025_v32 = vld [vmem:[#allocation26_spill] sm:$0xff] }
0x1bce   :  { %v4328_v38 = vadd.f32 %v10025_v32, %v9402_v34 }
0x1bd4   :  { %v6804_v16 = vpop.eup %6803 }
0x1bd5   :  { %v6806_v20 = vpop.eup %6805  ;;  %v5210_v30 = vadd.f32 1.0, %v6804_v16 }
0x1bd6   :  { %v5223_v42 = vadd.f32 1.0, %v6806_v20  ;;  %v6808_v1 = vpop.eup %6807 }
0x1bd7   :  { %6811 = vrcp.f32 %v5210_v30  ;;  %v6810_v23 = vpop.eup %6809  ;;  %v5217_v11 = vadd.f32 1.0, %v6808_v1 }
0x1bd8   :  { %6813 = vrcp.f32 %v5223_v42 }
0x1bd9   :  { %6815 = vrcp.f32 %v5217_v11 }
0x1be1   :  { %v6812_v15 = vpop.eup %6811 }
0x1be2   :  { %v6814_v50 = vpop.eup %6813  ;;  %v5227_v31 = vmul.f32 %v6812_v15, %v6810_v23 }
0x1be3   :  { %v5226_v3 = vmul.f32 %v6814_v50, %v9706_v37  ;;  %v6816_v53 = vpop.eup %6815  ;;  %v5976_v37 = vpack.c.bf16 %v5347_v52, %v5346_v18  ;;  %v5922_v52 = vld [vmem:[%s9881_s5] ss:$0 sm:$0xff] }
0x1be5   :  { %v9810_v17 = vadd.f32 %v5227_v31, %v5226_v3 }
0x1be7   :  { %6817 = vtanh.f32 %v9810_v17 }
0x1bf1   :  { %v6818_v51 = vpop.eup %6817 }
0x1bf2   :  { %v5230_v47 = vmul.f32 %v6818_v51, %v6816_v53 }
0x1bf4   :  { %v5235_v61 = vpack.c.bf16 %v5230_v47, %v5230_v47 }
0x1bf6   :  { %5269 = vmatmul.mubr.bf16.vlgmr.msra.gmra.mrb[156].mxu0 %v5235_v61  ;;  %5310 = vmatmul.mubr.bf16.vlgmr.msra.gmra.mrb[156].mxu1 %v5235_v61 }
0x1bf7   :  { %5977 = vmatpush3.bf16.msra.mxu0 %v5976_v37  ;;  %5972 = vmatprep.mubr.msk.f32.mxu0 %vm6965_vm0, %v6966_v4 }
0x1bf8   :  { %5978 = vmatprep.subr.bf16.mxu0 %v6964_v59 }
0x1bfb   :  { %5980 = vmatpush3.bf16.msra.mxu0 %v5979_v57 }
0x1bfc   :  { %5981 = vmatprep.subr.bf16.mxu0 %v6964_v59 }
0x1bff   :  { %5983 = vmatpush3.bf16.msra.mxu0 %v5982_v63 }
0x1c00   :  { %5984 = vmatprep.subr.bf16.mxu0 %v6964_v59 }
0x1c03   :  { %5986 = vmatpush3.bf16.msra.mxu0 %v5985_v39 }
0x1c04   :  { %5987 = vmatprep.subr.bf16.mxu0 %v6964_v59 }
0x1c07   :  { %5989 = vmatpush3.bf16.msra.mxu0 %v5988_v22 }
0x1c08   :  { %5990 = vmatprep.subr.bf16.mxu0 %v6964_v59 }
0x1c0b   :  { %5992 = vmatpush3.bf16.msra.mxu0 %v5991_v56 }
0x1c0c   :  { %5993 = vmatprep.subr.bf16.mxu0 %v6964_v59 }
0x1c0f   :  { %5995 = vmatpush3.bf16.msra.mxu0 %v5994_v49 }
0x1c10   :  { %5996 = vmatprep.subr.bf16.mxu0 %v6964_v59 }
0x1c13   :  { %5998 = vmatpush3.bf16.msra.mxu0 %v5997_v24 }
0x1cc9   :  { %v5270_v9 = vpop.f32.mrb[156].mxu0  ;;  %v5311_v8 = vpop.f32.mrb[156].mxu1 }
0x1cca   :  { %v5318_v5 = vadd.f32 %v5270_v9, %v4253_v6  ;;  %v5320_v7 = vadd.f32 %v5311_v8, %v4326_v33  ;;  %v5272_v41 = vpop.f32.mrb[157].mxu0  ;;  %v5313_v12 = vpop.f32.mrb[157].mxu1 }
0x1ccb   :  { %v5319_v60 = vadd.f32 %v5272_v41, %v4255_v36  ;;  %v5321_v14 = vadd.f32 %v5313_v12, %v4328_v38  ;;  %v5274_v29 = vpop.f32.mrb[158].mxu0  ;;  %v5315_v19 = vpop.f32.mrb[158].mxu1 }
0x1ccc   :  { %v5919_v62 = vmul.f32 -1.442695, %v5318_v5  ;;  %v5275_v16 = vpop.f32.mrb[159].mxu0  ;;  %v5316_v20 = vpop.f32.mrb[159].mxu1 }
0x1ccd   :  { %v5921_v43 = vmul.f32 -1.442695, %v5319_v60  ;;  %v5920_v54 = vmul.f32 -1.442695, %v5321_v14 }
0x1cce   :  { %6819 = vpow2.f32 %v5919_v62 }
0x1ccf   :  { %6821 = vpow2.f32 %v5921_v43 }
0x1cd0   :  { %6823 = vpow2.f32 %v5920_v54 }
0x1cd1   :  { %6825 = vtanh.f32 %v5320_v7 }
0x1cd8   :  { %v6820_v30 = vpop.eup %6819 }
0x1cd9   :  { %v6822_v42 = vpop.eup %6821  ;;  %v5325_v34 = vadd.f32 1.0, %v6820_v30 }
0x1cda   :  { %v5338_v1 = vadd.f32 1.0, %v6822_v42  ;;  %v6824_v23 = vpop.eup %6823 }
0x1cdb   :  { %6827 = vrcp.f32 %v5325_v34  ;;  %v6826_v15 = vpop.eup %6825  ;;  %v5332_v3 = vadd.f32 1.0, %v6824_v23 }
0x1cdc   :  { %6829 = vrcp.f32 %v5338_v1 }
0x1cdd   :  { %6831 = vrcp.f32 %v5332_v3 }
0x1ce5   :  { %v6828_v50 = vpop.eup %6827 }
0x1ce6   :  { %v6830_v31 = vpop.eup %6829  ;;  %v5342_v11 = vmul.f32 %v6828_v50, %v6826_v15 }
0x1ce7   :  { %v5341_v53 = vmul.f32 %v6830_v31, %v9810_v17  ;;  %v6832_v47 = vpop.eup %6831 }
0x1ce9   :  { %v5343_v51 = vadd.f32 %v5342_v11, %v5341_v53 }
0x1ceb   :  { %6833 = vtanh.f32 %v5343_v51 }
0x1cf5   :  { %v6834_v61 = vpop.eup %6833 }
0x1cf6   :  { %v5345_v18 = vmul.f32 %v6834_v61, %v6832_v47 }
0x1cf8   :  { %5973 = vmatmul.mubr.f32.vlgmr.msra.gmra.mrb[160].mxu0 %v5345_v18 }
0x1dcb   :  { %v5435_v37 = vpop.f32.mrb[160].mxu0 }
0x1dcc   :  { %v5436_v59 = vadd.f32 %v5922_v52, %v5435_v37  ;;  %v5974_v55 = vpop.f32.mrb[161].mxu0 }
0x1dce   :  { %5439 = vst [vmem:[%s9882_s6] sm:$0xff] %v5436_v59 }

</bundles_post_ra>
